<compile_context>
chip_gen: v6e
topology: v6e:2x2x1
jax: 0.10.0
libtpu: 0.0.40
codegen_flags: <defaults>
</compile_context>

<pallas_src>
import functools
import math

import numpy as np
import jax
import jax.numpy as jnp
from jax import lax
from jax.experimental import pallas as pl
from jax.experimental.pallas import tpu as pltpu

# ---------------- config (small shapes consistent with the module) ----------------
SEQ_LEN   = 24
LABEL_LEN = 24            # MICN requires label_len == seq_len for shape consistency
PRED_LEN  = 12
ENC_IN    = 4
C_OUT     = 4
D_MODEL   = 32
CONV_KERNEL   = [12, 16]
DECOMP_KERNEL = [k + 1 if k % 2 == 0 else k for k in CONV_KERNEL]                 # [13, 17]
ISO_KERNEL    = [(SEQ_LEN + PRED_LEN + k) // k if k % 2 == 0
                 else (SEQ_LEN + PRED_LEN + k - 1) // k for k in CONV_KERNEL]      # [4, 3]
L_DEC    = LABEL_LEN + PRED_LEN                                                    # 36
N_BRANCH = len(CONV_KERNEL)

SUB   = 8     # sublane-aligned tap-slab height for down / isometric conv gathers
L_PAD = 40    # L_DEC (36) padded to a multiple of 8 for the transposed-conv scatter


# ---------------------------- kernel helpers ----------------------------
def _layer_norm(v, g, b):
    mu = jnp.mean(v, axis=-1, keepdims=True)
    vc = v - mu
    var = jnp.mean(vc * vc, axis=-1, keepdims=True)
    return vc * lax.rsqrt(var + 1e-5) * g + b


def _mxu(a, b):
    # bf16 x bf16 MXU matmul with f32 accumulation (casts are no-ops for bf16 refs).
    return jnp.dot(a.astype(jnp.bfloat16), b.astype(jnp.bfloat16),
                   preferred_element_type=jnp.float32)


# ---------------------------- the fused Pallas kernel ----------------------------
def _micn_kernel(*refs):
    (x_ref, dm_ref, m12_ref, regw_ref, regb_ref,
     b0_ref, b1_ref, b2_ref, tw0_ref, tw1_ref, tw2_ref, emb_ref) = refs[:12]
    branch_refs = [refs[12 + 10 * i: 12 + 10 * (i + 1)] for i in range(N_BRANCH)]
    (normg_ref, normb_ref, mergew_ref, mergeb_ref,
     n1g_ref, n1b_ref, c1w_ref, c1b_ref, c2w_ref, c2b_ref,
     n2g_ref, n2b_ref, projw_ref, projb_ref, out_ref) = refs[12 + 10 * N_BRANCH:]

    x = x_ref[...]                                         # (SEQ_LEN, ENC_IN) f32

    # ---- encoder: softmax-weighted multi-kernel series decomposition ----
    mm = _mxu(m12_ref[...], x)                             # (2*SEQ, Cin): both moving avgs
    m1 = mm[0:SEQ_LEN, :]
    m2 = mm[SEQ_LEN:2 * SEQ_LEN, :]
    dm = dm_ref[...]                                       # (2, Cin): rows = [dw ; db]
    w1 = 1.0 / (1.0 + jnp.exp(-(x * dm[0:1, :] + dm[1:2, :])))
    trend = m2 + (m1 - m2) * w1                            # (SEQ, Cin)
    sd = x - trend                                         # seasonal_init_enc
    trend_out = _mxu(regw_ref[...], trend) + regb_ref[...]  # (PRED, Cin)

    # ---- decoder seasonal input + DataEmbedding (token conv k=3, circular pad) ----
    dec = (_mxu(_mxu(b0_ref[...], sd), tw0_ref[...])
           + _mxu(_mxu(b1_ref[...], sd), tw1_ref[...])
           + _mxu(_mxu(b2_ref[...], sd), tw2_ref[...])
           + emb_ref[...])                                 # (L_DEC, D_MODEL) f32
    dec16 = dec.astype(jnp.bfloat16)

    norm_g = normg_ref[...]
    norm_b = normb_ref[...]

    # ---- MIC layer: both conv_kernel branches, per-tap conv accumulation ----
    branch_outs = []
    for i, brefs in enumerate(branch_refs):
        (cdec_ref, g_ref, wc_ref, bc_ref, si_ref, vi_ref, bi_ref,
         wt_ref, bt_ref, p_ref) = brefs
        ck = CONV_KERNEL[i]
        ik = ISO_KERNEL[i]

        s = _mxu(cdec_ref[...], dec16)                     # per-branch series_decomp seasonal
        s16 = s.astype(jnp.bfloat16)

        # Conv1d(C, C, ck, pad=ck//2, stride=ck) + tanh  (per-tap gather + weight matmul)
        x1 = jnp.zeros((SUB, D_MODEL), jnp.float32)
        for j in range(ck):
            g = _mxu(g_ref[SUB * j:SUB * (j + 1), :], s16)
            x1 = x1 + _mxu(g, wc_ref[D_MODEL * j:D_MODEL * (j + 1), :])
        x1 = jnp.tanh(x1 + bc_ref[...])
        x1_16 = x1.astype(jnp.bfloat16)

        # isometric Conv1d (zero front pad, valid) + tanh
        xi = jnp.zeros((SUB, D_MODEL), jnp.float32)
        for j in range(ik):
            g = _mxu(si_ref[SUB * j:SUB * (j + 1), :], x1_16)
            xi = xi + _mxu(g, vi_ref[D_MODEL * j:D_MODEL * (j + 1), :])
        xi = jnp.tanh(xi + bi_ref[...])
        xn = _layer_norm(xi + x1, norm_g, norm_b)
        xn16 = xn.astype(jnp.bfloat16)

        # ConvTranspose1d(C, C, ck, stride=ck) + tanh, truncated to L_DEC (0/1 scatter)
        xt = jnp.zeros((L_PAD, D_MODEL), jnp.float32)
        for j in range(ck):
            y = _mxu(xn16, wt_ref[D_MODEL * j:D_MODEL * (j + 1), :])
            xt = xt + _mxu(p_ref[L_PAD * j:L_PAD * (j + 1), :], y)
        xt = jnp.tanh(xt[0:L_DEC, :] + bt_ref[...])
        branch_outs.append(_layer_norm(xt + s, norm_g, norm_b))

    # merge Conv2d(C, C, (n_branch, 1)) over lane-stacked branch channels
    mg = _mxu(jnp.concatenate(branch_outs, axis=1), mergew_ref[...]) + mergeb_ref[...]

    # point-wise feed-forward (no activation, matches MICN source) + residual norms
    y = _layer_norm(mg, n1g_ref[...], n1b_ref[...])
    y = _mxu(y, c1w_ref[...]) + c1b_ref[...]
    y = _mxu(y, c2w_ref[...]) + c2b_ref[...]
    mic = _layer_norm(mg + y, n2g_ref[...], n2b_ref[...])

    # projection on the last PRED_LEN positions only + trend add
    out_ref[...] = (_mxu(mic[L_DEC - PRED_LEN:L_DEC, :], projw_ref[...])
                    + projb_ref[...] + trend_out)


# ---------------------------- constant selection matrices ----------------------------
def _mavg_matrix(L, k):
    """Replicate-pad + AvgPool1d(k, stride=1) as an (L, L) matrix."""
    p = (k - 1) // 2
    M = np.zeros((L, L), np.float32)
    for i in range(L):
        for j in range(k):
            t = min(max(i + j - p, 0), L - 1)
            M[i, t] += 1.0 / k
    return M


def _positional_embedding(L, d):
    pos = np.arange(L, dtype=np.float32)[:, None]
    div = np.exp(np.arange(0, d, 2, dtype=np.float32) * (-math.log(10000.0) / d))
    pe = np.zeros((L, d), np.float32)
    pe[:, 0::2] = np.sin(pos * div)
    pe[:, 1::2] = np.cos(pos * div)
    return pe


def build_consts():
    """All parameter-free selection / averaging matrices, built once per SINGLE batch."""
    # stacked encoder moving averages (both decomp kernels)
    m12 = np.concatenate([_mavg_matrix(SEQ_LEN, k) for k in DECOMP_KERNEL], axis=0)
    # seasonal decoder-input builder: [seasonal_enc[-label:], zeros(pred)]
    sel = np.zeros((L_DEC, SEQ_LEN), np.float32)
    for r in range(LABEL_LEN):
        sel[r, SEQ_LEN - LABEL_LEN + r] = 1.0
    # fold the circular +/-1 shifts of the k=3 token-embedding conv into the selection
    shm = np.zeros((L_DEC, L_DEC), np.float32)
    shp = np.zeros((L_DEC, L_DEC), np.float32)
    for t in range(L_DEC):
        shm[t, (t - 1) % L_DEC] = 1.0
        shp[t, (t + 1) % L_DEC] = 1.0
    b0, b1, b2 = shm @ sel, sel, shp @ sel
    # constant part of the embedding: positional table + normalized time index
    pe = _positional_embedding(L_DEC, D_MODEL)
    xmark = np.concatenate([(np.arange(SEQ_LEN, dtype=np.float32) / SEQ_LEN)[-LABEL_LEN:],
                            np.arange(PRED_LEN, dtype=np.float32) / PRED_LEN])[:, None]

    branches = []
    for ck, ik, dk in zip(CONV_KERNEL, ISO_KERNEL, DECOMP_KERNEL):
        pad = ck // 2
        l_ds = (L_DEC + 2 * pad - ck) // ck + 1
        c_dec = np.eye(L_DEC, dtype=np.float32) - _mavg_matrix(L_DEC, dk)
        # strided down-conv gather, one 8-row slab per tap (rows >= l_ds stay zero)
        g = np.zeros((ck * SUB, L_DEC), np.float32)
        for j in range(ck):
            for l in range(l_ds):
                t = l * ck + j - pad
                if 0 <= t < L_DEC:
                    g[j * SUB + l, t] = 1.0
        # isometric conv gather (zero front pad of length l_ds-1, valid conv)
        s_iso = np.zeros((ik * SUB, SUB), np.float32)
        for j in range(ik):
            for l in range(l_ds):
                t = l + j - (l_ds - 1)
                if 0 <= t < l_ds:
                    s_iso[j * SUB + l, t] = 1.0
        # transposed-conv scatter (stride == kernel), one 40-row slab per tap
        p_up = np.zeros((ck * L_PAD, SUB), np.float32)
        for j in range(ck):
            for l in range(l_ds):
                t = l * ck + j
                if t < L_DEC:
                    p_up[j * L_PAD + t, l] = 1.0
        branches.append(dict(c_dec=jnp.asarray(c_dec, jnp.bfloat16),
                             g_down=jnp.asarray(g),
                             s_iso=jnp.asarray(s_iso),
                             p_up=jnp.asarray(p_up)))

    return dict(m12=jnp.asarray(m12, jnp.bfloat16),
                b0=jnp.asarray(b0, jnp.bfloat16),
                b1=jnp.asarray(b1, jnp.bfloat16),
                b2=jnp.asarray(b2, jnp.bfloat16),
                pe=jnp.asarray(pe),
                xmark=jnp.asarray(xmark),
                branch=branches)


# ---------------------------- deterministic parameter init ----------------------------
def init_params(key):
    keys = iter(jax.random.split(key, 64))

    def w(shape, scale=0.02):
        return scale * jax.random.normal(next(keys), shape, jnp.float32)

    C = D_MODEL
    tok_t = w((C, ENC_IN, 3))                     # TokenEmbedding Conv1d weight (C, Cin, 3)
    branches = []
    for ck, ik in zip(CONV_KERNEL, ISO_KERNEL):
        conv_t = w((C, C, ck))                    # Conv1d weight (C_out, C_in, ck)
        iso_t = w((C, C, ik))
        tr_t = w((C, C, ck))                      # ConvTranspose1d weight (C_in, C_out, ck)
        branches.append(dict(
            wc=jnp.concatenate([conv_t[:, :, j].T for j in range(ck)], axis=0
                               ).astype(jnp.bfloat16),     # (ck*C, C): tap slabs of 32 rows
            bc=w((1, C)),
            vi=jnp.concatenate([iso_t[:, :, j].T for j in range(ik)], axis=0
                               ).astype(jnp.bfloat16),
            bi=w((1, C)),
            wt=jnp.concatenate([tr_t[:, :, j] for j in range(ck)], axis=0
                               ).astype(jnp.bfloat16),
            bt=w((1, C)),
        ))
    merge_t = w((C, C, N_BRANCH))                 # Conv2d weight (C_out, C_in, n_branch, 1)
    dm_w = w((2,))                                # series_decomp_multi Linear(1, 2)
    dm_b = w((2,))
    dm_ab = jnp.stack([jnp.full((ENC_IN,), dm_w[0] - dm_w[1], jnp.float32),
                       jnp.full((ENC_IN,), dm_b[0] - dm_b[1], jnp.float32)], axis=0)

    return dict(
        dm_ab=dm_ab,
        tok_w=[tok_t[:, :, j].T.astype(jnp.bfloat16) for j in range(3)],
        temp_w=w((1, C)),                         # TimeFeatureEmbedding Linear(1, d_model).W^T
        reg_w=jnp.full((PRED_LEN, SEQ_LEN), 1.0 / PRED_LEN, jnp.bfloat16),
        reg_b=jnp.zeros((PRED_LEN, 1), jnp.float32),
        branch=branches,                          # d_layers = 1 (single MIC layer)
        norm_g=jnp.ones((1, C)), norm_b=jnp.zeros((1, C)),
        merge_w=jnp.concatenate([merge_t[:, :, k].T for k in range(N_BRANCH)], axis=0
                                ).astype(jnp.bfloat16),
        merge_b=w((1, C)),
        norm1_g=jnp.ones((1, C)), norm1_b=jnp.zeros((1, C)),
        conv1_w=w((4 * C, C)).T.astype(jnp.bfloat16), conv1_b=w((1, 4 * C)),
        conv2_w=w((C, 4 * C)).T.astype(jnp.bfloat16), conv2_b=w((1, C)),
        norm2_g=jnp.ones((1, C)), norm2_b=jnp.zeros((1, C)),
        proj_w=w((C_OUT, C)).T.astype(jnp.bfloat16), proj_b=w((1, C_OUT)),
    )


# ---------------------------- Model forward (forecast) ----------------------------
def micn_forecast(x, params, consts):
    B = x.shape[0]
    # constant additive embedding (temporal + positional), single (L_DEC, D_MODEL) table
    emb_add = consts["pe"] + consts["xmark"] @ params["temp_w"]

    args, in_specs = [], []

    def add(a, spec):
        args.append(a)
        in_specs.append(spec)

    def addc(a):  # constant / weight: stays VMEM-resident across grid steps
        add(a, pl.BlockSpec(a.shape, lambda b: (0, 0)))

    add(x.astype(jnp.float32),
        pl.BlockSpec((None, SEQ_LEN, ENC_IN), lambda b: (b, 0, 0)))
    addc(params["dm_ab"])
    addc(consts["m12"])
    addc(params["reg_w"])
    addc(params["reg_b"])
    addc(consts["b0"]); addc(consts["b1"]); addc(consts["b2"])
    for j in range(3):
        addc(params["tok_w"][j])
    addc(emb_add)
    for bp, cc in zip(params["branch"], consts["branch"]):
        addc(cc["c_dec"]); addc(cc["g_down"]); addc(bp["wc"]); addc(bp["bc"])
        addc(cc["s_iso"]); addc(bp["vi"]); addc(bp["bi"])
        addc(bp["wt"]); addc(bp["bt"]); addc(cc["p_up"])
    for name in ["norm_g", "norm_b", "merge_w", "merge_b",
                 "norm1_g", "norm1_b", "conv1_w", "conv1_b",
                 "conv2_w", "conv2_b", "norm2_g", "norm2_b",
                 "proj_w", "proj_b"]:
        addc(params[name])

    bytes_accessed = (sum(int(np.prod(a.shape)) * a.dtype.itemsize for a in args)
                      + B * PRED_LEN * C_OUT * 4)
    cost = pl.CostEstimate(flops=3_300_000 * B, transcendentals=5_000 * B,
                           bytes_accessed=int(bytes_accessed))

    out = pl.pallas_call(
        _micn_kernel,
        grid=(B,),
        in_specs=in_specs,
        out_specs=pl.BlockSpec((None, PRED_LEN, C_OUT), lambda b: (b, 0, 0)),
        out_shape=jax.ShapeDtypeStruct((B, PRED_LEN, C_OUT), jnp.float32),
        compiler_params=pltpu.CompilerParams(
            dimension_semantics=("parallel",),
            vmem_limit_bytes=32 * 1024 * 1024),
        cost_estimate=cost,
    )(*args)
    return out


if __name__ == "__main__":
    key = jax.random.PRNGKey(0)
    pkey, xkey = jax.random.split(key)
    B = 2
    params = init_params(pkey)
    consts = build_consts()
    x = jax.random.normal(xkey, (B, SEQ_LEN, ENC_IN), jnp.float32)
    fwd = jax.jit(micn_forecast)
    out = jax.block_until_ready(fwd(x, params, consts))
    assert out.shape == (B, PRED_LEN, C_OUT)
    assert bool(jnp.all(jnp.isfinite(out)))
    print("KERNEL_OK")
</pallas_src>

<mosaic_0001>
module attributes {stable_mosaic.version = 11 : i64} {
  func.func @_micn_kernel(%arg0: i32, %arg1: memref<1x24x4xf32, #tpu.memory_space<vmem>>, %arg2: memref<2x4xf32, #tpu.memory_space<vmem>>, %arg3: memref<48x24xbf16, #tpu.memory_space<vmem>>, %arg4: memref<12x24xbf16, #tpu.memory_space<vmem>>, %arg5: memref<12x1xf32, #tpu.memory_space<vmem>>, %arg6: memref<36x24xbf16, #tpu.memory_space<vmem>>, %arg7: memref<36x24xbf16, #tpu.memory_space<vmem>>, %arg8: memref<36x24xbf16, #tpu.memory_space<vmem>>, %arg9: memref<4x32xbf16, #tpu.memory_space<vmem>>, %arg10: memref<4x32xbf16, #tpu.memory_space<vmem>>, %arg11: memref<4x32xbf16, #tpu.memory_space<vmem>>, %arg12: memref<36x32xf32, #tpu.memory_space<vmem>>, %arg13: memref<36x36xbf16, #tpu.memory_space<vmem>>, %arg14: memref<96x36xf32, #tpu.memory_space<vmem>>, %arg15: memref<384x32xbf16, #tpu.memory_space<vmem>>, %arg16: memref<1x32xf32, #tpu.memory_space<vmem>>, %arg17: memref<32x8xf32, #tpu.memory_space<vmem>>, %arg18: memref<128x32xbf16, #tpu.memory_space<vmem>>, %arg19: memref<1x32xf32, #tpu.memory_space<vmem>>, %arg20: memref<384x32xbf16, #tpu.memory_space<vmem>>, %arg21: memref<1x32xf32, #tpu.memory_space<vmem>>, %arg22: memref<480x8xf32, #tpu.memory_space<vmem>>, %arg23: memref<36x36xbf16, #tpu.memory_space<vmem>>, %arg24: memref<128x36xf32, #tpu.memory_space<vmem>>, %arg25: memref<512x32xbf16, #tpu.memory_space<vmem>>, %arg26: memref<1x32xf32, #tpu.memory_space<vmem>>, %arg27: memref<24x8xf32, #tpu.memory_space<vmem>>, %arg28: memref<96x32xbf16, #tpu.memory_space<vmem>>, %arg29: memref<1x32xf32, #tpu.memory_space<vmem>>, %arg30: memref<512x32xbf16, #tpu.memory_space<vmem>>, %arg31: memref<1x32xf32, #tpu.memory_space<vmem>>, %arg32: memref<640x8xf32, #tpu.memory_space<vmem>>, %arg33: memref<1x32xf32, #tpu.memory_space<vmem>>, %arg34: memref<1x32xf32, #tpu.memory_space<vmem>>, %arg35: memref<64x32xbf16, #tpu.memory_space<vmem>>, %arg36: memref<1x32xf32, #tpu.memory_space<vmem>>, %arg37: memref<1x32xf32, #tpu.memory_space<vmem>>, %arg38: memref<1x32xf32, #tpu.memory_space<vmem>>, %arg39: memref<32x128xbf16, #tpu.memory_space<vmem>>, %arg40: memref<1x128xf32, #tpu.memory_space<vmem>>, %arg41: memref<128x32xbf16, #tpu.memory_space<vmem>>, %arg42: memref<1x32xf32, #tpu.memory_space<vmem>>, %arg43: memref<1x32xf32, #tpu.memory_space<vmem>>, %arg44: memref<1x32xf32, #tpu.memory_space<vmem>>, %arg45: memref<32x4xbf16, #tpu.memory_space<vmem>>, %arg46: memref<1x4xf32, #tpu.memory_space<vmem>>, %arg47: memref<1x12x4xf32, #tpu.memory_space<vmem>>) attributes {dimension_semantics = [#tpu.dimension_semantics<parallel>], iteration_bounds = array<i64: 2>, scalar_prefetch = 0 : i64, scratch_operands = 0 : i64, tpu.core_type = #tpu.core_type<tc>, window_params = [{transform_indices = @transform_0, window_bounds = array<i64: 1, 24, 4>}, {pipeline_mode = #tpu.pipeline_mode<synchronous>, transform_indices = @transform_1, window_bounds = array<i64: 2, 4>}, {pipeline_mode = #tpu.pipeline_mode<synchronous>, transform_indices = @transform_2, window_bounds = array<i64: 48, 24>}, {pipeline_mode = #tpu.pipeline_mode<synchronous>, transform_indices = @transform_3, window_bounds = array<i64: 12, 24>}, {pipeline_mode = #tpu.pipeline_mode<synchronous>, transform_indices = @transform_4, window_bounds = array<i64: 12, 1>}, {pipeline_mode = #tpu.pipeline_mode<synchronous>, transform_indices = @transform_5, window_bounds = array<i64: 36, 24>}, {pipeline_mode = #tpu.pipeline_mode<synchronous>, transform_indices = @transform_6, window_bounds = array<i64: 36, 24>}, {pipeline_mode = #tpu.pipeline_mode<synchronous>, transform_indices = @transform_7, window_bounds = array<i64: 36, 24>}, {pipeline_mode = #tpu.pipeline_mode<synchronous>, transform_indices = @transform_8, window_bounds = array<i64: 4, 32>}, {pipeline_mode = #tpu.pipeline_mode<synchronous>, transform_indices = @transform_9, window_bounds = array<i64: 4, 32>}, {pipeline_mode = #tpu.pipeline_mode<synchronous>, transform_indices = @transform_10, window_bounds = array<i64: 4, 32>}, {pipeline_mode = #tpu.pipeline_mode<synchronous>, transform_indices = @transform_11, window_bounds = array<i64: 36, 32>}, {pipeline_mode = #tpu.pipeline_mode<synchronous>, transform_indices = @transform_12, window_bounds = array<i64: 36, 36>}, {pipeline_mode = #tpu.pipeline_mode<synchronous>, transform_indices = @transform_13, window_bounds = array<i64: 96, 36>}, {pipeline_mode = #tpu.pipeline_mode<synchronous>, transform_indices = @transform_14, window_bounds = array<i64: 384, 32>}, {pipeline_mode = #tpu.pipeline_mode<synchronous>, transform_indices = @transform_15, window_bounds = array<i64: 1, 32>}, {pipeline_mode = #tpu.pipeline_mode<synchronous>, transform_indices = @transform_16, window_bounds = array<i64: 32, 8>}, {pipeline_mode = #tpu.pipeline_mode<synchronous>, transform_indices = @transform_17, window_bounds = array<i64: 128, 32>}, {pipeline_mode = #tpu.pipeline_mode<synchronous>, transform_indices = @transform_18, window_bounds = array<i64: 1, 32>}, {pipeline_mode = #tpu.pipeline_mode<synchronous>, transform_indices = @transform_19, window_bounds = array<i64: 384, 32>}, {pipeline_mode = #tpu.pipeline_mode<synchronous>, transform_indices = @transform_20, window_bounds = array<i64: 1, 32>}, {pipeline_mode = #tpu.pipeline_mode<synchronous>, transform_indices = @transform_21, window_bounds = array<i64: 480, 8>}, {pipeline_mode = #tpu.pipeline_mode<synchronous>, transform_indices = @transform_22, window_bounds = array<i64: 36, 36>}, {pipeline_mode = #tpu.pipeline_mode<synchronous>, transform_indices = @transform_23, window_bounds = array<i64: 128, 36>}, {pipeline_mode = #tpu.pipeline_mode<synchronous>, transform_indices = @transform_24, window_bounds = array<i64: 512, 32>}, {pipeline_mode = #tpu.pipeline_mode<synchronous>, transform_indices = @transform_25, window_bounds = array<i64: 1, 32>}, {pipeline_mode = #tpu.pipeline_mode<synchronous>, transform_indices = @transform_26, window_bounds = array<i64: 24, 8>}, {pipeline_mode = #tpu.pipeline_mode<synchronous>, transform_indices = @transform_27, window_bounds = array<i64: 96, 32>}, {pipeline_mode = #tpu.pipeline_mode<synchronous>, transform_indices = @transform_28, window_bounds = array<i64: 1, 32>}, {pipeline_mode = #tpu.pipeline_mode<synchronous>, transform_indices = @transform_29, window_bounds = array<i64: 512, 32>}, {pipeline_mode = #tpu.pipeline_mode<synchronous>, transform_indices = @transform_30, window_bounds = array<i64: 1, 32>}, {pipeline_mode = #tpu.pipeline_mode<synchronous>, transform_indices = @transform_31, window_bounds = array<i64: 640, 8>}, {pipeline_mode = #tpu.pipeline_mode<synchronous>, transform_indices = @transform_32, window_bounds = array<i64: 1, 32>}, {pipeline_mode = #tpu.pipeline_mode<synchronous>, transform_indices = @transform_33, window_bounds = array<i64: 1, 32>}, {pipeline_mode = #tpu.pipeline_mode<synchronous>, transform_indices = @transform_34, window_bounds = array<i64: 64, 32>}, {pipeline_mode = #tpu.pipeline_mode<synchronous>, transform_indices = @transform_35, window_bounds = array<i64: 1, 32>}, {pipeline_mode = #tpu.pipeline_mode<synchronous>, transform_indices = @transform_36, window_bounds = array<i64: 1, 32>}, {pipeline_mode = #tpu.pipeline_mode<synchronous>, transform_indices = @transform_37, window_bounds = array<i64: 1, 32>}, {pipeline_mode = #tpu.pipeline_mode<synchronous>, transform_indices = @transform_38, window_bounds = array<i64: 32, 128>}, {pipeline_mode = #tpu.pipeline_mode<synchronous>, transform_indices = @transform_39, window_bounds = array<i64: 1, 128>}, {pipeline_mode = #tpu.pipeline_mode<synchronous>, transform_indices = @transform_40, window_bounds = array<i64: 128, 32>}, {pipeline_mode = #tpu.pipeline_mode<synchronous>, transform_indices = @transform_41, window_bounds = array<i64: 1, 32>}, {pipeline_mode = #tpu.pipeline_mode<synchronous>, transform_indices = @transform_42, window_bounds = array<i64: 1, 32>}, {pipeline_mode = #tpu.pipeline_mode<synchronous>, transform_indices = @transform_43, window_bounds = array<i64: 1, 32>}, {pipeline_mode = #tpu.pipeline_mode<synchronous>, transform_indices = @transform_44, window_bounds = array<i64: 32, 4>}, {pipeline_mode = #tpu.pipeline_mode<synchronous>, transform_indices = @transform_45, window_bounds = array<i64: 1, 4>}, {transform_indices = @transform_46, window_bounds = array<i64: 1, 12, 4>}]} {
    %c0 = arith.constant 0 : index
    %c0_0 = arith.constant 0 : index
    %c0_1 = arith.constant 0 : index
    %0 = vector.load %arg1[%c0, %c0_0, %c0_1] : memref<1x24x4xf32, #tpu.memory_space<vmem>>, vector<1x24x4xf32>
    %1 = vector.shape_cast %0 : vector<1x24x4xf32> to vector<24x4xf32>
    %c0_2 = arith.constant 0 : index
    %c0_3 = arith.constant 0 : index
    %2 = vector.load %arg3[%c0_2, %c0_3] : memref<48x24xbf16, #tpu.memory_space<vmem>>, vector<48x24xbf16>
    %3 = arith.truncf %1 : vector<24x4xf32> to vector<24x4xbf16>
    %cst = arith.constant dense<0.000000e+00> : vector<48x4xf32>
    %4 = tpu.matmul %2, %3, %cst {dimension_numbers = #tpu.dot_dimension_numbers<[1], [0], [0], [1], [0, 0, 1, 1], [], []>} : vector<48x24xbf16>, vector<24x4xbf16>, vector<48x4xf32> -> vector<48x4xf32>
    %5 = vector.extract_strided_slice %4 {offsets = [0, 0], sizes = [24, 4], strides = [1, 1]} : vector<48x4xf32> to vector<24x4xf32>
    %6 = vector.extract_strided_slice %4 {offsets = [24, 0], sizes = [24, 4], strides = [1, 1]} : vector<48x4xf32> to vector<24x4xf32>
    %c0_4 = arith.constant 0 : index
    %c0_5 = arith.constant 0 : index
    %7 = vector.load %arg2[%c0_4, %c0_5] : memref<2x4xf32, #tpu.memory_space<vmem>>, vector<2x4xf32>
    %8 = vector.extract_strided_slice %7 {offsets = [0, 0], sizes = [1, 4], strides = [1, 1]} : vector<2x4xf32> to vector<1x4xf32>
    %9 = vector.broadcast %8 : vector<1x4xf32> to vector<24x4xf32>
    %10 = arith.mulf %1, %9 : vector<24x4xf32>
    %11 = vector.extract_strided_slice %7 {offsets = [1, 0], sizes = [1, 4], strides = [1, 1]} : vector<2x4xf32> to vector<1x4xf32>
    %12 = vector.broadcast %11 : vector<1x4xf32> to vector<24x4xf32>
    %13 = arith.addf %10, %12 : vector<24x4xf32>
    %cst_6 = arith.constant 0.000000e+00 : f32
    %14 = vector.broadcast %cst_6 : f32 to vector<24x4xf32>
    %15 = arith.subf %14, %13 : vector<24x4xf32>
    %16 = math.exp %15 : vector<24x4xf32>
    %cst_7 = arith.constant 1.000000e+00 : f32
    %17 = vector.broadcast %cst_7 : f32 to vector<24x4xf32>
    %18 = arith.addf %17, %16 : vector<24x4xf32>
    %cst_8 = arith.constant 1.000000e+00 : f32
    %19 = vector.broadcast %cst_8 : f32 to vector<24x4xf32>
    %20 = arith.divf %19, %18 : vector<24x4xf32>
    %21 = arith.subf %5, %6 : vector<24x4xf32>
    %22 = arith.mulf %21, %20 : vector<24x4xf32>
    %23 = arith.addf %6, %22 : vector<24x4xf32>
    %24 = arith.subf %1, %23 : vector<24x4xf32>
    %c0_9 = arith.constant 0 : index
    %c0_10 = arith.constant 0 : index
    %25 = vector.load %arg4[%c0_9, %c0_10] : memref<12x24xbf16, #tpu.memory_space<vmem>>, vector<12x24xbf16>
    %26 = arith.truncf %23 : vector<24x4xf32> to vector<24x4xbf16>
    %cst_11 = arith.constant dense<0.000000e+00> : vector<12x4xf32>
    %27 = tpu.matmul %25, %26, %cst_11 {dimension_numbers = #tpu.dot_dimension_numbers<[1], [0], [0], [1], [0, 0, 1, 1], [], []>} : vector<12x24xbf16>, vector<24x4xbf16>, vector<12x4xf32> -> vector<12x4xf32>
    %c0_12 = arith.constant 0 : index
    %c0_13 = arith.constant 0 : index
    %28 = vector.load %arg5[%c0_12, %c0_13] : memref<12x1xf32, #tpu.memory_space<vmem>>, vector<12x1xf32>
    %29 = vector.broadcast %28 : vector<12x1xf32> to vector<12x4xf32>
    %30 = arith.addf %27, %29 : vector<12x4xf32>
    %c0_14 = arith.constant 0 : index
    %c0_15 = arith.constant 0 : index
    %31 = vector.load %arg6[%c0_14, %c0_15] : memref<36x24xbf16, #tpu.memory_space<vmem>>, vector<36x24xbf16>
    %32 = arith.truncf %24 : vector<24x4xf32> to vector<24x4xbf16>
    %cst_16 = arith.constant dense<0.000000e+00> : vector<36x4xf32>
    %33 = tpu.matmul %31, %32, %cst_16 {dimension_numbers = #tpu.dot_dimension_numbers<[1], [0], [0], [1], [0, 0, 1, 1], [], []>} : vector<36x24xbf16>, vector<24x4xbf16>, vector<36x4xf32> -> vector<36x4xf32>
    %c0_17 = arith.constant 0 : index
    %c0_18 = arith.constant 0 : index
    %34 = vector.load %arg9[%c0_17, %c0_18] : memref<4x32xbf16, #tpu.memory_space<vmem>>, vector<4x32xbf16>
    %35 = arith.truncf %33 : vector<36x4xf32> to vector<36x4xbf16>
    %cst_19 = arith.constant dense<0.000000e+00> : vector<36x32xf32>
    %36 = tpu.matmul %35, %34, %cst_19 {dimension_numbers = #tpu.dot_dimension_numbers<[1], [0], [0], [1], [0, 0, 1, 1], [], []>} : vector<36x4xbf16>, vector<4x32xbf16>, vector<36x32xf32> -> vector<36x32xf32>
    %c0_20 = arith.constant 0 : index
    %c0_21 = arith.constant 0 : index
    %37 = vector.load %arg7[%c0_20, %c0_21] : memref<36x24xbf16, #tpu.memory_space<vmem>>, vector<36x24xbf16>
    %38 = arith.truncf %24 : vector<24x4xf32> to vector<24x4xbf16>
    %cst_22 = arith.constant dense<0.000000e+00> : vector<36x4xf32>
    %39 = tpu.matmul %37, %38, %cst_22 {dimension_numbers = #tpu.dot_dimension_numbers<[1], [0], [0], [1], [0, 0, 1, 1], [], []>} : vector<36x24xbf16>, vector<24x4xbf16>, vector<36x4xf32> -> vector<36x4xf32>
    %c0_23 = arith.constant 0 : index
    %c0_24 = arith.constant 0 : index
    %40 = vector.load %arg10[%c0_23, %c0_24] : memref<4x32xbf16, #tpu.memory_space<vmem>>, vector<4x32xbf16>
    %41 = arith.truncf %39 : vector<36x4xf32> to vector<36x4xbf16>
    %cst_25 = arith.constant dense<0.000000e+00> : vector<36x32xf32>
    %42 = tpu.matmul %41, %40, %cst_25 {dimension_numbers = #tpu.dot_dimension_numbers<[1], [0], [0], [1], [0, 0, 1, 1], [], []>} : vector<36x4xbf16>, vector<4x32xbf16>, vector<36x32xf32> -> vector<36x32xf32>
    %43 = arith.addf %36, %42 : vector<36x32xf32>
    %c0_26 = arith.constant 0 : index
    %c0_27 = arith.constant 0 : index
    %44 = vector.load %arg8[%c0_26, %c0_27] : memref<36x24xbf16, #tpu.memory_space<vmem>>, vector<36x24xbf16>
    %45 = arith.truncf %24 : vector<24x4xf32> to vector<24x4xbf16>
    %cst_28 = arith.constant dense<0.000000e+00> : vector<36x4xf32>
    %46 = tpu.matmul %44, %45, %cst_28 {dimension_numbers = #tpu.dot_dimension_numbers<[1], [0], [0], [1], [0, 0, 1, 1], [], []>} : vector<36x24xbf16>, vector<24x4xbf16>, vector<36x4xf32> -> vector<36x4xf32>
    %c0_29 = arith.constant 0 : index
    %c0_30 = arith.constant 0 : index
    %47 = vector.load %arg11[%c0_29, %c0_30] : memref<4x32xbf16, #tpu.memory_space<vmem>>, vector<4x32xbf16>
    %48 = arith.truncf %46 : vector<36x4xf32> to vector<36x4xbf16>
    %cst_31 = arith.constant dense<0.000000e+00> : vector<36x32xf32>
    %49 = tpu.matmul %48, %47, %cst_31 {dimension_numbers = #tpu.dot_dimension_numbers<[1], [0], [0], [1], [0, 0, 1, 1], [], []>} : vector<36x4xbf16>, vector<4x32xbf16>, vector<36x32xf32> -> vector<36x32xf32>
    %50 = arith.addf %43, %49 : vector<36x32xf32>
    %c0_32 = arith.constant 0 : index
    %c0_33 = arith.constant 0 : index
    %51 = vector.load %arg12[%c0_32, %c0_33] : memref<36x32xf32, #tpu.memory_space<vmem>>, vector<36x32xf32>
    %52 = arith.addf %50, %51 : vector<36x32xf32>
    %53 = arith.truncf %52 : vector<36x32xf32> to vector<36x32xbf16>
    %c0_34 = arith.constant 0 : index
    %c0_35 = arith.constant 0 : index
    %54 = vector.load %arg33[%c0_34, %c0_35] : memref<1x32xf32, #tpu.memory_space<vmem>>, vector<1x32xf32>
    %c0_36 = arith.constant 0 : index
    %c0_37 = arith.constant 0 : index
    %55 = vector.load %arg34[%c0_36, %c0_37] : memref<1x32xf32, #tpu.memory_space<vmem>>, vector<1x32xf32>
    %c0_38 = arith.constant 0 : index
    %c0_39 = arith.constant 0 : index
    %56 = vector.load %arg13[%c0_38, %c0_39] : memref<36x36xbf16, #tpu.memory_space<vmem>>, vector<36x36xbf16>
    %cst_40 = arith.constant dense<0.000000e+00> : vector<36x32xf32>
    %57 = tpu.matmul %56, %53, %cst_40 {dimension_numbers = #tpu.dot_dimension_numbers<[1], [0], [0], [1], [0, 0, 1, 1], [], []>} : vector<36x36xbf16>, vector<36x32xbf16>, vector<36x32xf32> -> vector<36x32xf32>
    %58 = arith.truncf %57 : vector<36x32xf32> to vector<36x32xbf16>
    %cst_41 = arith.constant 0.000000e+00 : f32
    %59 = vector.broadcast %cst_41 : f32 to vector<8x32xf32>
    %c0_42 = arith.constant 0 : index
    %c0_43 = arith.constant 0 : index
    %60 = vector.load %arg14[%c0_42, %c0_43] : memref<96x36xf32, #tpu.memory_space<vmem>>, vector<8x36xf32>
    %61 = arith.truncf %60 : vector<8x36xf32> to vector<8x36xbf16>
    %cst_44 = arith.constant dense<0.000000e+00> : vector<8x32xf32>
    %62 = tpu.matmul %61, %58, %cst_44 {dimension_numbers = #tpu.dot_dimension_numbers<[1], [0], [0], [1], [0, 0, 1, 1], [], []>} : vector<8x36xbf16>, vector<36x32xbf16>, vector<8x32xf32> -> vector<8x32xf32>
    %c0_45 = arith.constant 0 : index
    %c0_46 = arith.constant 0 : index
    %63 = vector.load %arg15[%c0_45, %c0_46] : memref<384x32xbf16, #tpu.memory_space<vmem>>, vector<32x32xbf16>
    %64 = arith.truncf %62 : vector<8x32xf32> to vector<8x32xbf16>
    %cst_47 = arith.constant dense<0.000000e+00> : vector<8x32xf32>
    %65 = tpu.matmul %64, %63, %cst_47 {dimension_numbers = #tpu.dot_dimension_numbers<[1], [0], [0], [1], [0, 0, 1, 1], [], []>} : vector<8x32xbf16>, vector<32x32xbf16>, vector<8x32xf32> -> vector<8x32xf32>
    %66 = arith.addf %59, %65 : vector<8x32xf32>
    %c8 = arith.constant 8 : index
    %c0_48 = arith.constant 0 : index
    %67 = vector.load %arg14[%c8, %c0_48] : memref<96x36xf32, #tpu.memory_space<vmem>>, vector<8x36xf32>
    %68 = arith.truncf %67 : vector<8x36xf32> to vector<8x36xbf16>
    %cst_49 = arith.constant dense<0.000000e+00> : vector<8x32xf32>
    %69 = tpu.matmul %68, %58, %cst_49 {dimension_numbers = #tpu.dot_dimension_numbers<[1], [0], [0], [1], [0, 0, 1, 1], [], []>} : vector<8x36xbf16>, vector<36x32xbf16>, vector<8x32xf32> -> vector<8x32xf32>
    %c32 = arith.constant 32 : index
    %c0_50 = arith.constant 0 : index
    %70 = vector.load %arg15[%c32, %c0_50] : memref<384x32xbf16, #tpu.memory_space<vmem>>, vector<32x32xbf16>
    %71 = arith.truncf %69 : vector<8x32xf32> to vector<8x32xbf16>
    %cst_51 = arith.constant dense<0.000000e+00> : vector<8x32xf32>
    %72 = tpu.matmul %71, %70, %cst_51 {dimension_numbers = #tpu.dot_dimension_numbers<[1], [0], [0], [1], [0, 0, 1, 1], [], []>} : vector<8x32xbf16>, vector<32x32xbf16>, vector<8x32xf32> -> vector<8x32xf32>
    %73 = arith.addf %66, %72 : vector<8x32xf32>
    %c16 = arith.constant 16 : index
    %c0_52 = arith.constant 0 : index
    %74 = vector.load %arg14[%c16, %c0_52] : memref<96x36xf32, #tpu.memory_space<vmem>>, vector<8x36xf32>
    %75 = arith.truncf %74 : vector<8x36xf32> to vector<8x36xbf16>
    %cst_53 = arith.constant dense<0.000000e+00> : vector<8x32xf32>
    %76 = tpu.matmul %75, %58, %cst_53 {dimension_numbers = #tpu.dot_dimension_numbers<[1], [0], [0], [1], [0, 0, 1, 1], [], []>} : vector<8x36xbf16>, vector<36x32xbf16>, vector<8x32xf32> -> vector<8x32xf32>
    %c64 = arith.constant 64 : index
    %c0_54 = arith.constant 0 : index
    %77 = vector.load %arg15[%c64, %c0_54] : memref<384x32xbf16, #tpu.memory_space<vmem>>, vector<32x32xbf16>
    %78 = arith.truncf %76 : vector<8x32xf32> to vector<8x32xbf16>
    %cst_55 = arith.constant dense<0.000000e+00> : vector<8x32xf32>
    %79 = tpu.matmul %78, %77, %cst_55 {dimension_numbers = #tpu.dot_dimension_numbers<[1], [0], [0], [1], [0, 0, 1, 1], [], []>} : vector<8x32xbf16>, vector<32x32xbf16>, vector<8x32xf32> -> vector<8x32xf32>
    %80 = arith.addf %73, %79 : vector<8x32xf32>
    %c24 = arith.constant 24 : index
    %c0_56 = arith.constant 0 : index
    %81 = vector.load %arg14[%c24, %c0_56] : memref<96x36xf32, #tpu.memory_space<vmem>>, vector<8x36xf32>
    %82 = arith.truncf %81 : vector<8x36xf32> to vector<8x36xbf16>
    %cst_57 = arith.constant dense<0.000000e+00> : vector<8x32xf32>
    %83 = tpu.matmul %82, %58, %cst_57 {dimension_numbers = #tpu.dot_dimension_numbers<[1], [0], [0], [1], [0, 0, 1, 1], [], []>} : vector<8x36xbf16>, vector<36x32xbf16>, vector<8x32xf32> -> vector<8x32xf32>
    %c96 = arith.constant 96 : index
    %c0_58 = arith.constant 0 : index
    %84 = vector.load %arg15[%c96, %c0_58] : memref<384x32xbf16, #tpu.memory_space<vmem>>, vector<32x32xbf16>
    %85 = arith.truncf %83 : vector<8x32xf32> to vector<8x32xbf16>
    %cst_59 = arith.constant dense<0.000000e+00> : vector<8x32xf32>
    %86 = tpu.matmul %85, %84, %cst_59 {dimension_numbers = #tpu.dot_dimension_numbers<[1], [0], [0], [1], [0, 0, 1, 1], [], []>} : vector<8x32xbf16>, vector<32x32xbf16>, vector<8x32xf32> -> vector<8x32xf32>
    %87 = arith.addf %80, %86 : vector<8x32xf32>
    %c32_60 = arith.constant 32 : index
    %c0_61 = arith.constant 0 : index
    %88 = vector.load %arg14[%c32_60, %c0_61] : memref<96x36xf32, #tpu.memory_space<vmem>>, vector<8x36xf32>
    %89 = arith.truncf %88 : vector<8x36xf32> to vector<8x36xbf16>
    %cst_62 = arith.constant dense<0.000000e+00> : vector<8x32xf32>
    %90 = tpu.matmul %89, %58, %cst_62 {dimension_numbers = #tpu.dot_dimension_numbers<[1], [0], [0], [1], [0, 0, 1, 1], [], []>} : vector<8x36xbf16>, vector<36x32xbf16>, vector<8x32xf32> -> vector<8x32xf32>
    %c128 = arith.constant 128 : index
    %c0_63 = arith.constant 0 : index
    %91 = vector.load %arg15[%c128, %c0_63] : memref<384x32xbf16, #tpu.memory_space<vmem>>, vector<32x32xbf16>
    %92 = arith.truncf %90 : vector<8x32xf32> to vector<8x32xbf16>
    %cst_64 = arith.constant dense<0.000000e+00> : vector<8x32xf32>
    %93 = tpu.matmul %92, %91, %cst_64 {dimension_numbers = #tpu.dot_dimension_numbers<[1], [0], [0], [1], [0, 0, 1, 1], [], []>} : vector<8x32xbf16>, vector<32x32xbf16>, vector<8x32xf32> -> vector<8x32xf32>
    %94 = arith.addf %87, %93 : vector<8x32xf32>
    %c40 = arith.constant 40 : index
    %c0_65 = arith.constant 0 : index
    %95 = vector.load %arg14[%c40, %c0_65] : memref<96x36xf32, #tpu.memory_space<vmem>>, vector<8x36xf32>
    %96 = arith.truncf %95 : vector<8x36xf32> to vector<8x36xbf16>
    %cst_66 = arith.constant dense<0.000000e+00> : vector<8x32xf32>
    %97 = tpu.matmul %96, %58, %cst_66 {dimension_numbers = #tpu.dot_dimension_numbers<[1], [0], [0], [1], [0, 0, 1, 1], [], []>} : vector<8x36xbf16>, vector<36x32xbf16>, vector<8x32xf32> -> vector<8x32xf32>
    %c160 = arith.constant 160 : index
    %c0_67 = arith.constant 0 : index
    %98 = vector.load %arg15[%c160, %c0_67] : memref<384x32xbf16, #tpu.memory_space<vmem>>, vector<32x32xbf16>
    %99 = arith.truncf %97 : vector<8x32xf32> to vector<8x32xbf16>
    %cst_68 = arith.constant dense<0.000000e+00> : vector<8x32xf32>
    %100 = tpu.matmul %99, %98, %cst_68 {dimension_numbers = #tpu.dot_dimension_numbers<[1], [0], [0], [1], [0, 0, 1, 1], [], []>} : vector<8x32xbf16>, vector<32x32xbf16>, vector<8x32xf32> -> vector<8x32xf32>
    %101 = arith.addf %94, %100 : vector<8x32xf32>
    %c48 = arith.constant 48 : index
    %c0_69 = arith.constant 0 : index
    %102 = vector.load %arg14[%c48, %c0_69] : memref<96x36xf32, #tpu.memory_space<vmem>>, vector<8x36xf32>
    %103 = arith.truncf %102 : vector<8x36xf32> to vector<8x36xbf16>
    %cst_70 = arith.constant dense<0.000000e+00> : vector<8x32xf32>
    %104 = tpu.matmul %103, %58, %cst_70 {dimension_numbers = #tpu.dot_dimension_numbers<[1], [0], [0], [1], [0, 0, 1, 1], [], []>} : vector<8x36xbf16>, vector<36x32xbf16>, vector<8x32xf32> -> vector<8x32xf32>
    %c192 = arith.constant 192 : index
    %c0_71 = arith.constant 0 : index
    %105 = vector.load %arg15[%c192, %c0_71] : memref<384x32xbf16, #tpu.memory_space<vmem>>, vector<32x32xbf16>
    %106 = arith.truncf %104 : vector<8x32xf32> to vector<8x32xbf16>
    %cst_72 = arith.constant dense<0.000000e+00> : vector<8x32xf32>
    %107 = tpu.matmul %106, %105, %cst_72 {dimension_numbers = #tpu.dot_dimension_numbers<[1], [0], [0], [1], [0, 0, 1, 1], [], []>} : vector<8x32xbf16>, vector<32x32xbf16>, vector<8x32xf32> -> vector<8x32xf32>
    %108 = arith.addf %101, %107 : vector<8x32xf32>
    %c56 = arith.constant 56 : index
    %c0_73 = arith.constant 0 : index
    %109 = vector.load %arg14[%c56, %c0_73] : memref<96x36xf32, #tpu.memory_space<vmem>>, vector<8x36xf32>
    %110 = arith.truncf %109 : vector<8x36xf32> to vector<8x36xbf16>
    %cst_74 = arith.constant dense<0.000000e+00> : vector<8x32xf32>
    %111 = tpu.matmul %110, %58, %cst_74 {dimension_numbers = #tpu.dot_dimension_numbers<[1], [0], [0], [1], [0, 0, 1, 1], [], []>} : vector<8x36xbf16>, vector<36x32xbf16>, vector<8x32xf32> -> vector<8x32xf32>
    %c224 = arith.constant 224 : index
    %c0_75 = arith.constant 0 : index
    %112 = vector.load %arg15[%c224, %c0_75] : memref<384x32xbf16, #tpu.memory_space<vmem>>, vector<32x32xbf16>
    %113 = arith.truncf %111 : vector<8x32xf32> to vector<8x32xbf16>
    %cst_76 = arith.constant dense<0.000000e+00> : vector<8x32xf32>
    %114 = tpu.matmul %113, %112, %cst_76 {dimension_numbers = #tpu.dot_dimension_numbers<[1], [0], [0], [1], [0, 0, 1, 1], [], []>} : vector<8x32xbf16>, vector<32x32xbf16>, vector<8x32xf32> -> vector<8x32xf32>
    %115 = arith.addf %108, %114 : vector<8x32xf32>
    %c64_77 = arith.constant 64 : index
    %c0_78 = arith.constant 0 : index
    %116 = vector.load %arg14[%c64_77, %c0_78] : memref<96x36xf32, #tpu.memory_space<vmem>>, vector<8x36xf32>
    %117 = arith.truncf %116 : vector<8x36xf32> to vector<8x36xbf16>
    %cst_79 = arith.constant dense<0.000000e+00> : vector<8x32xf32>
    %118 = tpu.matmul %117, %58, %cst_79 {dimension_numbers = #tpu.dot_dimension_numbers<[1], [0], [0], [1], [0, 0, 1, 1], [], []>} : vector<8x36xbf16>, vector<36x32xbf16>, vector<8x32xf32> -> vector<8x32xf32>
    %c256 = arith.constant 256 : index
    %c0_80 = arith.constant 0 : index
    %119 = vector.load %arg15[%c256, %c0_80] : memref<384x32xbf16, #tpu.memory_space<vmem>>, vector<32x32xbf16>
    %120 = arith.truncf %118 : vector<8x32xf32> to vector<8x32xbf16>
    %cst_81 = arith.constant dense<0.000000e+00> : vector<8x32xf32>
    %121 = tpu.matmul %120, %119, %cst_81 {dimension_numbers = #tpu.dot_dimension_numbers<[1], [0], [0], [1], [0, 0, 1, 1], [], []>} : vector<8x32xbf16>, vector<32x32xbf16>, vector<8x32xf32> -> vector<8x32xf32>
    %122 = arith.addf %115, %121 : vector<8x32xf32>
    %c72 = arith.constant 72 : index
    %c0_82 = arith.constant 0 : index
    %123 = vector.load %arg14[%c72, %c0_82] : memref<96x36xf32, #tpu.memory_space<vmem>>, vector<8x36xf32>
    %124 = arith.truncf %123 : vector<8x36xf32> to vector<8x36xbf16>
    %cst_83 = arith.constant dense<0.000000e+00> : vector<8x32xf32>
    %125 = tpu.matmul %124, %58, %cst_83 {dimension_numbers = #tpu.dot_dimension_numbers<[1], [0], [0], [1], [0, 0, 1, 1], [], []>} : vector<8x36xbf16>, vector<36x32xbf16>, vector<8x32xf32> -> vector<8x32xf32>
    %c288 = arith.constant 288 : index
    %c0_84 = arith.constant 0 : index
    %126 = vector.load %arg15[%c288, %c0_84] : memref<384x32xbf16, #tpu.memory_space<vmem>>, vector<32x32xbf16>
    %127 = arith.truncf %125 : vector<8x32xf32> to vector<8x32xbf16>
    %cst_85 = arith.constant dense<0.000000e+00> : vector<8x32xf32>
    %128 = tpu.matmul %127, %126, %cst_85 {dimension_numbers = #tpu.dot_dimension_numbers<[1], [0], [0], [1], [0, 0, 1, 1], [], []>} : vector<8x32xbf16>, vector<32x32xbf16>, vector<8x32xf32> -> vector<8x32xf32>
    %129 = arith.addf %122, %128 : vector<8x32xf32>
    %c80 = arith.constant 80 : index
    %c0_86 = arith.constant 0 : index
    %130 = vector.load %arg14[%c80, %c0_86] : memref<96x36xf32, #tpu.memory_space<vmem>>, vector<8x36xf32>
    %131 = arith.truncf %130 : vector<8x36xf32> to vector<8x36xbf16>
    %cst_87 = arith.constant dense<0.000000e+00> : vector<8x32xf32>
    %132 = tpu.matmul %131, %58, %cst_87 {dimension_numbers = #tpu.dot_dimension_numbers<[1], [0], [0], [1], [0, 0, 1, 1], [], []>} : vector<8x36xbf16>, vector<36x32xbf16>, vector<8x32xf32> -> vector<8x32xf32>
    %c320 = arith.constant 320 : index
    %c0_88 = arith.constant 0 : index
    %133 = vector.load %arg15[%c320, %c0_88] : memref<384x32xbf16, #tpu.memory_space<vmem>>, vector<32x32xbf16>
    %134 = arith.truncf %132 : vector<8x32xf32> to vector<8x32xbf16>
    %cst_89 = arith.constant dense<0.000000e+00> : vector<8x32xf32>
    %135 = tpu.matmul %134, %133, %cst_89 {dimension_numbers = #tpu.dot_dimension_numbers<[1], [0], [0], [1], [0, 0, 1, 1], [], []>} : vector<8x32xbf16>, vector<32x32xbf16>, vector<8x32xf32> -> vector<8x32xf32>
    %136 = arith.addf %129, %135 : vector<8x32xf32>
    %c88 = arith.constant 88 : index
    %c0_90 = arith.constant 0 : index
    %137 = vector.load %arg14[%c88, %c0_90] : memref<96x36xf32, #tpu.memory_space<vmem>>, vector<8x36xf32>
    %138 = arith.truncf %137 : vector<8x36xf32> to vector<8x36xbf16>
    %cst_91 = arith.constant dense<0.000000e+00> : vector<8x32xf32>
    %139 = tpu.matmul %138, %58, %cst_91 {dimension_numbers = #tpu.dot_dimension_numbers<[1], [0], [0], [1], [0, 0, 1, 1], [], []>} : vector<8x36xbf16>, vector<36x32xbf16>, vector<8x32xf32> -> vector<8x32xf32>
    %c352 = arith.constant 352 : index
    %c0_92 = arith.constant 0 : index
    %140 = vector.load %arg15[%c352, %c0_92] : memref<384x32xbf16, #tpu.memory_space<vmem>>, vector<32x32xbf16>
    %141 = arith.truncf %139 : vector<8x32xf32> to vector<8x32xbf16>
    %cst_93 = arith.constant dense<0.000000e+00> : vector<8x32xf32>
    %142 = tpu.matmul %141, %140, %cst_93 {dimension_numbers = #tpu.dot_dimension_numbers<[1], [0], [0], [1], [0, 0, 1, 1], [], []>} : vector<8x32xbf16>, vector<32x32xbf16>, vector<8x32xf32> -> vector<8x32xf32>
    %143 = arith.addf %136, %142 : vector<8x32xf32>
    %c0_94 = arith.constant 0 : index
    %c0_95 = arith.constant 0 : index
    %144 = vector.load %arg16[%c0_94, %c0_95] : memref<1x32xf32, #tpu.memory_space<vmem>>, vector<1x32xf32>
    %145 = vector.broadcast %144 : vector<1x32xf32> to vector<8x32xf32>
    %146 = arith.addf %143, %145 : vector<8x32xf32>
    %147 = math.tanh %146 : vector<8x32xf32>
    %148 = arith.truncf %147 : vector<8x32xf32> to vector<8x32xbf16>
    %cst_96 = arith.constant 0.000000e+00 : f32
    %149 = vector.broadcast %cst_96 : f32 to vector<8x32xf32>
    %c0_97 = arith.constant 0 : index
    %c0_98 = arith.constant 0 : index
    %150 = vector.load %arg17[%c0_97, %c0_98] : memref<32x8xf32, #tpu.memory_space<vmem>>, vector<8x8xf32>
    %151 = arith.truncf %150 : vector<8x8xf32> to vector<8x8xbf16>
    %cst_99 = arith.constant dense<0.000000e+00> : vector<8x32xf32>
    %152 = tpu.matmul %151, %148, %cst_99 {dimension_numbers = #tpu.dot_dimension_numbers<[1], [0], [0], [1], [0, 0, 1, 1], [], []>} : vector<8x8xbf16>, vector<8x32xbf16>, vector<8x32xf32> -> vector<8x32xf32>
    %c0_100 = arith.constant 0 : index
    %c0_101 = arith.constant 0 : index
    %153 = vector.load %arg18[%c0_100, %c0_101] : memref<128x32xbf16, #tpu.memory_space<vmem>>, vector<32x32xbf16>
    %154 = arith.truncf %152 : vector<8x32xf32> to vector<8x32xbf16>
    %cst_102 = arith.constant dense<0.000000e+00> : vector<8x32xf32>
    %155 = tpu.matmul %154, %153, %cst_102 {dimension_numbers = #tpu.dot_dimension_numbers<[1], [0], [0], [1], [0, 0, 1, 1], [], []>} : vector<8x32xbf16>, vector<32x32xbf16>, vector<8x32xf32> -> vector<8x32xf32>
    %156 = arith.addf %149, %155 : vector<8x32xf32>
    %c8_103 = arith.constant 8 : index
    %c0_104 = arith.constant 0 : index
    %157 = vector.load %arg17[%c8_103, %c0_104] : memref<32x8xf32, #tpu.memory_space<vmem>>, vector<8x8xf32>
    %158 = arith.truncf %157 : vector<8x8xf32> to vector<8x8xbf16>
    %cst_105 = arith.constant dense<0.000000e+00> : vector<8x32xf32>
    %159 = tpu.matmul %158, %148, %cst_105 {dimension_numbers = #tpu.dot_dimension_numbers<[1], [0], [0], [1], [0, 0, 1, 1], [], []>} : vector<8x8xbf16>, vector<8x32xbf16>, vector<8x32xf32> -> vector<8x32xf32>
    %c32_106 = arith.constant 32 : index
    %c0_107 = arith.constant 0 : index
    %160 = vector.load %arg18[%c32_106, %c0_107] : memref<128x32xbf16, #tpu.memory_space<vmem>>, vector<32x32xbf16>
    %161 = arith.truncf %159 : vector<8x32xf32> to vector<8x32xbf16>
    %cst_108 = arith.constant dense<0.000000e+00> : vector<8x32xf32>
    %162 = tpu.matmul %161, %160, %cst_108 {dimension_numbers = #tpu.dot_dimension_numbers<[1], [0], [0], [1], [0, 0, 1, 1], [], []>} : vector<8x32xbf16>, vector<32x32xbf16>, vector<8x32xf32> -> vector<8x32xf32>
    %163 = arith.addf %156, %162 : vector<8x32xf32>
    %c16_109 = arith.constant 16 : index
    %c0_110 = arith.constant 0 : index
    %164 = vector.load %arg17[%c16_109, %c0_110] : memref<32x8xf32, #tpu.memory_space<vmem>>, vector<8x8xf32>
    %165 = arith.truncf %164 : vector<8x8xf32> to vector<8x8xbf16>
    %cst_111 = arith.constant dense<0.000000e+00> : vector<8x32xf32>
    %166 = tpu.matmul %165, %148, %cst_111 {dimension_numbers = #tpu.dot_dimension_numbers<[1], [0], [0], [1], [0, 0, 1, 1], [], []>} : vector<8x8xbf16>, vector<8x32xbf16>, vector<8x32xf32> -> vector<8x32xf32>
    %c64_112 = arith.constant 64 : index
    %c0_113 = arith.constant 0 : index
    %167 = vector.load %arg18[%c64_112, %c0_113] : memref<128x32xbf16, #tpu.memory_space<vmem>>, vector<32x32xbf16>
    %168 = arith.truncf %166 : vector<8x32xf32> to vector<8x32xbf16>
    %cst_114 = arith.constant dense<0.000000e+00> : vector<8x32xf32>
    %169 = tpu.matmul %168, %167, %cst_114 {dimension_numbers = #tpu.dot_dimension_numbers<[1], [0], [0], [1], [0, 0, 1, 1], [], []>} : vector<8x32xbf16>, vector<32x32xbf16>, vector<8x32xf32> -> vector<8x32xf32>
    %170 = arith.addf %163, %169 : vector<8x32xf32>
    %c24_115 = arith.constant 24 : index
    %c0_116 = arith.constant 0 : index
    %171 = vector.load %arg17[%c24_115, %c0_116] : memref<32x8xf32, #tpu.memory_space<vmem>>, vector<8x8xf32>
    %172 = arith.truncf %171 : vector<8x8xf32> to vector<8x8xbf16>
    %cst_117 = arith.constant dense<0.000000e+00> : vector<8x32xf32>
    %173 = tpu.matmul %172, %148, %cst_117 {dimension_numbers = #tpu.dot_dimension_numbers<[1], [0], [0], [1], [0, 0, 1, 1], [], []>} : vector<8x8xbf16>, vector<8x32xbf16>, vector<8x32xf32> -> vector<8x32xf32>
    %c96_118 = arith.constant 96 : index
    %c0_119 = arith.constant 0 : index
    %174 = vector.load %arg18[%c96_118, %c0_119] : memref<128x32xbf16, #tpu.memory_space<vmem>>, vector<32x32xbf16>
    %175 = arith.truncf %173 : vector<8x32xf32> to vector<8x32xbf16>
    %cst_120 = arith.constant dense<0.000000e+00> : vector<8x32xf32>
    %176 = tpu.matmul %175, %174, %cst_120 {dimension_numbers = #tpu.dot_dimension_numbers<[1], [0], [0], [1], [0, 0, 1, 1], [], []>} : vector<8x32xbf16>, vector<32x32xbf16>, vector<8x32xf32> -> vector<8x32xf32>
    %177 = arith.addf %170, %176 : vector<8x32xf32>
    %c0_121 = arith.constant 0 : index
    %c0_122 = arith.constant 0 : index
    %178 = vector.load %arg19[%c0_121, %c0_122] : memref<1x32xf32, #tpu.memory_space<vmem>>, vector<1x32xf32>
    %179 = vector.broadcast %178 : vector<1x32xf32> to vector<8x32xf32>
    %180 = arith.addf %177, %179 : vector<8x32xf32>
    %181 = math.tanh %180 : vector<8x32xf32>
    %182 = arith.addf %181, %147 : vector<8x32xf32>
    %cst_123 = arith.constant dense<0.000000e+00> : vector<8xf32>
    %183 = vector.multi_reduction <add>, %182, %cst_123 [1] : vector<8x32xf32> to vector<8xf32>
    %184 = vector.shape_cast %183 : vector<8xf32> to vector<8x1xf32>
    %cst_124 = arith.constant 3.200000e+01 : f32
    %185 = vector.broadcast %cst_124 : f32 to vector<8x1xf32>
    %186 = arith.divf %184, %185 : vector<8x1xf32>
    %187 = vector.broadcast %186 : vector<8x1xf32> to vector<8x32xf32>
    %188 = arith.subf %182, %187 : vector<8x32xf32>
    %189 = arith.mulf %188, %188 : vector<8x32xf32>
    %cst_125 = arith.constant dense<0.000000e+00> : vector<8xf32>
    %190 = vector.multi_reduction <add>, %189, %cst_125 [1] : vector<8x32xf32> to vector<8xf32>
    %191 = vector.shape_cast %190 : vector<8xf32> to vector<8x1xf32>
    %cst_126 = arith.constant 3.200000e+01 : f32
    %192 = vector.broadcast %cst_126 : f32 to vector<8x1xf32>
    %193 = arith.divf %191, %192 : vector<8x1xf32>
    %cst_127 = arith.constant 9.99999974E-6 : f32
    %194 = vector.broadcast %cst_127 : f32 to vector<8x1xf32>
    %195 = arith.addf %193, %194 : vector<8x1xf32>
    %196 = math.rsqrt %195 : vector<8x1xf32>
    %197 = vector.broadcast %196 : vector<8x1xf32> to vector<8x32xf32>
    %198 = arith.mulf %188, %197 : vector<8x32xf32>
    %199 = vector.broadcast %54 : vector<1x32xf32> to vector<8x32xf32>
    %200 = arith.mulf %198, %199 : vector<8x32xf32>
    %201 = vector.broadcast %55 : vector<1x32xf32> to vector<8x32xf32>
    %202 = arith.addf %200, %201 : vector<8x32xf32>
    %203 = arith.truncf %202 : vector<8x32xf32> to vector<8x32xbf16>
    %cst_128 = arith.constant 0.000000e+00 : f32
    %204 = vector.broadcast %cst_128 : f32 to vector<40x32xf32>
    %c0_129 = arith.constant 0 : index
    %c0_130 = arith.constant 0 : index
    %205 = vector.load %arg20[%c0_129, %c0_130] : memref<384x32xbf16, #tpu.memory_space<vmem>>, vector<32x32xbf16>
    %cst_131 = arith.constant dense<0.000000e+00> : vector<8x32xf32>
    %206 = tpu.matmul %203, %205, %cst_131 {dimension_numbers = #tpu.dot_dimension_numbers<[1], [0], [0], [1], [0, 0, 1, 1], [], []>} : vector<8x32xbf16>, vector<32x32xbf16>, vector<8x32xf32> -> vector<8x32xf32>
    %c0_132 = arith.constant 0 : index
    %c0_133 = arith.constant 0 : index
    %207 = vector.load %arg22[%c0_132, %c0_133] : memref<480x8xf32, #tpu.memory_space<vmem>>, vector<40x8xf32>
    %208 = arith.truncf %207 : vector<40x8xf32> to vector<40x8xbf16>
    %209 = arith.truncf %206 : vector<8x32xf32> to vector<8x32xbf16>
    %cst_134 = arith.constant dense<0.000000e+00> : vector<40x32xf32>
    %210 = tpu.matmul %208, %209, %cst_134 {dimension_numbers = #tpu.dot_dimension_numbers<[1], [0], [0], [1], [0, 0, 1, 1], [], []>} : vector<40x8xbf16>, vector<8x32xbf16>, vector<40x32xf32> -> vector<40x32xf32>
    %211 = arith.addf %204, %210 : vector<40x32xf32>
    %c32_135 = arith.constant 32 : index
    %c0_136 = arith.constant 0 : index
    %212 = vector.load %arg20[%c32_135, %c0_136] : memref<384x32xbf16, #tpu.memory_space<vmem>>, vector<32x32xbf16>
    %cst_137 = arith.constant dense<0.000000e+00> : vector<8x32xf32>
    %213 = tpu.matmul %203, %212, %cst_137 {dimension_numbers = #tpu.dot_dimension_numbers<[1], [0], [0], [1], [0, 0, 1, 1], [], []>} : vector<8x32xbf16>, vector<32x32xbf16>, vector<8x32xf32> -> vector<8x32xf32>
    %c40_138 = arith.constant 40 : index
    %c0_139 = arith.constant 0 : index
    %214 = vector.load %arg22[%c40_138, %c0_139] : memref<480x8xf32, #tpu.memory_space<vmem>>, vector<40x8xf32>
    %215 = arith.truncf %214 : vector<40x8xf32> to vector<40x8xbf16>
    %216 = arith.truncf %213 : vector<8x32xf32> to vector<8x32xbf16>
    %cst_140 = arith.constant dense<0.000000e+00> : vector<40x32xf32>
    %217 = tpu.matmul %215, %216, %cst_140 {dimension_numbers = #tpu.dot_dimension_numbers<[1], [0], [0], [1], [0, 0, 1, 1], [], []>} : vector<40x8xbf16>, vector<8x32xbf16>, vector<40x32xf32> -> vector<40x32xf32>
    %218 = arith.addf %211, %217 : vector<40x32xf32>
    %c64_141 = arith.constant 64 : index
    %c0_142 = arith.constant 0 : index
    %219 = vector.load %arg20[%c64_141, %c0_142] : memref<384x32xbf16, #tpu.memory_space<vmem>>, vector<32x32xbf16>
    %cst_143 = arith.constant dense<0.000000e+00> : vector<8x32xf32>
    %220 = tpu.matmul %203, %219, %cst_143 {dimension_numbers = #tpu.dot_dimension_numbers<[1], [0], [0], [1], [0, 0, 1, 1], [], []>} : vector<8x32xbf16>, vector<32x32xbf16>, vector<8x32xf32> -> vector<8x32xf32>
    %c80_144 = arith.constant 80 : index
    %c0_145 = arith.constant 0 : index
    %221 = vector.load %arg22[%c80_144, %c0_145] : memref<480x8xf32, #tpu.memory_space<vmem>>, vector<40x8xf32>
    %222 = arith.truncf %221 : vector<40x8xf32> to vector<40x8xbf16>
    %223 = arith.truncf %220 : vector<8x32xf32> to vector<8x32xbf16>
    %cst_146 = arith.constant dense<0.000000e+00> : vector<40x32xf32>
    %224 = tpu.matmul %222, %223, %cst_146 {dimension_numbers = #tpu.dot_dimension_numbers<[1], [0], [0], [1], [0, 0, 1, 1], [], []>} : vector<40x8xbf16>, vector<8x32xbf16>, vector<40x32xf32> -> vector<40x32xf32>
    %225 = arith.addf %218, %224 : vector<40x32xf32>
    %c96_147 = arith.constant 96 : index
    %c0_148 = arith.constant 0 : index
    %226 = vector.load %arg20[%c96_147, %c0_148] : memref<384x32xbf16, #tpu.memory_space<vmem>>, vector<32x32xbf16>
    %cst_149 = arith.constant dense<0.000000e+00> : vector<8x32xf32>
    %227 = tpu.matmul %203, %226, %cst_149 {dimension_numbers = #tpu.dot_dimension_numbers<[1], [0], [0], [1], [0, 0, 1, 1], [], []>} : vector<8x32xbf16>, vector<32x32xbf16>, vector<8x32xf32> -> vector<8x32xf32>
    %c120 = arith.constant 120 : index
    %c0_150 = arith.constant 0 : index
    %228 = vector.load %arg22[%c120, %c0_150] : memref<480x8xf32, #tpu.memory_space<vmem>>, vector<40x8xf32>
    %229 = arith.truncf %228 : vector<40x8xf32> to vector<40x8xbf16>
    %230 = arith.truncf %227 : vector<8x32xf32> to vector<8x32xbf16>
    %cst_151 = arith.constant dense<0.000000e+00> : vector<40x32xf32>
    %231 = tpu.matmul %229, %230, %cst_151 {dimension_numbers = #tpu.dot_dimension_numbers<[1], [0], [0], [1], [0, 0, 1, 1], [], []>} : vector<40x8xbf16>, vector<8x32xbf16>, vector<40x32xf32> -> vector<40x32xf32>
    %232 = arith.addf %225, %231 : vector<40x32xf32>
    %c128_152 = arith.constant 128 : index
    %c0_153 = arith.constant 0 : index
    %233 = vector.load %arg20[%c128_152, %c0_153] : memref<384x32xbf16, #tpu.memory_space<vmem>>, vector<32x32xbf16>
    %cst_154 = arith.constant dense<0.000000e+00> : vector<8x32xf32>
    %234 = tpu.matmul %203, %233, %cst_154 {dimension_numbers = #tpu.dot_dimension_numbers<[1], [0], [0], [1], [0, 0, 1, 1], [], []>} : vector<8x32xbf16>, vector<32x32xbf16>, vector<8x32xf32> -> vector<8x32xf32>
    %c160_155 = arith.constant 160 : index
    %c0_156 = arith.constant 0 : index
    %235 = vector.load %arg22[%c160_155, %c0_156] : memref<480x8xf32, #tpu.memory_space<vmem>>, vector<40x8xf32>
    %236 = arith.truncf %235 : vector<40x8xf32> to vector<40x8xbf16>
    %237 = arith.truncf %234 : vector<8x32xf32> to vector<8x32xbf16>
    %cst_157 = arith.constant dense<0.000000e+00> : vector<40x32xf32>
    %238 = tpu.matmul %236, %237, %cst_157 {dimension_numbers = #tpu.dot_dimension_numbers<[1], [0], [0], [1], [0, 0, 1, 1], [], []>} : vector<40x8xbf16>, vector<8x32xbf16>, vector<40x32xf32> -> vector<40x32xf32>
    %239 = arith.addf %232, %238 : vector<40x32xf32>
    %c160_158 = arith.constant 160 : index
    %c0_159 = arith.constant 0 : index
    %240 = vector.load %arg20[%c160_158, %c0_159] : memref<384x32xbf16, #tpu.memory_space<vmem>>, vector<32x32xbf16>
    %cst_160 = arith.constant dense<0.000000e+00> : vector<8x32xf32>
    %241 = tpu.matmul %203, %240, %cst_160 {dimension_numbers = #tpu.dot_dimension_numbers<[1], [0], [0], [1], [0, 0, 1, 1], [], []>} : vector<8x32xbf16>, vector<32x32xbf16>, vector<8x32xf32> -> vector<8x32xf32>
    %c200 = arith.constant 200 : index
    %c0_161 = arith.constant 0 : index
    %242 = vector.load %arg22[%c200, %c0_161] : memref<480x8xf32, #tpu.memory_space<vmem>>, vector<40x8xf32>
    %243 = arith.truncf %242 : vector<40x8xf32> to vector<40x8xbf16>
    %244 = arith.truncf %241 : vector<8x32xf32> to vector<8x32xbf16>
    %cst_162 = arith.constant dense<0.000000e+00> : vector<40x32xf32>
    %245 = tpu.matmul %243, %244, %cst_162 {dimension_numbers = #tpu.dot_dimension_numbers<[1], [0], [0], [1], [0, 0, 1, 1], [], []>} : vector<40x8xbf16>, vector<8x32xbf16>, vector<40x32xf32> -> vector<40x32xf32>
    %246 = arith.addf %239, %245 : vector<40x32xf32>
    %c192_163 = arith.constant 192 : index
    %c0_164 = arith.constant 0 : index
    %247 = vector.load %arg20[%c192_163, %c0_164] : memref<384x32xbf16, #tpu.memory_space<vmem>>, vector<32x32xbf16>
    %cst_165 = arith.constant dense<0.000000e+00> : vector<8x32xf32>
    %248 = tpu.matmul %203, %247, %cst_165 {dimension_numbers = #tpu.dot_dimension_numbers<[1], [0], [0], [1], [0, 0, 1, 1], [], []>} : vector<8x32xbf16>, vector<32x32xbf16>, vector<8x32xf32> -> vector<8x32xf32>
    %c240 = arith.constant 240 : index
    %c0_166 = arith.constant 0 : index
    %249 = vector.load %arg22[%c240, %c0_166] : memref<480x8xf32, #tpu.memory_space<vmem>>, vector<40x8xf32>
    %250 = arith.truncf %249 : vector<40x8xf32> to vector<40x8xbf16>
    %251 = arith.truncf %248 : vector<8x32xf32> to vector<8x32xbf16>
    %cst_167 = arith.constant dense<0.000000e+00> : vector<40x32xf32>
    %252 = tpu.matmul %250, %251, %cst_167 {dimension_numbers = #tpu.dot_dimension_numbers<[1], [0], [0], [1], [0, 0, 1, 1], [], []>} : vector<40x8xbf16>, vector<8x32xbf16>, vector<40x32xf32> -> vector<40x32xf32>
    %253 = arith.addf %246, %252 : vector<40x32xf32>
    %c224_168 = arith.constant 224 : index
    %c0_169 = arith.constant 0 : index
    %254 = vector.load %arg20[%c224_168, %c0_169] : memref<384x32xbf16, #tpu.memory_space<vmem>>, vector<32x32xbf16>
    %cst_170 = arith.constant dense<0.000000e+00> : vector<8x32xf32>
    %255 = tpu.matmul %203, %254, %cst_170 {dimension_numbers = #tpu.dot_dimension_numbers<[1], [0], [0], [1], [0, 0, 1, 1], [], []>} : vector<8x32xbf16>, vector<32x32xbf16>, vector<8x32xf32> -> vector<8x32xf32>
    %c280 = arith.constant 280 : index
    %c0_171 = arith.constant 0 : index
    %256 = vector.load %arg22[%c280, %c0_171] : memref<480x8xf32, #tpu.memory_space<vmem>>, vector<40x8xf32>
    %257 = arith.truncf %256 : vector<40x8xf32> to vector<40x8xbf16>
    %258 = arith.truncf %255 : vector<8x32xf32> to vector<8x32xbf16>
    %cst_172 = arith.constant dense<0.000000e+00> : vector<40x32xf32>
    %259 = tpu.matmul %257, %258, %cst_172 {dimension_numbers = #tpu.dot_dimension_numbers<[1], [0], [0], [1], [0, 0, 1, 1], [], []>} : vector<40x8xbf16>, vector<8x32xbf16>, vector<40x32xf32> -> vector<40x32xf32>
    %260 = arith.addf %253, %259 : vector<40x32xf32>
    %c256_173 = arith.constant 256 : index
    %c0_174 = arith.constant 0 : index
    %261 = vector.load %arg20[%c256_173, %c0_174] : memref<384x32xbf16, #tpu.memory_space<vmem>>, vector<32x32xbf16>
    %cst_175 = arith.constant dense<0.000000e+00> : vector<8x32xf32>
    %262 = tpu.matmul %203, %261, %cst_175 {dimension_numbers = #tpu.dot_dimension_numbers<[1], [0], [0], [1], [0, 0, 1, 1], [], []>} : vector<8x32xbf16>, vector<32x32xbf16>, vector<8x32xf32> -> vector<8x32xf32>
    %c320_176 = arith.constant 320 : index
    %c0_177 = arith.constant 0 : index
    %263 = vector.load %arg22[%c320_176, %c0_177] : memref<480x8xf32, #tpu.memory_space<vmem>>, vector<40x8xf32>
    %264 = arith.truncf %263 : vector<40x8xf32> to vector<40x8xbf16>
    %265 = arith.truncf %262 : vector<8x32xf32> to vector<8x32xbf16>
    %cst_178 = arith.constant dense<0.000000e+00> : vector<40x32xf32>
    %266 = tpu.matmul %264, %265, %cst_178 {dimension_numbers = #tpu.dot_dimension_numbers<[1], [0], [0], [1], [0, 0, 1, 1], [], []>} : vector<40x8xbf16>, vector<8x32xbf16>, vector<40x32xf32> -> vector<40x32xf32>
    %267 = arith.addf %260, %266 : vector<40x32xf32>
    %c288_179 = arith.constant 288 : index
    %c0_180 = arith.constant 0 : index
    %268 = vector.load %arg20[%c288_179, %c0_180] : memref<384x32xbf16, #tpu.memory_space<vmem>>, vector<32x32xbf16>
    %cst_181 = arith.constant dense<0.000000e+00> : vector<8x32xf32>
    %269 = tpu.matmul %203, %268, %cst_181 {dimension_numbers = #tpu.dot_dimension_numbers<[1], [0], [0], [1], [0, 0, 1, 1], [], []>} : vector<8x32xbf16>, vector<32x32xbf16>, vector<8x32xf32> -> vector<8x32xf32>
    %c360 = arith.constant 360 : index
    %c0_182 = arith.constant 0 : index
    %270 = vector.load %arg22[%c360, %c0_182] : memref<480x8xf32, #tpu.memory_space<vmem>>, vector<40x8xf32>
    %271 = arith.truncf %270 : vector<40x8xf32> to vector<40x8xbf16>
    %272 = arith.truncf %269 : vector<8x32xf32> to vector<8x32xbf16>
    %cst_183 = arith.constant dense<0.000000e+00> : vector<40x32xf32>
    %273 = tpu.matmul %271, %272, %cst_183 {dimension_numbers = #tpu.dot_dimension_numbers<[1], [0], [0], [1], [0, 0, 1, 1], [], []>} : vector<40x8xbf16>, vector<8x32xbf16>, vector<40x32xf32> -> vector<40x32xf32>
    %274 = arith.addf %267, %273 : vector<40x32xf32>
    %c320_184 = arith.constant 320 : index
    %c0_185 = arith.constant 0 : index
    %275 = vector.load %arg20[%c320_184, %c0_185] : memref<384x32xbf16, #tpu.memory_space<vmem>>, vector<32x32xbf16>
    %cst_186 = arith.constant dense<0.000000e+00> : vector<8x32xf32>
    %276 = tpu.matmul %203, %275, %cst_186 {dimension_numbers = #tpu.dot_dimension_numbers<[1], [0], [0], [1], [0, 0, 1, 1], [], []>} : vector<8x32xbf16>, vector<32x32xbf16>, vector<8x32xf32> -> vector<8x32xf32>
    %c400 = arith.constant 400 : index
    %c0_187 = arith.constant 0 : index
    %277 = vector.load %arg22[%c400, %c0_187] : memref<480x8xf32, #tpu.memory_space<vmem>>, vector<40x8xf32>
    %278 = arith.truncf %277 : vector<40x8xf32> to vector<40x8xbf16>
    %279 = arith.truncf %276 : vector<8x32xf32> to vector<8x32xbf16>
    %cst_188 = arith.constant dense<0.000000e+00> : vector<40x32xf32>
    %280 = tpu.matmul %278, %279, %cst_188 {dimension_numbers = #tpu.dot_dimension_numbers<[1], [0], [0], [1], [0, 0, 1, 1], [], []>} : vector<40x8xbf16>, vector<8x32xbf16>, vector<40x32xf32> -> vector<40x32xf32>
    %281 = arith.addf %274, %280 : vector<40x32xf32>
    %c352_189 = arith.constant 352 : index
    %c0_190 = arith.constant 0 : index
    %282 = vector.load %arg20[%c352_189, %c0_190] : memref<384x32xbf16, #tpu.memory_space<vmem>>, vector<32x32xbf16>
    %cst_191 = arith.constant dense<0.000000e+00> : vector<8x32xf32>
    %283 = tpu.matmul %203, %282, %cst_191 {dimension_numbers = #tpu.dot_dimension_numbers<[1], [0], [0], [1], [0, 0, 1, 1], [], []>} : vector<8x32xbf16>, vector<32x32xbf16>, vector<8x32xf32> -> vector<8x32xf32>
    %c440 = arith.constant 440 : index
    %c0_192 = arith.constant 0 : index
    %284 = vector.load %arg22[%c440, %c0_192] : memref<480x8xf32, #tpu.memory_space<vmem>>, vector<40x8xf32>
    %285 = arith.truncf %284 : vector<40x8xf32> to vector<40x8xbf16>
    %286 = arith.truncf %283 : vector<8x32xf32> to vector<8x32xbf16>
    %cst_193 = arith.constant dense<0.000000e+00> : vector<40x32xf32>
    %287 = tpu.matmul %285, %286, %cst_193 {dimension_numbers = #tpu.dot_dimension_numbers<[1], [0], [0], [1], [0, 0, 1, 1], [], []>} : vector<40x8xbf16>, vector<8x32xbf16>, vector<40x32xf32> -> vector<40x32xf32>
    %288 = arith.addf %281, %287 : vector<40x32xf32>
    %289 = vector.extract_strided_slice %288 {offsets = [0, 0], sizes = [36, 32], strides = [1, 1]} : vector<40x32xf32> to vector<36x32xf32>
    %c0_194 = arith.constant 0 : index
    %c0_195 = arith.constant 0 : index
    %290 = vector.load %arg21[%c0_194, %c0_195] : memref<1x32xf32, #tpu.memory_space<vmem>>, vector<1x32xf32>
    %291 = vector.broadcast %290 : vector<1x32xf32> to vector<36x32xf32>
    %292 = arith.addf %289, %291 : vector<36x32xf32>
    %293 = math.tanh %292 : vector<36x32xf32>
    %294 = arith.addf %293, %57 : vector<36x32xf32>
    %cst_196 = arith.constant dense<0.000000e+00> : vector<36xf32>
    %295 = vector.multi_reduction <add>, %294, %cst_196 [1] : vector<36x32xf32> to vector<36xf32>
    %296 = vector.shape_cast %295 : vector<36xf32> to vector<36x1xf32>
    %cst_197 = arith.constant 3.200000e+01 : f32
    %297 = vector.broadcast %cst_197 : f32 to vector<36x1xf32>
    %298 = arith.divf %296, %297 : vector<36x1xf32>
    %299 = vector.broadcast %298 : vector<36x1xf32> to vector<36x32xf32>
    %300 = arith.subf %294, %299 : vector<36x32xf32>
    %301 = arith.mulf %300, %300 : vector<36x32xf32>
    %cst_198 = arith.constant dense<0.000000e+00> : vector<36xf32>
    %302 = vector.multi_reduction <add>, %301, %cst_198 [1] : vector<36x32xf32> to vector<36xf32>
    %303 = vector.shape_cast %302 : vector<36xf32> to vector<36x1xf32>
    %cst_199 = arith.constant 3.200000e+01 : f32
    %304 = vector.broadcast %cst_199 : f32 to vector<36x1xf32>
    %305 = arith.divf %303, %304 : vector<36x1xf32>
    %cst_200 = arith.constant 9.99999974E-6 : f32
    %306 = vector.broadcast %cst_200 : f32 to vector<36x1xf32>
    %307 = arith.addf %305, %306 : vector<36x1xf32>
    %308 = math.rsqrt %307 : vector<36x1xf32>
    %309 = vector.broadcast %308 : vector<36x1xf32> to vector<36x32xf32>
    %310 = arith.mulf %300, %309 : vector<36x32xf32>
    %311 = vector.broadcast %54 : vector<1x32xf32> to vector<36x32xf32>
    %312 = arith.mulf %310, %311 : vector<36x32xf32>
    %313 = vector.broadcast %55 : vector<1x32xf32> to vector<36x32xf32>
    %314 = arith.addf %312, %313 : vector<36x32xf32>
    %c0_201 = arith.constant 0 : index
    %c0_202 = arith.constant 0 : index
    %315 = vector.load %arg23[%c0_201, %c0_202] : memref<36x36xbf16, #tpu.memory_space<vmem>>, vector<36x36xbf16>
    %cst_203 = arith.constant dense<0.000000e+00> : vector<36x32xf32>
    %316 = tpu.matmul %315, %53, %cst_203 {dimension_numbers = #tpu.dot_dimension_numbers<[1], [0], [0], [1], [0, 0, 1, 1], [], []>} : vector<36x36xbf16>, vector<36x32xbf16>, vector<36x32xf32> -> vector<36x32xf32>
    %317 = arith.truncf %316 : vector<36x32xf32> to vector<36x32xbf16>
    %cst_204 = arith.constant 0.000000e+00 : f32
    %318 = vector.broadcast %cst_204 : f32 to vector<8x32xf32>
    %c0_205 = arith.constant 0 : index
    %c0_206 = arith.constant 0 : index
    %319 = vector.load %arg24[%c0_205, %c0_206] : memref<128x36xf32, #tpu.memory_space<vmem>>, vector<8x36xf32>
    %320 = arith.truncf %319 : vector<8x36xf32> to vector<8x36xbf16>
    %cst_207 = arith.constant dense<0.000000e+00> : vector<8x32xf32>
    %321 = tpu.matmul %320, %317, %cst_207 {dimension_numbers = #tpu.dot_dimension_numbers<[1], [0], [0], [1], [0, 0, 1, 1], [], []>} : vector<8x36xbf16>, vector<36x32xbf16>, vector<8x32xf32> -> vector<8x32xf32>
    %c0_208 = arith.constant 0 : index
    %c0_209 = arith.constant 0 : index
    %322 = vector.load %arg25[%c0_208, %c0_209] : memref<512x32xbf16, #tpu.memory_space<vmem>>, vector<32x32xbf16>
    %323 = arith.truncf %321 : vector<8x32xf32> to vector<8x32xbf16>
    %cst_210 = arith.constant dense<0.000000e+00> : vector<8x32xf32>
    %324 = tpu.matmul %323, %322, %cst_210 {dimension_numbers = #tpu.dot_dimension_numbers<[1], [0], [0], [1], [0, 0, 1, 1], [], []>} : vector<8x32xbf16>, vector<32x32xbf16>, vector<8x32xf32> -> vector<8x32xf32>
    %325 = arith.addf %318, %324 : vector<8x32xf32>
    %c8_211 = arith.constant 8 : index
    %c0_212 = arith.constant 0 : index
    %326 = vector.load %arg24[%c8_211, %c0_212] : memref<128x36xf32, #tpu.memory_space<vmem>>, vector<8x36xf32>
    %327 = arith.truncf %326 : vector<8x36xf32> to vector<8x36xbf16>
    %cst_213 = arith.constant dense<0.000000e+00> : vector<8x32xf32>
    %328 = tpu.matmul %327, %317, %cst_213 {dimension_numbers = #tpu.dot_dimension_numbers<[1], [0], [0], [1], [0, 0, 1, 1], [], []>} : vector<8x36xbf16>, vector<36x32xbf16>, vector<8x32xf32> -> vector<8x32xf32>
    %c32_214 = arith.constant 32 : index
    %c0_215 = arith.constant 0 : index
    %329 = vector.load %arg25[%c32_214, %c0_215] : memref<512x32xbf16, #tpu.memory_space<vmem>>, vector<32x32xbf16>
    %330 = arith.truncf %328 : vector<8x32xf32> to vector<8x32xbf16>
    %cst_216 = arith.constant dense<0.000000e+00> : vector<8x32xf32>
    %331 = tpu.matmul %330, %329, %cst_216 {dimension_numbers = #tpu.dot_dimension_numbers<[1], [0], [0], [1], [0, 0, 1, 1], [], []>} : vector<8x32xbf16>, vector<32x32xbf16>, vector<8x32xf32> -> vector<8x32xf32>
    %332 = arith.addf %325, %331 : vector<8x32xf32>
    %c16_217 = arith.constant 16 : index
    %c0_218 = arith.constant 0 : index
    %333 = vector.load %arg24[%c16_217, %c0_218] : memref<128x36xf32, #tpu.memory_space<vmem>>, vector<8x36xf32>
    %334 = arith.truncf %333 : vector<8x36xf32> to vector<8x36xbf16>
    %cst_219 = arith.constant dense<0.000000e+00> : vector<8x32xf32>
    %335 = tpu.matmul %334, %317, %cst_219 {dimension_numbers = #tpu.dot_dimension_numbers<[1], [0], [0], [1], [0, 0, 1, 1], [], []>} : vector<8x36xbf16>, vector<36x32xbf16>, vector<8x32xf32> -> vector<8x32xf32>
    %c64_220 = arith.constant 64 : index
    %c0_221 = arith.constant 0 : index
    %336 = vector.load %arg25[%c64_220, %c0_221] : memref<512x32xbf16, #tpu.memory_space<vmem>>, vector<32x32xbf16>
    %337 = arith.truncf %335 : vector<8x32xf32> to vector<8x32xbf16>
    %cst_222 = arith.constant dense<0.000000e+00> : vector<8x32xf32>
    %338 = tpu.matmul %337, %336, %cst_222 {dimension_numbers = #tpu.dot_dimension_numbers<[1], [0], [0], [1], [0, 0, 1, 1], [], []>} : vector<8x32xbf16>, vector<32x32xbf16>, vector<8x32xf32> -> vector<8x32xf32>
    %339 = arith.addf %332, %338 : vector<8x32xf32>
    %c24_223 = arith.constant 24 : index
    %c0_224 = arith.constant 0 : index
    %340 = vector.load %arg24[%c24_223, %c0_224] : memref<128x36xf32, #tpu.memory_space<vmem>>, vector<8x36xf32>
    %341 = arith.truncf %340 : vector<8x36xf32> to vector<8x36xbf16>
    %cst_225 = arith.constant dense<0.000000e+00> : vector<8x32xf32>
    %342 = tpu.matmul %341, %317, %cst_225 {dimension_numbers = #tpu.dot_dimension_numbers<[1], [0], [0], [1], [0, 0, 1, 1], [], []>} : vector<8x36xbf16>, vector<36x32xbf16>, vector<8x32xf32> -> vector<8x32xf32>
    %c96_226 = arith.constant 96 : index
    %c0_227 = arith.constant 0 : index
    %343 = vector.load %arg25[%c96_226, %c0_227] : memref<512x32xbf16, #tpu.memory_space<vmem>>, vector<32x32xbf16>
    %344 = arith.truncf %342 : vector<8x32xf32> to vector<8x32xbf16>
    %cst_228 = arith.constant dense<0.000000e+00> : vector<8x32xf32>
    %345 = tpu.matmul %344, %343, %cst_228 {dimension_numbers = #tpu.dot_dimension_numbers<[1], [0], [0], [1], [0, 0, 1, 1], [], []>} : vector<8x32xbf16>, vector<32x32xbf16>, vector<8x32xf32> -> vector<8x32xf32>
    %346 = arith.addf %339, %345 : vector<8x32xf32>
    %c32_229 = arith.constant 32 : index
    %c0_230 = arith.constant 0 : index
    %347 = vector.load %arg24[%c32_229, %c0_230] : memref<128x36xf32, #tpu.memory_space<vmem>>, vector<8x36xf32>
    %348 = arith.truncf %347 : vector<8x36xf32> to vector<8x36xbf16>
    %cst_231 = arith.constant dense<0.000000e+00> : vector<8x32xf32>
    %349 = tpu.matmul %348, %317, %cst_231 {dimension_numbers = #tpu.dot_dimension_numbers<[1], [0], [0], [1], [0, 0, 1, 1], [], []>} : vector<8x36xbf16>, vector<36x32xbf16>, vector<8x32xf32> -> vector<8x32xf32>
    %c128_232 = arith.constant 128 : index
    %c0_233 = arith.constant 0 : index
    %350 = vector.load %arg25[%c128_232, %c0_233] : memref<512x32xbf16, #tpu.memory_space<vmem>>, vector<32x32xbf16>
    %351 = arith.truncf %349 : vector<8x32xf32> to vector<8x32xbf16>
    %cst_234 = arith.constant dense<0.000000e+00> : vector<8x32xf32>
    %352 = tpu.matmul %351, %350, %cst_234 {dimension_numbers = #tpu.dot_dimension_numbers<[1], [0], [0], [1], [0, 0, 1, 1], [], []>} : vector<8x32xbf16>, vector<32x32xbf16>, vector<8x32xf32> -> vector<8x32xf32>
    %353 = arith.addf %346, %352 : vector<8x32xf32>
    %c40_235 = arith.constant 40 : index
    %c0_236 = arith.constant 0 : index
    %354 = vector.load %arg24[%c40_235, %c0_236] : memref<128x36xf32, #tpu.memory_space<vmem>>, vector<8x36xf32>
    %355 = arith.truncf %354 : vector<8x36xf32> to vector<8x36xbf16>
    %cst_237 = arith.constant dense<0.000000e+00> : vector<8x32xf32>
    %356 = tpu.matmul %355, %317, %cst_237 {dimension_numbers = #tpu.dot_dimension_numbers<[1], [0], [0], [1], [0, 0, 1, 1], [], []>} : vector<8x36xbf16>, vector<36x32xbf16>, vector<8x32xf32> -> vector<8x32xf32>
    %c160_238 = arith.constant 160 : index
    %c0_239 = arith.constant 0 : index
    %357 = vector.load %arg25[%c160_238, %c0_239] : memref<512x32xbf16, #tpu.memory_space<vmem>>, vector<32x32xbf16>
    %358 = arith.truncf %356 : vector<8x32xf32> to vector<8x32xbf16>
    %cst_240 = arith.constant dense<0.000000e+00> : vector<8x32xf32>
    %359 = tpu.matmul %358, %357, %cst_240 {dimension_numbers = #tpu.dot_dimension_numbers<[1], [0], [0], [1], [0, 0, 1, 1], [], []>} : vector<8x32xbf16>, vector<32x32xbf16>, vector<8x32xf32> -> vector<8x32xf32>
    %360 = arith.addf %353, %359 : vector<8x32xf32>
    %c48_241 = arith.constant 48 : index
    %c0_242 = arith.constant 0 : index
    %361 = vector.load %arg24[%c48_241, %c0_242] : memref<128x36xf32, #tpu.memory_space<vmem>>, vector<8x36xf32>
    %362 = arith.truncf %361 : vector<8x36xf32> to vector<8x36xbf16>
    %cst_243 = arith.constant dense<0.000000e+00> : vector<8x32xf32>
    %363 = tpu.matmul %362, %317, %cst_243 {dimension_numbers = #tpu.dot_dimension_numbers<[1], [0], [0], [1], [0, 0, 1, 1], [], []>} : vector<8x36xbf16>, vector<36x32xbf16>, vector<8x32xf32> -> vector<8x32xf32>
    %c192_244 = arith.constant 192 : index
    %c0_245 = arith.constant 0 : index
    %364 = vector.load %arg25[%c192_244, %c0_245] : memref<512x32xbf16, #tpu.memory_space<vmem>>, vector<32x32xbf16>
    %365 = arith.truncf %363 : vector<8x32xf32> to vector<8x32xbf16>
    %cst_246 = arith.constant dense<0.000000e+00> : vector<8x32xf32>
    %366 = tpu.matmul %365, %364, %cst_246 {dimension_numbers = #tpu.dot_dimension_numbers<[1], [0], [0], [1], [0, 0, 1, 1], [], []>} : vector<8x32xbf16>, vector<32x32xbf16>, vector<8x32xf32> -> vector<8x32xf32>
    %367 = arith.addf %360, %366 : vector<8x32xf32>
    %c56_247 = arith.constant 56 : index
    %c0_248 = arith.constant 0 : index
    %368 = vector.load %arg24[%c56_247, %c0_248] : memref<128x36xf32, #tpu.memory_space<vmem>>, vector<8x36xf32>
    %369 = arith.truncf %368 : vector<8x36xf32> to vector<8x36xbf16>
    %cst_249 = arith.constant dense<0.000000e+00> : vector<8x32xf32>
    %370 = tpu.matmul %369, %317, %cst_249 {dimension_numbers = #tpu.dot_dimension_numbers<[1], [0], [0], [1], [0, 0, 1, 1], [], []>} : vector<8x36xbf16>, vector<36x32xbf16>, vector<8x32xf32> -> vector<8x32xf32>
    %c224_250 = arith.constant 224 : index
    %c0_251 = arith.constant 0 : index
    %371 = vector.load %arg25[%c224_250, %c0_251] : memref<512x32xbf16, #tpu.memory_space<vmem>>, vector<32x32xbf16>
    %372 = arith.truncf %370 : vector<8x32xf32> to vector<8x32xbf16>
    %cst_252 = arith.constant dense<0.000000e+00> : vector<8x32xf32>
    %373 = tpu.matmul %372, %371, %cst_252 {dimension_numbers = #tpu.dot_dimension_numbers<[1], [0], [0], [1], [0, 0, 1, 1], [], []>} : vector<8x32xbf16>, vector<32x32xbf16>, vector<8x32xf32> -> vector<8x32xf32>
    %374 = arith.addf %367, %373 : vector<8x32xf32>
    %c64_253 = arith.constant 64 : index
    %c0_254 = arith.constant 0 : index
    %375 = vector.load %arg24[%c64_253, %c0_254] : memref<128x36xf32, #tpu.memory_space<vmem>>, vector<8x36xf32>
    %376 = arith.truncf %375 : vector<8x36xf32> to vector<8x36xbf16>
    %cst_255 = arith.constant dense<0.000000e+00> : vector<8x32xf32>
    %377 = tpu.matmul %376, %317, %cst_255 {dimension_numbers = #tpu.dot_dimension_numbers<[1], [0], [0], [1], [0, 0, 1, 1], [], []>} : vector<8x36xbf16>, vector<36x32xbf16>, vector<8x32xf32> -> vector<8x32xf32>
    %c256_256 = arith.constant 256 : index
    %c0_257 = arith.constant 0 : index
    %378 = vector.load %arg25[%c256_256, %c0_257] : memref<512x32xbf16, #tpu.memory_space<vmem>>, vector<32x32xbf16>
    %379 = arith.truncf %377 : vector<8x32xf32> to vector<8x32xbf16>
    %cst_258 = arith.constant dense<0.000000e+00> : vector<8x32xf32>
    %380 = tpu.matmul %379, %378, %cst_258 {dimension_numbers = #tpu.dot_dimension_numbers<[1], [0], [0], [1], [0, 0, 1, 1], [], []>} : vector<8x32xbf16>, vector<32x32xbf16>, vector<8x32xf32> -> vector<8x32xf32>
    %381 = arith.addf %374, %380 : vector<8x32xf32>
    %c72_259 = arith.constant 72 : index
    %c0_260 = arith.constant 0 : index
    %382 = vector.load %arg24[%c72_259, %c0_260] : memref<128x36xf32, #tpu.memory_space<vmem>>, vector<8x36xf32>
    %383 = arith.truncf %382 : vector<8x36xf32> to vector<8x36xbf16>
    %cst_261 = arith.constant dense<0.000000e+00> : vector<8x32xf32>
    %384 = tpu.matmul %383, %317, %cst_261 {dimension_numbers = #tpu.dot_dimension_numbers<[1], [0], [0], [1], [0, 0, 1, 1], [], []>} : vector<8x36xbf16>, vector<36x32xbf16>, vector<8x32xf32> -> vector<8x32xf32>
    %c288_262 = arith.constant 288 : index
    %c0_263 = arith.constant 0 : index
    %385 = vector.load %arg25[%c288_262, %c0_263] : memref<512x32xbf16, #tpu.memory_space<vmem>>, vector<32x32xbf16>
    %386 = arith.truncf %384 : vector<8x32xf32> to vector<8x32xbf16>
    %cst_264 = arith.constant dense<0.000000e+00> : vector<8x32xf32>
    %387 = tpu.matmul %386, %385, %cst_264 {dimension_numbers = #tpu.dot_dimension_numbers<[1], [0], [0], [1], [0, 0, 1, 1], [], []>} : vector<8x32xbf16>, vector<32x32xbf16>, vector<8x32xf32> -> vector<8x32xf32>
    %388 = arith.addf %381, %387 : vector<8x32xf32>
    %c80_265 = arith.constant 80 : index
    %c0_266 = arith.constant 0 : index
    %389 = vector.load %arg24[%c80_265, %c0_266] : memref<128x36xf32, #tpu.memory_space<vmem>>, vector<8x36xf32>
    %390 = arith.truncf %389 : vector<8x36xf32> to vector<8x36xbf16>
    %cst_267 = arith.constant dense<0.000000e+00> : vector<8x32xf32>
    %391 = tpu.matmul %390, %317, %cst_267 {dimension_numbers = #tpu.dot_dimension_numbers<[1], [0], [0], [1], [0, 0, 1, 1], [], []>} : vector<8x36xbf16>, vector<36x32xbf16>, vector<8x32xf32> -> vector<8x32xf32>
    %c320_268 = arith.constant 320 : index
    %c0_269 = arith.constant 0 : index
    %392 = vector.load %arg25[%c320_268, %c0_269] : memref<512x32xbf16, #tpu.memory_space<vmem>>, vector<32x32xbf16>
    %393 = arith.truncf %391 : vector<8x32xf32> to vector<8x32xbf16>
    %cst_270 = arith.constant dense<0.000000e+00> : vector<8x32xf32>
    %394 = tpu.matmul %393, %392, %cst_270 {dimension_numbers = #tpu.dot_dimension_numbers<[1], [0], [0], [1], [0, 0, 1, 1], [], []>} : vector<8x32xbf16>, vector<32x32xbf16>, vector<8x32xf32> -> vector<8x32xf32>
    %395 = arith.addf %388, %394 : vector<8x32xf32>
    %c88_271 = arith.constant 88 : index
    %c0_272 = arith.constant 0 : index
    %396 = vector.load %arg24[%c88_271, %c0_272] : memref<128x36xf32, #tpu.memory_space<vmem>>, vector<8x36xf32>
    %397 = arith.truncf %396 : vector<8x36xf32> to vector<8x36xbf16>
    %cst_273 = arith.constant dense<0.000000e+00> : vector<8x32xf32>
    %398 = tpu.matmul %397, %317, %cst_273 {dimension_numbers = #tpu.dot_dimension_numbers<[1], [0], [0], [1], [0, 0, 1, 1], [], []>} : vector<8x36xbf16>, vector<36x32xbf16>, vector<8x32xf32> -> vector<8x32xf32>
    %c352_274 = arith.constant 352 : index
    %c0_275 = arith.constant 0 : index
    %399 = vector.load %arg25[%c352_274, %c0_275] : memref<512x32xbf16, #tpu.memory_space<vmem>>, vector<32x32xbf16>
    %400 = arith.truncf %398 : vector<8x32xf32> to vector<8x32xbf16>
    %cst_276 = arith.constant dense<0.000000e+00> : vector<8x32xf32>
    %401 = tpu.matmul %400, %399, %cst_276 {dimension_numbers = #tpu.dot_dimension_numbers<[1], [0], [0], [1], [0, 0, 1, 1], [], []>} : vector<8x32xbf16>, vector<32x32xbf16>, vector<8x32xf32> -> vector<8x32xf32>
    %402 = arith.addf %395, %401 : vector<8x32xf32>
    %c96_277 = arith.constant 96 : index
    %c0_278 = arith.constant 0 : index
    %403 = vector.load %arg24[%c96_277, %c0_278] : memref<128x36xf32, #tpu.memory_space<vmem>>, vector<8x36xf32>
    %404 = arith.truncf %403 : vector<8x36xf32> to vector<8x36xbf16>
    %cst_279 = arith.constant dense<0.000000e+00> : vector<8x32xf32>
    %405 = tpu.matmul %404, %317, %cst_279 {dimension_numbers = #tpu.dot_dimension_numbers<[1], [0], [0], [1], [0, 0, 1, 1], [], []>} : vector<8x36xbf16>, vector<36x32xbf16>, vector<8x32xf32> -> vector<8x32xf32>
    %c384 = arith.constant 384 : index
    %c0_280 = arith.constant 0 : index
    %406 = vector.load %arg25[%c384, %c0_280] : memref<512x32xbf16, #tpu.memory_space<vmem>>, vector<32x32xbf16>
    %407 = arith.truncf %405 : vector<8x32xf32> to vector<8x32xbf16>
    %cst_281 = arith.constant dense<0.000000e+00> : vector<8x32xf32>
    %408 = tpu.matmul %407, %406, %cst_281 {dimension_numbers = #tpu.dot_dimension_numbers<[1], [0], [0], [1], [0, 0, 1, 1], [], []>} : vector<8x32xbf16>, vector<32x32xbf16>, vector<8x32xf32> -> vector<8x32xf32>
    %409 = arith.addf %402, %408 : vector<8x32xf32>
    %c104 = arith.constant 104 : index
    %c0_282 = arith.constant 0 : index
    %410 = vector.load %arg24[%c104, %c0_282] : memref<128x36xf32, #tpu.memory_space<vmem>>, vector<8x36xf32>
    %411 = arith.truncf %410 : vector<8x36xf32> to vector<8x36xbf16>
    %cst_283 = arith.constant dense<0.000000e+00> : vector<8x32xf32>
    %412 = tpu.matmul %411, %317, %cst_283 {dimension_numbers = #tpu.dot_dimension_numbers<[1], [0], [0], [1], [0, 0, 1, 1], [], []>} : vector<8x36xbf16>, vector<36x32xbf16>, vector<8x32xf32> -> vector<8x32xf32>
    %c416 = arith.constant 416 : index
    %c0_284 = arith.constant 0 : index
    %413 = vector.load %arg25[%c416, %c0_284] : memref<512x32xbf16, #tpu.memory_space<vmem>>, vector<32x32xbf16>
    %414 = arith.truncf %412 : vector<8x32xf32> to vector<8x32xbf16>
    %cst_285 = arith.constant dense<0.000000e+00> : vector<8x32xf32>
    %415 = tpu.matmul %414, %413, %cst_285 {dimension_numbers = #tpu.dot_dimension_numbers<[1], [0], [0], [1], [0, 0, 1, 1], [], []>} : vector<8x32xbf16>, vector<32x32xbf16>, vector<8x32xf32> -> vector<8x32xf32>
    %416 = arith.addf %409, %415 : vector<8x32xf32>
    %c112 = arith.constant 112 : index
    %c0_286 = arith.constant 0 : index
    %417 = vector.load %arg24[%c112, %c0_286] : memref<128x36xf32, #tpu.memory_space<vmem>>, vector<8x36xf32>
    %418 = arith.truncf %417 : vector<8x36xf32> to vector<8x36xbf16>
    %cst_287 = arith.constant dense<0.000000e+00> : vector<8x32xf32>
    %419 = tpu.matmul %418, %317, %cst_287 {dimension_numbers = #tpu.dot_dimension_numbers<[1], [0], [0], [1], [0, 0, 1, 1], [], []>} : vector<8x36xbf16>, vector<36x32xbf16>, vector<8x32xf32> -> vector<8x32xf32>
    %c448 = arith.constant 448 : index
    %c0_288 = arith.constant 0 : index
    %420 = vector.load %arg25[%c448, %c0_288] : memref<512x32xbf16, #tpu.memory_space<vmem>>, vector<32x32xbf16>
    %421 = arith.truncf %419 : vector<8x32xf32> to vector<8x32xbf16>
    %cst_289 = arith.constant dense<0.000000e+00> : vector<8x32xf32>
    %422 = tpu.matmul %421, %420, %cst_289 {dimension_numbers = #tpu.dot_dimension_numbers<[1], [0], [0], [1], [0, 0, 1, 1], [], []>} : vector<8x32xbf16>, vector<32x32xbf16>, vector<8x32xf32> -> vector<8x32xf32>
    %423 = arith.addf %416, %422 : vector<8x32xf32>
    %c120_290 = arith.constant 120 : index
    %c0_291 = arith.constant 0 : index
    %424 = vector.load %arg24[%c120_290, %c0_291] : memref<128x36xf32, #tpu.memory_space<vmem>>, vector<8x36xf32>
    %425 = arith.truncf %424 : vector<8x36xf32> to vector<8x36xbf16>
    %cst_292 = arith.constant dense<0.000000e+00> : vector<8x32xf32>
    %426 = tpu.matmul %425, %317, %cst_292 {dimension_numbers = #tpu.dot_dimension_numbers<[1], [0], [0], [1], [0, 0, 1, 1], [], []>} : vector<8x36xbf16>, vector<36x32xbf16>, vector<8x32xf32> -> vector<8x32xf32>
    %c480 = arith.constant 480 : index
    %c0_293 = arith.constant 0 : index
    %427 = vector.load %arg25[%c480, %c0_293] : memref<512x32xbf16, #tpu.memory_space<vmem>>, vector<32x32xbf16>
    %428 = arith.truncf %426 : vector<8x32xf32> to vector<8x32xbf16>
    %cst_294 = arith.constant dense<0.000000e+00> : vector<8x32xf32>
    %429 = tpu.matmul %428, %427, %cst_294 {dimension_numbers = #tpu.dot_dimension_numbers<[1], [0], [0], [1], [0, 0, 1, 1], [], []>} : vector<8x32xbf16>, vector<32x32xbf16>, vector<8x32xf32> -> vector<8x32xf32>
    %430 = arith.addf %423, %429 : vector<8x32xf32>
    %c0_295 = arith.constant 0 : index
    %c0_296 = arith.constant 0 : index
    %431 = vector.load %arg26[%c0_295, %c0_296] : memref<1x32xf32, #tpu.memory_space<vmem>>, vector<1x32xf32>
    %432 = vector.broadcast %431 : vector<1x32xf32> to vector<8x32xf32>
    %433 = arith.addf %430, %432 : vector<8x32xf32>
    %434 = math.tanh %433 : vector<8x32xf32>
    %435 = arith.truncf %434 : vector<8x32xf32> to vector<8x32xbf16>
    %cst_297 = arith.constant 0.000000e+00 : f32
    %436 = vector.broadcast %cst_297 : f32 to vector<8x32xf32>
    %c0_298 = arith.constant 0 : index
    %c0_299 = arith.constant 0 : index
    %437 = vector.load %arg27[%c0_298, %c0_299] : memref<24x8xf32, #tpu.memory_space<vmem>>, vector<8x8xf32>
    %438 = arith.truncf %437 : vector<8x8xf32> to vector<8x8xbf16>
    %cst_300 = arith.constant dense<0.000000e+00> : vector<8x32xf32>
    %439 = tpu.matmul %438, %435, %cst_300 {dimension_numbers = #tpu.dot_dimension_numbers<[1], [0], [0], [1], [0, 0, 1, 1], [], []>} : vector<8x8xbf16>, vector<8x32xbf16>, vector<8x32xf32> -> vector<8x32xf32>
    %c0_301 = arith.constant 0 : index
    %c0_302 = arith.constant 0 : index
    %440 = vector.load %arg28[%c0_301, %c0_302] : memref<96x32xbf16, #tpu.memory_space<vmem>>, vector<32x32xbf16>
    %441 = arith.truncf %439 : vector<8x32xf32> to vector<8x32xbf16>
    %cst_303 = arith.constant dense<0.000000e+00> : vector<8x32xf32>
    %442 = tpu.matmul %441, %440, %cst_303 {dimension_numbers = #tpu.dot_dimension_numbers<[1], [0], [0], [1], [0, 0, 1, 1], [], []>} : vector<8x32xbf16>, vector<32x32xbf16>, vector<8x32xf32> -> vector<8x32xf32>
    %443 = arith.addf %436, %442 : vector<8x32xf32>
    %c8_304 = arith.constant 8 : index
    %c0_305 = arith.constant 0 : index
    %444 = vector.load %arg27[%c8_304, %c0_305] : memref<24x8xf32, #tpu.memory_space<vmem>>, vector<8x8xf32>
    %445 = arith.truncf %444 : vector<8x8xf32> to vector<8x8xbf16>
    %cst_306 = arith.constant dense<0.000000e+00> : vector<8x32xf32>
    %446 = tpu.matmul %445, %435, %cst_306 {dimension_numbers = #tpu.dot_dimension_numbers<[1], [0], [0], [1], [0, 0, 1, 1], [], []>} : vector<8x8xbf16>, vector<8x32xbf16>, vector<8x32xf32> -> vector<8x32xf32>
    %c32_307 = arith.constant 32 : index
    %c0_308 = arith.constant 0 : index
    %447 = vector.load %arg28[%c32_307, %c0_308] : memref<96x32xbf16, #tpu.memory_space<vmem>>, vector<32x32xbf16>
    %448 = arith.truncf %446 : vector<8x32xf32> to vector<8x32xbf16>
    %cst_309 = arith.constant dense<0.000000e+00> : vector<8x32xf32>
    %449 = tpu.matmul %448, %447, %cst_309 {dimension_numbers = #tpu.dot_dimension_numbers<[1], [0], [0], [1], [0, 0, 1, 1], [], []>} : vector<8x32xbf16>, vector<32x32xbf16>, vector<8x32xf32> -> vector<8x32xf32>
    %450 = arith.addf %443, %449 : vector<8x32xf32>
    %c16_310 = arith.constant 16 : index
    %c0_311 = arith.constant 0 : index
    %451 = vector.load %arg27[%c16_310, %c0_311] : memref<24x8xf32, #tpu.memory_space<vmem>>, vector<8x8xf32>
    %452 = arith.truncf %451 : vector<8x8xf32> to vector<8x8xbf16>
    %cst_312 = arith.constant dense<0.000000e+00> : vector<8x32xf32>
    %453 = tpu.matmul %452, %435, %cst_312 {dimension_numbers = #tpu.dot_dimension_numbers<[1], [0], [0], [1], [0, 0, 1, 1], [], []>} : vector<8x8xbf16>, vector<8x32xbf16>, vector<8x32xf32> -> vector<8x32xf32>
    %c64_313 = arith.constant 64 : index
    %c0_314 = arith.constant 0 : index
    %454 = vector.load %arg28[%c64_313, %c0_314] : memref<96x32xbf16, #tpu.memory_space<vmem>>, vector<32x32xbf16>
    %455 = arith.truncf %453 : vector<8x32xf32> to vector<8x32xbf16>
    %cst_315 = arith.constant dense<0.000000e+00> : vector<8x32xf32>
    %456 = tpu.matmul %455, %454, %cst_315 {dimension_numbers = #tpu.dot_dimension_numbers<[1], [0], [0], [1], [0, 0, 1, 1], [], []>} : vector<8x32xbf16>, vector<32x32xbf16>, vector<8x32xf32> -> vector<8x32xf32>
    %457 = arith.addf %450, %456 : vector<8x32xf32>
    %c0_316 = arith.constant 0 : index
    %c0_317 = arith.constant 0 : index
    %458 = vector.load %arg29[%c0_316, %c0_317] : memref<1x32xf32, #tpu.memory_space<vmem>>, vector<1x32xf32>
    %459 = vector.broadcast %458 : vector<1x32xf32> to vector<8x32xf32>
    %460 = arith.addf %457, %459 : vector<8x32xf32>
    %461 = math.tanh %460 : vector<8x32xf32>
    %462 = arith.addf %461, %434 : vector<8x32xf32>
    %cst_318 = arith.constant dense<0.000000e+00> : vector<8xf32>
    %463 = vector.multi_reduction <add>, %462, %cst_318 [1] : vector<8x32xf32> to vector<8xf32>
    %464 = vector.shape_cast %463 : vector<8xf32> to vector<8x1xf32>
    %cst_319 = arith.constant 3.200000e+01 : f32
    %465 = vector.broadcast %cst_319 : f32 to vector<8x1xf32>
    %466 = arith.divf %464, %465 : vector<8x1xf32>
    %467 = vector.broadcast %466 : vector<8x1xf32> to vector<8x32xf32>
    %468 = arith.subf %462, %467 : vector<8x32xf32>
    %469 = arith.mulf %468, %468 : vector<8x32xf32>
    %cst_320 = arith.constant dense<0.000000e+00> : vector<8xf32>
    %470 = vector.multi_reduction <add>, %469, %cst_320 [1] : vector<8x32xf32> to vector<8xf32>
    %471 = vector.shape_cast %470 : vector<8xf32> to vector<8x1xf32>
    %cst_321 = arith.constant 3.200000e+01 : f32
    %472 = vector.broadcast %cst_321 : f32 to vector<8x1xf32>
    %473 = arith.divf %471, %472 : vector<8x1xf32>
    %cst_322 = arith.constant 9.99999974E-6 : f32
    %474 = vector.broadcast %cst_322 : f32 to vector<8x1xf32>
    %475 = arith.addf %473, %474 : vector<8x1xf32>
    %476 = math.rsqrt %475 : vector<8x1xf32>
    %477 = vector.broadcast %476 : vector<8x1xf32> to vector<8x32xf32>
    %478 = arith.mulf %468, %477 : vector<8x32xf32>
    %479 = vector.broadcast %54 : vector<1x32xf32> to vector<8x32xf32>
    %480 = arith.mulf %478, %479 : vector<8x32xf32>
    %481 = vector.broadcast %55 : vector<1x32xf32> to vector<8x32xf32>
    %482 = arith.addf %480, %481 : vector<8x32xf32>
    %483 = arith.truncf %482 : vector<8x32xf32> to vector<8x32xbf16>
    %cst_323 = arith.constant 0.000000e+00 : f32
    %484 = vector.broadcast %cst_323 : f32 to vector<40x32xf32>
    %c0_324 = arith.constant 0 : index
    %c0_325 = arith.constant 0 : index
    %485 = vector.load %arg30[%c0_324, %c0_325] : memref<512x32xbf16, #tpu.memory_space<vmem>>, vector<32x32xbf16>
    %cst_326 = arith.constant dense<0.000000e+00> : vector<8x32xf32>
    %486 = tpu.matmul %483, %485, %cst_326 {dimension_numbers = #tpu.dot_dimension_numbers<[1], [0], [0], [1], [0, 0, 1, 1], [], []>} : vector<8x32xbf16>, vector<32x32xbf16>, vector<8x32xf32> -> vector<8x32xf32>
    %c0_327 = arith.constant 0 : index
    %c0_328 = arith.constant 0 : index
    %487 = vector.load %arg32[%c0_327, %c0_328] : memref<640x8xf32, #tpu.memory_space<vmem>>, vector<40x8xf32>
    %488 = arith.truncf %487 : vector<40x8xf32> to vector<40x8xbf16>
    %489 = arith.truncf %486 : vector<8x32xf32> to vector<8x32xbf16>
    %cst_329 = arith.constant dense<0.000000e+00> : vector<40x32xf32>
    %490 = tpu.matmul %488, %489, %cst_329 {dimension_numbers = #tpu.dot_dimension_numbers<[1], [0], [0], [1], [0, 0, 1, 1], [], []>} : vector<40x8xbf16>, vector<8x32xbf16>, vector<40x32xf32> -> vector<40x32xf32>
    %491 = arith.addf %484, %490 : vector<40x32xf32>
    %c32_330 = arith.constant 32 : index
    %c0_331 = arith.constant 0 : index
    %492 = vector.load %arg30[%c32_330, %c0_331] : memref<512x32xbf16, #tpu.memory_space<vmem>>, vector<32x32xbf16>
    %cst_332 = arith.constant dense<0.000000e+00> : vector<8x32xf32>
    %493 = tpu.matmul %483, %492, %cst_332 {dimension_numbers = #tpu.dot_dimension_numbers<[1], [0], [0], [1], [0, 0, 1, 1], [], []>} : vector<8x32xbf16>, vector<32x32xbf16>, vector<8x32xf32> -> vector<8x32xf32>
    %c40_333 = arith.constant 40 : index
    %c0_334 = arith.constant 0 : index
    %494 = vector.load %arg32[%c40_333, %c0_334] : memref<640x8xf32, #tpu.memory_space<vmem>>, vector<40x8xf32>
    %495 = arith.truncf %494 : vector<40x8xf32> to vector<40x8xbf16>
    %496 = arith.truncf %493 : vector<8x32xf32> to vector<8x32xbf16>
    %cst_335 = arith.constant dense<0.000000e+00> : vector<40x32xf32>
    %497 = tpu.matmul %495, %496, %cst_335 {dimension_numbers = #tpu.dot_dimension_numbers<[1], [0], [0], [1], [0, 0, 1, 1], [], []>} : vector<40x8xbf16>, vector<8x32xbf16>, vector<40x32xf32> -> vector<40x32xf32>
    %498 = arith.addf %491, %497 : vector<40x32xf32>
    %c64_336 = arith.constant 64 : index
    %c0_337 = arith.constant 0 : index
    %499 = vector.load %arg30[%c64_336, %c0_337] : memref<512x32xbf16, #tpu.memory_space<vmem>>, vector<32x32xbf16>
    %cst_338 = arith.constant dense<0.000000e+00> : vector<8x32xf32>
    %500 = tpu.matmul %483, %499, %cst_338 {dimension_numbers = #tpu.dot_dimension_numbers<[1], [0], [0], [1], [0, 0, 1, 1], [], []>} : vector<8x32xbf16>, vector<32x32xbf16>, vector<8x32xf32> -> vector<8x32xf32>
    %c80_339 = arith.constant 80 : index
    %c0_340 = arith.constant 0 : index
    %501 = vector.load %arg32[%c80_339, %c0_340] : memref<640x8xf32, #tpu.memory_space<vmem>>, vector<40x8xf32>
    %502 = arith.truncf %501 : vector<40x8xf32> to vector<40x8xbf16>
    %503 = arith.truncf %500 : vector<8x32xf32> to vector<8x32xbf16>
    %cst_341 = arith.constant dense<0.000000e+00> : vector<40x32xf32>
    %504 = tpu.matmul %502, %503, %cst_341 {dimension_numbers = #tpu.dot_dimension_numbers<[1], [0], [0], [1], [0, 0, 1, 1], [], []>} : vector<40x8xbf16>, vector<8x32xbf16>, vector<40x32xf32> -> vector<40x32xf32>
    %505 = arith.addf %498, %504 : vector<40x32xf32>
    %c96_342 = arith.constant 96 : index
    %c0_343 = arith.constant 0 : index
    %506 = vector.load %arg30[%c96_342, %c0_343] : memref<512x32xbf16, #tpu.memory_space<vmem>>, vector<32x32xbf16>
    %cst_344 = arith.constant dense<0.000000e+00> : vector<8x32xf32>
    %507 = tpu.matmul %483, %506, %cst_344 {dimension_numbers = #tpu.dot_dimension_numbers<[1], [0], [0], [1], [0, 0, 1, 1], [], []>} : vector<8x32xbf16>, vector<32x32xbf16>, vector<8x32xf32> -> vector<8x32xf32>
    %c120_345 = arith.constant 120 : index
    %c0_346 = arith.constant 0 : index
    %508 = vector.load %arg32[%c120_345, %c0_346] : memref<640x8xf32, #tpu.memory_space<vmem>>, vector<40x8xf32>
    %509 = arith.truncf %508 : vector<40x8xf32> to vector<40x8xbf16>
    %510 = arith.truncf %507 : vector<8x32xf32> to vector<8x32xbf16>
    %cst_347 = arith.constant dense<0.000000e+00> : vector<40x32xf32>
    %511 = tpu.matmul %509, %510, %cst_347 {dimension_numbers = #tpu.dot_dimension_numbers<[1], [0], [0], [1], [0, 0, 1, 1], [], []>} : vector<40x8xbf16>, vector<8x32xbf16>, vector<40x32xf32> -> vector<40x32xf32>
    %512 = arith.addf %505, %511 : vector<40x32xf32>
    %c128_348 = arith.constant 128 : index
    %c0_349 = arith.constant 0 : index
    %513 = vector.load %arg30[%c128_348, %c0_349] : memref<512x32xbf16, #tpu.memory_space<vmem>>, vector<32x32xbf16>
    %cst_350 = arith.constant dense<0.000000e+00> : vector<8x32xf32>
    %514 = tpu.matmul %483, %513, %cst_350 {dimension_numbers = #tpu.dot_dimension_numbers<[1], [0], [0], [1], [0, 0, 1, 1], [], []>} : vector<8x32xbf16>, vector<32x32xbf16>, vector<8x32xf32> -> vector<8x32xf32>
    %c160_351 = arith.constant 160 : index
    %c0_352 = arith.constant 0 : index
    %515 = vector.load %arg32[%c160_351, %c0_352] : memref<640x8xf32, #tpu.memory_space<vmem>>, vector<40x8xf32>
    %516 = arith.truncf %515 : vector<40x8xf32> to vector<40x8xbf16>
    %517 = arith.truncf %514 : vector<8x32xf32> to vector<8x32xbf16>
    %cst_353 = arith.constant dense<0.000000e+00> : vector<40x32xf32>
    %518 = tpu.matmul %516, %517, %cst_353 {dimension_numbers = #tpu.dot_dimension_numbers<[1], [0], [0], [1], [0, 0, 1, 1], [], []>} : vector<40x8xbf16>, vector<8x32xbf16>, vector<40x32xf32> -> vector<40x32xf32>
    %519 = arith.addf %512, %518 : vector<40x32xf32>
    %c160_354 = arith.constant 160 : index
    %c0_355 = arith.constant 0 : index
    %520 = vector.load %arg30[%c160_354, %c0_355] : memref<512x32xbf16, #tpu.memory_space<vmem>>, vector<32x32xbf16>
    %cst_356 = arith.constant dense<0.000000e+00> : vector<8x32xf32>
    %521 = tpu.matmul %483, %520, %cst_356 {dimension_numbers = #tpu.dot_dimension_numbers<[1], [0], [0], [1], [0, 0, 1, 1], [], []>} : vector<8x32xbf16>, vector<32x32xbf16>, vector<8x32xf32> -> vector<8x32xf32>
    %c200_357 = arith.constant 200 : index
    %c0_358 = arith.constant 0 : index
    %522 = vector.load %arg32[%c200_357, %c0_358] : memref<640x8xf32, #tpu.memory_space<vmem>>, vector<40x8xf32>
    %523 = arith.truncf %522 : vector<40x8xf32> to vector<40x8xbf16>
    %524 = arith.truncf %521 : vector<8x32xf32> to vector<8x32xbf16>
    %cst_359 = arith.constant dense<0.000000e+00> : vector<40x32xf32>
    %525 = tpu.matmul %523, %524, %cst_359 {dimension_numbers = #tpu.dot_dimension_numbers<[1], [0], [0], [1], [0, 0, 1, 1], [], []>} : vector<40x8xbf16>, vector<8x32xbf16>, vector<40x32xf32> -> vector<40x32xf32>
    %526 = arith.addf %519, %525 : vector<40x32xf32>
    %c192_360 = arith.constant 192 : index
    %c0_361 = arith.constant 0 : index
    %527 = vector.load %arg30[%c192_360, %c0_361] : memref<512x32xbf16, #tpu.memory_space<vmem>>, vector<32x32xbf16>
    %cst_362 = arith.constant dense<0.000000e+00> : vector<8x32xf32>
    %528 = tpu.matmul %483, %527, %cst_362 {dimension_numbers = #tpu.dot_dimension_numbers<[1], [0], [0], [1], [0, 0, 1, 1], [], []>} : vector<8x32xbf16>, vector<32x32xbf16>, vector<8x32xf32> -> vector<8x32xf32>
    %c240_363 = arith.constant 240 : index
    %c0_364 = arith.constant 0 : index
    %529 = vector.load %arg32[%c240_363, %c0_364] : memref<640x8xf32, #tpu.memory_space<vmem>>, vector<40x8xf32>
    %530 = arith.truncf %529 : vector<40x8xf32> to vector<40x8xbf16>
    %531 = arith.truncf %528 : vector<8x32xf32> to vector<8x32xbf16>
    %cst_365 = arith.constant dense<0.000000e+00> : vector<40x32xf32>
    %532 = tpu.matmul %530, %531, %cst_365 {dimension_numbers = #tpu.dot_dimension_numbers<[1], [0], [0], [1], [0, 0, 1, 1], [], []>} : vector<40x8xbf16>, vector<8x32xbf16>, vector<40x32xf32> -> vector<40x32xf32>
    %533 = arith.addf %526, %532 : vector<40x32xf32>
    %c224_366 = arith.constant 224 : index
    %c0_367 = arith.constant 0 : index
    %534 = vector.load %arg30[%c224_366, %c0_367] : memref<512x32xbf16, #tpu.memory_space<vmem>>, vector<32x32xbf16>
    %cst_368 = arith.constant dense<0.000000e+00> : vector<8x32xf32>
    %535 = tpu.matmul %483, %534, %cst_368 {dimension_numbers = #tpu.dot_dimension_numbers<[1], [0], [0], [1], [0, 0, 1, 1], [], []>} : vector<8x32xbf16>, vector<32x32xbf16>, vector<8x32xf32> -> vector<8x32xf32>
    %c280_369 = arith.constant 280 : index
    %c0_370 = arith.constant 0 : index
    %536 = vector.load %arg32[%c280_369, %c0_370] : memref<640x8xf32, #tpu.memory_space<vmem>>, vector<40x8xf32>
    %537 = arith.truncf %536 : vector<40x8xf32> to vector<40x8xbf16>
    %538 = arith.truncf %535 : vector<8x32xf32> to vector<8x32xbf16>
    %cst_371 = arith.constant dense<0.000000e+00> : vector<40x32xf32>
    %539 = tpu.matmul %537, %538, %cst_371 {dimension_numbers = #tpu.dot_dimension_numbers<[1], [0], [0], [1], [0, 0, 1, 1], [], []>} : vector<40x8xbf16>, vector<8x32xbf16>, vector<40x32xf32> -> vector<40x32xf32>
    %540 = arith.addf %533, %539 : vector<40x32xf32>
    %c256_372 = arith.constant 256 : index
    %c0_373 = arith.constant 0 : index
    %541 = vector.load %arg30[%c256_372, %c0_373] : memref<512x32xbf16, #tpu.memory_space<vmem>>, vector<32x32xbf16>
    %cst_374 = arith.constant dense<0.000000e+00> : vector<8x32xf32>
    %542 = tpu.matmul %483, %541, %cst_374 {dimension_numbers = #tpu.dot_dimension_numbers<[1], [0], [0], [1], [0, 0, 1, 1], [], []>} : vector<8x32xbf16>, vector<32x32xbf16>, vector<8x32xf32> -> vector<8x32xf32>
    %c320_375 = arith.constant 320 : index
    %c0_376 = arith.constant 0 : index
    %543 = vector.load %arg32[%c320_375, %c0_376] : memref<640x8xf32, #tpu.memory_space<vmem>>, vector<40x8xf32>
    %544 = arith.truncf %543 : vector<40x8xf32> to vector<40x8xbf16>
    %545 = arith.truncf %542 : vector<8x32xf32> to vector<8x32xbf16>
    %cst_377 = arith.constant dense<0.000000e+00> : vector<40x32xf32>
    %546 = tpu.matmul %544, %545, %cst_377 {dimension_numbers = #tpu.dot_dimension_numbers<[1], [0], [0], [1], [0, 0, 1, 1], [], []>} : vector<40x8xbf16>, vector<8x32xbf16>, vector<40x32xf32> -> vector<40x32xf32>
    %547 = arith.addf %540, %546 : vector<40x32xf32>
    %c288_378 = arith.constant 288 : index
    %c0_379 = arith.constant 0 : index
    %548 = vector.load %arg30[%c288_378, %c0_379] : memref<512x32xbf16, #tpu.memory_space<vmem>>, vector<32x32xbf16>
    %cst_380 = arith.constant dense<0.000000e+00> : vector<8x32xf32>
    %549 = tpu.matmul %483, %548, %cst_380 {dimension_numbers = #tpu.dot_dimension_numbers<[1], [0], [0], [1], [0, 0, 1, 1], [], []>} : vector<8x32xbf16>, vector<32x32xbf16>, vector<8x32xf32> -> vector<8x32xf32>
    %c360_381 = arith.constant 360 : index
    %c0_382 = arith.constant 0 : index
    %550 = vector.load %arg32[%c360_381, %c0_382] : memref<640x8xf32, #tpu.memory_space<vmem>>, vector<40x8xf32>
    %551 = arith.truncf %550 : vector<40x8xf32> to vector<40x8xbf16>
    %552 = arith.truncf %549 : vector<8x32xf32> to vector<8x32xbf16>
    %cst_383 = arith.constant dense<0.000000e+00> : vector<40x32xf32>
    %553 = tpu.matmul %551, %552, %cst_383 {dimension_numbers = #tpu.dot_dimension_numbers<[1], [0], [0], [1], [0, 0, 1, 1], [], []>} : vector<40x8xbf16>, vector<8x32xbf16>, vector<40x32xf32> -> vector<40x32xf32>
    %554 = arith.addf %547, %553 : vector<40x32xf32>
    %c320_384 = arith.constant 320 : index
    %c0_385 = arith.constant 0 : index
    %555 = vector.load %arg30[%c320_384, %c0_385] : memref<512x32xbf16, #tpu.memory_space<vmem>>, vector<32x32xbf16>
    %cst_386 = arith.constant dense<0.000000e+00> : vector<8x32xf32>
    %556 = tpu.matmul %483, %555, %cst_386 {dimension_numbers = #tpu.dot_dimension_numbers<[1], [0], [0], [1], [0, 0, 1, 1], [], []>} : vector<8x32xbf16>, vector<32x32xbf16>, vector<8x32xf32> -> vector<8x32xf32>
    %c400_387 = arith.constant 400 : index
    %c0_388 = arith.constant 0 : index
    %557 = vector.load %arg32[%c400_387, %c0_388] : memref<640x8xf32, #tpu.memory_space<vmem>>, vector<40x8xf32>
    %558 = arith.truncf %557 : vector<40x8xf32> to vector<40x8xbf16>
    %559 = arith.truncf %556 : vector<8x32xf32> to vector<8x32xbf16>
    %cst_389 = arith.constant dense<0.000000e+00> : vector<40x32xf32>
    %560 = tpu.matmul %558, %559, %cst_389 {dimension_numbers = #tpu.dot_dimension_numbers<[1], [0], [0], [1], [0, 0, 1, 1], [], []>} : vector<40x8xbf16>, vector<8x32xbf16>, vector<40x32xf32> -> vector<40x32xf32>
    %561 = arith.addf %554, %560 : vector<40x32xf32>
    %c352_390 = arith.constant 352 : index
    %c0_391 = arith.constant 0 : index
    %562 = vector.load %arg30[%c352_390, %c0_391] : memref<512x32xbf16, #tpu.memory_space<vmem>>, vector<32x32xbf16>
    %cst_392 = arith.constant dense<0.000000e+00> : vector<8x32xf32>
    %563 = tpu.matmul %483, %562, %cst_392 {dimension_numbers = #tpu.dot_dimension_numbers<[1], [0], [0], [1], [0, 0, 1, 1], [], []>} : vector<8x32xbf16>, vector<32x32xbf16>, vector<8x32xf32> -> vector<8x32xf32>
    %c440_393 = arith.constant 440 : index
    %c0_394 = arith.constant 0 : index
    %564 = vector.load %arg32[%c440_393, %c0_394] : memref<640x8xf32, #tpu.memory_space<vmem>>, vector<40x8xf32>
    %565 = arith.truncf %564 : vector<40x8xf32> to vector<40x8xbf16>
    %566 = arith.truncf %563 : vector<8x32xf32> to vector<8x32xbf16>
    %cst_395 = arith.constant dense<0.000000e+00> : vector<40x32xf32>
    %567 = tpu.matmul %565, %566, %cst_395 {dimension_numbers = #tpu.dot_dimension_numbers<[1], [0], [0], [1], [0, 0, 1, 1], [], []>} : vector<40x8xbf16>, vector<8x32xbf16>, vector<40x32xf32> -> vector<40x32xf32>
    %568 = arith.addf %561, %567 : vector<40x32xf32>
    %c384_396 = arith.constant 384 : index
    %c0_397 = arith.constant 0 : index
    %569 = vector.load %arg30[%c384_396, %c0_397] : memref<512x32xbf16, #tpu.memory_space<vmem>>, vector<32x32xbf16>
    %cst_398 = arith.constant dense<0.000000e+00> : vector<8x32xf32>
    %570 = tpu.matmul %483, %569, %cst_398 {dimension_numbers = #tpu.dot_dimension_numbers<[1], [0], [0], [1], [0, 0, 1, 1], [], []>} : vector<8x32xbf16>, vector<32x32xbf16>, vector<8x32xf32> -> vector<8x32xf32>
    %c480_399 = arith.constant 480 : index
    %c0_400 = arith.constant 0 : index
    %571 = vector.load %arg32[%c480_399, %c0_400] : memref<640x8xf32, #tpu.memory_space<vmem>>, vector<40x8xf32>
    %572 = arith.truncf %571 : vector<40x8xf32> to vector<40x8xbf16>
    %573 = arith.truncf %570 : vector<8x32xf32> to vector<8x32xbf16>
    %cst_401 = arith.constant dense<0.000000e+00> : vector<40x32xf32>
    %574 = tpu.matmul %572, %573, %cst_401 {dimension_numbers = #tpu.dot_dimension_numbers<[1], [0], [0], [1], [0, 0, 1, 1], [], []>} : vector<40x8xbf16>, vector<8x32xbf16>, vector<40x32xf32> -> vector<40x32xf32>
    %575 = arith.addf %568, %574 : vector<40x32xf32>
    %c416_402 = arith.constant 416 : index
    %c0_403 = arith.constant 0 : index
    %576 = vector.load %arg30[%c416_402, %c0_403] : memref<512x32xbf16, #tpu.memory_space<vmem>>, vector<32x32xbf16>
    %cst_404 = arith.constant dense<0.000000e+00> : vector<8x32xf32>
    %577 = tpu.matmul %483, %576, %cst_404 {dimension_numbers = #tpu.dot_dimension_numbers<[1], [0], [0], [1], [0, 0, 1, 1], [], []>} : vector<8x32xbf16>, vector<32x32xbf16>, vector<8x32xf32> -> vector<8x32xf32>
    %c520 = arith.constant 520 : index
    %c0_405 = arith.constant 0 : index
    %578 = vector.load %arg32[%c520, %c0_405] : memref<640x8xf32, #tpu.memory_space<vmem>>, vector<40x8xf32>
    %579 = arith.truncf %578 : vector<40x8xf32> to vector<40x8xbf16>
    %580 = arith.truncf %577 : vector<8x32xf32> to vector<8x32xbf16>
    %cst_406 = arith.constant dense<0.000000e+00> : vector<40x32xf32>
    %581 = tpu.matmul %579, %580, %cst_406 {dimension_numbers = #tpu.dot_dimension_numbers<[1], [0], [0], [1], [0, 0, 1, 1], [], []>} : vector<40x8xbf16>, vector<8x32xbf16>, vector<40x32xf32> -> vector<40x32xf32>
    %582 = arith.addf %575, %581 : vector<40x32xf32>
    %c448_407 = arith.constant 448 : index
    %c0_408 = arith.constant 0 : index
    %583 = vector.load %arg30[%c448_407, %c0_408] : memref<512x32xbf16, #tpu.memory_space<vmem>>, vector<32x32xbf16>
    %cst_409 = arith.constant dense<0.000000e+00> : vector<8x32xf32>
    %584 = tpu.matmul %483, %583, %cst_409 {dimension_numbers = #tpu.dot_dimension_numbers<[1], [0], [0], [1], [0, 0, 1, 1], [], []>} : vector<8x32xbf16>, vector<32x32xbf16>, vector<8x32xf32> -> vector<8x32xf32>
    %c560 = arith.constant 560 : index
    %c0_410 = arith.constant 0 : index
    %585 = vector.load %arg32[%c560, %c0_410] : memref<640x8xf32, #tpu.memory_space<vmem>>, vector<40x8xf32>
    %586 = arith.truncf %585 : vector<40x8xf32> to vector<40x8xbf16>
    %587 = arith.truncf %584 : vector<8x32xf32> to vector<8x32xbf16>
    %cst_411 = arith.constant dense<0.000000e+00> : vector<40x32xf32>
    %588 = tpu.matmul %586, %587, %cst_411 {dimension_numbers = #tpu.dot_dimension_numbers<[1], [0], [0], [1], [0, 0, 1, 1], [], []>} : vector<40x8xbf16>, vector<8x32xbf16>, vector<40x32xf32> -> vector<40x32xf32>
    %589 = arith.addf %582, %588 : vector<40x32xf32>
    %c480_412 = arith.constant 480 : index
    %c0_413 = arith.constant 0 : index
    %590 = vector.load %arg30[%c480_412, %c0_413] : memref<512x32xbf16, #tpu.memory_space<vmem>>, vector<32x32xbf16>
    %cst_414 = arith.constant dense<0.000000e+00> : vector<8x32xf32>
    %591 = tpu.matmul %483, %590, %cst_414 {dimension_numbers = #tpu.dot_dimension_numbers<[1], [0], [0], [1], [0, 0, 1, 1], [], []>} : vector<8x32xbf16>, vector<32x32xbf16>, vector<8x32xf32> -> vector<8x32xf32>
    %c600 = arith.constant 600 : index
    %c0_415 = arith.constant 0 : index
    %592 = vector.load %arg32[%c600, %c0_415] : memref<640x8xf32, #tpu.memory_space<vmem>>, vector<40x8xf32>
    %593 = arith.truncf %592 : vector<40x8xf32> to vector<40x8xbf16>
    %594 = arith.truncf %591 : vector<8x32xf32> to vector<8x32xbf16>
    %cst_416 = arith.constant dense<0.000000e+00> : vector<40x32xf32>
    %595 = tpu.matmul %593, %594, %cst_416 {dimension_numbers = #tpu.dot_dimension_numbers<[1], [0], [0], [1], [0, 0, 1, 1], [], []>} : vector<40x8xbf16>, vector<8x32xbf16>, vector<40x32xf32> -> vector<40x32xf32>
    %596 = arith.addf %589, %595 : vector<40x32xf32>
    %597 = vector.extract_strided_slice %596 {offsets = [0, 0], sizes = [36, 32], strides = [1, 1]} : vector<40x32xf32> to vector<36x32xf32>
    %c0_417 = arith.constant 0 : index
    %c0_418 = arith.constant 0 : index
    %598 = vector.load %arg31[%c0_417, %c0_418] : memref<1x32xf32, #tpu.memory_space<vmem>>, vector<1x32xf32>
    %599 = vector.broadcast %598 : vector<1x32xf32> to vector<36x32xf32>
    %600 = arith.addf %597, %599 : vector<36x32xf32>
    %601 = math.tanh %600 : vector<36x32xf32>
    %602 = arith.addf %601, %316 : vector<36x32xf32>
    %cst_419 = arith.constant dense<0.000000e+00> : vector<36xf32>
    %603 = vector.multi_reduction <add>, %602, %cst_419 [1] : vector<36x32xf32> to vector<36xf32>
    %604 = vector.shape_cast %603 : vector<36xf32> to vector<36x1xf32>
    %cst_420 = arith.constant 3.200000e+01 : f32
    %605 = vector.broadcast %cst_420 : f32 to vector<36x1xf32>
    %606 = arith.divf %604, %605 : vector<36x1xf32>
    %607 = vector.broadcast %606 : vector<36x1xf32> to vector<36x32xf32>
    %608 = arith.subf %602, %607 : vector<36x32xf32>
    %609 = arith.mulf %608, %608 : vector<36x32xf32>
    %cst_421 = arith.constant dense<0.000000e+00> : vector<36xf32>
    %610 = vector.multi_reduction <add>, %609, %cst_421 [1] : vector<36x32xf32> to vector<36xf32>
    %611 = vector.shape_cast %610 : vector<36xf32> to vector<36x1xf32>
    %cst_422 = arith.constant 3.200000e+01 : f32
    %612 = vector.broadcast %cst_422 : f32 to vector<36x1xf32>
    %613 = arith.divf %611, %612 : vector<36x1xf32>
    %cst_423 = arith.constant 9.99999974E-6 : f32
    %614 = vector.broadcast %cst_423 : f32 to vector<36x1xf32>
    %615 = arith.addf %613, %614 : vector<36x1xf32>
    %616 = math.rsqrt %615 : vector<36x1xf32>
    %617 = vector.broadcast %616 : vector<36x1xf32> to vector<36x32xf32>
    %618 = arith.mulf %608, %617 : vector<36x32xf32>
    %619 = vector.broadcast %54 : vector<1x32xf32> to vector<36x32xf32>
    %620 = arith.mulf %618, %619 : vector<36x32xf32>
    %621 = vector.broadcast %55 : vector<1x32xf32> to vector<36x32xf32>
    %622 = arith.addf %620, %621 : vector<36x32xf32>
    %623 = tpu.concatenate %314, %622 in 1 : vector<36x32xf32>, vector<36x32xf32> -> vector<36x64xf32>
    %c0_424 = arith.constant 0 : index
    %c0_425 = arith.constant 0 : index
    %624 = vector.load %arg35[%c0_424, %c0_425] : memref<64x32xbf16, #tpu.memory_space<vmem>>, vector<64x32xbf16>
    %625 = arith.truncf %623 : vector<36x64xf32> to vector<36x64xbf16>
    %cst_426 = arith.constant dense<0.000000e+00> : vector<36x32xf32>
    %626 = tpu.matmul %625, %624, %cst_426 {dimension_numbers = #tpu.dot_dimension_numbers<[1], [0], [0], [1], [0, 0, 1, 1], [], []>} : vector<36x64xbf16>, vector<64x32xbf16>, vector<36x32xf32> -> vector<36x32xf32>
    %c0_427 = arith.constant 0 : index
    %c0_428 = arith.constant 0 : index
    %627 = vector.load %arg36[%c0_427, %c0_428] : memref<1x32xf32, #tpu.memory_space<vmem>>, vector<1x32xf32>
    %628 = vector.broadcast %627 : vector<1x32xf32> to vector<36x32xf32>
    %629 = arith.addf %626, %628 : vector<36x32xf32>
    %c0_429 = arith.constant 0 : index
    %c0_430 = arith.constant 0 : index
    %630 = vector.load %arg37[%c0_429, %c0_430] : memref<1x32xf32, #tpu.memory_space<vmem>>, vector<1x32xf32>
    %c0_431 = arith.constant 0 : index
    %c0_432 = arith.constant 0 : index
    %631 = vector.load %arg38[%c0_431, %c0_432] : memref<1x32xf32, #tpu.memory_space<vmem>>, vector<1x32xf32>
    %cst_433 = arith.constant dense<0.000000e+00> : vector<36xf32>
    %632 = vector.multi_reduction <add>, %629, %cst_433 [1] : vector<36x32xf32> to vector<36xf32>
    %633 = vector.shape_cast %632 : vector<36xf32> to vector<36x1xf32>
    %cst_434 = arith.constant 3.200000e+01 : f32
    %634 = vector.broadcast %cst_434 : f32 to vector<36x1xf32>
    %635 = arith.divf %633, %634 : vector<36x1xf32>
    %636 = vector.broadcast %635 : vector<36x1xf32> to vector<36x32xf32>
    %637 = arith.subf %629, %636 : vector<36x32xf32>
    %638 = arith.mulf %637, %637 : vector<36x32xf32>
    %cst_435 = arith.constant dense<0.000000e+00> : vector<36xf32>
    %639 = vector.multi_reduction <add>, %638, %cst_435 [1] : vector<36x32xf32> to vector<36xf32>
    %640 = vector.shape_cast %639 : vector<36xf32> to vector<36x1xf32>
    %cst_436 = arith.constant 3.200000e+01 : f32
    %641 = vector.broadcast %cst_436 : f32 to vector<36x1xf32>
    %642 = arith.divf %640, %641 : vector<36x1xf32>
    %cst_437 = arith.constant 9.99999974E-6 : f32
    %643 = vector.broadcast %cst_437 : f32 to vector<36x1xf32>
    %644 = arith.addf %642, %643 : vector<36x1xf32>
    %645 = math.rsqrt %644 : vector<36x1xf32>
    %646 = vector.broadcast %645 : vector<36x1xf32> to vector<36x32xf32>
    %647 = arith.mulf %637, %646 : vector<36x32xf32>
    %648 = vector.broadcast %630 : vector<1x32xf32> to vector<36x32xf32>
    %649 = arith.mulf %647, %648 : vector<36x32xf32>
    %650 = vector.broadcast %631 : vector<1x32xf32> to vector<36x32xf32>
    %651 = arith.addf %649, %650 : vector<36x32xf32>
    %c0_438 = arith.constant 0 : index
    %c0_439 = arith.constant 0 : index
    %652 = vector.load %arg39[%c0_438, %c0_439] : memref<32x128xbf16, #tpu.memory_space<vmem>>, vector<32x128xbf16>
    %653 = arith.truncf %651 : vector<36x32xf32> to vector<36x32xbf16>
    %cst_440 = arith.constant dense<0.000000e+00> : vector<36x128xf32>
    %654 = tpu.matmul %653, %652, %cst_440 {dimension_numbers = #tpu.dot_dimension_numbers<[1], [0], [0], [1], [0, 0, 1, 1], [], []>} : vector<36x32xbf16>, vector<32x128xbf16>, vector<36x128xf32> -> vector<36x128xf32>
    %c0_441 = arith.constant 0 : index
    %c0_442 = arith.constant 0 : index
    %655 = vector.load %arg40[%c0_441, %c0_442] : memref<1x128xf32, #tpu.memory_space<vmem>>, vector<1x128xf32>
    %656 = vector.broadcast %655 : vector<1x128xf32> to vector<36x128xf32>
    %657 = arith.addf %654, %656 : vector<36x128xf32>
    %c0_443 = arith.constant 0 : index
    %c0_444 = arith.constant 0 : index
    %658 = vector.load %arg41[%c0_443, %c0_444] : memref<128x32xbf16, #tpu.memory_space<vmem>>, vector<128x32xbf16>
    %659 = arith.truncf %657 : vector<36x128xf32> to vector<36x128xbf16>
    %cst_445 = arith.constant dense<0.000000e+00> : vector<36x32xf32>
    %660 = tpu.matmul %659, %658, %cst_445 {dimension_numbers = #tpu.dot_dimension_numbers<[1], [0], [0], [1], [0, 0, 1, 1], [], []>} : vector<36x128xbf16>, vector<128x32xbf16>, vector<36x32xf32> -> vector<36x32xf32>
    %c0_446 = arith.constant 0 : index
    %c0_447 = arith.constant 0 : index
    %661 = vector.load %arg42[%c0_446, %c0_447] : memref<1x32xf32, #tpu.memory_space<vmem>>, vector<1x32xf32>
    %662 = vector.broadcast %661 : vector<1x32xf32> to vector<36x32xf32>
    %663 = arith.addf %660, %662 : vector<36x32xf32>
    %664 = arith.addf %629, %663 : vector<36x32xf32>
    %c0_448 = arith.constant 0 : index
    %c0_449 = arith.constant 0 : index
    %665 = vector.load %arg43[%c0_448, %c0_449] : memref<1x32xf32, #tpu.memory_space<vmem>>, vector<1x32xf32>
    %c0_450 = arith.constant 0 : index
    %c0_451 = arith.constant 0 : index
    %666 = vector.load %arg44[%c0_450, %c0_451] : memref<1x32xf32, #tpu.memory_space<vmem>>, vector<1x32xf32>
    %cst_452 = arith.constant dense<0.000000e+00> : vector<36xf32>
    %667 = vector.multi_reduction <add>, %664, %cst_452 [1] : vector<36x32xf32> to vector<36xf32>
    %668 = vector.shape_cast %667 : vector<36xf32> to vector<36x1xf32>
    %cst_453 = arith.constant 3.200000e+01 : f32
    %669 = vector.broadcast %cst_453 : f32 to vector<36x1xf32>
    %670 = arith.divf %668, %669 : vector<36x1xf32>
    %671 = vector.broadcast %670 : vector<36x1xf32> to vector<36x32xf32>
    %672 = arith.subf %664, %671 : vector<36x32xf32>
    %673 = arith.mulf %672, %672 : vector<36x32xf32>
    %cst_454 = arith.constant dense<0.000000e+00> : vector<36xf32>
    %674 = vector.multi_reduction <add>, %673, %cst_454 [1] : vector<36x32xf32> to vector<36xf32>
    %675 = vector.shape_cast %674 : vector<36xf32> to vector<36x1xf32>
    %cst_455 = arith.constant 3.200000e+01 : f32
    %676 = vector.broadcast %cst_455 : f32 to vector<36x1xf32>
    %677 = arith.divf %675, %676 : vector<36x1xf32>
    %cst_456 = arith.constant 9.99999974E-6 : f32
    %678 = vector.broadcast %cst_456 : f32 to vector<36x1xf32>
    %679 = arith.addf %677, %678 : vector<36x1xf32>
    %680 = math.rsqrt %679 : vector<36x1xf32>
    %681 = vector.broadcast %680 : vector<36x1xf32> to vector<36x32xf32>
    %682 = arith.mulf %672, %681 : vector<36x32xf32>
    %683 = vector.broadcast %665 : vector<1x32xf32> to vector<36x32xf32>
    %684 = arith.mulf %682, %683 : vector<36x32xf32>
    %685 = vector.broadcast %666 : vector<1x32xf32> to vector<36x32xf32>
    %686 = arith.addf %684, %685 : vector<36x32xf32>
    %687 = vector.extract_strided_slice %686 {offsets = [24, 0], sizes = [12, 32], strides = [1, 1]} : vector<36x32xf32> to vector<12x32xf32>
    %c0_457 = arith.constant 0 : index
    %c0_458 = arith.constant 0 : index
    %688 = vector.load %arg45[%c0_457, %c0_458] : memref<32x4xbf16, #tpu.memory_space<vmem>>, vector<32x4xbf16>
    %689 = arith.truncf %687 : vector<12x32xf32> to vector<12x32xbf16>
    %cst_459 = arith.constant dense<0.000000e+00> : vector<12x4xf32>
    %690 = tpu.matmul %689, %688, %cst_459 {dimension_numbers = #tpu.dot_dimension_numbers<[1], [0], [0], [1], [0, 0, 1, 1], [], []>} : vector<12x32xbf16>, vector<32x4xbf16>, vector<12x4xf32> -> vector<12x4xf32>
    %c0_460 = arith.constant 0 : index
    %c0_461 = arith.constant 0 : index
    %691 = vector.load %arg46[%c0_460, %c0_461] : memref<1x4xf32, #tpu.memory_space<vmem>>, vector<1x4xf32>
    %692 = vector.broadcast %691 : vector<1x4xf32> to vector<12x4xf32>
    %693 = arith.addf %690, %692 : vector<12x4xf32>
    %694 = arith.addf %693, %30 : vector<12x4xf32>
    %c0_462 = arith.constant 0 : index
    %c0_463 = arith.constant 0 : index
    %c0_464 = arith.constant 0 : index
    %695 = vector.load %arg47[%c0_462, %c0_463, %c0_464] : memref<1x12x4xf32, #tpu.memory_space<vmem>>, vector<1x12x4xf32>
    %696 = vector.shape_cast %695 : vector<1x12x4xf32> to vector<12x4xf32>
    %697 = vector.shape_cast %694 : vector<12x4xf32> to vector<1x12x4xf32>
    tpu.vector_store %arg47[%c0_462, %c0_463, %c0_464], %697 {strides = array<i32>} : memref<1x12x4xf32, #tpu.memory_space<vmem>>, vector<1x12x4xf32>,
    return
  }
  func.func @transform_0(%arg0: i32) -> (i32, i32, i32) {
    %c0_i32 = arith.constant 0 : i32
    %c0_i32_0 = arith.constant 0 : i32
    %c0_i32_1 = arith.constant 0 : i32
    return %arg0, %c0_i32, %c0_i32_0 : i32, i32, i32
  }
  func.func @transform_1(%arg0: i32) -> (i32, i32) {
    %c0_i32 = arith.constant 0 : i32
    %c0_i32_0 = arith.constant 0 : i32
    %c0_i32_1 = arith.constant 0 : i32
    return %c0_i32, %c0_i32_0 : i32, i32
  }
  func.func @transform_2(%arg0: i32) -> (i32, i32) {
    %c0_i32 = arith.constant 0 : i32
    %c0_i32_0 = arith.constant 0 : i32
    %c0_i32_1 = arith.constant 0 : i32
    return %c0_i32, %c0_i32_0 : i32, i32
  }
  func.func @transform_3(%arg0: i32) -> (i32, i32) {
    %c0_i32 = arith.constant 0 : i32
    %c0_i32_0 = arith.constant 0 : i32
    %c0_i32_1 = arith.constant 0 : i32
    return %c0_i32, %c0_i32_0 : i32, i32
  }
  func.func @transform_4(%arg0: i32) -> (i32, i32) {
    %c0_i32 = arith.constant 0 : i32
    %c0_i32_0 = arith.constant 0 : i32
    %c0_i32_1 = arith.constant 0 : i32
    return %c0_i32, %c0_i32_0 : i32, i32
  }
  func.func @transform_5(%arg0: i32) -> (i32, i32) {
    %c0_i32 = arith.constant 0 : i32
    %c0_i32_0 = arith.constant 0 : i32
    %c0_i32_1 = arith.constant 0 : i32
    return %c0_i32, %c0_i32_0 : i32, i32
  }
  func.func @transform_6(%arg0: i32) -> (i32, i32) {
    %c0_i32 = arith.constant 0 : i32
    %c0_i32_0 = arith.constant 0 : i32
    %c0_i32_1 = arith.constant 0 : i32
    return %c0_i32, %c0_i32_0 : i32, i32
  }
  func.func @transform_7(%arg0: i32) -> (i32, i32) {
    %c0_i32 = arith.constant 0 : i32
    %c0_i32_0 = arith.constant 0 : i32
    %c0_i32_1 = arith.constant 0 : i32
    return %c0_i32, %c0_i32_0 : i32, i32
  }
  func.func @transform_8(%arg0: i32) -> (i32, i32) {
    %c0_i32 = arith.constant 0 : i32
    %c0_i32_0 = arith.constant 0 : i32
    %c0_i32_1 = arith.constant 0 : i32
    return %c0_i32, %c0_i32_0 : i32, i32
  }
  func.func @transform_9(%arg0: i32) -> (i32, i32) {
    %c0_i32 = arith.constant 0 : i32
    %c0_i32_0 = arith.constant 0 : i32
    %c0_i32_1 = arith.constant 0 : i32
    return %c0_i32, %c0_i32_0 : i32, i32
  }
  func.func @transform_10(%arg0: i32) -> (i32, i32) {
    %c0_i32 = arith.constant 0 : i32
    %c0_i32_0 = arith.constant 0 : i32
    %c0_i32_1 = arith.constant 0 : i32
    return %c0_i32, %c0_i32_0 : i32, i32
  }
  func.func @transform_11(%arg0: i32) -> (i32, i32) {
    %c0_i32 = arith.constant 0 : i32
    %c0_i32_0 = arith.constant 0 : i32
    %c0_i32_1 = arith.constant 0 : i32
    return %c0_i32, %c0_i32_0 : i32, i32
  }
  func.func @transform_12(%arg0: i32) -> (i32, i32) {
    %c0_i32 = arith.constant 0 : i32
    %c0_i32_0 = arith.constant 0 : i32
    %c0_i32_1 = arith.constant 0 : i32
    return %c0_i32, %c0_i32_0 : i32, i32
  }
  func.func @transform_13(%arg0: i32) -> (i32, i32) {
    %c0_i32 = arith.constant 0 : i32
    %c0_i32_0 = arith.constant 0 : i32
    %c0_i32_1 = arith.constant 0 : i32
    return %c0_i32, %c0_i32_0 : i32, i32
  }
  func.func @transform_14(%arg0: i32) -> (i32, i32) {
    %c0_i32 = arith.constant 0 : i32
    %c0_i32_0 = arith.constant 0 : i32
    %c0_i32_1 = arith.constant 0 : i32
    return %c0_i32, %c0_i32_0 : i32, i32
  }
  func.func @transform_15(%arg0: i32) -> (i32, i32) {
    %c0_i32 = arith.constant 0 : i32
    %c0_i32_0 = arith.constant 0 : i32
    %c0_i32_1 = arith.constant 0 : i32
    return %c0_i32, %c0_i32_0 : i32, i32
  }
  func.func @transform_16(%arg0: i32) -> (i32, i32) {
    %c0_i32 = arith.constant 0 : i32
    %c0_i32_0 = arith.constant 0 : i32
    %c0_i32_1 = arith.constant 0 : i32
    return %c0_i32, %c0_i32_0 : i32, i32
  }
  func.func @transform_17(%arg0: i32) -> (i32, i32) {
    %c0_i32 = arith.constant 0 : i32
    %c0_i32_0 = arith.constant 0 : i32
    %c0_i32_1 = arith.constant 0 : i32
    return %c0_i32, %c0_i32_0 : i32, i32
  }
  func.func @transform_18(%arg0: i32) -> (i32, i32) {
    %c0_i32 = arith.constant 0 : i32
    %c0_i32_0 = arith.constant 0 : i32
    %c0_i32_1 = arith.constant 0 : i32
    return %c0_i32, %c0_i32_0 : i32, i32
  }
  func.func @transform_19(%arg0: i32) -> (i32, i32) {
    %c0_i32 = arith.constant 0 : i32
    %c0_i32_0 = arith.constant 0 : i32
    %c0_i32_1 = arith.constant 0 : i32
    return %c0_i32, %c0_i32_0 : i32, i32
  }
  func.func @transform_20(%arg0: i32) -> (i32, i32) {
    %c0_i32 = arith.constant 0 : i32
    %c0_i32_0 = arith.constant 0 : i32
    %c0_i32_1 = arith.constant 0 : i32
    return %c0_i32, %c0_i32_0 : i32, i32
  }
  func.func @transform_21(%arg0: i32) -> (i32, i32) {
    %c0_i32 = arith.constant 0 : i32
    %c0_i32_0 = arith.constant 0 : i32
    %c0_i32_1 = arith.constant 0 : i32
    return %c0_i32, %c0_i32_0 : i32, i32
  }
  func.func @transform_22(%arg0: i32) -> (i32, i32) {
    %c0_i32 = arith.constant 0 : i32
    %c0_i32_0 = arith.constant 0 : i32
    %c0_i32_1 = arith.constant 0 : i32
    return %c0_i32, %c0_i32_0 : i32, i32
  }
  func.func @transform_23(%arg0: i32) -> (i32, i32) {
    %c0_i32 = arith.constant 0 : i32
    %c0_i32_0 = arith.constant 0 : i32
    %c0_i32_1 = arith.constant 0 : i32
    return %c0_i32, %c0_i32_0 : i32, i32
  }
  func.func @transform_24(%arg0: i32) -> (i32, i32) {
    %c0_i32 = arith.constant 0 : i32
    %c0_i32_0 = arith.constant 0 : i32
    %c0_i32_1 = arith.constant 0 : i32
    return %c0_i32, %c0_i32_0 : i32, i32
  }
  func.func @transform_25(%arg0: i32) -> (i32, i32) {
    %c0_i32 = arith.constant 0 : i32
    %c0_i32_0 = arith.constant 0 : i32
    %c0_i32_1 = arith.constant 0 : i32
    return %c0_i32, %c0_i32_0 : i32, i32
  }
  func.func @transform_26(%arg0: i32) -> (i32, i32) {
    %c0_i32 = arith.constant 0 : i32
    %c0_i32_0 = arith.constant 0 : i32
    %c0_i32_1 = arith.constant 0 : i32
    return %c0_i32, %c0_i32_0 : i32, i32
  }
  func.func @transform_27(%arg0: i32) -> (i32, i32) {
    %c0_i32 = arith.constant 0 : i32
    %c0_i32_0 = arith.constant 0 : i32
    %c0_i32_1 = arith.constant 0 : i32
    return %c0_i32, %c0_i32_0 : i32, i32
  }
  func.func @transform_28(%arg0: i32) -> (i32, i32) {
    %c0_i32 = arith.constant 0 : i32
    %c0_i32_0 = arith.constant 0 : i32
    %c0_i32_1 = arith.constant 0 : i32
    return %c0_i32, %c0_i32_0 : i32, i32
  }
  func.func @transform_29(%arg0: i32) -> (i32, i32) {
    %c0_i32 = arith.constant 0 : i32
    %c0_i32_0 = arith.constant 0 : i32
    %c0_i32_1 = arith.constant 0 : i32
    return %c0_i32, %c0_i32_0 : i32, i32
  }
  func.func @transform_30(%arg0: i32) -> (i32, i32) {
    %c0_i32 = arith.constant 0 : i32
    %c0_i32_0 = arith.constant 0 : i32
    %c0_i32_1 = arith.constant 0 : i32
    return %c0_i32, %c0_i32_0 : i32, i32
  }
  func.func @transform_31(%arg0: i32) -> (i32, i32) {
    %c0_i32 = arith.constant 0 : i32
    %c0_i32_0 = arith.constant 0 : i32
    %c0_i32_1 = arith.constant 0 : i32
    return %c0_i32, %c0_i32_0 : i32, i32
  }
  func.func @transform_32(%arg0: i32) -> (i32, i32) {
    %c0_i32 = arith.constant 0 : i32
    %c0_i32_0 = arith.constant 0 : i32
    %c0_i32_1 = arith.constant 0 : i32
    return %c0_i32, %c0_i32_0 : i32, i32
  }
  func.func @transform_33(%arg0: i32) -> (i32, i32) {
    %c0_i32 = arith.constant 0 : i32
    %c0_i32_0 = arith.constant 0 : i32
    %c0_i32_1 = arith.constant 0 : i32
    return %c0_i32, %c0_i32_0 : i32, i32
  }
  func.func @transform_34(%arg0: i32) -> (i32, i32) {
    %c0_i32 = arith.constant 0 : i32
    %c0_i32_0 = arith.constant 0 : i32
    %c0_i32_1 = arith.constant 0 : i32
    return %c0_i32, %c0_i32_0 : i32, i32
  }
  func.func @transform_35(%arg0: i32) -> (i32, i32) {
    %c0_i32 = arith.constant 0 : i32
    %c0_i32_0 = arith.constant 0 : i32
    %c0_i32_1 = arith.constant 0 : i32
    return %c0_i32, %c0_i32_0 : i32, i32
  }
  func.func @transform_36(%arg0: i32) -> (i32, i32) {
    %c0_i32 = arith.constant 0 : i32
    %c0_i32_0 = arith.constant 0 : i32
    %c0_i32_1 = arith.constant 0 : i32
    return %c0_i32, %c0_i32_0 : i32, i32
  }
  func.func @transform_37(%arg0: i32) -> (i32, i32) {
    %c0_i32 = arith.constant 0 : i32
    %c0_i32_0 = arith.constant 0 : i32
    %c0_i32_1 = arith.constant 0 : i32
    return %c0_i32, %c0_i32_0 : i32, i32
  }
  func.func @transform_38(%arg0: i32) -> (i32, i32) {
    %c0_i32 = arith.constant 0 : i32
    %c0_i32_0 = arith.constant 0 : i32
    %c0_i32_1 = arith.constant 0 : i32
    return %c0_i32, %c0_i32_0 : i32, i32
  }
  func.func @transform_39(%arg0: i32) -> (i32, i32) {
    %c0_i32 = arith.constant 0 : i32
    %c0_i32_0 = arith.constant 0 : i32
    %c0_i32_1 = arith.constant 0 : i32
    return %c0_i32, %c0_i32_0 : i32, i32
  }
  func.func @transform_40(%arg0: i32) -> (i32, i32) {
    %c0_i32 = arith.constant 0 : i32
    %c0_i32_0 = arith.constant 0 : i32
    %c0_i32_1 = arith.constant 0 : i32
    return %c0_i32, %c0_i32_0 : i32, i32
  }
  func.func @transform_41(%arg0: i32) -> (i32, i32) {
    %c0_i32 = arith.constant 0 : i32
    %c0_i32_0 = arith.constant 0 : i32
    %c0_i32_1 = arith.constant 0 : i32
    return %c0_i32, %c0_i32_0 : i32, i32
  }
  func.func @transform_42(%arg0: i32) -> (i32, i32) {
    %c0_i32 = arith.constant 0 : i32
    %c0_i32_0 = arith.constant 0 : i32
    %c0_i32_1 = arith.constant 0 : i32
    return %c0_i32, %c0_i32_0 : i32, i32
  }
  func.func @transform_43(%arg0: i32) -> (i32, i32) {
    %c0_i32 = arith.constant 0 : i32
    %c0_i32_0 = arith.constant 0 : i32
    %c0_i32_1 = arith.constant 0 : i32
    return %c0_i32, %c0_i32_0 : i32, i32
  }
  func.func @transform_44(%arg0: i32) -> (i32, i32) {
    %c0_i32 = arith.constant 0 : i32
    %c0_i32_0 = arith.constant 0 : i32
    %c0_i32_1 = arith.constant 0 : i32
    return %c0_i32, %c0_i32_0 : i32, i32
  }
  func.func @transform_45(%arg0: i32) -> (i32, i32) {
    %c0_i32 = arith.constant 0 : i32
    %c0_i32_0 = arith.constant 0 : i32
    %c0_i32_1 = arith.constant 0 : i32
    return %c0_i32, %c0_i32_0 : i32, i32
  }
  func.func @transform_46(%arg0: i32) -> (i32, i32, i32) {
    %c0_i32 = arith.constant 0 : i32
    %c0_i32_0 = arith.constant 0 : i32
    %c0_i32_1 = arith.constant 0 : i32
    return %arg0, %c0_i32, %c0_i32_0 : i32, i32, i32
  }
}

</mosaic_0001>

<bundles_post_ra>
// kernel: micn_forecast.1
= control target key start
LH: loop header
LB: loop body
LE: loop exit
PB: predicated region body
PF: predicated region fallthrough
CT: control target
= control target key end

     0   :  { %s13432_s6 = smov 1   ;;  %s13433_s10 = smov 2   ;;  %s15649_s0 = inlined_call_operand.smem [shape: u32[47], index: -1, kind: input, shape index: {}] }
   0x1   :  { %s13490_s5 = sld [smem:[%s15649_s0]]   ;;  %s13434_s14 = smov 3  }
   0x2   :  { %s13495_s9 = sld [smem:[%s15649_s0 + %s13432_s6]]   ;;  %s13435_s18 = smov 4  }
   0x3   :  { %s13500_s13 = sld [smem:[%s15649_s0 + %s13433_s10]]   ;;  %s13436_s22 = smov 5  }
   0x4   :  { %s13505_s17 = sld [smem:[%s15649_s0 + %s13434_s14]]   ;;  %s13437_s26 = smov 6  }
   0x5   :  { %s13510_s21 = sld [smem:[%s15649_s0 + %s13435_s18]]   ;;  %s13438_s30 = smov 7  }
   0x6   :  { %s13515_s25 = sld [smem:[%s15649_s0 + %s13436_s22]]   ;;  %s13439_s4 = smov 8  }
   0x7   :  { %s13520_s29 = sld [smem:[%s15649_s0 + %s13437_s26]]   ;;  %s13440_s10 = smov 9  }
   0x8   :  { %s13525_s3 = sld [smem:[%s15649_s0 + %s13438_s30]]   ;;  %s13441_s15 = smov 10  }
   0x9   :  { %s13530_s8 = sld [smem:[%s15649_s0 + %s13439_s4]]   ;;  %s13442_s20 = smov 11  }
   0xa   :  { %s13535_s14 = sld [smem:[%s15649_s0 + %s13440_s10]]   ;;  %s13443_s26 = smov 12  }
   0xb   :  { %15677 = sst [smem:[#allocation2_spill]] %s13510_s21  ;;  %s13444_s1 = smov 13  }
   0xc   :  { %s13540_s19 = sld [smem:[%s15649_s0 + %s13441_s15]]   ;;  %s13445_s7 = smov 14  }
   0xd   :  { %s13545_s24 = sld [smem:[%s15649_s0 + %s13442_s20]]   ;;  %s13446_s15 = smov 15  }
   0xe   :  { %15678 = sst [smem:[#allocation3_spill]] %s13525_s3  ;;  %s13447_s22 = smov 16  }
   0xf   :  { %s13550_s30 = sld [smem:[%s15649_s0 + %s13443_s26]]   ;;  %s13448_s28 = smov 17  }
  0x10   :  { %s13555_s6 = sld [smem:[%s15649_s0 + %s13444_s1]]  }
  0x11   :  { %s13560_s12 = sld [smem:[%s15649_s0 + %s13445_s7]]   ;;  %s13449_s7 = smov 18  }
  0x12   :  { %s13565_s20 = sld [smem:[%s15649_s0 + %s13446_s15]]   ;;  %s13450_s15 = smov 19  }
  0x13   :  { %s13570_s27 = sld [smem:[%s15649_s0 + %s13447_s22]]   ;;  %s13451_s22 = smov 20  }
  0x14   :  { %s13575_s4 = sld [smem:[%s15649_s0 + %s13448_s28]]   ;;  %s13452_s28 = smov 21  }
  0x15   :  { %s13580_s21 = sld [smem:[%s15649_s0 + %s13449_s7]]   ;;  %s13453_s7 = smov 22  }
  0x18   :  { %15679 = sst [smem:[#allocation4_spill]] %s13565_s20 }
  0x19   :  { %15680 = sst [smem:[#allocation5_spill]] %s13570_s27 }
  0x1a   :  { %15681 = sst [smem:[#allocation6_spill]] %s13575_s4 }
  0x1b   :  { %15682 = sst [smem:[#allocation7_spill]] %s13580_s21 }
  0x1c   :  { %s13585_s20 = sld [smem:[%s15649_s0 + %s13450_s15]]   ;;  %s13454_s15 = smov 23  }
  0x1d   :  { %s13590_s27 = sld [smem:[%s15649_s0 + %s13451_s22]]   ;;  %s13455_s22 = smov 24  }
  0x1e   :  { %s13595_s4 = sld [smem:[%s15649_s0 + %s13452_s28]]   ;;  %s13456_s28 = smov 25  }
  0x1f   :  { %s13600_s21 = sld [smem:[%s15649_s0 + %s13453_s7]]   ;;  %s13457_s7 = smov 26  }
  0x22   :  { %15683 = sst [smem:[#allocation8_spill]] %s13585_s20 }
  0x23   :  { %15684 = sst [smem:[#allocation9_spill]] %s13590_s27 }
  0x24   :  { %15685 = sst [smem:[#allocation10_spill]] %s13595_s4 }
  0x25   :  { %15686 = sst [smem:[#allocation11_spill]] %s13600_s21 }
  0x26   :  { %s13605_s20 = sld [smem:[%s15649_s0 + %s13454_s15]]   ;;  %s13458_s15 = smov 27  }
  0x27   :  { %s13610_s27 = sld [smem:[%s15649_s0 + %s13455_s22]]   ;;  %s13459_s22 = smov 28  }
  0x28   :  { %s13615_s4 = sld [smem:[%s15649_s0 + %s13456_s28]]   ;;  %s13460_s28 = smov 29  }
  0x29   :  { %s13620_s21 = sld [smem:[%s15649_s0 + %s13457_s7]]   ;;  %s13461_s7 = smov 30  }
  0x2c   :  { %15687 = sst [smem:[#allocation12_spill]] %s13605_s20 }
  0x2d   :  { %15688 = sst [smem:[#allocation13_spill]] %s13610_s27 }
  0x2e   :  { %15689 = sst [smem:[#allocation14_spill]] %s13615_s4 }
  0x2f   :  { %15690 = sst [smem:[#allocation15_spill]] %s13620_s21 }
  0x30   :  { %s13625_s20 = sld [smem:[%s15649_s0 + %s13458_s15]]   ;;  %s13462_s15 = smov 31  }
  0x31   :  { %s13630_s27 = sld [smem:[%s15649_s0 + %s13459_s22]]   ;;  %s13463_s22 = smov 32  }
  0x32   :  { %s13635_s4 = sld [smem:[%s15649_s0 + %s13460_s28]]   ;;  %s13464_s28 = smov 33  }
  0x33   :  { %s13640_s21 = sld [smem:[%s15649_s0 + %s13461_s7]]   ;;  %s13465_s7 = smov 34  }
  0x36   :  { %15691 = sst [smem:[#allocation16_spill]] %s13625_s20 }
  0x37   :  { %15692 = sst [smem:[#allocation17_spill]] %s13630_s27 }
  0x38   :  { %15693 = sst [smem:[#allocation18_spill]] %s13635_s4 }
  0x39   :  { %15694 = sst [smem:[#allocation19_spill]] %s13640_s21 }
  0x3a   :  { %s13645_s20 = sld [smem:[%s15649_s0 + %s13462_s15]]   ;;  %s13466_s15 = smov 35  }
  0x3b   :  { %s13650_s27 = sld [smem:[%s15649_s0 + %s13463_s22]]   ;;  %s13467_s22 = smov 36  }
  0x3c   :  { %s13655_s4 = sld [smem:[%s15649_s0 + %s13464_s28]]   ;;  %s13468_s28 = smov 37  }
  0x3d   :  { %s13660_s21 = sld [smem:[%s15649_s0 + %s13465_s7]]   ;;  %s13469_s7 = smov 38  }
  0x40   :  { %15695 = sst [smem:[#allocation20_spill]] %s13645_s20 }
  0x41   :  { %15696 = sst [smem:[#allocation21_spill]] %s13650_s27 }
  0x42   :  { %15697 = sst [smem:[#allocation22_spill]] %s13655_s4 }
  0x43   :  { %15698 = sst [smem:[#allocation23_spill]] %s13660_s21 }
  0x44   :  { %s13665_s20 = sld [smem:[%s15649_s0 + %s13466_s15]]   ;;  %s13470_s15 = smov 39  }
  0x45   :  { %s13670_s27 = sld [smem:[%s15649_s0 + %s13467_s22]]   ;;  %s13471_s22 = smov 40  }
  0x46   :  { %s13675_s4 = sld [smem:[%s15649_s0 + %s13468_s28]]   ;;  %s13472_s28 = smov 41  }
  0x47   :  { %s13680_s21 = sld [smem:[%s15649_s0 + %s13469_s7]]   ;;  %s13473_s7 = smov 42  }
  0x4a   :  { %15699 = sst [smem:[#allocation24_spill]] %s13665_s20 }
  0x4b   :  { %15700 = sst [smem:[#allocation25_spill]] %s13670_s27 }
  0x4c   :  { %15701 = sst [smem:[#allocation26_spill]] %s13675_s4 }
  0x4d   :  { %15702 = sst [smem:[#allocation27_spill]] %s13680_s21 }
  0x4e   :  { %s13685_s20 = sld [smem:[%s15649_s0 + %s13470_s15]]   ;;  %s13474_s15 = smov 43  }
  0x4f   :  { %s13690_s27 = sld [smem:[%s15649_s0 + %s13471_s22]]   ;;  %s13475_s22 = smov 44  }
  0x50   :  { %s13695_s4 = sld [smem:[%s15649_s0 + %s13472_s28]]   ;;  %s13476_s28 = smov 45  }
  0x51   :  { %s13700_s21 = sld [smem:[%s15649_s0 + %s13473_s7]]   ;;  %s13477_s7 = smov 46  }
  0x54   :  { %15703 = sst [smem:[#allocation28_spill]] %s13685_s20 }
  0x55   :  { %15704 = sst [smem:[#allocation29_spill]] %s13690_s27 }
  0x56   :  { %15705 = sst [smem:[#allocation30_spill]] %s13695_s4 }
  0x57   :  { %15706 = sst [smem:[#allocation31_spill]] %s13700_s21 }
  0x58   :  { %s13705_s20 = sld [smem:[%s15649_s0 + %s13474_s15]]   ;;  %s13722_s15 = smov 0  }
  0x59   :  { %s13710_s27 = sld [smem:[%s15649_s0 + %s13475_s22]]  }
  0x5a   :  { %s13715_s4 = sld [smem:[%s15649_s0 + %s13476_s28]]  }
  0x5b   :  { %s13720_s21 = sld [smem:[%s15649_s0 + %s13477_s7]]  }
  0x5c LB: > { %s15707_s3 = sld [smem:[#allocation3_spill]]  ;;  %s10764_s16 = sadd.s32 4294967295, %s13430_s15   ;;  %s13430_s15 = sphi %s13722_s15, %s103_s15  }
  0x5d   : > { %p10768_p0 = scmp.ge.s32.totalorder %s13430_s15, 1  ;;  %p1259_p1 = scmp.lt.s32.totalorder %s13430_s15, 3 }
  0x5f   : > { %p1260_p2 = pnand %p10768_p0, %p1259_p1 }
  0x60   : > { %p1369_p3 = scmp.lt.s32.totalorder (!%p1260_p2), %s10764_s16, 1  ;;  %s15708_s22 = sld [smem:[#allocation4_spill]] (!%p1260_p2) }
  0x61   : > { %1263 = sbr.rel (%p1260_p2) target bundleno = 13495 (0x34b7), region = 204  ;;  %s15709_s23 = sld [smem:[#allocation5_spill]] (!%p1260_p2) }
  0x62   : > { %s15710_s26 = sld [smem:[#allocation6_spill]] (!%p1260_p2) }
  0x63   : > { %s15711_s28 = sld [smem:[#allocation7_spill]] (!%p1260_p2) }
  0x64   : > { %s15712_s1 = sld [smem:[#allocation8_spill]] (!%p1260_p2) }
  0x65   : > { %s15713_s2 = sld [smem:[#allocation21_spill]] (!%p1260_p2) }
  0x66   : > { %v13478_v0 = vmov 0.0   ;;  %vm13479_vm0 = vmmov 0   ;;  %s15738_s16 = smov (!%p1369_p3, %s10764_s16), 1  ;;  %vm1416_vm1 = vcmask 1043456   ;;  %v13180_v7 = vld [vmem:[%s13500_s13] sm:$0xff]   ;;  %vm1406_vm2 = vcmask 195584  }
  0x67   : > { %11669 = vmatprep.subr.bf16.mxu0 %v13478_v0  ;;  %11673 = vmatprep.mubr.msk.bf16.mxu0 %vm13479_vm0, %v13478_v0  ;;  %s13109_s0 = smul.u32 24, %s15738_s16  ;;  %v13181_v8 = vld [vmem:[%s13500_s13 + $0x8] sm:$0xff]   ;;  %v13182_v9 = vld [vmem:[%s13500_s13 + $0x10] sm:$0xff]   ;;  %v1478_v10 = vlaneseq  ;;  %v1477_v13 = vld [vmem:[%s13495_s9] sm:$0x3]  ;;  %vm1779_vm3 = vcmask 1041408  }
  0x68   : > { %11685 = vmatprep.subr.bf16.mxu1 %v13478_v0  ;;  %11689 = vmatprep.mubr.msk.bf16.mxu1 %vm13479_vm0, %v13478_v0  ;;  %vm1769_vm4 = vcmask 31744   ;;  %vm2100_vm5 = vcmask 293888   ;;  %vm2287_vm6 = vcmask 261120   ;;  %vm3458_vm7 = vcmask 64512   ;;  %s15714_s7 = sld [smem:[#allocation22_spill]] }
  0x69   : > { %s1373_s18 = scalar_lea.vmem %s13490_s5, %s13109_s0  ;;  %v1479_v11 = vshrl.u32 %v1478_v10, 7  ;;  %v13188_v10 = vld [vmem:[%s13520_s29 + $0x10] ss:$0 sps:$4 sm:$0x33]   ;;  %s15715_s10 = sld [smem:[#allocation10_spill]]  ;;  %vm5604_vm8 = vcmask 257024  }
  0x6a   : > { %v13740_v1 = vld [vmem:[%s1373_s18 + $0x10] sm:$0xff]  ;;  %v13742_v2 = vld [vmem:[%s1373_s18] sm:$0xff]  ;;  %v13744_v3 = vld [vmem:[%s1373_s18 + $0x8] sm:$0xff]  ;;  %s15716_s11 = sld [smem:[#allocation11_spill]]  ;;  %vm10171_vm9 = vcmask 523264   ;;  %vm10661_vm10 = vcmask 27648  }
  0x6b   : > { %v1390_v4 = vpack.c.bf16 %v13740_v1, %v13740_v1  ;;  %v1389_v6 = vpack.c.bf16 %v13744_v3, %v13742_v2  ;;  %v1480_v12 = vsub.s32 0, %v1479_v11  ;;  %v1487_v15 = vsub.s32 1, %v1479_v11  ;;  %v13189_v11 = vld [vmem:[%s13515_s25 + $0x10] ss:$0 sps:$4 sm:$0x33]   ;;  %s15717_s0 = sld [smem:[#allocation9_spill]] }
  0x6c   : > { %s15718_s18 = sld [smem:[#allocation12_spill]] }
  0x6d   : > { %v1418_v5 = vsel %vm1416_vm1, %v1390_v4, 0  ;;  %v1481_v14 = vrot.slane %v1477_v13, %v1480_v12  ;;  %v1488_v18 = vrot.slane %v1477_v13, %v1487_v15  ;;  %v1765_v12 = vld [vmem:[%s13535_s14] sm:$0x3] }
  0x6e   : > { %11670 = vmatpush3.bf16.msra.mxu0 %v1418_v5  ;;  %v1781_v13 = vsel %vm1779_vm3, %v1765_v12, 0 }
  0x6f   : > { %11671 = vmatprep.subr.bf16.mxu0 %v13478_v0  ;;  %v1483_v16 = vmul.f32 %v1481_v14, %v13744_v3  ;;  %v1484_v17 = vmul.f32 %v1481_v14, %v13740_v1  ;;  %v1482_v19 = vmul.f32 %v1481_v14, %v13742_v2  ;;  %v1678_v14 = vld [vmem:[%s13530_s8] sm:$0x3] }
  0x70   : > { %v1849_v15 = vsel %vm1779_vm3, %v1678_v14, 0 }
  0x71   : > { %v1490_v20 = vadd.f32 %v1488_v18, %v1483_v16  ;;  %v1491_v21 = vadd.f32 %v1488_v18, %v1484_v17  ;;  %v1489_v22 = vadd.f32 %v1488_v18, %v1482_v19 }
  0x72   : > { %11672 = vmatpush3.bf16.msra.mxu0 %v1389_v6 }
  0x73   : > { %11709 = vmatprep.subr.bf16.mxu0 %v13478_v0  ;;  %v1493_v23 = vsub.f32 0.0, %v1490_v20  ;;  %v1494_v24 = vsub.f32 0.0, %v1491_v21  ;;  %v1492_v25 = vsub.f32 0.0, %v1489_v22 }
  0x75   : > { %11674 = vmatmul.mubr.msk.bf16.vlgmr.msra.gmra.mxu0 %vm1406_vm2, %v13180_v7  ;;  %v1497_v26 = vmul.f32 1.442695, %v1493_v23  ;;  %v1499_v27 = vmul.f32 1.442695, %v1494_v24  ;;  %v1495_v28 = vmul.f32 1.442695, %v1492_v25 }
  0x76   : > { %11677 = vmatprep.mubr.msk.bf16.mxu0 %vm13479_vm0, %v13478_v0 }
  0x77   : > { %13341 = vpow2.f32 %v1497_v26 }
  0x78   : > { %13343 = vpow2.f32 %v1499_v27 }
  0x79   : > { %13345 = vpow2.f32 %v1495_v28 }
  0x7d   : > { %11678 = vmatmul.mubr.msk.bf16.gmra.mxu0 %vm1406_vm2, %v13181_v8  ;;  %v13184_v8 = vld [vmem:[%s13520_s29] sm:$0xff]  }
  0x7e   : > { %11681 = vmatprep.mubr.msk.bf16.mxu0 %vm13479_vm0, %v13478_v0 }
  0x84   : > { %v13342_v29 = vpop.eup %13341 }
  0x85   : > { %11682 = vmatmul.mubr.msk.bf16.gmra.mxu0 %vm1406_vm2, %v13182_v9  ;;  %v13344_v30 = vpop.eup %13343  ;;  %v1502_v33 = vadd.f32 1.0, %v13342_v29  ;;  %v13187_v9 = vld [vmem:[%s13515_s25 + $0x8] sm:$0xff]  }
  0x86   : > { %11713 = vmatprep.mubr.msk.bf16.mxu0 %vm13479_vm0, %v13478_v0  ;;  %v13346_v32 = vpop.eup %13345  ;;  %v1503_v35 = vadd.f32 1.0, %v13344_v30 }
  0x87   : > { %v1501_v36 = vadd.f32 1.0, %v13346_v32  ;;  %13347 = vrcp.f32 %v1502_v33 }
  0x88   : > { %13349 = vrcp.f32 %v1503_v35 }
  0x89   : > { %13351 = vrcp.f32 %v1501_v36 }
  0x94   : > { %v13348_v46 = vpop.eup %13347 }
  0x95   : > { %v13350_v47 = vpop.eup %13349 }
  0x96   : > { %v13352_v50 = vpop.eup %13351 }
 0x135   : > { %v1454_v31 = vpop.f32.mrf.mxu0 }
 0x137   : > { %v11675_v34 = vpop.f32.mrf.mxu0 }
 0x139   : > { %v1457_v37 = vpop.f32.mrf.mxu0 }
 0x13b   : > { %v11676_v38 = vpop.f32.mrf.mxu0 }
 0x13d   : > { %v1462_v39 = vpop.f32.mrf.mxu0 }
 0x13f   : > { %v11679_v40 = vpop.f32.mrf.mxu0 }
 0x141   : > { %v1465_v41 = vpop.f32.mrf.mxu0 }
 0x142   : > { %v1510_v48 = vsub.f32 %v1454_v31, %v1465_v41 }
 0x143   : > { %v11680_v42 = vpop.f32.mrf.mxu0 }
 0x144   : > { %v1513_v55 = vmul.f32 %v13352_v50, %v1510_v48 }
 0x145   : > { %v1470_v43 = vpop.f32.mrf.mxu0 }
 0x146   : > { %v1511_v44 = vsub.f32 %v1457_v37, %v1470_v43  ;;  %v1516_v60 = vadd.f32 %v1513_v55, %v1465_v41 }
 0x147   : > { %v11683_v45 = vpop.f32.mrf.mxu0 }
 0x148   : > { %v1514_v52 = vmul.f32 %v13348_v46, %v1511_v44  ;;  %v1519_v5 = vsub.f32 %v13742_v2, %v1516_v60  ;;  %v13185_v2 = vld [vmem:[%s13515_s25] sm:$0xff]  }
 0x149   : > { %v1473_v49 = vpop.f32.mrf.mxu0 }
 0x14a   : > { %v1512_v51 = vsub.f32 %v1462_v39, %v1473_v49  ;;  %v1517_v57 = vadd.f32 %v1514_v52, %v1470_v43  ;;  %v13192_v52 = vld [vmem:[%s15707_s3 + $0x10] ss:$0 sps:$4 sm:$0x33]  }
 0x14b   : > { %v11684_v53 = vpop.f32.mrf.mxu0 }
 0x14c   : > { %v1515_v54 = vmul.f32 %v13350_v47, %v1512_v51  ;;  %v1520_v63 = vsub.f32 %v13744_v3, %v1517_v57  ;;  %v1524_v6 = vpack.c.bf16 %v1517_v57, %v1516_v60  ;;  %v13186_v3 = vld [vmem:[%s13520_s29 + $0x8] sm:$0xff]   ;;  %v1990_v53 = vld [vmem:[%s13540_s19] sm:$0x3] }
 0x14d   : > { %v13191_v51 = vld [vmem:[%s15707_s3 + $0x8] sm:$0xff]  }
 0x14e   : > { %v1518_v56 = vadd.f32 %v1515_v54, %v1473_v49  ;;  %v1595_v7 = vpack.c.bf16 %v1520_v63, %v1519_v5  ;;  %v13190_v49 = vld [vmem:[%s15707_s3] sm:$0xff]   ;;  %v2004_v54 = vsel %vm1779_vm3, %v1990_v53, 0  ;;  %s15722_s3 = sld [smem:[#allocation16_spill]] }
 0x150   : > { %v1521_v58 = vsub.f32 %v13740_v1, %v1518_v56  ;;  %v1525_v59 = vpack.c.bf16 %v1518_v56, %v1518_v56  ;;  %v13183_v1 = vld [vmem:[%s13505_s17] sm:$0x3f]  }
 0x152   : > { %v1596_v61 = vpack.c.bf16 %v1521_v58, %v1521_v58  ;;  %v1547_v62 = vsel %vm1416_vm1, %v1525_v59, 0 }
 0x153   : > { %11686 = vmatpush3.bf16.msra.mxu1 %v1547_v62 }
 0x154   : > { %v1620_v4 = vsel %vm1416_vm1, %v1596_v61, 0  ;;  %11687 = vmatprep.subr.bf16.mxu1 %v13478_v0 }
 0x155   : > { %11710 = vmatpush3.bf16.msra.mxu0 %v1620_v4 }
 0x156   : > { %11711 = vmatprep.subr.bf16.mxu0 %v13478_v0 }
 0x157   : > { %11688 = vmatpush3.bf16.msra.mxu1 %v1524_v6 }
 0x158   : > { %11693 = vmatprep.subr.bf16.mxu1 %v13478_v0 }
 0x159   : > { %11712 = vmatpush3.bf16.msra.mxu0 %v1595_v7 }
 0x15a   : > { %11690 = vmatmul.mubr.msk.bf16.vlgmr.msra.gmra.mxu1 %vm1406_vm2, %v13183_v1  ;;  %11739 = vmatprep.subr.bf16.mxu0 %v13478_v0 }
 0x15b   : > { %11694 = vmatpush3.bf16.msra.mxu1 %v1620_v4  ;;  %11697 = vmatprep.mubr.msk.bf16.mxu1 %vm13479_vm0, %v13478_v0 }
 0x15c   : > { %11714 = vmatmul.mubr.msk.bf16.vlgmr.msra.gmra.mxu0 %vm1406_vm2, %v13184_v8  ;;  %11695 = vmatprep.subr.bf16.mxu1 %v13478_v0 }
 0x15d   : > { %11717 = vmatprep.mubr.msk.bf16.mxu0 %vm13479_vm0, %v13478_v0  ;;  %11740 = vmatpush3.bf16.msra.mxu0 %v1849_v15 }
 0x15e   : > { %11769 = vmatprep.subr.bf16.mxu0 %v13478_v0 }
 0x15f   : > { %11696 = vmatpush3.bf16.msra.mxu1 %v1595_v7 }
 0x160   : > { %11725 = vmatprep.subr.bf16.mxu1 %v13478_v0 }
 0x162   : > { %11698 = vmatmul.mubr.msk.bf16.vlgmr.msra.gmra.mxu1 %vm1406_vm2, %v13185_v2 }
 0x163   : > { %11701 = vmatprep.mubr.msk.bf16.mxu1 %vm13479_vm0, %v13478_v0  ;;  %11726 = vmatpush3.bf16.msra.mxu1 %v1781_v13 }
 0x164   : > { %11718 = vmatmul.mubr.msk.bf16.gmra.mxu0 %vm1406_vm2, %v13186_v3  ;;  %11753 = vmatprep.subr.bf16.mxu1 %v13478_v0 }
 0x165   : > { %11721 = vmatprep.mubr.msk.bf16.mxu0 %vm13479_vm0, %v13478_v0 }
 0x16a   : > { %11702 = vmatmul.mubr.msk.bf16.gmra.mxu1 %vm1406_vm2, %v13187_v9 }
 0x16b   : > { %11705 = vmatprep.mubr.msk.bf16.mxu1 %vm13479_vm0, %v13478_v0 }
 0x16c   : > { %11722 = vmatmul.mubr.msk.bf16.gmra.mxu0 %vm1406_vm2, %v13188_v10 }
 0x16d   : > { %11741 = vmatprep.mubr.msk.bf16.mxu0 %vm13479_vm0, %v13478_v0 }
 0x172   : > { %11706 = vmatmul.mubr.msk.bf16.gmra.mxu1 %vm1406_vm2, %v13189_v11 }
 0x173   : > { %11727 = vmatprep.mubr.msk.bf16.mxu1 %vm13479_vm0, %v13478_v0 }
 0x21a   : > { %v13814_v16 = vpop.f32.mrf.mxu1 }
 0x21c   : > { %v11691_v17 = vpop.f32.mrf.mxu1  ;;  %v1743_v18 = vpop.f32.mrf.mxu0 }
 0x21e   : > { %v13816_v19 = vpop.f32.mrf.mxu1  ;;  %v11715_v20 = vpop.f32.mrf.mxu0 }
 0x220   : > { %v11692_v21 = vpop.f32.mrf.mxu1  ;;  %v1746_v22 = vpop.f32.mrf.mxu0 }
 0x221   : > { %v1766_v23 = vpack.c.bf16 %v1746_v22, %v1743_v18 }
 0x222   : > { %v1656_v24 = vpop.f32.mrf.mxu1  ;;  %v11716_v25 = vpop.f32.mrf.mxu0 }
 0x223   : > { %11728 = vmatmul.mubr.msk.bf16.vlgmr.msra.gmra.mxu1 %vm1769_vm4, %v1766_v23 }
 0x224   : > { %11754 = vmatpush3.bf16.msra.mxu1 %v1620_v4  ;;  %v11699_v26 = vpop.f32.mrf.mxu1  ;;  %v1751_v27 = vpop.f32.mrf.mxu0  ;;  %11731 = vmatprep.mubr.msk.bf16.mxu1 %vm13479_vm0, %v13478_v0 }
 0x225   : > { %11755 = vmatprep.subr.bf16.mxu1 %v13478_v0 }
 0x226   : > { %v1659_v28 = vpop.f32.mrf.mxu1  ;;  %v11719_v29 = vpop.f32.mrf.mxu0 }
 0x227   : > { %v1679_v30 = vpack.c.bf16 %v1659_v28, %v1656_v24 }
 0x228   : > { %11756 = vmatpush3.bf16.msra.mxu1 %v1595_v7  ;;  %v11700_v31 = vpop.f32.mrf.mxu1  ;;  %v1754_v32 = vpop.f32.mrf.mxu0 }
 0x229   : > { %v1767_v33 = vpack.c.bf16 %v1754_v32, %v1751_v27  ;;  %11742 = vmatmul.mubr.msk.bf16.vlgmr.msra.gmra.mxu0 %vm1769_vm4, %v1679_v30  ;;  %11783 = vmatprep.subr.bf16.mxu1 %v13478_v0 }
 0x22a   : > { %v1664_v34 = vpop.f32.mrf.mxu1  ;;  %v11720_v35 = vpop.f32.mrf.mxu0  ;;  %11745 = vmatprep.mubr.msk.bf16.mxu0 %vm13479_vm0, %v13478_v0  ;;  %11770 = vmatpush3.bf16.msra.mxu0 %v2004_v54  ;;  %v2070_v54 = vld [vmem:[%s13545_s24 + $0x18] sm:$0xff] }
 0x22b   : > { %11732 = vmatmul.mubr.msk.bf16.gmra.mxu1 %vm1769_vm4, %v1767_v33  ;;  %11801 = vmatprep.subr.bf16.mxu0 %v13478_v0 }
 0x22c   : > { %v11703_v36 = vpop.f32.mrf.mxu1  ;;  %v1759_v37 = vpop.f32.mrf.mxu0  ;;  %11735 = vmatprep.mubr.msk.bf16.mxu1 %vm13479_vm0, %v13478_v0 }
 0x22d   : > { %v1768_v40 = vpack.c.bf16 %v1759_v37, %v1759_v37 }
 0x22e   : > { %v1667_v38 = vpop.f32.mrf.mxu1  ;;  %v11723_v39 = vpop.f32.mrf.mxu0 }
 0x22f   : > { %v1680_v41 = vpack.c.bf16 %v1667_v38, %v1664_v34 }
 0x230   : > { %v1762_v42 = vpop.f32.mrf.mxu0  ;;  %v11704_v43 = vpop.f32.mrf.mxu1 }
 0x231   : > { %11746 = vmatmul.mubr.msk.bf16.gmra.mxu0 %vm1769_vm4, %v1680_v41  ;;  %v2067_v41 = vld [vmem:[%s13545_s24] sm:$0xff]  ;;  %v2068_v43 = vld [vmem:[%s13545_s24 + $0x8] sm:$0xff] }
 0x232   : > { %v11724_v44 = vpop.f32.mrf.mxu0  ;;  %v1672_v45 = vpop.f32.mrf.mxu1  ;;  %11749 = vmatprep.mubr.msk.bf16.mxu0 %vm13479_vm0, %v13478_v0 }
 0x233   : > { %11736 = vmatmul.mubr.msk.bf16.gmra.mxu1 %vm1769_vm4, %v1768_v40  ;;  %v1681_v47 = vpack.c.bf16 %v1672_v45, %v1672_v45 }
 0x234   : > { %11757 = vmatprep.mubr.msk.bf16.mxu1 %vm13479_vm0, %v13478_v0  ;;  %v11707_v46 = vpop.f32.mrf.mxu1 }
 0x236   : > { %v1675_v48 = vpop.f32.mrf.mxu1 }
 0x238   : > { %v11708_v50 = vpop.f32.mrf.mxu1 }
 0x239   : > { %11750 = vmatmul.mubr.msk.bf16.gmra.mxu0 %vm1769_vm4, %v1681_v47 }
 0x23a   : > { %11771 = vmatprep.mubr.msk.bf16.mxu0 %vm13479_vm0, %v13478_v0 }
 0x23b   : > { %11758 = vmatmul.mubr.msk.bf16.vlgmr.msra.gmra.mxu1 %vm1406_vm2, %v13190_v49 }
 0x23c   : > { %11761 = vmatprep.mubr.msk.bf16.mxu1 %vm13479_vm0, %v13478_v0 }
 0x243   : > { %11762 = vmatmul.mubr.msk.bf16.gmra.mxu1 %vm1406_vm2, %v13191_v51 }
 0x244   : > { %11765 = vmatprep.mubr.msk.bf16.mxu1 %vm13479_vm0, %v13478_v0 }
 0x24b   : > { %11766 = vmatmul.mubr.msk.bf16.gmra.mxu1 %vm1406_vm2, %v13192_v52  ;;  %v2069_v52 = vld [vmem:[%s13545_s24 + $0x10] sm:$0xff] }
 0x24c   : > { %11789 = vmatprep.mubr.msk.bf16.mxu1 %vm13479_vm0, %v13478_v0 }
 0x2e3   : > { %v1817_v55 = vpop.f32.mrf.mxu1 }
 0x2e5   : > { %v11729_v56 = vpop.f32.mrf.mxu1 }
 0x2e7   : > { %v1820_v57 = vpop.f32.mrf.mxu1 }
 0x2e9   : > { %v11730_v58 = vpop.f32.mrf.mxu1  ;;  %v1885_v59 = vpop.f32.mrf.mxu0 }
 0x2ea   : > { %v1886_v60 = vadd.f32 %v1885_v59, %v1817_v55 }
 0x2eb   : > { %v1825_v61 = vpop.f32.mrf.mxu1  ;;  %v11743_v62 = vpop.f32.mrf.mxu0 }
 0x2ed   : > { %v11733_v63 = vpop.f32.mrf.mxu1  ;;  %v1888_v4 = vpop.f32.mrf.mxu0 }
 0x2ee   : > { %v1889_v5 = vadd.f32 %v1888_v4, %v1820_v57 }
 0x2ef   : > { %v1828_v6 = vpop.f32.mrf.mxu1  ;;  %v11744_v1 = vpop.f32.mrf.mxu0 }
 0x2f1   : > { %v11734_v7 = vpop.f32.mrf.mxu1  ;;  %v1893_v8 = vpop.f32.mrf.mxu0 }
 0x2f2   : > { %v1894_v2 = vadd.f32 %v1893_v8, %v1825_v61  ;;  %v13193_v8 = vld [vmem:[%s13550_s30] sm:$0xff]  }
 0x2f3   : > { %v1833_v3 = vpop.f32.mrf.mxu1  ;;  %v11747_v9 = vpop.f32.mrf.mxu0 }
 0x2f5   : > { %v11737_v10 = vpop.f32.mrf.mxu1  ;;  %v1896_v11 = vpop.f32.mrf.mxu0 }
 0x2f6   : > { %v1897_v12 = vadd.f32 %v1896_v11, %v1828_v6 }
 0x2f7   : > { %v1836_v13 = vpop.f32.mrf.mxu1  ;;  %v11748_v14 = vpop.f32.mrf.mxu0 }
 0x2f9   : > { %v11738_v15 = vpop.f32.mrf.mxu1  ;;  %v1901_v17 = vpop.f32.mrf.mxu0 }
 0x2fa   : > { %v1902_v18 = vadd.f32 %v1901_v17, %v1833_v3  ;;  %v13195_v3 = vld [vmem:[%s13550_s30 + $0x10] ss:$0 sps:$4 sm:$0x33]  }
 0x2fb   : > { %v1968_v20 = vpop.f32.mrf.mxu1  ;;  %v11751_v21 = vpop.f32.mrf.mxu0 }
 0x2fd   : > { %v11759_v22 = vpop.f32.mrf.mxu1  ;;  %v1904_v23 = vpop.f32.mrf.mxu0 }
 0x2ff   : > { %v1971_v24 = vpop.f32.mrf.mxu1  ;;  %v11752_v25 = vpop.f32.mrf.mxu0 }
 0x300   : > { %v1991_v26 = vpack.c.bf16 %v1971_v24, %v1968_v20 }
 0x301   : > { %v11760_v27 = vpop.f32.mrf.mxu1 }
 0x302   : > { %11772 = vmatmul.mubr.msk.bf16.vlgmr.msra.gmra.mxu0 %vm1769_vm4, %v1991_v26  ;;  %v2225_v26 = vld [vmem:[%s13555_s6 + $0x8] sm:$0xff]  ;;  %v2172_v27 = vld [vmem:[%s13555_s6] sm:$0xff] }
 0x303   : > { %v1976_v28 = vpop.f32.mrf.mxu1  ;;  %11775 = vmatprep.mubr.msk.bf16.mxu0 %vm13479_vm0, %v13478_v0 }
 0x305   : > { %v11763_v29 = vpop.f32.mrf.mxu1 }
 0x306   : > { %v2226_v29 = vpack.c.bf16 %v2225_v26, %v2225_v26 }
 0x307   : > { %v1979_v30 = vpop.f32.mrf.mxu1 }
 0x308   : > { %v1992_v31 = vpack.c.bf16 %v1979_v30, %v1976_v28  ;;  %v2173_v30 = vpack.c.bf16 %v2172_v27, %v2172_v27 }
 0x309   : > { %v11764_v32 = vpop.f32.mrf.mxu1 }
 0x30a   : > { %11776 = vmatmul.mubr.msk.bf16.gmra.mxu0 %vm1769_vm4, %v1992_v31  ;;  %v13196_v31 = vld [vmem:[%s13560_s12 + $0x18] sm:$0xff]   ;;  %v13197_v32 = vld [vmem:[%s13560_s12 + $0x10] sm:$0xff]  }
 0x30b   : > { %v1984_v33 = vpop.f32.mrf.mxu1  ;;  %11779 = vmatprep.mubr.msk.bf16.mxu0 %vm13479_vm0, %v13478_v0 }
 0x30c   : > { %v1993_v35 = vpack.c.bf16 %v1984_v33, %v1984_v33  ;;  %v2386_v33 = vld [vmem:[%s13555_s6 + $0x10] sm:$0xff] }
 0x30d   : > { %v11767_v34 = vpop.f32.mrf.mxu1 }
 0x30e   : > { %v2387_v34 = vpack.c.bf16 %v2386_v33, %v2386_v33 }
 0x30f   : > { %v1987_v36 = vpop.f32.mrf.mxu1 }
 0x311   : > { %v11768_v37 = vpop.f32.mrf.mxu1 }
 0x312   : > { %11780 = vmatmul.mubr.msk.bf16.gmra.mxu0 %vm1769_vm4, %v1993_v35  ;;  %v2492_v35 = vld [vmem:[%s13555_s6 + $0x18] sm:$0xff] }
 0x313   : > { %11807 = vmatprep.mubr.msk.bf16.mxu0 %vm13479_vm0, %v13478_v0  ;;  %v2493_v36 = vpack.c.bf16 %v2492_v35, %v2492_v35 }
 0x3c2   : > { %v2040_v38 = vpop.f32.mrf.mxu0 }
 0x3c3   : > { %v2062_v40 = vadd.f32 %v2040_v38, %v1886_v60  ;;  %v2071_v60 = vld [vmem:[%s13545_s24 + $0x20] sm:$0xf] }
 0x3c4   : > { %v11773_v39 = vpop.f32.mrf.mxu0 }
 0x3c5   : > { %v2072_v46 = vadd.f32 %v2067_v41, %v2062_v40  ;;  %v13198_v39 = vld [vmem:[%s13560_s12 + $0x8] sm:$0xff]  }
 0x3c6   : > { %v2043_v42 = vpop.f32.mrf.mxu0 }
 0x3c7   : > { %v2063_v44 = vadd.f32 %v2043_v42, %v1889_v5 }
 0x3c8   : > { %v11774_v45 = vpop.f32.mrf.mxu0 }
 0x3c9   : > { %v2073_v47 = vadd.f32 %v2068_v43, %v2063_v44  ;;  %v13199_v45 = vld [vmem:[%s13560_s12] sm:$0xff]  }
 0x3ca   : > { %v2048_v48 = vpop.f32.mrf.mxu0 }
 0x3cb   : > { %v13864_v49 = vpack.c.bf16 %v2073_v47, %v2072_v46  ;;  %v2064_v51 = vadd.f32 %v2048_v48, %v1894_v2  ;;  %v13194_v2 = vld [vmem:[%s13550_s30 + $0x8] sm:$0xff]  }
 0x3cc   : > { %v11777_v50 = vpop.f32.mrf.mxu0 }
 0x3cd   : > { %v2074_v57 = vadd.f32 %v2069_v52, %v2064_v51  ;;  %v13200_v50 = vld [vmem:[%s13560_s12 + $0x28] sm:$0xff]   ;;  %v13201_v52 = vld [vmem:[%s13560_s12 + $0x20] sm:$0xff]  }
 0x3ce   : > { %v2051_v53 = vpop.f32.mrf.mxu0 }
 0x3cf   : > { %v2065_v55 = vadd.f32 %v2051_v53, %v1897_v12 }
 0x3d0   : > { %v11778_v56 = vpop.f32.mrf.mxu0 }
 0x3d1   : > { %v2075_v58 = vadd.f32 %v2070_v54, %v2065_v55  ;;  %v13202_v55 = vld [vmem:[%s13560_s12 + $0x38] sm:$0xff]  }
 0x3d2   : > { %v2056_v59 = vpop.f32.mrf.mxu0 }
 0x3d3   : > { %v13869_v61 = vpack.c.bf16 %v2075_v58, %v2074_v57  ;;  %v2066_v62 = vadd.f32 %v2056_v59, %v1902_v18  ;;  %v13203_v58 = vld [vmem:[%s13560_s12 + $0x30] sm:$0xff]  }
 0x3d4   : > { %v11781_v63 = vpop.f32.mrf.mxu0 }
 0x3d5   : > { %v2076_v4 = vadd.f32 %v2071_v60, %v2066_v62 }
 0x3d6   : > { %v2059_v5 = vpop.f32.mrf.mxu0 }
 0x3d7   : > { %v2079_v6 = vpack.c.bf16 %v2076_v4, %v2076_v4  ;;  %v2598_v5 = vld [vmem:[%s13555_s6 + $0x20] sm:$0xff] }
 0x3d8   : > { %v11782_v1 = vpop.f32.mrf.mxu0 }
 0x3d9   : > { %v13872_v7 = vsel %vm1779_vm3, %v2079_v6, 0  ;;  %v2599_v6 = vpack.c.bf16 %v2598_v5, %v2598_v5  ;;  %v13204_v1 = vld [vmem:[%s13560_s12 + $0x48] sm:$0xff]  }
 0x3da   : > { %11784 = vmatpush3.bf16.msra.mxu1 %v13872_v7 }
 0x3db   : > { %11785 = vmatprep.subr.bf16.mxu1 %v13478_v0 }
 0x3de   : > { %11786 = vmatpush3.bf16.msra.mxu1 %v13869_v61 }
 0x3df   : > { %11787 = vmatprep.subr.bf16.mxu1 %v13478_v0 }
 0x3e2   : > { %11788 = vmatpush3.bf16.msra.mxu1 %v13864_v49 }
 0x3e3   : > { %11811 = vmatprep.subr.bf16.mxu1 %v13478_v0 }
 0x3e5   : > { %11790 = vmatmul.mubr.msk.bf16.vlgmr.msra.gmra.mxu1 %vm2100_vm5, %v13193_v8  ;;  %v13205_v8 = vld [vmem:[%s13560_s12 + $0x40] sm:$0xff]  }
 0x3e6   : > { %11793 = vmatprep.mubr.msk.bf16.mxu1 %vm13479_vm0, %v13478_v0 }
 0x3ed   : > { %11794 = vmatmul.mubr.msk.bf16.gmra.mxu1 %vm2100_vm5, %v13194_v2 }
 0x3ee   : > { %11797 = vmatprep.mubr.msk.bf16.mxu1 %vm13479_vm0, %v13478_v0 }
 0x3f5   : > { %11798 = vmatmul.mubr.msk.bf16.gmra.mxu1 %vm2100_vm5, %v13195_v3 }
 0x3f6   : > { %11817 = vmatprep.mubr.msk.bf16.mxu1 %vm13479_vm0, %v13478_v0 }
 0x4a5   : > { %v13892_v9 = vpop.f32.mrf.mxu1 }
 0x4a7   : > { %v11791_v10 = vpop.f32.mrf.mxu1 }
 0x4a9   : > { %v13894_v11 = vpop.f32.mrf.mxu1 }
 0x4aa   : > { %v13923_v28 = vpack.c.bf16 %v13894_v11, %v13892_v9 }
 0x4ab   : > { %v11792_v12 = vpop.f32.mrf.mxu1 }
 0x4ad   : > { %v13896_v13 = vpop.f32.mrf.mxu1 }
 0x4af   : > { %v11795_v14 = vpop.f32.mrf.mxu1 }
 0x4b1   : > { %v13898_v15 = vpop.f32.mrf.mxu1 }
 0x4b2   : > { %v13913_v24 = vpack.c.bf16 %v13898_v15, %v13896_v13 }
 0x4b3   : > { %v11796_v17 = vpop.f32.mrf.mxu1 }
 0x4b5   : > { %v13900_v18 = vpop.f32.mrf.mxu1 }
 0x4b6   : > { %v2171_v20 = vpack.c.bf16 %v13900_v18, %v13900_v18 }
 0x4b7   : > { %v11799_v21 = vpop.f32.mrf.mxu1 }
 0x4b8   : > { %v13905_v22 = vsel %vm1779_vm3, %v2171_v20, 0 }
 0x4b9   : > { %v2166_v23 = vpop.f32.mrf.mxu1  ;;  %11802 = vmatpush3.bf16.msra.mxu0 %v13905_v22  ;;  %11812 = vmatpush3.bf16.msra.mxu1 %v13905_v22 }
 0x4ba   : > { %11803 = vmatprep.subr.bf16.mxu0 %v13478_v0  ;;  %11813 = vmatprep.subr.bf16.mxu1 %v13478_v0 }
 0x4bb   : > { %v11800_v25 = vpop.f32.mrf.mxu1 }
 0x4bd   : > { %11804 = vmatpush3.bf16.msra.mxu0 %v13913_v24  ;;  %11814 = vmatpush3.bf16.msra.mxu1 %v13913_v24 }
 0x4be   : > { %11805 = vmatprep.subr.bf16.mxu0 %v13478_v0  ;;  %11815 = vmatprep.subr.bf16.mxu1 %v13478_v0 }
 0x4c1   : > { %11806 = vmatpush3.bf16.msra.mxu0 %v13923_v28  ;;  %11816 = vmatpush3.bf16.msra.mxu1 %v13923_v28 }
 0x4c2   : > { %11837 = vmatprep.subr.bf16.mxu1 %v13478_v0  ;;  %11821 = vmatprep.subr.bf16.mxu0 %v13478_v0 }
 0x4c4   : > { %11818 = vmatmul.mubr.msk.bf16.vlgmr.msra.gmra.mxu1 %vm2100_vm5, %v2226_v29  ;;  %11808 = vmatmul.mubr.msk.bf16.vlgmr.msra.gmra.mxu0 %vm2100_vm5, %v2173_v30 }
 0x4c5   : > { %11838 = vmatpush3.bf16.msra.mxu1 %v13905_v22  ;;  %11843 = vmatprep.mubr.msk.bf16.mxu1 %vm13479_vm0, %v13478_v0 }
 0x4c6   : > { %11839 = vmatprep.subr.bf16.mxu1 %v13478_v0  ;;  %11822 = vmatpush3.bf16.msra.mxu0 %v13196_v31 }
 0x4c7   : > { %11823 = vmatprep.subr.bf16.mxu0 %v13478_v0  ;;  %11825 = vmatprep.mubr.msk.bf16.mxu0 %vm13479_vm0, %v13478_v0 }
 0x4c9   : > { %11840 = vmatpush3.bf16.msra.mxu1 %v13913_v24 }
 0x4ca   : > { %11841 = vmatprep.subr.bf16.mxu1 %v13478_v0  ;;  %11824 = vmatpush3.bf16.msra.mxu0 %v13197_v32 }
 0x4cb   : > { %11829 = vmatprep.subr.bf16.mxu0 %v13478_v0 }
 0x4cd   : > { %11842 = vmatpush3.bf16.msra.mxu1 %v13923_v28 }
 0x4ce   : > { %11855 = vmatprep.subr.bf16.mxu1 %v13478_v0 }
 0x4d0   : > { %11844 = vmatmul.mubr.msk.bf16.vlgmr.msra.gmra.mxu1 %vm2100_vm5, %v2387_v34 }
 0x4d1   : > { %11856 = vmatpush3.bf16.msra.mxu1 %v13905_v22  ;;  %11861 = vmatprep.mubr.msk.bf16.mxu1 %vm13479_vm0, %v13478_v0 }
 0x4d2   : > { %11857 = vmatprep.subr.bf16.mxu1 %v13478_v0 }
 0x4d5   : > { %11858 = vmatpush3.bf16.msra.mxu1 %v13913_v24 }
 0x4d6   : > { %11859 = vmatprep.subr.bf16.mxu1 %v13478_v0 }
 0x4d9   : > { %11860 = vmatpush3.bf16.msra.mxu1 %v13923_v28 }
 0x4da   : > { %11883 = vmatprep.subr.bf16.mxu1 %v13478_v0 }
 0x4dc   : > { %11862 = vmatmul.mubr.msk.bf16.vlgmr.msra.gmra.mxu1 %vm2100_vm5, %v2493_v36 }
 0x4dd   : > { %11887 = vmatprep.mubr.msk.bf16.mxu1 %vm13479_vm0, %v13478_v0  ;;  %11884 = vmatpush3.bf16.msra.mxu1 %v13204_v1 }
 0x4de   : > { %11885 = vmatprep.subr.bf16.mxu1 %v13478_v0 }
 0x4e1   : > { %11886 = vmatpush3.bf16.msra.mxu1 %v13205_v8 }
 0x4e2   : > { %11891 = vmatprep.subr.bf16.mxu1 %v13478_v0 }
 0x584   : > { %v2264_v37 = vpop.f32.mrf.mxu1  ;;  %v2214_v38 = vpop.f32.mrf.mxu0 }
 0x585   : > { %v2274_v40 = vpack.c.bf16 %v2264_v37, %v2264_v37  ;;  %v2224_v48 = vpack.c.bf16 %v2214_v38, %v2214_v38 }
 0x586   : > { %v11819_v41 = vpop.f32.mrf.mxu1  ;;  %v11809_v42 = vpop.f32.mrf.mxu0 }
 0x587   : > { %11826 = vmatmul.mubr.msk.bf16.vlgmr.msra.gmra.mxu0 %vm2287_vm6, %v2274_v40  ;;  %v2704_v41 = vld [vmem:[%s13555_s6 + $0x28] sm:$0xff] }
 0x588   : > { %11830 = vmatpush3.bf16.msra.mxu0 %v13198_v39  ;;  %v2267_v43 = vpop.f32.mrf.mxu1  ;;  %v2217_v44 = vpop.f32.mrf.mxu0  ;;  %11833 = vmatprep.mubr.msk.bf16.mxu0 %vm13479_vm0, %v13478_v0  ;;  %v2705_v42 = vpack.c.bf16 %v2704_v41, %v2704_v41 }
 0x589   : > { %11831 = vmatprep.subr.bf16.mxu0 %v13478_v0  ;;  %v13206_v43 = vld [vmem:[%s13560_s12 + $0x58] sm:$0xff]   ;;  %v13207_v44 = vld [vmem:[%s13560_s12 + $0x50] sm:$0xff]  }
 0x58a   : > { %v11820_v46 = vpop.f32.mrf.mxu1  ;;  %v11810_v47 = vpop.f32.mrf.mxu0 }
 0x58c   : > { %11832 = vmatpush3.bf16.msra.mxu0 %v13199_v45 }
 0x58d   : > { %11847 = vmatprep.subr.bf16.mxu0 %v13478_v0 }
 0x58f   : > { %11834 = vmatmul.mubr.msk.bf16.vlgmr.msra.gmra.mxu0 %vm2287_vm6, %v2224_v48 }
 0x590   : > { %11848 = vmatpush3.bf16.msra.mxu0 %v13200_v50  ;;  %v2425_v51 = vpop.f32.mrf.mxu1  ;;  %11851 = vmatprep.mubr.msk.bf16.mxu0 %vm13479_vm0, %v13478_v0 }
 0x591   : > { %11849 = vmatprep.subr.bf16.mxu0 %v13478_v0  ;;  %v2435_v56 = vpack.c.bf16 %v2425_v51, %v2425_v51 }
 0x592   : > { %v11845_v53 = vpop.f32.mrf.mxu1 }
 0x594   : > { %11850 = vmatpush3.bf16.msra.mxu0 %v13201_v52  ;;  %v2428_v54 = vpop.f32.mrf.mxu1 }
 0x595   : > { %11865 = vmatprep.subr.bf16.mxu0 %v13478_v0 }
 0x596   : > { %v11846_v57 = vpop.f32.mrf.mxu1 }
 0x597   : > { %11852 = vmatmul.mubr.msk.bf16.vlgmr.msra.gmra.mxu0 %vm2287_vm6, %v2435_v56  ;;  %v2810_v56 = vld [vmem:[%s13555_s6 + $0x30] sm:$0xff] }
 0x598   : > { %11866 = vmatpush3.bf16.msra.mxu0 %v13202_v55  ;;  %11869 = vmatprep.mubr.msk.bf16.mxu0 %vm13479_vm0, %v13478_v0  ;;  %v2811_v57 = vpack.c.bf16 %v2810_v56, %v2810_v56 }
 0x599   : > { %11867 = vmatprep.subr.bf16.mxu0 %v13478_v0 }
 0x59c   : > { %11868 = vmatpush3.bf16.msra.mxu0 %v13203_v58  ;;  %v2531_v59 = vpop.f32.mrf.mxu1  ;;  %v13208_v58 = vld [vmem:[%s13560_s12 + $0x68] sm:$0xff]  }
 0x59d   : > { %v2541_v60 = vpack.c.bf16 %v2531_v59, %v2531_v59  ;;  %11873 = vmatprep.subr.bf16.mxu0 %v13478_v0  ;;  %v13209_v59 = vld [vmem:[%s13560_s12 + $0x60] sm:$0xff]  }
 0x59e   : > { %v11863_v62 = vpop.f32.mrf.mxu1 }
 0x59f   : > { %11870 = vmatmul.mubr.msk.bf16.vlgmr.msra.gmra.mxu0 %vm2287_vm6, %v2541_v60 }
 0x5a0   : > { %11874 = vmatpush3.bf16.msra.mxu0 %v13905_v22  ;;  %v2534_v63 = vpop.f32.mrf.mxu1  ;;  %11879 = vmatprep.mubr.msk.bf16.mxu0 %vm13479_vm0, %v13478_v0 }
 0x5a1   : > { %11875 = vmatprep.subr.bf16.mxu0 %v13478_v0 }
 0x5a2   : > { %v11864_v4 = vpop.f32.mrf.mxu1 }
 0x5a4   : > { %11876 = vmatpush3.bf16.msra.mxu0 %v13913_v24 }
 0x5a5   : > { %11877 = vmatprep.subr.bf16.mxu0 %v13478_v0 }
 0x5a8   : > { %11878 = vmatpush3.bf16.msra.mxu0 %v13923_v28 }
 0x5a9   : > { %11901 = vmatprep.subr.bf16.mxu0 %v13478_v0 }
 0x5ab   : > { %11880 = vmatmul.mubr.msk.bf16.vlgmr.msra.gmra.mxu0 %vm2100_vm5, %v2599_v6 }
 0x5ac   : > { %11905 = vmatprep.mubr.msk.bf16.mxu0 %vm13479_vm0, %v13478_v0  ;;  %11902 = vmatpush3.bf16.msra.mxu0 %v13206_v43 }
 0x5ad   : > { %11903 = vmatprep.subr.bf16.mxu0 %v13478_v0 }
 0x5b0   : > { %11904 = vmatpush3.bf16.msra.mxu0 %v13207_v44 }
 0x5b1   : > { %11909 = vmatprep.subr.bf16.mxu0 %v13478_v0 }
 0x647   : > { %v2325_v2 = vpop.f32.mrf.mxu0 }
 0x649   : > { %v11827_v3 = vpop.f32.mrf.mxu0 }
 0x64b   : > { %v2328_v10 = vpop.f32.mrf.mxu0 }
 0x64c   : > { %v2916_v10 = vld [vmem:[%s13555_s6 + $0x38] sm:$0xff] }
 0x64d   : > { %v11828_v12 = vpop.f32.mrf.mxu0 }
 0x64e   : > { %v2917_v12 = vpack.c.bf16 %v2916_v10, %v2916_v10 }
 0x64f   : > { %v2380_v14 = vpop.f32.mrf.mxu0 }
 0x650   : > { %v2381_v17 = vadd.f32 %v2380_v14, %v2325_v2  ;;  %v13210_v14 = vld [vmem:[%s13560_s12 + $0x78] sm:$0xff]  }
 0x651   : > { %v11835_v20 = vpop.f32.mrf.mxu0 }
 0x653   : > { %v2383_v21 = vpop.f32.mrf.mxu0 }
 0x655   : > { %v11836_v23 = vpop.f32.mrf.mxu0 }
 0x657   : > { %v2485_v25 = vpop.f32.mrf.mxu0 }
 0x658   : > { %v2491_v26 = vadd.f32 %v2485_v25, %v2381_v17  ;;  %v13211_v17 = vld [vmem:[%s13560_s12 + $0x70] sm:$0xff]  }
 0x659   : > { %v11853_v27 = vpop.f32.mrf.mxu0 }
 0x65b   : > { %v2488_v29 = vpop.f32.mrf.mxu0 }
 0x65d   : > { %v11854_v30 = vpop.f32.mrf.mxu0 }
 0x65f   : > { %v2591_v31 = vpop.f32.mrf.mxu0 }
 0x660   : > { %v2597_v32 = vadd.f32 %v2591_v31, %v2491_v26 }
 0x661   : > { %v11871_v33 = vpop.f32.mrf.mxu0 }
 0x662   : > { %v3022_v33 = vld [vmem:[%s13555_s6 + $0x40] sm:$0xff] }
 0x663   : > { %v2594_v34 = vpop.f32.mrf.mxu0 }
 0x664   : > { %v3023_v34 = vpack.c.bf16 %v3022_v33, %v3022_v33 }
 0x665   : > { %v11872_v35 = vpop.f32.mrf.mxu0 }
 0x666   : > { %v13212_v35 = vld [vmem:[%s13560_s12 + $0x88] sm:$0xff]  }
 0x66b   : > { %v2637_v36 = vpop.f32.mrf.mxu0 }
 0x66c   : > { %v2647_v37 = vpack.c.bf16 %v2637_v36, %v2637_v36  ;;  %v13213_v36 = vld [vmem:[%s13560_s12 + $0x80] sm:$0xff]  }
 0x66d   : > { %v11881_v38 = vpop.f32.mrf.mxu0 }
 0x66e   : > { %11888 = vmatmul.mubr.msk.bf16.vlgmr.msra.gmra.mxu1 %vm2287_vm6, %v2647_v37 }
 0x66f   : > { %11892 = vmatpush3.bf16.msra.mxu1 %v13905_v22  ;;  %v2640_v39 = vpop.f32.mrf.mxu0  ;;  %11897 = vmatprep.mubr.msk.bf16.mxu1 %vm13479_vm0, %v13478_v0 }
 0x670   : > { %11893 = vmatprep.subr.bf16.mxu1 %v13478_v0 }
 0x671   : > { %v11882_v40 = vpop.f32.mrf.mxu0 }
 0x673   : > { %11894 = vmatpush3.bf16.msra.mxu1 %v13913_v24 }
 0x674   : > { %11895 = vmatprep.subr.bf16.mxu1 %v13478_v0 }
 0x677   : > { %11896 = vmatpush3.bf16.msra.mxu1 %v13923_v28 }
 0x678   : > { %11919 = vmatprep.subr.bf16.mxu1 %v13478_v0 }
 0x67a   : > { %11898 = vmatmul.mubr.msk.bf16.vlgmr.msra.gmra.mxu1 %vm2100_vm5, %v2705_v42 }
 0x67b   : > { %11923 = vmatprep.mubr.msk.bf16.mxu1 %vm13479_vm0, %v13478_v0  ;;  %11920 = vmatpush3.bf16.msra.mxu1 %v13208_v58 }
 0x67c   : > { %11921 = vmatprep.subr.bf16.mxu1 %v13478_v0 }
 0x67f   : > { %11922 = vmatpush3.bf16.msra.mxu1 %v13209_v59 }
 0x680   : > { %11927 = vmatprep.subr.bf16.mxu1 %v13478_v0 }
 0x72e   : > { %v2697_v45 = vpop.f32.mrf.mxu1 }
 0x72f   : > { %v2703_v46 = vadd.f32 %v2697_v45, %v2597_v32 }
 0x730   : > { %v11889_v47 = vpop.f32.mrf.mxu1 }
 0x731   : > { %v3128_v47 = vld [vmem:[%s13555_s6 + $0x48] sm:$0xff] }
 0x732   : > { %v2700_v48 = vpop.f32.mrf.mxu1 }
 0x733   : > { %v3129_v48 = vpack.c.bf16 %v3128_v47, %v3128_v47 }
 0x734   : > { %v11890_v50 = vpop.f32.mrf.mxu1 }
 0x735   : > { %v13214_v50 = vld [vmem:[%s13560_s12 + $0x98] sm:$0xff]  }
 0x73a   : > { %v2743_v51 = vpop.f32.mrf.mxu1 }
 0x73b   : > { %v2753_v52 = vpack.c.bf16 %v2743_v51, %v2743_v51  ;;  %v13215_v51 = vld [vmem:[%s13560_s12 + $0x90] sm:$0xff]  }
 0x73c   : > { %v11899_v53 = vpop.f32.mrf.mxu1 }
 0x73d   : > { %11906 = vmatmul.mubr.msk.bf16.vlgmr.msra.gmra.mxu0 %vm2287_vm6, %v2753_v52 }
 0x73e   : > { %11910 = vmatpush3.bf16.msra.mxu0 %v13905_v22  ;;  %v2746_v54 = vpop.f32.mrf.mxu1  ;;  %11915 = vmatprep.mubr.msk.bf16.mxu0 %vm13479_vm0, %v13478_v0 }
 0x73f   : > { %11911 = vmatprep.subr.bf16.mxu0 %v13478_v0 }
 0x740   : > { %v11900_v55 = vpop.f32.mrf.mxu1 }
 0x742   : > { %11912 = vmatpush3.bf16.msra.mxu0 %v13913_v24 }
 0x743   : > { %11913 = vmatprep.subr.bf16.mxu0 %v13478_v0 }
 0x746   : > { %11914 = vmatpush3.bf16.msra.mxu0 %v13923_v28 }
 0x747   : > { %11937 = vmatprep.subr.bf16.mxu0 %v13478_v0 }
 0x749   : > { %11916 = vmatmul.mubr.msk.bf16.vlgmr.msra.gmra.mxu0 %vm2100_vm5, %v2811_v57 }
 0x74a   : > { %11941 = vmatprep.mubr.msk.bf16.mxu0 %vm13479_vm0, %v13478_v0  ;;  %11938 = vmatpush3.bf16.msra.mxu0 %v13210_v14 }
 0x74b   : > { %11939 = vmatprep.subr.bf16.mxu0 %v13478_v0 }
 0x74e   : > { %11940 = vmatpush3.bf16.msra.mxu0 %v13211_v17 }
 0x74f   : > { %11945 = vmatprep.subr.bf16.mxu0 %v13478_v0 }
 0x7fd   : > { %v2803_v60 = vpop.f32.mrf.mxu0 }
 0x7fe   : > { %v2809_v62 = vadd.f32 %v2803_v60, %v2703_v46 }
 0x7ff   : > { %v11907_v63 = vpop.f32.mrf.mxu0 }
 0x800   : > { %v3234_v63 = vld [vmem:[%s13555_s6 + $0x50] sm:$0xff] }
 0x801   : > { %v2806_v4 = vpop.f32.mrf.mxu0 }
 0x802   : > { %v3235_v4 = vpack.c.bf16 %v3234_v63, %v3234_v63  ;;  %v3670_v63 = vld [vmem:[%s15709_s23 + $0x10] sm:$0xff] }
 0x803   : > { %v11908_v5 = vpop.f32.mrf.mxu0 }
 0x804   : > { %v13216_v5 = vld [vmem:[%s13560_s12 + $0xa8] sm:$0xff]  }
 0x809   : > { %v2849_v6 = vpop.f32.mrf.mxu0 }
 0x80a   : > { %v2859_v1 = vpack.c.bf16 %v2849_v6, %v2849_v6  ;;  %v13217_v6 = vld [vmem:[%s13560_s12 + $0xa0] sm:$0xff]  }
 0x80b   : > { %v11917_v8 = vpop.f32.mrf.mxu0 }
 0x80c   : > { %11924 = vmatmul.mubr.msk.bf16.vlgmr.msra.gmra.mxu1 %vm2287_vm6, %v2859_v1 }
 0x80d   : > { %11928 = vmatpush3.bf16.msra.mxu1 %v13905_v22  ;;  %v2852_v2 = vpop.f32.mrf.mxu0  ;;  %11933 = vmatprep.mubr.msk.bf16.mxu1 %vm13479_vm0, %v13478_v0 }
 0x80e   : > { %11929 = vmatprep.subr.bf16.mxu1 %v13478_v0 }
 0x80f   : > { %v11918_v3 = vpop.f32.mrf.mxu0 }
 0x811   : > { %11930 = vmatpush3.bf16.msra.mxu1 %v13913_v24 }
 0x812   : > { %11931 = vmatprep.subr.bf16.mxu1 %v13478_v0 }
 0x815   : > { %11932 = vmatpush3.bf16.msra.mxu1 %v13923_v28 }
 0x816   : > { %11955 = vmatprep.subr.bf16.mxu1 %v13478_v0 }
 0x818   : > { %11934 = vmatmul.mubr.msk.bf16.vlgmr.msra.gmra.mxu1 %vm2100_vm5, %v2917_v12 }
 0x819   : > { %11959 = vmatprep.mubr.msk.bf16.mxu1 %vm13479_vm0, %v13478_v0  ;;  %11956 = vmatpush3.bf16.msra.mxu1 %v13212_v35 }
 0x81a   : > { %11957 = vmatprep.subr.bf16.mxu1 %v13478_v0 }
 0x81d   : > { %11958 = vmatpush3.bf16.msra.mxu1 %v13213_v36 }
 0x81e   : > { %11963 = vmatprep.subr.bf16.mxu1 %v13478_v0 }
 0x8cc   : > { %v2909_v20 = vpop.f32.mrf.mxu1 }
 0x8cd   : > { %v2915_v21 = vadd.f32 %v2909_v20, %v2809_v62 }
 0x8ce   : > { %v11925_v23 = vpop.f32.mrf.mxu1 }
 0x8cf   : > { %v3340_v23 = vld [vmem:[%s13555_s6 + $0x58] sm:$0xff] }
 0x8d0   : > { %v2912_v25 = vpop.f32.mrf.mxu1 }
 0x8d1   : > { %v3341_v25 = vpack.c.bf16 %v3340_v23, %v3340_v23 }
 0x8d2   : > { %v11926_v26 = vpop.f32.mrf.mxu1 }
 0x8d3   : > { %v13219_v26 = vld [vmem:[%s13560_s12 + $0xb0] sm:$0xff]  }
 0x8d8   : > { %v2955_v27 = vpop.f32.mrf.mxu1 }
 0x8d9   : > { %v2965_v29 = vpack.c.bf16 %v2955_v27, %v2955_v27 }
 0x8da   : > { %v11935_v30 = vpop.f32.mrf.mxu1 }
 0x8db   : > { %11942 = vmatmul.mubr.msk.bf16.vlgmr.msra.gmra.mxu0 %vm2287_vm6, %v2965_v29 }
 0x8dc   : > { %11946 = vmatpush3.bf16.msra.mxu0 %v13905_v22  ;;  %v2958_v31 = vpop.f32.mrf.mxu1  ;;  %11951 = vmatprep.mubr.msk.bf16.mxu0 %vm13479_vm0, %v13478_v0 }
 0x8dd   : > { %11947 = vmatprep.subr.bf16.mxu0 %v13478_v0 }
 0x8de   : > { %v11936_v32 = vpop.f32.mrf.mxu1 }
 0x8e0   : > { %11948 = vmatpush3.bf16.msra.mxu0 %v13913_v24 }
 0x8e1   : > { %11949 = vmatprep.subr.bf16.mxu0 %v13478_v0 }
 0x8e4   : > { %11950 = vmatpush3.bf16.msra.mxu0 %v13923_v28 }
 0x8e5   : > { %11973 = vmatprep.subr.bf16.mxu0 %v13478_v0 }
 0x8e7   : > { %11952 = vmatmul.mubr.msk.bf16.vlgmr.msra.gmra.mxu0 %vm2100_vm5, %v3023_v34 }
 0x8e8   : > { %11977 = vmatprep.mubr.msk.bf16.mxu0 %vm13479_vm0, %v13478_v0  ;;  %11974 = vmatpush3.bf16.msra.mxu0 %v13214_v50 }
 0x8e9   : > { %11975 = vmatprep.subr.bf16.mxu0 %v13478_v0 }
 0x8ec   : > { %11976 = vmatpush3.bf16.msra.mxu0 %v13215_v51  ;;  %v13220_v51 = vld [vmem:[%s15710_s26 + $0x18] sm:$0xff]  }
 0x8ed   : > { %11981 = vmatprep.subr.bf16.mxu0 %v13478_v0 }
 0x99b   : > { %v3015_v37 = vpop.f32.mrf.mxu0 }
 0x99c   : > { %v3021_v38 = vadd.f32 %v3015_v37, %v2915_v21  ;;  %v10861_v37 = vld [vmem:[%s15708_s22] ss:$0 sm:$0xff]  ;;  %s15719_s22 = sld [smem:[#allocation13_spill]] }
 0x99d   : > { %v11943_v39 = vpop.f32.mrf.mxu0 }
 0x99f   : > { %v3018_v40 = vpop.f32.mrf.mxu0 }
 0x9a1   : > { %v11944_v41 = vpop.f32.mrf.mxu0 }
 0x9a7   : > { %v3061_v42 = vpop.f32.mrf.mxu0 }
 0x9a8   : > { %v3071_v43 = vpack.c.bf16 %v3061_v42, %v3061_v42 }
 0x9a9   : > { %v11953_v44 = vpop.f32.mrf.mxu0 }
 0x9aa   : > { %11960 = vmatmul.mubr.msk.bf16.vlgmr.msra.gmra.mxu1 %vm2287_vm6, %v3071_v43  ;;  %v3456_v44 = vld [vmem:[%s15709_s23] sm:$0xff] }
 0x9ab   : > { %11964 = vmatpush3.bf16.msra.mxu1 %v13905_v22  ;;  %v3064_v45 = vpop.f32.mrf.mxu0  ;;  %11969 = vmatprep.mubr.msk.bf16.mxu1 %vm13479_vm0, %v13478_v0 }
 0x9ac   : > { %11965 = vmatprep.subr.bf16.mxu1 %v13478_v0  ;;  %v3510_v45 = vld [vmem:[%s15709_s23 + $0x8] sm:$0xff] }
 0x9ad   : > { %v11954_v46 = vpop.f32.mrf.mxu0  ;;  %v3511_v50 = vpack.c.bf16 %v3510_v45, %v3510_v45  ;;  %v10878_v45 = vld [vmem:[%s15711_s28] ss:$0 sm:$0xff]  ;;  %s15720_s28 = sld [smem:[#allocation14_spill]] }
 0x9af   : > { %11966 = vmatpush3.bf16.msra.mxu1 %v13913_v24 }
 0x9b0   : > { %11967 = vmatprep.subr.bf16.mxu1 %v13478_v0 }
 0x9b3   : > { %11968 = vmatpush3.bf16.msra.mxu1 %v13923_v28 }
 0x9b4   : > { %11991 = vmatprep.subr.bf16.mxu1 %v13478_v0 }
 0x9b6   : > { %11970 = vmatmul.mubr.msk.bf16.vlgmr.msra.gmra.mxu1 %vm2100_vm5, %v3129_v48  ;;  %v3457_v48 = vpack.c.bf16 %v3456_v44, %v3456_v44 }
 0x9b7   : > { %11995 = vmatprep.mubr.msk.bf16.mxu1 %vm13479_vm0, %v13478_v0  ;;  %11992 = vmatpush3.bf16.msra.mxu1 %v13216_v5 }
 0x9b8   : > { %11993 = vmatprep.subr.bf16.mxu1 %v13478_v0 }
 0x9bb   : > { %11994 = vmatpush3.bf16.msra.mxu1 %v13217_v6 }
 0x9bc   : > { %11999 = vmatprep.subr.bf16.mxu1 %v13478_v0 }
 0xa6a   : > { %v3121_v52 = vpop.f32.mrf.mxu1 }
 0xa6b   : > { %v3127_v53 = vadd.f32 %v3121_v52, %v3021_v38  ;;  %v13221_v52 = vld [vmem:[%s15710_s26 + $0x8] sm:$0xff]  }
 0xa6c   : > { %v11961_v54 = vpop.f32.mrf.mxu1 }
 0xa6d   : > { %v13223_v54 = vld [vmem:[%s15710_s26] sm:$0xff]  }
 0xa6e   : > { %v3124_v55 = vpop.f32.mrf.mxu1 }
 0xa70   : > { %v11962_v56 = vpop.f32.mrf.mxu1 }
 0xa76   : > { %v3167_v57 = vpop.f32.mrf.mxu1 }
 0xa77   : > { %v3177_v58 = vpack.c.bf16 %v3167_v57, %v3167_v57 }
 0xa78   : > { %v11971_v59 = vpop.f32.mrf.mxu1 }
 0xa79   : > { %11978 = vmatmul.mubr.msk.bf16.vlgmr.msra.gmra.mxu0 %vm2287_vm6, %v3177_v58 }
 0xa7a   : > { %11982 = vmatpush3.bf16.msra.mxu0 %v13905_v22  ;;  %v3170_v60 = vpop.f32.mrf.mxu1  ;;  %11987 = vmatprep.mubr.msk.bf16.mxu0 %vm13479_vm0, %v13478_v0 }
 0xa7b   : > { %11983 = vmatprep.subr.bf16.mxu0 %v13478_v0 }
 0xa7c   : > { %v11972_v62 = vpop.f32.mrf.mxu1 }
 0xa7e   : > { %11984 = vmatpush3.bf16.msra.mxu0 %v13913_v24 }
 0xa7f   : > { %11985 = vmatprep.subr.bf16.mxu0 %v13478_v0 }
 0xa82   : > { %11986 = vmatpush3.bf16.msra.mxu0 %v13923_v28 }
 0xa83   : > { %12009 = vmatprep.subr.bf16.mxu0 %v13478_v0 }
 0xa85   : > { %11988 = vmatmul.mubr.msk.bf16.vlgmr.msra.gmra.mxu0 %vm2100_vm5, %v3235_v4 }
 0xa86   : > { %12013 = vmatprep.mubr.msk.bf16.mxu0 %vm13479_vm0, %v13478_v0 }
 0xb39   : > { %v3227_v1 = vpop.f32.mrf.mxu0 }
 0xb3a   : > { %v3233_v8 = vadd.f32 %v3227_v1, %v3127_v53  ;;  %v13222_v53 = vld [vmem:[%s15710_s26 + $0x10] sm:$0xff]   ;;  %v3671_v1 = vpack.c.bf16 %v3670_v63, %v3670_v63 }
 0xb3b   : > { %v11979_v2 = vpop.f32.mrf.mxu0  ;;  %v13231_v63 = vld [vmem:[%s15712_s1 + $0x10] sm:$0xff]  }
 0xb3d   : > { %v3230_v3 = vpop.f32.mrf.mxu0 }
 0xb3e   : > { %v13224_v3 = vld [vmem:[%s15710_s26 + $0x28] sm:$0xff]  }
 0xb3f   : > { %v11980_v10 = vpop.f32.mrf.mxu0 }
 0xb40   : > { %v13225_v10 = vld [vmem:[%s15710_s26 + $0x20] sm:$0xff]  }
 0xb45   : > { %v3273_v12 = vpop.f32.mrf.mxu0 }
 0xb46   : > { %v3283_v14 = vpack.c.bf16 %v3273_v12, %v3273_v12 }
 0xb47   : > { %v11989_v17 = vpop.f32.mrf.mxu0 }
 0xb48   : > { %11996 = vmatmul.mubr.msk.bf16.vlgmr.msra.gmra.mxu1 %vm2287_vm6, %v3283_v14 }
 0xb49   : > { %12000 = vmatpush3.bf16.msra.mxu1 %v13905_v22  ;;  %v3276_v20 = vpop.f32.mrf.mxu0  ;;  %12005 = vmatprep.mubr.msk.bf16.mxu1 %vm13479_vm0, %v13478_v0  ;;  %v13218_v22 = vld [vmem:[%s13560_s12 + $0xb8] sm:$0xff]  }
 0xb4a   : > { %12001 = vmatprep.subr.bf16.mxu1 %v13478_v0  ;;  %12010 = vmatpush3.bf16.msra.mxu0 %v13218_v22 }
 0xb4b   : > { %v11990_v21 = vpop.f32.mrf.mxu0  ;;  %12011 = vmatprep.subr.bf16.mxu0 %v13478_v0 }
 0xb4d   : > { %12002 = vmatpush3.bf16.msra.mxu1 %v13913_v24 }
 0xb4e   : > { %12003 = vmatprep.subr.bf16.mxu1 %v13478_v0  ;;  %12012 = vmatpush3.bf16.msra.mxu0 %v13219_v26 }
 0xb4f   : > { %12017 = vmatprep.subr.bf16.mxu0 %v13478_v0 }
 0xb51   : > { %12004 = vmatpush3.bf16.msra.mxu1 %v13923_v28 }
 0xb52   : > { %12023 = vmatprep.subr.bf16.mxu1 %v13478_v0 }
 0xb54   : > { %12006 = vmatmul.mubr.msk.bf16.vlgmr.msra.gmra.mxu1 %vm2100_vm5, %v3341_v25 }
 0xb55   : > { %12025 = vmatprep.mubr.msk.bf16.mxu1 %vm13479_vm0, %v13478_v0 }
 0xc08   : > { %v3333_v24 = vpop.f32.mrf.mxu1 }
 0xc09   : > { %v3339_v27 = vadd.f32 %v3333_v24, %v3233_v8  ;;  %v3776_v8 = vld [vmem:[%s15709_s23 + $0x18] sm:$0xff] }
 0xc0a   : > { %v11997_v29 = vpop.f32.mrf.mxu1  ;;  %v3777_v2 = vpack.c.bf16 %v3776_v8, %v3776_v8  ;;  %v10879_v8 = vld [vmem:[%s15713_s2] ss:$0 sm:$0xff] }
 0xc0c   : > { %v3336_v28 = vpop.f32.mrf.mxu1 }
 0xc0e   : > { %v11998_v30 = vpop.f32.mrf.mxu1 }
 0xc14   : > { %v3379_v31 = vpop.f32.mrf.mxu1 }
 0xc15   : > { %v3389_v32 = vpack.c.bf16 %v3379_v31, %v3379_v31  ;;  %v13227_v31 = vld [vmem:[%s15710_s26 + $0x30] sm:$0xff]  }
 0xc16   : > { %v12007_v33 = vpop.f32.mrf.mxu1 }
 0xc17   : > { %12014 = vmatmul.mubr.msk.bf16.vlgmr.msra.gmra.mxu0 %vm2287_vm6, %v3389_v32 }
 0xc18   : > { %v3382_v34 = vpop.f32.mrf.mxu1  ;;  %12019 = vmatprep.mubr.msk.bf16.mxu0 %vm13479_vm0, %v13478_v0 }
 0xc1a   : > { %v12008_v35 = vpop.f32.mrf.mxu1 }
 0xcd7   : > { %v3439_v36 = vpop.f32.mrf.mxu0 }
 0xcd8   : > { %v3445_v38 = vadd.f32 %v3439_v36, %v3339_v27  ;;  %v13226_v27 = vld [vmem:[%s15710_s26 + $0x38] sm:$0xff]  }
 0xcd9   : > { %v12015_v39 = vpop.f32.mrf.mxu0 }
 0xcda   : > { %v3453_v40 = vadd.f32 %v10861_v37, %v3445_v38 }
 0xcdb   : > { %v3442_v41 = vpop.f32.mrf.mxu0 }
 0xcdc   : > { %13353 = vtanh.f32 %v3453_v40 }
 0xcdd   : > { %v12016_v42 = vpop.f32.mrf.mxu0 }
 0xce9   : > { %v14120_v43 = vpop.eup %13353 }
 0xcea   : > { %v3455_v46 = vpack.c.bf16 %v14120_v43, %v14120_v43 }
 0xcec   : > { %v3463_v47 = vsel %vm1416_vm1, %v3455_v46, 0 }
 0xced   : > { %12018 = vmatpush3.bf16.msra.mxu0 %v3463_v47  ;;  %12024 = vmatpush3.bf16.msra.mxu1 %v3463_v47 }
 0xcee   : > { %12029 = vmatprep.subr.bf16.mxu0 %v13478_v0  ;;  %12037 = vmatprep.subr.bf16.mxu1 %v13478_v0 }
 0xcf0   : > { %12020 = vmatmul.mubr.msk.bf16.vlgmr.msra.gmra.mxu0 %vm3458_vm7, %v3457_v48  ;;  %12026 = vmatmul.mubr.msk.bf16.vlgmr.msra.gmra.mxu1 %vm3458_vm7, %v3511_v50 }
 0xcf1   : > { %12030 = vmatpush3.bf16.msra.mxu0 %v13220_v51  ;;  %12038 = vmatpush3.bf16.msra.mxu1 %v13221_v52 }
 0xcf2   : > { %12031 = vmatprep.subr.bf16.mxu0 %v13478_v0  ;;  %12039 = vmatprep.subr.bf16.mxu1 %v13478_v0 }
 0xcf3   : > { %12033 = vmatprep.mubr.msk.bf16.mxu0 %vm13479_vm0, %v13478_v0  ;;  %12041 = vmatprep.mubr.msk.bf16.mxu1 %vm13479_vm0, %v13478_v0 }
 0xcf5   : > { %12032 = vmatpush3.bf16.msra.mxu0 %v13222_v53  ;;  %12040 = vmatpush3.bf16.msra.mxu1 %v13223_v54 }
 0xcf6   : > { %12045 = vmatprep.subr.bf16.mxu0 %v13478_v0  ;;  %12051 = vmatprep.subr.bf16.mxu1 %v13478_v0 }
 0xdb0   : > { %v3499_v55 = vpop.f32.mrf.mxu0  ;;  %v3549_v56 = vpop.f32.mrf.mxu1 }
 0xdb1   : > { %v3509_v57 = vpack.c.bf16 %v3499_v55, %v3499_v55  ;;  %v3559_v58 = vpack.c.bf16 %v3549_v56, %v3549_v56 }
 0xdb2   : > { %v12027_v59 = vpop.f32.mrf.mxu1  ;;  %v12021_v60 = vpop.f32.mrf.mxu0 }
 0xdb3   : > { %12034 = vmatmul.mubr.msk.bf16.vlgmr.msra.gmra.mxu0 %vm2287_vm6, %v3559_v58  ;;  %12042 = vmatmul.mubr.msk.bf16.vlgmr.msra.gmra.mxu1 %vm2287_vm6, %v3509_v57  ;;  %v13228_v60 = vld [vmem:[%s15712_s1 + $0x8] sm:$0xff]  }
 0xdb4   : > { %12046 = vmatpush3.bf16.msra.mxu0 %v3463_v47  ;;  %v3552_v62 = vpop.f32.mrf.mxu1  ;;  %12047 = vmatprep.mubr.msk.bf16.mxu0 %vm13479_vm0, %v13478_v0  ;;  %v3502_v4 = vpop.f32.mrf.mxu0 }
 0xdb5   : > { %12059 = vmatprep.subr.bf16.mxu0 %v13478_v0  ;;  %12055 = vmatprep.mubr.msk.bf16.mxu1 %vm13479_vm0, %v13478_v0  ;;  %v13229_v62 = vld [vmem:[%s15712_s1 + $0x18] sm:$0xff]  }
 0xdb6   : > { %v12028_v5 = vpop.f32.mrf.mxu1  ;;  %v12022_v6 = vpop.f32.mrf.mxu0  ;;  %12052 = vmatpush3.bf16.msra.mxu1 %v13224_v3  ;;  %v10880_v3 = vld [vmem:[%s15714_s7] ss:$0 sm:$0xff] }
 0xdb7   : > { %12053 = vmatprep.subr.bf16.mxu1 %v13478_v0 }
 0xdba   : > { %12054 = vmatpush3.bf16.msra.mxu1 %v13225_v10 }
 0xdbb   : > { %12048 = vmatmul.mubr.msk.bf16.vlgmr.msra.gmra.mxu0 %vm3458_vm7, %v3671_v1  ;;  %12065 = vmatprep.subr.bf16.mxu1 %v13478_v0 }
 0xdbc   : > { %12060 = vmatpush3.bf16.msra.mxu0 %v3463_v47  ;;  %12061 = vmatprep.mubr.msk.bf16.mxu0 %vm13479_vm0, %v13478_v0 }
 0xdbd   : > { %12073 = vmatprep.subr.bf16.mxu0 %v13478_v0 }
 0xdc3   : > { %12062 = vmatmul.mubr.msk.bf16.vlgmr.msra.gmra.mxu0 %vm3458_vm7, %v3777_v2 }
 0xdc4   : > { %12077 = vmatprep.mubr.msk.bf16.mxu0 %vm13479_vm0, %v13478_v0  ;;  %12074 = vmatpush3.bf16.msra.mxu0 %v13228_v60 }
 0xdc5   : > { %12075 = vmatprep.subr.bf16.mxu0 %v13478_v0 }
 0xe73   : > { %v3609_v12 = vpop.f32.mrf.mxu0  ;;  %v3664_v14 = vpop.f32.mrf.mxu1 }
 0xe74   : > { %v3665_v17 = vadd.f32 %v3664_v14, %v3609_v12 }
 0xe75   : > { %v12035_v20 = vpop.f32.mrf.mxu0  ;;  %v12043_v21 = vpop.f32.mrf.mxu1 }
 0xe77   : > { %v3612_v23 = vpop.f32.mrf.mxu0  ;;  %v3667_v25 = vpop.f32.mrf.mxu1 }
 0xe78   : > { %v4046_v23 = vld [vmem:[%s15715_s10 + $0x30] sm:$0xff]  ;;  %v3980_v25 = vld [vmem:[%s15715_s10] sm:$0xff] }
 0xe79   : > { %v12036_v22 = vpop.f32.mrf.mxu0  ;;  %v12044_v26 = vpop.f32.mrf.mxu1 }
 0xe7a   : > { %v3981_v22 = vld [vmem:[%s15715_s10 + $0x8] sm:$0xff] }
 0xe7b   : > { %v3709_v24 = vpop.f32.mrf.mxu0 }
 0xe7c   : > { %v3719_v29 = vpack.c.bf16 %v3709_v24, %v3709_v24 }
 0xe7d   : > { %v12049_v28 = vpop.f32.mrf.mxu0 }
 0xe7e   : > { %12056 = vmatmul.mubr.msk.bf16.vlgmr.msra.gmra.mxu1 %vm2287_vm6, %v3719_v29 }
 0xe7f   : > { %v3712_v30 = vpop.f32.mrf.mxu0  ;;  %12066 = vmatpush3.bf16.msra.mxu1 %v13226_v27  ;;  %12069 = vmatprep.mubr.msk.bf16.mxu1 %vm13479_vm0, %v13478_v0 }
 0xe80   : > { %12067 = vmatprep.subr.bf16.mxu1 %v13478_v0 }
 0xe81   : > { %v12050_v32 = vpop.f32.mrf.mxu0 }
 0xe82   : > { %v3985_v32 = vpack.c.bf16 %v3981_v22, %v3980_v25 }
 0xe83   : > { %v3815_v33 = vpop.f32.mrf.mxu0  ;;  %12068 = vmatpush3.bf16.msra.mxu1 %v13227_v31 }
 0xe84   : > { %v3825_v34 = vpack.c.bf16 %v3815_v33, %v3815_v33  ;;  %12081 = vmatprep.subr.bf16.mxu1 %v13478_v0 }
 0xe85   : > { %v12063_v35 = vpop.f32.mrf.mxu0 }
 0xe86   : > { %12070 = vmatmul.mubr.msk.bf16.vlgmr.msra.gmra.mxu1 %vm2287_vm6, %v3825_v34  ;;  %v13232_v35 = vld [vmem:[%s15712_s1 + $0x28] sm:$0xff]  }
 0xe87   : > { %v3818_v36 = vpop.f32.mrf.mxu0  ;;  %12085 = vmatprep.mubr.msk.bf16.mxu1 %vm13479_vm0, %v13478_v0  ;;  %12082 = vmatpush3.bf16.msra.mxu1 %v13229_v62 }
 0xe88   : > { %12083 = vmatprep.subr.bf16.mxu1 %v13478_v0 }
 0xe89   : > { %v12064_v37 = vpop.f32.mrf.mxu0 }
 0xe8b   : > { %12084 = vmatpush3.bf16.msra.mxu1 %v13231_v63 }
 0xe8c   : > { %12103 = vmatprep.subr.bf16.mxu1 %v13478_v0 }
 0xf3e   : > { %v3769_v38 = vpop.f32.mrf.mxu1 }
 0xf3f   : > { %v3775_v42 = vadd.f32 %v3769_v38, %v3665_v17  ;;  %v4045_v17 = vld [vmem:[%s15715_s10 + $0x28] sm:$0xff]  ;;  %v4047_v38 = vld [vmem:[%s15715_s10 + $0x38] sm:$0xff] }
 0xf40   : > { %v12057_v39 = vpop.f32.mrf.mxu1  ;;  %v4050_v31 = vpack.c.bf16 %v4046_v23, %v4045_v17 }
 0xf41   : > { %v4048_v39 = vld [vmem:[%s15715_s10 + $0x40] sm:$0xff] }
 0xf42   : > { %v3772_v40 = vpop.f32.mrf.mxu1 }
 0xf43   : > { %v3982_v40 = vld [vmem:[%s15715_s10 + $0x10] sm:$0xff] }
 0xf44   : > { %v12058_v41 = vpop.f32.mrf.mxu1 }
 0xf45   : > { %v3983_v41 = vld [vmem:[%s15715_s10 + $0x18] sm:$0xff] }
 0xf46   : > { %v3875_v44 = vpop.f32.mrf.mxu1 }
 0xf47   : > { %v3881_v46 = vadd.f32 %v3875_v44, %v3775_v42  ;;  %v13233_v42 = vld [vmem:[%s15712_s1 + $0x20] sm:$0xff]   ;;  %v4051_v44 = vpack.c.bf16 %v4048_v39, %v4047_v38  ;;  %v4249_v39 = vld [vmem:[%s15715_s10 + $0x68] sm:$0xff] }
 0xf48   : > { %v12071_v47 = vpop.f32.mrf.mxu1  ;;  %v4248_v38 = vld [vmem:[%s15715_s10 + $0x60] sm:$0xff] }
 0xf49   : > { %v3889_v48 = vadd.f32 %v10878_v45, %v3881_v46  ;;  %v3986_v45 = vpack.c.bf16 %v3983_v41, %v3982_v40  ;;  %v4049_v46 = vld [vmem:[%s15715_s10 + $0x48] sm:$0xff]  ;;  %v3984_v47 = vld [vmem:[%s15715_s10 + $0x20] sm:$0xff]  ;;  %v4384_v41 = vld [vmem:[%s15715_s10 + $0x78] sm:$0xff] }
 0xf4a   : > { %v3878_v50 = vpop.f32.mrf.mxu1 }
 0xf4b   : > { %13355 = vtanh.f32 %v3889_v48  ;;  %v4052_v48 = vpack.c.bf16 %v4049_v46, %v4049_v46  ;;  %v3987_v50 = vpack.c.bf16 %v3984_v47, %v3984_v47 }
 0xf4c   : > { %v12072_v51 = vpop.f32.mrf.mxu1 }
 0xf4d   : > { %v13234_v51 = vld [vmem:[%s15712_s1 + $0x38] sm:$0xff]  }
 0xf58   : > { %v13356_v52 = vpop.eup %13355 }
 0xf59   : > { %v3891_v53 = vadd.f32 %v13356_v52, %v14120_v43  ;;  %v13230_v43 = vld [vmem:[%s15712_s1] sm:$0xff]   ;;  %v13235_v52 = vld [vmem:[%s15712_s1 + $0x30] sm:$0xff]  }
 0xf5a   : > { %12076 = vmatpush3.bf16.msra.mxu0 %v13230_v43 }
 0xf5b   : > { %v3892_v54 = vsel %vm2287_vm6, %v3891_v53, 0.0  ;;  %12089 = vmatprep.subr.bf16.mxu0 %v13478_v0 }
 0xf5c   : > { %3893 = vadd.xlane.f32.xlu0 %v3892_v54 }
 0xfe5   : > { %v3894_v55 = vpop.xlane.xlu0 %3893 }
 0xfe6   : > { %v3896_v56 = vmul.f32 0.03125, %v3894_v55 }
 0xfe8   : > { %v3897_v57 = vsub.f32 %v3891_v53, %v3896_v56 }
 0xfea   : > { %v3898_v58 = vmul.f32 %v3897_v57, %v3897_v57 }
 0xfec   : > { %v3899_v59 = vsel %vm2287_vm6, %v3898_v58, 0.0 }
 0xfed   : > { %3900 = vadd.xlane.f32.xlu0 %v3899_v59 }
0x1076   : > { %v3901_v4 = vpop.xlane.xlu0 %3900 }
0x1077   : > { %v3902_v5 = vmul.f32 0.03125, %v3901_v4 }
0x1079   : > { %v3903_v6 = vadd.f32 1e-05, %v3902_v5 }
0x107b   : > { %13357 = vrsqrt.f32 %v3903_v6 }
0x1088   : > { %v13358_v1 = vpop.eup %13357 }
0x1089   : > { %v3905_v2 = vmul.f32 %v13358_v1, %v3897_v57 }
0x108b   : > { %v3912_v10 = vmul.f32 %v10879_v8, %v3905_v2 }
0x108d   : > { %v3919_v12 = vadd.f32 %v10880_v3, %v3912_v10 }
0x108f   : > { %v14187_v14 = vpack.c.bf16 %v3919_v12, %v3919_v12 }
0x1091   : > { %12078 = vmatmul.mubr.msk.bf16.vlgmr.msra.gmra.mxu0 %vm2287_vm6, %v14187_v14  ;;  %12086 = vmatmul.mubr.msk.bf16.vlgmr.msra.gmra.mxu1 %vm2287_vm6, %v14187_v14 }
0x1092   : > { %12091 = vmatprep.mubr.msk.bf16.mxu0 %vm13479_vm0, %v13478_v0  ;;  %12105 = vmatprep.mubr.msk.bf16.mxu1 %vm13479_vm0, %v13478_v0 }
0x1151   : > { %v3974_v20 = vpop.f32.mrf.mxu0  ;;  %v4039_v21 = vpop.f32.mrf.mxu1 }
0x1152   : > { %v3988_v26 = vpack.c.bf16 %v3974_v20, %v3974_v20  ;;  %v4053_v24 = vpack.c.bf16 %v4039_v21, %v4039_v21 }
0x1153   : > { %v12079_v27 = vpop.f32.mrf.mxu0  ;;  %v12087_v29 = vpop.f32.mrf.mxu1 }
0x1154   : > { %v4132_v28 = vsel %vm1416_vm1, %v3988_v26, 0  ;;  %v4064_v30 = vsel %vm1416_vm1, %v4053_v24, 0 }
0x1155   : > { %v3977_v33 = vpop.f32.mrf.mxu0  ;;  %v4042_v34 = vpop.f32.mrf.mxu1  ;;  %12090 = vmatpush3.bf16.msra.mxu0 %v4064_v30  ;;  %12104 = vmatpush3.bf16.msra.mxu1 %v4132_v28  ;;  %v4246_v28 = vld [vmem:[%s15715_s10 + $0x50] sm:$0xff]  ;;  %v4247_v30 = vld [vmem:[%s15715_s10 + $0x58] sm:$0xff] }
0x1156   : > { %12117 = vmatprep.subr.bf16.mxu0 %v13478_v0  ;;  %12125 = vmatprep.subr.bf16.mxu1 %v13478_v0  ;;  %v4251_v34 = vpack.c.bf16 %v4247_v30, %v4246_v28 }
0x1157   : > { %v12080_v36 = vpop.f32.mrf.mxu0  ;;  %v12088_v37 = vpop.f32.mrf.mxu1 }
0x1158   : > { %12092 = vmatmul.mubr.msk.bf16.vlgmr.msra.gmra.mxu0 %vm3458_vm7, %v4050_v31  ;;  %12106 = vmatmul.mubr.msk.bf16.vlgmr.msra.gmra.mxu1 %vm3458_vm7, %v3985_v32  ;;  %v13236_v36 = vld [vmem:[%s15712_s1 + $0x48] sm:$0xff]  }
0x1159   : > { %12095 = vmatprep.mubr.msk.bf16.mxu0 %vm13479_vm0, %v13478_v0  ;;  %12109 = vmatprep.mubr.msk.bf16.mxu1 %vm13479_vm0, %v13478_v0 }
0x115a   : > { %12118 = vmatpush3.bf16.msra.mxu0 %v13232_v35 }
0x115b   : > { %12119 = vmatprep.subr.bf16.mxu0 %v13478_v0 }
0x115e   : > { %12120 = vmatpush3.bf16.msra.mxu0 %v13233_v42  ;;  %v4385_v42 = vld [vmem:[%s15715_s10 + $0x80] sm:$0xff] }
0x115f   : > { %12139 = vmatprep.subr.bf16.mxu0 %v13478_v0 }
0x1160   : > { %12096 = vmatmul.mubr.msk.bf16.gmra.mxu0 %vm3458_vm7, %v4051_v44  ;;  %12110 = vmatmul.mubr.msk.bf16.gmra.mxu1 %vm3458_vm7, %v3986_v45  ;;  %v13237_v44 = vld [vmem:[%s15712_s1 + $0x40] sm:$0xff]  }
0x1161   : > { %12099 = vmatprep.mubr.msk.bf16.mxu0 %vm13479_vm0, %v13478_v0  ;;  %12113 = vmatprep.mubr.msk.bf16.mxu1 %vm13479_vm0, %v13478_v0 }
0x1168   : > { %12100 = vmatmul.mubr.msk.bf16.gmra.mxu0 %vm3458_vm7, %v4052_v48  ;;  %12114 = vmatmul.mubr.msk.bf16.gmra.mxu1 %vm3458_vm7, %v3987_v50  ;;  %v4252_v48 = vpack.c.bf16 %v4249_v39, %v4248_v38  ;;  %v4389_v50 = vpack.c.bf16 %v4385_v42, %v4384_v41  ;;  %v4523_v41 = vld [vmem:[%s15715_s10 + $0xa8] sm:$0xff] }
0x1169   : > { %12121 = vmatprep.mubr.msk.bf16.mxu0 %vm13479_vm0, %v13478_v0  ;;  %12127 = vmatprep.mubr.msk.bf16.mxu1 %vm13479_vm0, %v13478_v0 }
0x1170   : > { %12122 = vmatmul.mubr.msk.bf16.vlgmr.msra.gmra.mxu0 %vm2287_vm6, %v14187_v14 }
0x1171   : > { %12140 = vmatpush3.bf16.msra.mxu0 %v13234_v51  ;;  %12143 = vmatprep.mubr.msk.bf16.mxu0 %vm13479_vm0, %v13478_v0 }
0x1172   : > { %12141 = vmatprep.subr.bf16.mxu0 %v13478_v0 }
0x1175   : > { %12142 = vmatpush3.bf16.msra.mxu0 %v13235_v52  ;;  %v13238_v52 = vld [vmem:[%s15712_s1 + $0x58] sm:$0xff]  }
0x1176   : > { %12147 = vmatprep.subr.bf16.mxu0 %v13478_v0 }
0x1178   : > { %12144 = vmatmul.mubr.msk.bf16.vlgmr.msra.gmra.mxu0 %vm2287_vm6, %v14187_v14 }
0x1179   : > { %12149 = vmatprep.mubr.msk.bf16.mxu0 %vm13479_vm0, %v13478_v0 }
0x1218   : > { %v4100_v53 = vpop.f32.mrf.mxu0  ;;  %v4168_v54 = vpop.f32.mrf.mxu1 }
0x1219   : > { %v14245_v55 = vadd.f32 %v4168_v54, %v4100_v53  ;;  %v4250_v54 = vld [vmem:[%s15715_s10 + $0x70] sm:$0xff] }
0x121a   : > { %v12093_v56 = vpop.f32.mrf.mxu0  ;;  %v12107_v57 = vpop.f32.mrf.mxu1 }
0x121b   : > { %v4386_v56 = vld [vmem:[%s15715_s10 + $0x88] sm:$0xff]  ;;  %v4387_v57 = vld [vmem:[%s15715_s10 + $0x90] sm:$0xff] }
0x121c   : > { %v4103_v58 = vpop.f32.mrf.mxu0  ;;  %v4171_v59 = vpop.f32.mrf.mxu1 }
0x121d   : > { %v14247_v60 = vadd.f32 %v4171_v59, %v4103_v58  ;;  %v13239_v58 = vld [vmem:[%s15712_s1 + $0x50] sm:$0xff]   ;;  %v4253_v59 = vpack.c.bf16 %v4250_v54, %v4250_v54 }
0x121e   : > { %v12094_v62 = vpop.f32.mrf.mxu0  ;;  %v12108_v43 = vpop.f32.mrf.mxu1  ;;  %v4524_v54 = vld [vmem:[%s15715_s10 + $0xb0] sm:$0xff] }
0x121f   : > { %v4390_v62 = vpack.c.bf16 %v4387_v57, %v4386_v56  ;;  %v4388_v43 = vld [vmem:[%s15715_s10 + $0x98] sm:$0xff] }
0x1220   : > { %v4108_v63 = vpop.f32.mrf.mxu0  ;;  %v4176_v4 = vpop.f32.mrf.mxu1  ;;  %v4525_v56 = vld [vmem:[%s15715_s10 + $0xb8] sm:$0xff] }
0x1221   : > { %v14249_v5 = vadd.f32 %v4176_v4, %v4108_v63  ;;  %v4391_v63 = vpack.c.bf16 %v4388_v43, %v4388_v43 }
0x1222   : > { %v12097_v6 = vpop.f32.mrf.mxu0  ;;  %v12111_v1 = vpop.f32.mrf.mxu1 }
0x1224   : > { %v4111_v8 = vpop.f32.mrf.mxu0  ;;  %v4179_v2 = vpop.f32.mrf.mxu1 }
0x1225   : > { %v14251_v3 = vadd.f32 %v4179_v2, %v4111_v8 }
0x1226   : > { %v12098_v10 = vpop.f32.mrf.mxu0  ;;  %v12112_v12 = vpop.f32.mrf.mxu1 }
0x1228   : > { %v4116_v17 = vpop.f32.mrf.mxu0  ;;  %v4184_v20 = vpop.f32.mrf.mxu1 }
0x1229   : > { %v14253_v21 = vadd.f32 %v4184_v20, %v4116_v17 }
0x122a   : > { %v12101_v23 = vpop.f32.mrf.mxu0  ;;  %v12115_v25 = vpop.f32.mrf.mxu1 }
0x122c   : > { %v4119_v22 = vpop.f32.mrf.mxu0  ;;  %v4187_v26 = vpop.f32.mrf.mxu1 }
0x122e   : > { %v12102_v24 = vpop.f32.mrf.mxu0  ;;  %v12116_v27 = vpop.f32.mrf.mxu1 }
0x1230   : > { %v4240_v29 = vpop.f32.mrf.mxu0 }
0x1231   : > { %v4254_v31 = vpack.c.bf16 %v4240_v29, %v4240_v29 }
0x1232   : > { %v12123_v32 = vpop.f32.mrf.mxu0 }
0x1233   : > { %v4265_v33 = vsel %vm1416_vm1, %v4254_v31, 0 }
0x1234   : > { %v4243_v35 = vpop.f32.mrf.mxu0  ;;  %12126 = vmatpush3.bf16.msra.mxu1 %v4265_v33 }
0x1235   : > { %12161 = vmatprep.subr.bf16.mxu1 %v13478_v0 }
0x1236   : > { %v12124_v37 = vpop.f32.mrf.mxu0 }
0x1237   : > { %12128 = vmatmul.mubr.msk.bf16.vlgmr.msra.gmra.mxu1 %vm3458_vm7, %v4251_v34 }
0x1238   : > { %v4378_v40 = vpop.f32.mrf.mxu0  ;;  %12131 = vmatprep.mubr.msk.bf16.mxu1 %vm13479_vm0, %v13478_v0  ;;  %12162 = vmatpush3.bf16.msra.mxu1 %v13236_v36 }
0x1239   : > { %v4392_v45 = vpack.c.bf16 %v4378_v40, %v4378_v40  ;;  %12163 = vmatprep.subr.bf16.mxu1 %v13478_v0  ;;  %v4522_v40 = vld [vmem:[%s15715_s10 + $0xa0] sm:$0xff] }
0x123a   : > { %v12145_v46 = vpop.f32.mrf.mxu0 }
0x123b   : > { %v4403_v47 = vsel %vm1416_vm1, %v4392_v45, 0 }
0x123c   : > { %v4381_v51 = vpop.f32.mrf.mxu0  ;;  %12148 = vmatpush3.bf16.msra.mxu0 %v4403_v47  ;;  %12164 = vmatpush3.bf16.msra.mxu1 %v13237_v44  ;;  %v4527_v47 = vpack.c.bf16 %v4523_v41, %v4522_v40 }
0x123d   : > { %12183 = vmatprep.subr.bf16.mxu0 %v13478_v0  ;;  %12169 = vmatprep.subr.bf16.mxu1 %v13478_v0  ;;  %v13240_v51 = vld [vmem:[%s15712_s1 + $0x68] sm:$0xff]  }
0x123e   : > { %v12146_v53 = vpop.f32.mrf.mxu0 }
0x123f   : > { %12132 = vmatmul.mubr.msk.bf16.gmra.mxu1 %vm3458_vm7, %v4252_v48  ;;  %12150 = vmatmul.mubr.msk.bf16.vlgmr.msra.gmra.mxu0 %vm3458_vm7, %v4389_v50 }
0x1240   : > { %12135 = vmatprep.mubr.msk.bf16.mxu1 %vm13479_vm0, %v13478_v0  ;;  %12153 = vmatprep.mubr.msk.bf16.mxu0 %vm13479_vm0, %v13478_v0 }
0x1241   : > { %12184 = vmatpush3.bf16.msra.mxu0 %v13238_v52 }
0x1242   : > { %12185 = vmatprep.subr.bf16.mxu0 %v13478_v0 }
0x1245   : > { %12186 = vmatpush3.bf16.msra.mxu0 %v13239_v58  ;;  %v4660_v58 = vld [vmem:[%s15715_s10 + $0xc8] sm:$0xff] }
0x1246   : > { %12191 = vmatprep.subr.bf16.mxu0 %v13478_v0 }
0x1247   : > { %12136 = vmatmul.mubr.msk.bf16.gmra.mxu1 %vm3458_vm7, %v4253_v59  ;;  %12154 = vmatmul.mubr.msk.bf16.gmra.mxu0 %vm3458_vm7, %v4390_v62  ;;  %v4661_v59 = vld [vmem:[%s15715_s10 + $0xd0] sm:$0xff]  ;;  %v13241_v62 = vld [vmem:[%s15712_s1 + $0x60] sm:$0xff]  }
0x1248   : > { %12157 = vmatprep.mubr.msk.bf16.mxu0 %vm13479_vm0, %v13478_v0  ;;  %12165 = vmatprep.mubr.msk.bf16.mxu1 %vm13479_vm0, %v13478_v0 }
0x124f   : > { %12158 = vmatmul.mubr.msk.bf16.gmra.mxu0 %vm3458_vm7, %v4391_v63  ;;  %12166 = vmatmul.mubr.msk.bf16.vlgmr.msra.gmra.mxu1 %vm2287_vm6, %v14187_v14 }
0x1250   : > { %12187 = vmatprep.mubr.msk.bf16.mxu0 %vm13479_vm0, %v13478_v0  ;;  %12171 = vmatprep.mubr.msk.bf16.mxu1 %vm13479_vm0, %v13478_v0 }
0x1257   : > { %12188 = vmatmul.mubr.msk.bf16.vlgmr.msra.gmra.mxu0 %vm2287_vm6, %v14187_v14 }
0x1258   : > { %12193 = vmatprep.mubr.msk.bf16.mxu0 %vm13479_vm0, %v13478_v0 }
0x12f7   : > { %v4301_v4 = vpop.f32.mrf.mxu1 }
0x12f8   : > { %v4323_v6 = vadd.f32 %v4301_v4, %v14245_v55 }
0x12f9   : > { %v12129_v1 = vpop.f32.mrf.mxu1 }
0x12fa   : > { %v4665_v1 = vpack.c.bf16 %v4661_v59, %v4660_v58  ;;  %v4799_v58 = vld [vmem:[%s15715_s10 + $0xf8] sm:$0xff] }
0x12fb   : > { %v4304_v8 = vpop.f32.mrf.mxu1 }
0x12fc   : > { %v4324_v2 = vadd.f32 %v4304_v8, %v14247_v60 }
0x12fd   : > { %v12130_v10 = vpop.f32.mrf.mxu1 }
0x12ff   : > { %v4309_v12 = vpop.f32.mrf.mxu1  ;;  %v4439_v17 = vpop.f32.mrf.mxu0 }
0x1300   : > { %v4325_v20 = vadd.f32 %v4309_v12, %v14249_v5  ;;  %v14306_v23 = vadd.f32 %v4439_v17, %v4323_v6  ;;  %v4528_v6 = vpack.c.bf16 %v4525_v56, %v4524_v54  ;;  %v4526_v12 = vld [vmem:[%s15715_s10 + $0xc0] sm:$0xff]  ;;  %v4662_v17 = vld [vmem:[%s15715_s10 + $0xd8] sm:$0xff] }
0x1301   : > { %v12133_v25 = vpop.f32.mrf.mxu1  ;;  %v12151_v22 = vpop.f32.mrf.mxu0 }
0x1302   : > { %v13243_v25 = vld [vmem:[%s15712_s1 + $0x70] sm:$0xff]   ;;  %v4529_v22 = vpack.c.bf16 %v4526_v12, %v4526_v12  ;;  %v4800_v12 = vld [vmem:[%s15715_s10 + $0x100] sm:$0xff] }
0x1303   : > { %v4312_v26 = vpop.f32.mrf.mxu1  ;;  %v4442_v24 = vpop.f32.mrf.mxu0 }
0x1304   : > { %v4326_v27 = vadd.f32 %v4312_v26, %v14251_v3  ;;  %v14309_v29 = vadd.f32 %v4442_v24, %v4324_v2  ;;  %v13242_v2 = vld [vmem:[%s15712_s1 + $0x78] sm:$0xff]   ;;  %v4664_v24 = vld [vmem:[%s15715_s10 + $0xe8] sm:$0xff] }
0x1305   : > { %v12134_v55 = vpop.f32.mrf.mxu1  ;;  %v12152_v28 = vpop.f32.mrf.mxu0 }
0x1307   : > { %v4317_v60 = vpop.f32.mrf.mxu1  ;;  %v4447_v30 = vpop.f32.mrf.mxu0 }
0x1308   : > { %v4327_v31 = vadd.f32 %v4317_v60, %v14253_v21  ;;  %v14312_v32 = vadd.f32 %v4447_v30, %v4325_v20  ;;  %v4663_v20 = vld [vmem:[%s15715_s10 + $0xe0] sm:$0xff] }
0x1309   : > { %v12137_v5 = vpop.f32.mrf.mxu1  ;;  %v12155_v33 = vpop.f32.mrf.mxu0  ;;  %v4666_v26 = vpack.c.bf16 %v4663_v20, %v4662_v17  ;;  %v4801_v17 = vld [vmem:[%s15715_s10 + $0x108] sm:$0xff] }
0x130b   : > { %v4320_v34 = vpop.f32.mrf.mxu1  ;;  %v4450_v35 = vpop.f32.mrf.mxu0 }
0x130c   : > { %v14314_v36 = vadd.f32 %v4450_v35, %v4326_v27  ;;  %v4667_v27 = vpack.c.bf16 %v4664_v24, %v4664_v24 }
0x130d   : > { %v12138_v3 = vpop.f32.mrf.mxu1  ;;  %v12156_v37 = vpop.f32.mrf.mxu0 }
0x130f   : > { %v4455_v38 = vpop.f32.mrf.mxu0  ;;  %v4516_v39 = vpop.f32.mrf.mxu1 }
0x1310   : > { %v14318_v42 = vadd.f32 %v4455_v38, %v4327_v31  ;;  %v4530_v21 = vpack.c.bf16 %v4516_v39, %v4516_v39 }
0x1311   : > { %v12159_v44 = vpop.f32.mrf.mxu0  ;;  %v12167_v45 = vpop.f32.mrf.mxu1 }
0x1312   : > { %v4541_v46 = vsel %vm1416_vm1, %v4530_v21, 0 }
0x1313   : > { %v4458_v48 = vpop.f32.mrf.mxu0  ;;  %v4519_v50 = vpop.f32.mrf.mxu1  ;;  %12170 = vmatpush3.bf16.msra.mxu1 %v4541_v46 }
0x1314   : > { %12205 = vmatprep.subr.bf16.mxu1 %v13478_v0 }
0x1315   : > { %v12160_v52 = vpop.f32.mrf.mxu0  ;;  %v12168_v53 = vpop.f32.mrf.mxu1 }
0x1316   : > { %12172 = vmatmul.mubr.msk.bf16.vlgmr.msra.gmra.mxu1 %vm3458_vm7, %v4527_v47 }
0x1317   : > { %v4654_v57 = vpop.f32.mrf.mxu0  ;;  %12175 = vmatprep.mubr.msk.bf16.mxu1 %vm13479_vm0, %v13478_v0  ;;  %12206 = vmatpush3.bf16.msra.mxu1 %v13240_v51 }
0x1318   : > { %v4668_v43 = vpack.c.bf16 %v4654_v57, %v4654_v57  ;;  %12207 = vmatprep.subr.bf16.mxu1 %v13478_v0  ;;  %v4798_v57 = vld [vmem:[%s15715_s10 + $0xf0] sm:$0xff] }
0x1319   : > { %v12189_v63 = vpop.f32.mrf.mxu0 }
0x131a   : > { %v4679_v4 = vsel %vm1416_vm1, %v4668_v43, 0 }
0x131b   : > { %v4657_v8 = vpop.f32.mrf.mxu0  ;;  %12192 = vmatpush3.bf16.msra.mxu0 %v4679_v4  ;;  %12208 = vmatpush3.bf16.msra.mxu1 %v13241_v62  ;;  %v4803_v4 = vpack.c.bf16 %v4799_v58, %v4798_v57 }
0x131c   : > { %12227 = vmatprep.subr.bf16.mxu0 %v13478_v0  ;;  %12213 = vmatprep.subr.bf16.mxu1 %v13478_v0  ;;  %v13244_v8 = vld [vmem:[%s15712_s1 + $0x88] sm:$0xff]  }
0x131d   : > { %v12190_v10 = vpop.f32.mrf.mxu0 }
0x131e   : > { %12176 = vmatmul.mubr.msk.bf16.gmra.mxu1 %vm3458_vm7, %v4528_v6  ;;  %12194 = vmatmul.mubr.msk.bf16.vlgmr.msra.gmra.mxu0 %vm3458_vm7, %v4665_v1 }
0x131f   : > { %12179 = vmatprep.mubr.msk.bf16.mxu1 %vm13479_vm0, %v13478_v0  ;;  %12197 = vmatprep.mubr.msk.bf16.mxu0 %vm13479_vm0, %v13478_v0 }
0x1320   : > { %12228 = vmatpush3.bf16.msra.mxu0 %v13242_v2 }
0x1321   : > { %12229 = vmatprep.subr.bf16.mxu0 %v13478_v0 }
0x1324   : > { %12230 = vmatpush3.bf16.msra.mxu0 %v13243_v25  ;;  %v4936_v25 = vld [vmem:[%s15715_s10 + $0x118] sm:$0xff] }
0x1325   : > { %12235 = vmatprep.subr.bf16.mxu0 %v13478_v0 }
0x1326   : > { %12180 = vmatmul.mubr.msk.bf16.gmra.mxu1 %vm3458_vm7, %v4529_v22  ;;  %12198 = vmatmul.mubr.msk.bf16.gmra.mxu0 %vm3458_vm7, %v4666_v26  ;;  %v4937_v22 = vld [vmem:[%s15715_s10 + $0x120] sm:$0xff] }
0x1327   : > { %12201 = vmatprep.mubr.msk.bf16.mxu0 %vm13479_vm0, %v13478_v0  ;;  %12209 = vmatprep.mubr.msk.bf16.mxu1 %vm13479_vm0, %v13478_v0  ;;  %v13245_v26 = vld [vmem:[%s15712_s1 + $0x80] sm:$0xff]  }
0x132e   : > { %12202 = vmatmul.mubr.msk.bf16.gmra.mxu0 %vm3458_vm7, %v4667_v27  ;;  %12210 = vmatmul.mubr.msk.bf16.vlgmr.msra.gmra.mxu1 %vm2287_vm6, %v14187_v14 }
0x132f   : > { %12231 = vmatprep.mubr.msk.bf16.mxu0 %vm13479_vm0, %v13478_v0  ;;  %12215 = vmatprep.mubr.msk.bf16.mxu1 %vm13479_vm0, %v13478_v0 }
0x1336   : > { %12232 = vmatmul.mubr.msk.bf16.vlgmr.msra.gmra.mxu0 %vm2287_vm6, %v14187_v14 }
0x1337   : > { %12237 = vmatprep.mubr.msk.bf16.mxu0 %vm13479_vm0, %v13478_v0 }
0x13d6   : > { %v4577_v55 = vpop.f32.mrf.mxu1 }
0x13d7   : > { %v4599_v28 = vadd.f32 %v4577_v55, %v14306_v23 }
0x13d8   : > { %v12173_v60 = vpop.f32.mrf.mxu1 }
0x13d9   : > { %v4941_v60 = vpack.c.bf16 %v4937_v22, %v4936_v25  ;;  %v5075_v25 = vld [vmem:[%s15715_s10 + $0x148] sm:$0xff] }
0x13da   : > { %v4580_v30 = vpop.f32.mrf.mxu1 }
0x13db   : > { %v4600_v31 = vadd.f32 %v4580_v30, %v14309_v29 }
0x13dc   : > { %v12174_v5 = vpop.f32.mrf.mxu1 }
0x13de   : > { %v4585_v33 = vpop.f32.mrf.mxu1  ;;  %v4715_v34 = vpop.f32.mrf.mxu0 }
0x13df   : > { %v4601_v35 = vadd.f32 %v4585_v33, %v14312_v32  ;;  %v14369_v3 = vadd.f32 %v4715_v34, %v4599_v28  ;;  %v4804_v28 = vpack.c.bf16 %v4801_v17, %v4800_v12  ;;  %v4802_v33 = vld [vmem:[%s15715_s10 + $0x110] sm:$0xff]  ;;  %v4938_v34 = vld [vmem:[%s15715_s10 + $0x128] sm:$0xff] }
0x13e0   : > { %v12177_v37 = vpop.f32.mrf.mxu1  ;;  %v12195_v38 = vpop.f32.mrf.mxu0 }
0x13e1   : > { %v13247_v37 = vld [vmem:[%s15712_s1 + $0x90] sm:$0xff]   ;;  %v4805_v38 = vpack.c.bf16 %v4802_v33, %v4802_v33 }
0x13e2   : > { %v4588_v39 = vpop.f32.mrf.mxu1  ;;  %v4718_v40 = vpop.f32.mrf.mxu0  ;;  %v5076_v33 = vld [vmem:[%s15715_s10 + $0x150] sm:$0xff] }
0x13e3   : > { %v4602_v41 = vadd.f32 %v4588_v39, %v14314_v36  ;;  %v14372_v21 = vadd.f32 %v4718_v40, %v4600_v31  ;;  %v13246_v31 = vld [vmem:[%s15712_s1 + $0x98] sm:$0xff]  }
0x13e4   : > { %v12178_v23 = vpop.f32.mrf.mxu1  ;;  %v12196_v44 = vpop.f32.mrf.mxu0  ;;  %v4940_v40 = vld [vmem:[%s15715_s10 + $0x138] sm:$0xff] }
0x13e6   : > { %v4593_v29 = vpop.f32.mrf.mxu1  ;;  %v4723_v45 = vpop.f32.mrf.mxu0 }
0x13e7   : > { %v4603_v46 = vadd.f32 %v4593_v29, %v14318_v42  ;;  %v14375_v47 = vadd.f32 %v4723_v45, %v4601_v35  ;;  %v4939_v35 = vld [vmem:[%s15715_s10 + $0x130] sm:$0xff] }
0x13e8   : > { %v12181_v32 = vpop.f32.mrf.mxu1  ;;  %v12199_v48 = vpop.f32.mrf.mxu0  ;;  %v4942_v39 = vpack.c.bf16 %v4939_v35, %v4938_v34  ;;  %v5077_v34 = vld [vmem:[%s15715_s10 + $0x158] sm:$0xff] }
0x13ea   : > { %v4596_v50 = vpop.f32.mrf.mxu1  ;;  %v4726_v51 = vpop.f32.mrf.mxu0 }
0x13eb   : > { %v14377_v52 = vadd.f32 %v4726_v51, %v4602_v41  ;;  %v4943_v41 = vpack.c.bf16 %v4940_v40, %v4940_v40 }
0x13ec   : > { %v12182_v36 = vpop.f32.mrf.mxu1  ;;  %v12200_v53 = vpop.f32.mrf.mxu0 }
0x13ee   : > { %v4731_v54 = vpop.f32.mrf.mxu0  ;;  %v4792_v56 = vpop.f32.mrf.mxu1 }
0x13ef   : > { %v14381_v59 = vadd.f32 %v4731_v54, %v4603_v46  ;;  %v4806_v42 = vpack.c.bf16 %v4792_v56, %v4792_v56 }
0x13f0   : > { %v12203_v62 = vpop.f32.mrf.mxu0  ;;  %v12211_v43 = vpop.f32.mrf.mxu1 }
0x13f1   : > { %v4817_v63 = vsel %vm1416_vm1, %v4806_v42, 0 }
0x13f2   : > { %v4734_v6 = vpop.f32.mrf.mxu0  ;;  %v4795_v1 = vpop.f32.mrf.mxu1  ;;  %12214 = vmatpush3.bf16.msra.mxu1 %v4817_v63 }
0x13f3   : > { %12249 = vmatprep.subr.bf16.mxu1 %v13478_v0 }
0x13f4   : > { %v12204_v2 = vpop.f32.mrf.mxu0  ;;  %v12212_v10 = vpop.f32.mrf.mxu1 }
0x13f5   : > { %12216 = vmatmul.mubr.msk.bf16.vlgmr.msra.gmra.mxu1 %vm3458_vm7, %v4803_v4 }
0x13f6   : > { %v4930_v20 = vpop.f32.mrf.mxu0  ;;  %12219 = vmatprep.mubr.msk.bf16.mxu1 %vm13479_vm0, %v13478_v0  ;;  %12250 = vmatpush3.bf16.msra.mxu1 %v13244_v8 }
0x13f7   : > { %v4944_v24 = vpack.c.bf16 %v4930_v20, %v4930_v20  ;;  %12251 = vmatprep.subr.bf16.mxu1 %v13478_v0  ;;  %v5074_v20 = vld [vmem:[%s15715_s10 + $0x140] sm:$0xff] }
0x13f8   : > { %v12233_v27 = vpop.f32.mrf.mxu0 }
0x13f9   : > { %v4955_v55 = vsel %vm1416_vm1, %v4944_v24, 0 }
0x13fa   : > { %v4933_v30 = vpop.f32.mrf.mxu0  ;;  %12236 = vmatpush3.bf16.msra.mxu0 %v4955_v55  ;;  %12252 = vmatpush3.bf16.msra.mxu1 %v13245_v26  ;;  %v5079_v55 = vpack.c.bf16 %v5075_v25, %v5074_v20 }
0x13fb   : > { %12271 = vmatprep.subr.bf16.mxu0 %v13478_v0  ;;  %12257 = vmatprep.subr.bf16.mxu1 %v13478_v0  ;;  %v13248_v30 = vld [vmem:[%s15712_s1 + $0xa8] sm:$0xff]  }
0x13fc   : > { %v12234_v5 = vpop.f32.mrf.mxu0 }
0x13fd   : > { %12220 = vmatmul.mubr.msk.bf16.gmra.mxu1 %vm3458_vm7, %v4804_v28  ;;  %12238 = vmatmul.mubr.msk.bf16.vlgmr.msra.gmra.mxu0 %vm3458_vm7, %v4941_v60 }
0x13fe   : > { %12223 = vmatprep.mubr.msk.bf16.mxu1 %vm13479_vm0, %v13478_v0  ;;  %12241 = vmatprep.mubr.msk.bf16.mxu0 %vm13479_vm0, %v13478_v0 }
0x13ff   : > { %12272 = vmatpush3.bf16.msra.mxu0 %v13246_v31 }
0x1400   : > { %12273 = vmatprep.subr.bf16.mxu0 %v13478_v0 }
0x1403   : > { %12274 = vmatpush3.bf16.msra.mxu0 %v13247_v37  ;;  %v5212_v37 = vld [vmem:[%s15715_s10 + $0x168] sm:$0xff] }
0x1404   : > { %12279 = vmatprep.subr.bf16.mxu0 %v13478_v0 }
0x1405   : > { %12224 = vmatmul.mubr.msk.bf16.gmra.mxu1 %vm3458_vm7, %v4805_v38  ;;  %12242 = vmatmul.mubr.msk.bf16.gmra.mxu0 %vm3458_vm7, %v4942_v39  ;;  %v5213_v38 = vld [vmem:[%s15715_s10 + $0x170] sm:$0xff]  ;;  %v13249_v39 = vld [vmem:[%s15712_s1 + $0xa0] sm:$0xff]  }
0x1406   : > { %12245 = vmatprep.mubr.msk.bf16.mxu0 %vm13479_vm0, %v13478_v0  ;;  %12253 = vmatprep.mubr.msk.bf16.mxu1 %vm13479_vm0, %v13478_v0 }
0x140d   : > { %12246 = vmatmul.mubr.msk.bf16.gmra.mxu0 %vm3458_vm7, %v4943_v41  ;;  %12254 = vmatmul.mubr.msk.bf16.vlgmr.msra.gmra.mxu1 %vm2287_vm6, %v14187_v14 }
0x140e   : > { %12275 = vmatprep.mubr.msk.bf16.mxu0 %vm13479_vm0, %v13478_v0  ;;  %12259 = vmatprep.mubr.msk.bf16.mxu1 %vm13479_vm0, %v13478_v0 }
0x1415   : > { %12276 = vmatmul.mubr.msk.bf16.vlgmr.msra.gmra.mxu0 %vm2287_vm6, %v14187_v14 }
0x1416   : > { %12281 = vmatprep.mubr.msk.bf16.mxu0 %vm13479_vm0, %v13478_v0 }
0x14b5   : > { %v4853_v23 = vpop.f32.mrf.mxu1 }
0x14b6   : > { %v4875_v44 = vadd.f32 %v4853_v23, %v14369_v3 }
0x14b7   : > { %v12217_v29 = vpop.f32.mrf.mxu1 }
0x14b8   : > { %v5217_v29 = vpack.c.bf16 %v5213_v38, %v5212_v37 }
0x14b9   : > { %v4856_v45 = vpop.f32.mrf.mxu1 }
0x14ba   : > { %v4876_v46 = vadd.f32 %v4856_v45, %v14372_v21 }
0x14bb   : > { %v12218_v32 = vpop.f32.mrf.mxu1 }
0x14bd   : > { %v4861_v48 = vpop.f32.mrf.mxu1  ;;  %v4991_v50 = vpop.f32.mrf.mxu0 }
0x14be   : > { %v4877_v51 = vadd.f32 %v4861_v48, %v14375_v47  ;;  %v14432_v36 = vadd.f32 %v4991_v50, %v4875_v44  ;;  %v5080_v44 = vpack.c.bf16 %v5077_v34, %v5076_v33  ;;  %v5078_v48 = vld [vmem:[%s15715_s10 + $0x160] sm:$0xff]  ;;  %v5214_v50 = vld [vmem:[%s15715_s10 + $0x178] sm:$0xff]  ;;  %v5350_v34 = vld [vmem:[%s15715_s10 + $0x190] sm:$0xff] }
0x14bf   : > { %v12221_v53 = vpop.f32.mrf.mxu1  ;;  %v12239_v54 = vpop.f32.mrf.mxu0 }
0x14c0   : > { %v13251_v53 = vld [vmem:[%s15712_s1 + $0xb0] sm:$0xff]   ;;  %v5081_v54 = vpack.c.bf16 %v5078_v48, %v5078_v48  ;;  %v5353_v48 = vld [vmem:[%s15715_s10 + $0x1a8] sm:$0xff] }
0x14c1   : > { %v4864_v56 = vpop.f32.mrf.mxu1  ;;  %v4994_v57 = vpop.f32.mrf.mxu0 }
0x14c2   : > { %v4878_v58 = vadd.f32 %v4864_v56, %v14377_v52  ;;  %v14435_v42 = vadd.f32 %v4994_v57, %v4876_v46  ;;  %v13250_v46 = vld [vmem:[%s15712_s1 + $0xb8] sm:$0xff]   ;;  %v5216_v57 = vld [vmem:[%s15715_s10 + $0x188] sm:$0xff]  ;;  %s15721_s1 = sld [smem:[#allocation15_spill]] }
0x14c3   : > { %v12222_v3 = vpop.f32.mrf.mxu1  ;;  %v12240_v62 = vpop.f32.mrf.mxu0 }
0x14c5   : > { %v4869_v21 = vpop.f32.mrf.mxu1  ;;  %v4999_v43 = vpop.f32.mrf.mxu0 }
0x14c6   : > { %v4879_v63 = vadd.f32 %v4869_v21, %v14381_v59  ;;  %v14438_v4 = vadd.f32 %v4999_v43, %v4877_v51  ;;  %v5215_v51 = vld [vmem:[%s15715_s10 + $0x180] sm:$0xff] }
0x14c7   : > { %v12225_v47 = vpop.f32.mrf.mxu1  ;;  %v12243_v6 = vpop.f32.mrf.mxu0  ;;  %v5218_v56 = vpack.c.bf16 %v5215_v51, %v5214_v50  ;;  %v5488_v50 = vld [vmem:[%s15715_s10 + $0x1b8] sm:$0xff]  ;;  %v5489_v51 = vld [vmem:[%s15715_s10 + $0x1c0] sm:$0xff] }
0x14c9   : > { %v4872_v1 = vpop.f32.mrf.mxu1  ;;  %v5002_v8 = vpop.f32.mrf.mxu0 }
0x14ca   : > { %v14440_v2 = vadd.f32 %v5002_v8, %v4878_v58  ;;  %v5219_v58 = vpack.c.bf16 %v5216_v57, %v5216_v57 }
0x14cb   : > { %v12226_v52 = vpop.f32.mrf.mxu1  ;;  %v12244_v10 = vpop.f32.mrf.mxu0 }
0x14cd   : > { %v5007_v12 = vpop.f32.mrf.mxu0  ;;  %v5068_v17 = vpop.f32.mrf.mxu1 }
0x14ce   : > { %v14444_v22 = vadd.f32 %v5007_v12, %v4879_v63  ;;  %v5082_v59 = vpack.c.bf16 %v5068_v17, %v5068_v17 }
0x14cf   : > { %v12247_v26 = vpop.f32.mrf.mxu0  ;;  %v12255_v24 = vpop.f32.mrf.mxu1 }
0x14d0   : > { %v5093_v27 = vsel %vm1416_vm1, %v5082_v59, 0 }
0x14d1   : > { %v5010_v28 = vpop.f32.mrf.mxu0  ;;  %v5071_v60 = vpop.f32.mrf.mxu1  ;;  %12258 = vmatpush3.bf16.msra.mxu1 %v5093_v27 }
0x14d2   : > { %12293 = vmatprep.subr.bf16.mxu1 %v13478_v0 }
0x14d3   : > { %v12248_v31 = vpop.f32.mrf.mxu0  ;;  %v12256_v5 = vpop.f32.mrf.mxu1 }
0x14d4   : > { %12260 = vmatmul.mubr.msk.bf16.vlgmr.msra.gmra.mxu1 %vm3458_vm7, %v5079_v55 }
0x14d5   : > { %v5206_v35 = vpop.f32.mrf.mxu0  ;;  %12263 = vmatprep.mubr.msk.bf16.mxu1 %vm13479_vm0, %v13478_v0  ;;  %12294 = vmatpush3.bf16.msra.mxu1 %v13248_v30 }
0x14d6   : > { %v5220_v40 = vpack.c.bf16 %v5206_v35, %v5206_v35  ;;  %12295 = vmatprep.subr.bf16.mxu1 %v13478_v0  ;;  %v5351_v35 = vld [vmem:[%s15715_s10 + $0x198] sm:$0xff] }
0x14d7   : > { %v12277_v41 = vpop.f32.mrf.mxu0 }
0x14d8   : > { %v5231_v23 = vsel %vm1416_vm1, %v5220_v40, 0  ;;  %v5355_v41 = vpack.c.bf16 %v5351_v35, %v5350_v34 }
0x14d9   : > { %v5209_v45 = vpop.f32.mrf.mxu0  ;;  %12280 = vmatpush3.bf16.msra.mxu0 %v5231_v23  ;;  %12296 = vmatpush3.bf16.msra.mxu1 %v13249_v39 }
0x14da   : > { %12315 = vmatprep.subr.bf16.mxu0 %v13478_v0  ;;  %12301 = vmatprep.subr.bf16.mxu1 %v13478_v0 }
0x14db   : > { %v12278_v32 = vpop.f32.mrf.mxu0 }
0x14dc   : > { %12264 = vmatmul.mubr.msk.bf16.gmra.mxu1 %vm3458_vm7, %v5080_v44  ;;  %12282 = vmatmul.mubr.msk.bf16.vlgmr.msra.gmra.mxu0 %vm3458_vm7, %v5217_v29 }
0x14dd   : > { %12267 = vmatprep.mubr.msk.bf16.mxu1 %vm13479_vm0, %v13478_v0  ;;  %12285 = vmatprep.mubr.msk.bf16.mxu0 %vm13479_vm0, %v13478_v0 }
0x14de   : > { %12316 = vmatpush3.bf16.msra.mxu0 %v13250_v46  ;;  %v5352_v46 = vld [vmem:[%s15715_s10 + $0x1a0] sm:$0xff] }
0x14df   : > { %12317 = vmatprep.subr.bf16.mxu0 %v13478_v0  ;;  %v5356_v57 = vpack.c.bf16 %v5353_v48, %v5352_v46 }
0x14e2   : > { %12318 = vmatpush3.bf16.msra.mxu0 %v13251_v53 }
0x14e3   : > { %12323 = vmatprep.subr.bf16.mxu0 %v13478_v0 }
0x14e4   : > { %12268 = vmatmul.mubr.msk.bf16.gmra.mxu1 %vm3458_vm7, %v5081_v54  ;;  %12286 = vmatmul.mubr.msk.bf16.gmra.mxu0 %vm3458_vm7, %v5218_v56 }
0x14e5   : > { %12289 = vmatprep.mubr.msk.bf16.mxu0 %vm13479_vm0, %v13478_v0  ;;  %12297 = vmatprep.mubr.msk.bf16.mxu1 %vm13479_vm0, %v13478_v0 }
0x14ec   : > { %12290 = vmatmul.mubr.msk.bf16.gmra.mxu0 %vm3458_vm7, %v5219_v58  ;;  %12298 = vmatmul.mubr.msk.bf16.vlgmr.msra.gmra.mxu1 %vm2287_vm6, %v14187_v14  ;;  %v5493_v58 = vpack.c.bf16 %v5489_v51, %v5488_v50 }
0x14ed   : > { %12319 = vmatprep.mubr.msk.bf16.mxu0 %vm13479_vm0, %v13478_v0  ;;  %12303 = vmatprep.mubr.msk.bf16.mxu1 %vm13479_vm0, %v13478_v0 }
0x14f4   : > { %12320 = vmatmul.mubr.msk.bf16.vlgmr.msra.gmra.mxu0 %vm2287_vm6, %v14187_v14 }
0x14f5   : > { %12325 = vmatprep.mubr.msk.bf16.mxu0 %vm13479_vm0, %v13478_v0 }
0x1594   : > { %v5129_v3 = vpop.f32.mrf.mxu1 }
0x1595   : > { %v5151_v62 = vadd.f32 %v5129_v3, %v14432_v36 }
0x1596   : > { %v12261_v21 = vpop.f32.mrf.mxu1 }
0x1597   : > { %v5490_v21 = vld [vmem:[%s15715_s10 + $0x1c8] sm:$0xff] }
0x1598   : > { %v5132_v43 = vpop.f32.mrf.mxu1 }
0x1599   : > { %v5152_v63 = vadd.f32 %v5132_v43, %v14435_v42  ;;  %v5491_v43 = vld [vmem:[%s15715_s10 + $0x1d0] sm:$0xff] }
0x159a   : > { %v12262_v47 = vpop.f32.mrf.mxu1 }
0x159c   : > { %v5137_v6 = vpop.f32.mrf.mxu1  ;;  %v5267_v1 = vpop.f32.mrf.mxu0 }
0x159d   : > { %v5153_v8 = vadd.f32 %v5137_v6, %v14438_v4  ;;  %v14495_v52 = vadd.f32 %v5267_v1, %v5151_v62  ;;  %v5354_v62 = vld [vmem:[%s15715_s10 + $0x1b0] sm:$0xff]  ;;  %v13252_v6 = vld [vmem:[%s15716_s11] sm:$0xff]   ;;  %v13253_v1 = vld [vmem:[%s15716_s11 + $0x8] sm:$0xff]  }
0x159e   : > { %v12265_v10 = vpop.f32.mrf.mxu1  ;;  %v12283_v12 = vpop.f32.mrf.mxu0 }
0x15a0   : > { %v5140_v14 = vpop.f32.mrf.mxu1  ;;  %v5270_v17 = vpop.f32.mrf.mxu0 }
0x15a1   : > { %v5154_v20 = vadd.f32 %v5140_v14, %v14440_v2  ;;  %v14498_v25 = vadd.f32 %v5270_v17, %v5152_v63  ;;  %v5494_v63 = vpack.c.bf16 %v5491_v43, %v5490_v21 }
0x15a2   : > { %v12266_v36 = vpop.f32.mrf.mxu1  ;;  %v12284_v59 = vpop.f32.mrf.mxu0 }
0x15a4   : > { %v5145_v42 = vpop.f32.mrf.mxu1  ;;  %v5275_v26 = vpop.f32.mrf.mxu0 }
0x15a5   : > { %v5155_v24 = vadd.f32 %v5145_v42, %v14444_v22  ;;  %v14501_v27 = vadd.f32 %v5275_v26, %v5153_v8  ;;  %v13254_v8 = vld [vmem:[%s15716_s11 + $0x10] ss:$0 sps:$4 sm:$0x33]  }
0x15a6   : > { %v12269_v4 = vpop.f32.mrf.mxu1  ;;  %v12287_v55 = vpop.f32.mrf.mxu0 }
0x15a8   : > { %v5148_v28 = vpop.f32.mrf.mxu1  ;;  %v5278_v60 = vpop.f32.mrf.mxu0 }
0x15a9   : > { %v14503_v30 = vadd.f32 %v5278_v60, %v5154_v20 }
0x15aa   : > { %v12270_v31 = vpop.f32.mrf.mxu1  ;;  %v12288_v2 = vpop.f32.mrf.mxu0 }
0x15ac   : > { %v5283_v5 = vpop.f32.mrf.mxu0  ;;  %v5344_v33 = vpop.f32.mrf.mxu1 }
0x15ad   : > { %v14507_v37 = vadd.f32 %v5283_v5, %v5155_v24  ;;  %v5358_v38 = vpack.c.bf16 %v5344_v33, %v5344_v33 }
0x15ae   : > { %v12291_v22 = vpop.f32.mrf.mxu0  ;;  %v12299_v39 = vpop.f32.mrf.mxu1 }
0x15af   : > { %v5369_v40 = vsel %vm1416_vm1, %v5358_v38, 0 }
0x15b0   : > { %v5286_v23 = vpop.f32.mrf.mxu0  ;;  %v5347_v44 = vpop.f32.mrf.mxu1  ;;  %12302 = vmatpush3.bf16.msra.mxu1 %v5369_v40 }
0x15b1   : > { %12337 = vmatprep.subr.bf16.mxu1 %v13478_v0 }
0x15b2   : > { %v12292_v29 = vpop.f32.mrf.mxu0  ;;  %v12300_v45 = vpop.f32.mrf.mxu1 }
0x15b3   : > { %12304 = vmatmul.mubr.msk.bf16.vlgmr.msra.gmra.mxu1 %vm3458_vm7, %v5355_v41  ;;  %v10953_v45 = vld [vmem:[%s15717_s0] ss:$0 sm:$0xff] }
0x15b4   : > { %v5482_v32 = vpop.f32.mrf.mxu0  ;;  %12338 = vmatpush3.bf16.msra.mxu1 %v13872_v7  ;;  %12307 = vmatprep.mubr.msk.bf16.mxu1 %vm13479_vm0, %v13478_v0 }
0x15b5   : > { %v5496_v53 = vpack.c.bf16 %v5482_v32, %v5482_v32  ;;  %12339 = vmatprep.subr.bf16.mxu1 %v13478_v0 }
0x15b6   : > { %v12321_v54 = vpop.f32.mrf.mxu0 }
0x15b7   : > { %v5507_v56 = vsel %vm1416_vm1, %v5496_v53, 0 }
0x15b8   : > { %v5485_v3 = vpop.f32.mrf.mxu0  ;;  %12324 = vmatpush3.bf16.msra.mxu0 %v5507_v56  ;;  %12340 = vmatpush3.bf16.msra.mxu1 %v13869_v61  ;;  %v5357_v61 = vpack.c.bf16 %v5354_v62, %v5354_v62 }
0x15b9   : > { %12341 = vmatprep.subr.bf16.mxu1 %v13478_v0  ;;  %12355 = vmatprep.subr.bf16.mxu0 %v13478_v0 }
0x15ba   : > { %v12322_v7 = vpop.f32.mrf.mxu0 }
0x15bb   : > { %12308 = vmatmul.mubr.msk.bf16.gmra.mxu1 %vm3458_vm7, %v5356_v57  ;;  %12326 = vmatmul.mubr.msk.bf16.vlgmr.msra.gmra.mxu0 %vm3458_vm7, %v5493_v58 }
0x15bc   : > { %12342 = vmatpush3.bf16.msra.mxu1 %v13864_v49  ;;  %12311 = vmatprep.mubr.msk.bf16.mxu1 %vm13479_vm0, %v13478_v0  ;;  %v5492_v49 = vld [vmem:[%s15715_s10 + $0x1d8] sm:$0xff] }
0x15bd   : > { %12329 = vmatprep.mubr.msk.bf16.mxu0 %vm13479_vm0, %v13478_v0  ;;  %12365 = vmatprep.subr.bf16.mxu1 %v13478_v0  ;;  %v5495_v47 = vpack.c.bf16 %v5492_v49, %v5492_v49  ;;  %v5807_v49 = vld [vmem:[%s15718_s18 + $0x8] sm:$0xff] }
0x15c3   : > { %12312 = vmatmul.mubr.msk.bf16.gmra.mxu1 %vm3458_vm7, %v5357_v61  ;;  %12330 = vmatmul.mubr.msk.bf16.gmra.mxu0 %vm3458_vm7, %v5494_v63 }
0x15c4   : > { %12333 = vmatprep.mubr.msk.bf16.mxu0 %vm13479_vm0, %v13478_v0  ;;  %12343 = vmatprep.mubr.msk.bf16.mxu1 %vm13479_vm0, %v13478_v0 }
0x15cb   : > { %12334 = vmatmul.mubr.msk.bf16.gmra.mxu0 %vm3458_vm7, %v5495_v47  ;;  %12344 = vmatmul.mubr.msk.bf16.vlgmr.msra.gmra.mxu1 %vm2100_vm5, %v13252_v6  ;;  %v5754_v47 = vld [vmem:[%s15718_s18] sm:$0xff] }
0x15cc   : > { %12347 = vmatprep.mubr.msk.bf16.mxu1 %vm13479_vm0, %v13478_v0  ;;  %12361 = vmatprep.mubr.msk.bf16.mxu0 %vm13479_vm0, %v13478_v0 }
0x15d3   : > { %12348 = vmatmul.mubr.msk.bf16.gmra.mxu1 %vm2100_vm5, %v13253_v1  ;;  %v5808_v1 = vpack.c.bf16 %v5807_v49, %v5807_v49 }
0x15d4   : > { %12351 = vmatprep.mubr.msk.bf16.mxu1 %vm13479_vm0, %v13478_v0 }
0x15db   : > { %12352 = vmatmul.mubr.msk.bf16.gmra.mxu1 %vm2100_vm5, %v13254_v8  ;;  %v5755_v8 = vpack.c.bf16 %v5754_v47, %v5754_v47 }
0x15dc   : > { %12371 = vmatprep.mubr.msk.bf16.mxu1 %vm13479_vm0, %v13478_v0 }
0x1673   : > { %v5405_v10 = vpop.f32.mrf.mxu1 }
0x1674   : > { %v5427_v12 = vadd.f32 %v5405_v10, %v14495_v52  ;;  %v13255_v10 = vld [vmem:[%s15719_s22 + $0x18] sm:$0xff]  }
0x1675   : > { %v12305_v14 = vpop.f32.mrf.mxu1 }
0x1676   : > { %v5967_v14 = vld [vmem:[%s15718_s18 + $0x10] sm:$0xff] }
0x1677   : > { %v5408_v17 = vpop.f32.mrf.mxu1 }
0x1678   : > { %v5428_v20 = vadd.f32 %v5408_v17, %v14498_v25  ;;  %v5968_v17 = vpack.c.bf16 %v5967_v14, %v5967_v14 }
0x1679   : > { %v12306_v36 = vpop.f32.mrf.mxu1 }
0x167b   : > { %v5413_v59 = vpop.f32.mrf.mxu1  ;;  %v5543_v42 = vpop.f32.mrf.mxu0 }
0x167c   : > { %v5429_v26 = vadd.f32 %v5413_v59, %v14501_v27  ;;  %v14560_v24 = vadd.f32 %v5543_v42, %v5427_v12  ;;  %v13256_v12 = vld [vmem:[%s15719_s22 + $0x10] sm:$0xff]   ;;  %v13257_v42 = vld [vmem:[%s15719_s22 + $0x8] sm:$0xff]  }
0x167d   : > { %v12309_v4 = vpop.f32.mrf.mxu1  ;;  %v12327_v55 = vpop.f32.mrf.mxu0 }
0x167f   : > { %v5416_v28 = vpop.f32.mrf.mxu1  ;;  %v5546_v60 = vpop.f32.mrf.mxu0 }
0x1680   : > { %v5430_v31 = vadd.f32 %v5416_v28, %v14503_v30  ;;  %v14563_v2 = vadd.f32 %v5546_v60, %v5428_v20  ;;  %v6073_v20 = vld [vmem:[%s15718_s18 + $0x18] sm:$0xff] }
0x1681   : > { %v12310_v52 = vpop.f32.mrf.mxu1  ;;  %v12328_v5 = vpop.f32.mrf.mxu0  ;;  %v6074_v36 = vpack.c.bf16 %v6073_v20, %v6073_v20 }
0x1683   : > { %v5421_v33 = vpop.f32.mrf.mxu1  ;;  %v5551_v25 = vpop.f32.mrf.mxu0 }
0x1684   : > { %v5431_v34 = vadd.f32 %v5421_v33, %v14507_v37  ;;  %v14566_v35 = vadd.f32 %v5551_v25, %v5429_v26 }
0x1685   : > { %v12313_v27 = vpop.f32.mrf.mxu1  ;;  %v12331_v38 = vpop.f32.mrf.mxu0 }
0x1686   : > { %v13260_v38 = vld [vmem:[%s15719_s22 + $0x20] sm:$0xff]  }
0x1687   : > { %v5424_v22 = vpop.f32.mrf.mxu1  ;;  %v5554_v39 = vpop.f32.mrf.mxu0 }
0x1688   : > { %v14568_v40 = vadd.f32 %v5554_v39, %v5430_v31  ;;  %v13258_v31 = vld [vmem:[%s15719_s22] sm:$0xff]  }
0x1689   : > { %v12314_v41 = vpop.f32.mrf.mxu1  ;;  %v12332_v23 = vpop.f32.mrf.mxu0 }
0x168a   : > { %v13261_v41 = vld [vmem:[%s15719_s22 + $0x38] sm:$0xff]  }
0x168b   : > { %v5559_v30 = vpop.f32.mrf.mxu0  ;;  %v14570_v44 = vpop.f32.mrf.mxu1 }
0x168c   : > { %v5569_v29 = vadd.f32 %v5559_v30, %v5431_v34  ;;  %v13259_v34 = vld [vmem:[%s15719_s22 + $0x28] sm:$0xff]  }
0x168d   : > { %v12345_v46 = vpop.f32.mrf.mxu1  ;;  %v12335_v32 = vpop.f32.mrf.mxu0 }
0x168e   : > { %v14573_v48 = vadd.f32 %v10953_v45, %v5569_v29  ;;  %v13262_v29 = vld [vmem:[%s15719_s22 + $0x30] sm:$0xff]  }
0x168f   : > { %v14575_v37 = vpop.f32.mrf.mxu1  ;;  %v5562_v50 = vpop.f32.mrf.mxu0 }
0x1690   : > { %v14604_v6 = vpack.c.bf16 %v14575_v37, %v14570_v44 }
0x1691   : > { %v12346_v51 = vpop.f32.mrf.mxu1  ;;  %v12336_v53 = vpop.f32.mrf.mxu0 }
0x1692   : > { %v6179_v53 = vld [vmem:[%s15718_s18 + $0x20] sm:$0xff] }
0x1693   : > { %v14577_v54 = vpop.f32.mrf.mxu1 }
0x1695   : > { %v12349_v56 = vpop.f32.mrf.mxu1 }
0x1696   : > { %v6180_v56 = vpack.c.bf16 %v6179_v53, %v6179_v53 }
0x1697   : > { %v14579_v57 = vpop.f32.mrf.mxu1 }
0x1698   : > { %v14594_v61 = vpack.c.bf16 %v14579_v57, %v14577_v54 }
0x1699   : > { %v12350_v58 = vpop.f32.mrf.mxu1 }
0x169a   : > { %v13263_v58 = vld [vmem:[%s15719_s22 + $0x48] sm:$0xff]  }
0x169b   : > { %v14581_v3 = vpop.f32.mrf.mxu1 }
0x169c   : > { %v5753_v7 = vpack.c.bf16 %v14581_v3, %v14581_v3 }
0x169d   : > { %v12353_v62 = vpop.f32.mrf.mxu1 }
0x169e   : > { %v14586_v21 = vsel %vm1779_vm3, %v5753_v7, 0  ;;  %v13264_v7 = vld [vmem:[%s15719_s22 + $0x40] sm:$0xff]  }
0x169f   : > { %v5748_v43 = vpop.f32.mrf.mxu1  ;;  %12356 = vmatpush3.bf16.msra.mxu0 %v14586_v21  ;;  %12366 = vmatpush3.bf16.msra.mxu1 %v14586_v21 }
0x16a0   : > { %12357 = vmatprep.subr.bf16.mxu0 %v13478_v0  ;;  %12367 = vmatprep.subr.bf16.mxu1 %v13478_v0 }
0x16a1   : > { %v12354_v63 = vpop.f32.mrf.mxu1 }
0x16a3   : > { %12358 = vmatpush3.bf16.msra.mxu0 %v14594_v61  ;;  %12368 = vmatpush3.bf16.msra.mxu1 %v14594_v61 }
0x16a4   : > { %12359 = vmatprep.subr.bf16.mxu0 %v13478_v0  ;;  %12369 = vmatprep.subr.bf16.mxu1 %v13478_v0 }
0x16a7   : > { %12360 = vmatpush3.bf16.msra.mxu0 %v14604_v6  ;;  %12370 = vmatpush3.bf16.msra.mxu1 %v14604_v6 }
0x16a8   : > { %12391 = vmatprep.subr.bf16.mxu1 %v13478_v0  ;;  %12375 = vmatprep.subr.bf16.mxu0 %v13478_v0 }
0x16aa   : > { %12372 = vmatmul.mubr.msk.bf16.vlgmr.msra.gmra.mxu1 %vm2100_vm5, %v5808_v1  ;;  %12362 = vmatmul.mubr.msk.bf16.vlgmr.msra.gmra.mxu0 %vm2100_vm5, %v5755_v8 }
0x16ab   : > { %12392 = vmatpush3.bf16.msra.mxu1 %v14586_v21  ;;  %12397 = vmatprep.mubr.msk.bf16.mxu1 %vm13479_vm0, %v13478_v0 }
0x16ac   : > { %12393 = vmatprep.subr.bf16.mxu1 %v13478_v0  ;;  %12376 = vmatpush3.bf16.msra.mxu0 %v13255_v10 }
0x16ad   : > { %12377 = vmatprep.subr.bf16.mxu0 %v13478_v0  ;;  %12379 = vmatprep.mubr.msk.bf16.mxu0 %vm13479_vm0, %v13478_v0 }
0x16af   : > { %12394 = vmatpush3.bf16.msra.mxu1 %v14594_v61 }
0x16b0   : > { %12395 = vmatprep.subr.bf16.mxu1 %v13478_v0  ;;  %12378 = vmatpush3.bf16.msra.mxu0 %v13256_v12 }
0x16b1   : > { %12383 = vmatprep.subr.bf16.mxu0 %v13478_v0 }
0x16b3   : > { %12396 = vmatpush3.bf16.msra.mxu1 %v14604_v6 }
0x16b4   : > { %12409 = vmatprep.subr.bf16.mxu1 %v13478_v0 }
0x16b6   : > { %12398 = vmatmul.mubr.msk.bf16.vlgmr.msra.gmra.mxu1 %vm2100_vm5, %v5968_v17 }
0x16b7   : > { %12410 = vmatpush3.bf16.msra.mxu1 %v14586_v21  ;;  %12415 = vmatprep.mubr.msk.bf16.mxu1 %vm13479_vm0, %v13478_v0 }
0x16b8   : > { %12411 = vmatprep.subr.bf16.mxu1 %v13478_v0 }
0x16bb   : > { %12412 = vmatpush3.bf16.msra.mxu1 %v14594_v61 }
0x16bc   : > { %12413 = vmatprep.subr.bf16.mxu1 %v13478_v0 }
0x16bf   : > { %12414 = vmatpush3.bf16.msra.mxu1 %v14604_v6 }
0x16c0   : > { %12437 = vmatprep.subr.bf16.mxu1 %v13478_v0 }
0x16c2   : > { %12416 = vmatmul.mubr.msk.bf16.vlgmr.msra.gmra.mxu1 %vm2100_vm5, %v6074_v36 }
0x16c3   : > { %12441 = vmatprep.mubr.msk.bf16.mxu1 %vm13479_vm0, %v13478_v0  ;;  %12438 = vmatpush3.bf16.msra.mxu1 %v13263_v58  ;;  %v13268_v58 = vld [vmem:[%s15719_s22 + $0x60] sm:$0xff]  }
0x16c4   : > { %12439 = vmatprep.subr.bf16.mxu1 %v13478_v0 }
0x16c7   : > { %12440 = vmatpush3.bf16.msra.mxu1 %v13264_v7 }
0x16c8   : > { %12445 = vmatprep.subr.bf16.mxu1 %v13478_v0 }
0x176a   : > { %v5846_v59 = vpop.f32.mrf.mxu1  ;;  %v5796_v26 = vpop.f32.mrf.mxu0 }
0x176b   : > { %v5856_v4 = vpack.c.bf16 %v5846_v59, %v5846_v59  ;;  %v5806_v25 = vpack.c.bf16 %v5796_v26, %v5796_v26 }
0x176c   : > { %v12373_v55 = vpop.f32.mrf.mxu1  ;;  %v12363_v28 = vpop.f32.mrf.mxu0 }
0x176d   : > { %12380 = vmatmul.mubr.msk.bf16.vlgmr.msra.gmra.mxu0 %vm2287_vm6, %v5856_v4 }
0x176e   : > { %12384 = vmatpush3.bf16.msra.mxu0 %v13257_v42  ;;  %v5849_v60 = vpop.f32.mrf.mxu1  ;;  %12387 = vmatprep.mubr.msk.bf16.mxu0 %vm13479_vm0, %v13478_v0  ;;  %v5799_v52 = vpop.f32.mrf.mxu0 }
0x176f   : > { %12385 = vmatprep.subr.bf16.mxu0 %v13478_v0 }
0x1770   : > { %v12374_v5 = vpop.f32.mrf.mxu1  ;;  %v12364_v33 = vpop.f32.mrf.mxu0 }
0x1772   : > { %12386 = vmatpush3.bf16.msra.mxu0 %v13258_v31 }
0x1773   : > { %12401 = vmatprep.subr.bf16.mxu0 %v13478_v0 }
0x1775   : > { %12388 = vmatmul.mubr.msk.bf16.vlgmr.msra.gmra.mxu0 %vm2287_vm6, %v5806_v25  ;;  %v6285_v25 = vld [vmem:[%s15718_s18 + $0x28] sm:$0xff] }
0x1776   : > { %12402 = vmatpush3.bf16.msra.mxu0 %v13259_v34  ;;  %v6006_v27 = vpop.f32.mrf.mxu1  ;;  %12405 = vmatprep.mubr.msk.bf16.mxu0 %vm13479_vm0, %v13478_v0  ;;  %v6286_v34 = vpack.c.bf16 %v6285_v25, %v6285_v25 }
0x1777   : > { %12403 = vmatprep.subr.bf16.mxu0 %v13478_v0  ;;  %v6016_v23 = vpack.c.bf16 %v6006_v27, %v6006_v27  ;;  %v13265_v27 = vld [vmem:[%s15719_s22 + $0x58] sm:$0xff]  }
0x1778   : > { %v12399_v22 = vpop.f32.mrf.mxu1 }
0x177a   : > { %12404 = vmatpush3.bf16.msra.mxu0 %v13260_v38  ;;  %v6009_v39 = vpop.f32.mrf.mxu1  ;;  %v13266_v38 = vld [vmem:[%s15719_s22 + $0x50] sm:$0xff]  }
0x177b   : > { %12419 = vmatprep.subr.bf16.mxu0 %v13478_v0 }
0x177c   : > { %v12400_v30 = vpop.f32.mrf.mxu1 }
0x177d   : > { %12406 = vmatmul.mubr.msk.bf16.vlgmr.msra.gmra.mxu0 %vm2287_vm6, %v6016_v23 }
0x177e   : > { %12420 = vmatpush3.bf16.msra.mxu0 %v13261_v41  ;;  %12423 = vmatprep.mubr.msk.bf16.mxu0 %vm13479_vm0, %v13478_v0 }
0x177f   : > { %12421 = vmatprep.subr.bf16.mxu0 %v13478_v0 }
0x1782   : > { %12422 = vmatpush3.bf16.msra.mxu0 %v13262_v29  ;;  %v6112_v45 = vpop.f32.mrf.mxu1 }
0x1783   : > { %v6122_v46 = vpack.c.bf16 %v6112_v45, %v6112_v45  ;;  %12427 = vmatprep.subr.bf16.mxu0 %v13478_v0 }
0x1784   : > { %v12417_v32 = vpop.f32.mrf.mxu1 }
0x1785   : > { %12424 = vmatmul.mubr.msk.bf16.vlgmr.msra.gmra.mxu0 %vm2287_vm6, %v6122_v46 }
0x1786   : > { %12428 = vmatpush3.bf16.msra.mxu0 %v14586_v21  ;;  %v6115_v50 = vpop.f32.mrf.mxu1  ;;  %12433 = vmatprep.mubr.msk.bf16.mxu0 %vm13479_vm0, %v13478_v0 }
0x1787   : > { %12429 = vmatprep.subr.bf16.mxu0 %v13478_v0 }
0x1788   : > { %v12418_v51 = vpop.f32.mrf.mxu1 }
0x1789   : > { %v6391_v51 = vld [vmem:[%s15718_s18 + $0x30] sm:$0xff] }
0x178a   : > { %12430 = vmatpush3.bf16.msra.mxu0 %v14594_v61  ;;  %v6392_v53 = vpack.c.bf16 %v6391_v51, %v6391_v51 }
0x178b   : > { %12431 = vmatprep.subr.bf16.mxu0 %v13478_v0 }
0x178e   : > { %12432 = vmatpush3.bf16.msra.mxu0 %v14604_v6 }
0x178f   : > { %12455 = vmatprep.subr.bf16.mxu0 %v13478_v0 }
0x1791   : > { %12434 = vmatmul.mubr.msk.bf16.vlgmr.msra.gmra.mxu0 %vm2100_vm5, %v6180_v56  ;;  %v13267_v56 = vld [vmem:[%s15719_s22 + $0x68] sm:$0xff]  }
0x1792   : > { %12459 = vmatprep.mubr.msk.bf16.mxu0 %vm13479_vm0, %v13478_v0  ;;  %12456 = vmatpush3.bf16.msra.mxu0 %v13265_v27  ;;  %v13272_v27 = vld [vmem:[%s15719_s22 + $0x80] sm:$0xff]  }
0x1793   : > { %12457 = vmatprep.subr.bf16.mxu0 %v13478_v0 }
0x1796   : > { %12458 = vmatpush3.bf16.msra.mxu0 %v13266_v38 }
0x1797   : > { %12463 = vmatprep.subr.bf16.mxu0 %v13478_v0 }
0x182d   : > { %v5906_v62 = vpop.f32.mrf.mxu0 }
0x182f   : > { %v12381_v43 = vpop.f32.mrf.mxu0 }
0x1831   : > { %v5909_v63 = vpop.f32.mrf.mxu0 }
0x1833   : > { %v12382_v49 = vpop.f32.mrf.mxu0 }
0x1835   : > { %v5961_v47 = vpop.f32.mrf.mxu0 }
0x1836   : > { %v5962_v1 = vadd.f32 %v5961_v47, %v5906_v62 }
0x1837   : > { %v12389_v8 = vpop.f32.mrf.mxu0 }
0x1839   : > { %v5964_v10 = vpop.f32.mrf.mxu0 }
0x183b   : > { %v12390_v12 = vpop.f32.mrf.mxu0 }
0x183d   : > { %v6066_v14 = vpop.f32.mrf.mxu0 }
0x183e   : > { %v6072_v17 = vadd.f32 %v6066_v14, %v5962_v1  ;;  %v6497_v14 = vld [vmem:[%s15718_s18 + $0x38] sm:$0xff] }
0x183f   : > { %v12407_v20 = vpop.f32.mrf.mxu0 }
0x1840   : > { %v13269_v20 = vld [vmem:[%s15719_s22 + $0x78] sm:$0xff]  }
0x1841   : > { %v6069_v36 = vpop.f32.mrf.mxu0 }
0x1842   : > { %v13270_v36 = vld [vmem:[%s15719_s22 + $0x70] sm:$0xff]  }
0x1843   : > { %v12408_v59 = vpop.f32.mrf.mxu0 }
0x1845   : > { %v6172_v42 = vpop.f32.mrf.mxu0 }
0x1846   : > { %v6178_v26 = vadd.f32 %v6172_v42, %v6072_v17  ;;  %v6498_v17 = vpack.c.bf16 %v6497_v14, %v6497_v14 }
0x1847   : > { %v12425_v4 = vpop.f32.mrf.mxu0 }
0x1849   : > { %v6175_v55 = vpop.f32.mrf.mxu0 }
0x184b   : > { %v12426_v28 = vpop.f32.mrf.mxu0 }
0x1851   : > { %v6218_v60 = vpop.f32.mrf.mxu0 }
0x1852   : > { %v6228_v31 = vpack.c.bf16 %v6218_v60, %v6218_v60 }
0x1853   : > { %v12435_v52 = vpop.f32.mrf.mxu0 }
0x1854   : > { %12442 = vmatmul.mubr.msk.bf16.vlgmr.msra.gmra.mxu1 %vm2287_vm6, %v6228_v31 }
0x1855   : > { %12446 = vmatpush3.bf16.msra.mxu1 %v14586_v21  ;;  %v6221_v5 = vpop.f32.mrf.mxu0  ;;  %12451 = vmatprep.mubr.msk.bf16.mxu1 %vm13479_vm0, %v13478_v0 }
0x1856   : > { %12447 = vmatprep.subr.bf16.mxu1 %v13478_v0 }
0x1857   : > { %v12436_v33 = vpop.f32.mrf.mxu0 }
0x1858   : > { %v6603_v33 = vld [vmem:[%s15718_s18 + $0x40] sm:$0xff] }
0x1859   : > { %12448 = vmatpush3.bf16.msra.mxu1 %v14594_v61  ;;  %v6604_v25 = vpack.c.bf16 %v6603_v33, %v6603_v33 }
0x185a   : > { %12449 = vmatprep.subr.bf16.mxu1 %v13478_v0 }
0x185d   : > { %12450 = vmatpush3.bf16.msra.mxu1 %v14604_v6 }
0x185e   : > { %12473 = vmatprep.subr.bf16.mxu1 %v13478_v0 }
0x1860   : > { %12452 = vmatmul.mubr.msk.bf16.vlgmr.msra.gmra.mxu1 %vm2100_vm5, %v6286_v34  ;;  %v13271_v34 = vld [vmem:[%s15719_s22 + $0x88] sm:$0xff]  }
0x1861   : > { %12477 = vmatprep.mubr.msk.bf16.mxu1 %vm13479_vm0, %v13478_v0  ;;  %12474 = vmatpush3.bf16.msra.mxu1 %v13267_v56  ;;  %v13274_v56 = vld [vmem:[%s15719_s22 + $0x90] sm:$0xff]  }
0x1862   : > { %12475 = vmatprep.subr.bf16.mxu1 %v13478_v0 }
0x1865   : > { %12476 = vmatpush3.bf16.msra.mxu1 %v13268_v58 }
0x1866   : > { %12481 = vmatprep.subr.bf16.mxu1 %v13478_v0 }
0x1914   : > { %v6278_v22 = vpop.f32.mrf.mxu1 }
0x1915   : > { %v6284_v39 = vadd.f32 %v6278_v22, %v6178_v26 }
0x1916   : > { %v12443_v41 = vpop.f32.mrf.mxu1 }
0x1918   : > { %v6281_v23 = vpop.f32.mrf.mxu1 }
0x191a   : > { %v12444_v30 = vpop.f32.mrf.mxu1 }
0x1920   : > { %v6324_v29 = vpop.f32.mrf.mxu1 }
0x1921   : > { %v6334_v45 = vpack.c.bf16 %v6324_v29, %v6324_v29 }
0x1922   : > { %v12453_v46 = vpop.f32.mrf.mxu1 }
0x1923   : > { %12460 = vmatmul.mubr.msk.bf16.vlgmr.msra.gmra.mxu0 %vm2287_vm6, %v6334_v45 }
0x1924   : > { %12464 = vmatpush3.bf16.msra.mxu0 %v14586_v21  ;;  %v6327_v32 = vpop.f32.mrf.mxu1  ;;  %12469 = vmatprep.mubr.msk.bf16.mxu0 %vm13479_vm0, %v13478_v0 }
0x1925   : > { %12465 = vmatprep.subr.bf16.mxu0 %v13478_v0 }
0x1926   : > { %v12454_v50 = vpop.f32.mrf.mxu1 }
0x1927   : > { %v6709_v50 = vld [vmem:[%s15718_s18 + $0x48] sm:$0xff] }
0x1928   : > { %12466 = vmatpush3.bf16.msra.mxu0 %v14594_v61  ;;  %v6710_v51 = vpack.c.bf16 %v6709_v50, %v6709_v50 }
0x1929   : > { %12467 = vmatprep.subr.bf16.mxu0 %v13478_v0 }
0x192c   : > { %12468 = vmatpush3.bf16.msra.mxu0 %v14604_v6 }
0x192d   : > { %12491 = vmatprep.subr.bf16.mxu0 %v13478_v0 }
0x192f   : > { %12470 = vmatmul.mubr.msk.bf16.vlgmr.msra.gmra.mxu0 %vm2100_vm5, %v6392_v53  ;;  %v13273_v53 = vld [vmem:[%s15719_s22 + $0x98] sm:$0xff]  }
0x1930   : > { %12495 = vmatprep.mubr.msk.bf16.mxu0 %vm13479_vm0, %v13478_v0  ;;  %12492 = vmatpush3.bf16.msra.mxu0 %v13269_v20  ;;  %v13276_v20 = vld [vmem:[%s15719_s22 + $0xa0] sm:$0xff]  }
0x1931   : > { %12493 = vmatprep.subr.bf16.mxu0 %v13478_v0 }
0x1934   : > { %12494 = vmatpush3.bf16.msra.mxu0 %v13270_v36 }
0x1935   : > { %12499 = vmatprep.subr.bf16.mxu0 %v13478_v0 }
0x19e3   : > { %v6384_v7 = vpop.f32.mrf.mxu0 }
0x19e4   : > { %v6390_v62 = vadd.f32 %v6384_v7, %v6284_v39 }
0x19e5   : > { %v12461_v43 = vpop.f32.mrf.mxu0 }
0x19e7   : > { %v6387_v63 = vpop.f32.mrf.mxu0 }
0x19e9   : > { %v12462_v49 = vpop.f32.mrf.mxu0 }
0x19ef   : > { %v6430_v47 = vpop.f32.mrf.mxu0 }
0x19f0   : > { %v6440_v1 = vpack.c.bf16 %v6430_v47, %v6430_v47 }
0x19f1   : > { %v12471_v8 = vpop.f32.mrf.mxu0 }
0x19f2   : > { %12478 = vmatmul.mubr.msk.bf16.vlgmr.msra.gmra.mxu1 %vm2287_vm6, %v6440_v1 }
0x19f3   : > { %12482 = vmatpush3.bf16.msra.mxu1 %v14586_v21  ;;  %v6433_v10 = vpop.f32.mrf.mxu0  ;;  %12487 = vmatprep.mubr.msk.bf16.mxu1 %vm13479_vm0, %v13478_v0 }
0x19f4   : > { %12483 = vmatprep.subr.bf16.mxu1 %v13478_v0 }
0x19f5   : > { %v12472_v12 = vpop.f32.mrf.mxu0 }
0x19f6   : > { %v6815_v12 = vld [vmem:[%s15718_s18 + $0x50] sm:$0xff] }
0x19f7   : > { %12484 = vmatpush3.bf16.msra.mxu1 %v14594_v61  ;;  %v6816_v14 = vpack.c.bf16 %v6815_v12, %v6815_v12 }
0x19f8   : > { %12485 = vmatprep.subr.bf16.mxu1 %v13478_v0 }
0x19fb   : > { %12486 = vmatpush3.bf16.msra.mxu1 %v14604_v6 }
0x19fc   : > { %12509 = vmatprep.subr.bf16.mxu1 %v13478_v0 }
0x19fe   : > { %12488 = vmatmul.mubr.msk.bf16.vlgmr.msra.gmra.mxu1 %vm2100_vm5, %v6498_v17  ;;  %v13275_v17 = vld [vmem:[%s15719_s22 + $0xa8] sm:$0xff]  }
0x19ff   : > { %12513 = vmatprep.mubr.msk.bf16.mxu1 %vm13479_vm0, %v13478_v0  ;;  %12510 = vmatpush3.bf16.msra.mxu1 %v13271_v34  ;;  %v13278_v34 = vld [vmem:[%s15719_s22 + $0xb0] sm:$0xff]  }
0x1a00   : > { %12511 = vmatprep.subr.bf16.mxu1 %v13478_v0 }
0x1a03   : > { %12512 = vmatpush3.bf16.msra.mxu1 %v13272_v27 }
0x1a04   : > { %12517 = vmatprep.subr.bf16.mxu1 %v13478_v0 }
0x1ab2   : > { %v6490_v59 = vpop.f32.mrf.mxu1 }
0x1ab3   : > { %v6496_v42 = vadd.f32 %v6490_v59, %v6390_v62 }
0x1ab4   : > { %v12479_v26 = vpop.f32.mrf.mxu1 }
0x1ab6   : > { %v6493_v4 = vpop.f32.mrf.mxu1 }
0x1ab8   : > { %v12480_v55 = vpop.f32.mrf.mxu1 }
0x1abe   : > { %v6536_v28 = vpop.f32.mrf.mxu1 }
0x1abf   : > { %v6546_v60 = vpack.c.bf16 %v6536_v28, %v6536_v28 }
0x1ac0   : > { %v12489_v31 = vpop.f32.mrf.mxu1 }
0x1ac1   : > { %12496 = vmatmul.mubr.msk.bf16.vlgmr.msra.gmra.mxu0 %vm2287_vm6, %v6546_v60 }
0x1ac2   : > { %12500 = vmatpush3.bf16.msra.mxu0 %v14586_v21  ;;  %v6539_v52 = vpop.f32.mrf.mxu1  ;;  %12505 = vmatprep.mubr.msk.bf16.mxu0 %vm13479_vm0, %v13478_v0 }
0x1ac3   : > { %12501 = vmatprep.subr.bf16.mxu0 %v13478_v0 }
0x1ac4   : > { %v12490_v5 = vpop.f32.mrf.mxu1 }
0x1ac5   : > { %v6921_v5 = vld [vmem:[%s15718_s18 + $0x58] sm:$0xff] }
0x1ac6   : > { %12502 = vmatpush3.bf16.msra.mxu0 %v14594_v61  ;;  %v6922_v33 = vpack.c.bf16 %v6921_v5, %v6921_v5 }
0x1ac7   : > { %12503 = vmatprep.subr.bf16.mxu0 %v13478_v0 }
0x1aca   : > { %12504 = vmatpush3.bf16.msra.mxu0 %v14604_v6 }
0x1acb   : > { %12527 = vmatprep.subr.bf16.mxu0 %v13478_v0 }
0x1acd   : > { %12506 = vmatmul.mubr.msk.bf16.vlgmr.msra.gmra.mxu0 %vm2100_vm5, %v6604_v25  ;;  %v13277_v25 = vld [vmem:[%s15719_s22 + $0xb8] sm:$0xff]  }
0x1ace   : > { %12531 = vmatprep.mubr.msk.bf16.mxu0 %vm13479_vm0, %v13478_v0  ;;  %12528 = vmatpush3.bf16.msra.mxu0 %v13273_v53  ;;  %v13280_v53 = vld [vmem:[%s15719_s22 + $0xc0] sm:$0xff]  }
0x1acf   : > { %12529 = vmatprep.subr.bf16.mxu0 %v13478_v0 }
0x1ad2   : > { %12530 = vmatpush3.bf16.msra.mxu0 %v13274_v56 }
0x1ad3   : > { %12535 = vmatprep.subr.bf16.mxu0 %v13478_v0 }
0x1b81   : > { %v6596_v38 = vpop.f32.mrf.mxu0 }
0x1b82   : > { %v6602_v22 = vadd.f32 %v6596_v38, %v6496_v42 }
0x1b83   : > { %v12497_v39 = vpop.f32.mrf.mxu0 }
0x1b85   : > { %v6599_v41 = vpop.f32.mrf.mxu0 }
0x1b87   : > { %v12498_v23 = vpop.f32.mrf.mxu0 }
0x1b8d   : > { %v6642_v30 = vpop.f32.mrf.mxu0 }
0x1b8e   : > { %v6652_v29 = vpack.c.bf16 %v6642_v30, %v6642_v30 }
0x1b8f   : > { %v12507_v45 = vpop.f32.mrf.mxu0 }
0x1b90   : > { %12514 = vmatmul.mubr.msk.bf16.vlgmr.msra.gmra.mxu1 %vm2287_vm6, %v6652_v29 }
0x1b91   : > { %12518 = vmatpush3.bf16.msra.mxu1 %v14586_v21  ;;  %v6645_v46 = vpop.f32.mrf.mxu0  ;;  %12523 = vmatprep.mubr.msk.bf16.mxu1 %vm13479_vm0, %v13478_v0 }
0x1b92   : > { %12519 = vmatprep.subr.bf16.mxu1 %v13478_v0 }
0x1b93   : > { %v12508_v32 = vpop.f32.mrf.mxu0 }
0x1b94   : > { %v7027_v32 = vld [vmem:[%s15718_s18 + $0x60] sm:$0xff] }
0x1b95   : > { %12520 = vmatpush3.bf16.msra.mxu1 %v14594_v61  ;;  %v7028_v50 = vpack.c.bf16 %v7027_v32, %v7027_v32 }
0x1b96   : > { %12521 = vmatprep.subr.bf16.mxu1 %v13478_v0 }
0x1b99   : > { %12522 = vmatpush3.bf16.msra.mxu1 %v14604_v6 }
0x1b9a   : > { %12545 = vmatprep.subr.bf16.mxu1 %v13478_v0 }
0x1b9c   : > { %12524 = vmatmul.mubr.msk.bf16.vlgmr.msra.gmra.mxu1 %vm2100_vm5, %v6710_v51  ;;  %v13279_v51 = vld [vmem:[%s15719_s22 + $0xc8] sm:$0xff]  }
0x1b9d   : > { %12549 = vmatprep.mubr.msk.bf16.mxu1 %vm13479_vm0, %v13478_v0  ;;  %12546 = vmatpush3.bf16.msra.mxu1 %v13275_v17  ;;  %v13282_v17 = vld [vmem:[%s15719_s22 + $0xd0] sm:$0xff]  }
0x1b9e   : > { %12547 = vmatprep.subr.bf16.mxu1 %v13478_v0 }
0x1ba1   : > { %12548 = vmatpush3.bf16.msra.mxu1 %v13276_v20 }
0x1ba2   : > { %12553 = vmatprep.subr.bf16.mxu1 %v13478_v0 }
0x1c50   : > { %v6702_v58 = vpop.f32.mrf.mxu1 }
0x1c51   : > { %v6708_v7 = vadd.f32 %v6702_v58, %v6602_v22 }
0x1c52   : > { %v12515_v62 = vpop.f32.mrf.mxu1 }
0x1c54   : > { %v6705_v43 = vpop.f32.mrf.mxu1 }
0x1c56   : > { %v12516_v63 = vpop.f32.mrf.mxu1 }
0x1c5c   : > { %v6748_v49 = vpop.f32.mrf.mxu1 }
0x1c5d   : > { %v6758_v47 = vpack.c.bf16 %v6748_v49, %v6748_v49 }
0x1c5e   : > { %v12525_v1 = vpop.f32.mrf.mxu1 }
0x1c5f   : > { %12532 = vmatmul.mubr.msk.bf16.vlgmr.msra.gmra.mxu0 %vm2287_vm6, %v6758_v47 }
0x1c60   : > { %12536 = vmatpush3.bf16.msra.mxu0 %v14586_v21  ;;  %v6751_v8 = vpop.f32.mrf.mxu1  ;;  %12541 = vmatprep.mubr.msk.bf16.mxu0 %vm13479_vm0, %v13478_v0 }
0x1c61   : > { %12537 = vmatprep.subr.bf16.mxu0 %v13478_v0 }
0x1c62   : > { %v12526_v10 = vpop.f32.mrf.mxu1 }
0x1c63   : > { %v7133_v10 = vld [vmem:[%s15718_s18 + $0x68] sm:$0xff] }
0x1c64   : > { %12538 = vmatpush3.bf16.msra.mxu0 %v14594_v61  ;;  %v7134_v12 = vpack.c.bf16 %v7133_v10, %v7133_v10 }
0x1c65   : > { %12539 = vmatprep.subr.bf16.mxu0 %v13478_v0 }
0x1c68   : > { %12540 = vmatpush3.bf16.msra.mxu0 %v14604_v6 }
0x1c69   : > { %12563 = vmatprep.subr.bf16.mxu0 %v13478_v0 }
0x1c6b   : > { %12542 = vmatmul.mubr.msk.bf16.vlgmr.msra.gmra.mxu0 %vm2100_vm5, %v6816_v14  ;;  %v13281_v14 = vld [vmem:[%s15719_s22 + $0xd8] sm:$0xff]  }
0x1c6c   : > { %12567 = vmatprep.mubr.msk.bf16.mxu0 %vm13479_vm0, %v13478_v0  ;;  %12564 = vmatpush3.bf16.msra.mxu0 %v13277_v25  ;;  %v13284_v25 = vld [vmem:[%s15719_s22 + $0xe0] sm:$0xff]  }
0x1c6d   : > { %12565 = vmatprep.subr.bf16.mxu0 %v13478_v0 }
0x1c70   : > { %12566 = vmatpush3.bf16.msra.mxu0 %v13278_v34 }
0x1c71   : > { %12571 = vmatprep.subr.bf16.mxu0 %v13478_v0 }
0x1d1f   : > { %v6808_v36 = vpop.f32.mrf.mxu0 }
0x1d20   : > { %v6814_v59 = vadd.f32 %v6808_v36, %v6708_v7 }
0x1d21   : > { %v12533_v42 = vpop.f32.mrf.mxu0 }
0x1d23   : > { %v6811_v26 = vpop.f32.mrf.mxu0 }
0x1d25   : > { %v12534_v4 = vpop.f32.mrf.mxu0 }
0x1d2b   : > { %v6854_v55 = vpop.f32.mrf.mxu0 }
0x1d2c   : > { %v6864_v28 = vpack.c.bf16 %v6854_v55, %v6854_v55 }
0x1d2d   : > { %v12543_v60 = vpop.f32.mrf.mxu0 }
0x1d2e   : > { %12550 = vmatmul.mubr.msk.bf16.vlgmr.msra.gmra.mxu1 %vm2287_vm6, %v6864_v28 }
0x1d2f   : > { %12554 = vmatpush3.bf16.msra.mxu1 %v14586_v21  ;;  %v6857_v31 = vpop.f32.mrf.mxu0  ;;  %12559 = vmatprep.mubr.msk.bf16.mxu1 %vm13479_vm0, %v13478_v0 }
0x1d30   : > { %12555 = vmatprep.subr.bf16.mxu1 %v13478_v0 }
0x1d31   : > { %v12544_v52 = vpop.f32.mrf.mxu0 }
0x1d32   : > { %v7239_v52 = vld [vmem:[%s15718_s18 + $0x70] sm:$0xff] }
0x1d33   : > { %12556 = vmatpush3.bf16.msra.mxu1 %v14594_v61  ;;  %v7240_v5 = vpack.c.bf16 %v7239_v52, %v7239_v52 }
0x1d34   : > { %12557 = vmatprep.subr.bf16.mxu1 %v13478_v0 }
0x1d37   : > { %12558 = vmatpush3.bf16.msra.mxu1 %v14604_v6 }
0x1d38   : > { %12581 = vmatprep.subr.bf16.mxu1 %v13478_v0 }
0x1d3a   : > { %12560 = vmatmul.mubr.msk.bf16.vlgmr.msra.gmra.mxu1 %vm2100_vm5, %v6922_v33  ;;  %v13283_v33 = vld [vmem:[%s15719_s22 + $0xe8] sm:$0xff]  }
0x1d3b   : > { %12585 = vmatprep.mubr.msk.bf16.mxu1 %vm13479_vm0, %v13478_v0  ;;  %12582 = vmatpush3.bf16.msra.mxu1 %v13279_v51 }
0x1d3c   : > { %12583 = vmatprep.subr.bf16.mxu1 %v13478_v0 }
0x1d3f   : > { %12584 = vmatpush3.bf16.msra.mxu1 %v13280_v53 }
0x1d40   : > { %12589 = vmatprep.subr.bf16.mxu1 %v13478_v0 }
0x1dee   : > { %v6914_v27 = vpop.f32.mrf.mxu1 }
0x1def   : > { %v6920_v38 = vadd.f32 %v6914_v27, %v6814_v59 }
0x1df0   : > { %v12551_v22 = vpop.f32.mrf.mxu1 }
0x1df2   : > { %v6917_v39 = vpop.f32.mrf.mxu1 }
0x1df4   : > { %v12552_v41 = vpop.f32.mrf.mxu1 }
0x1dfa   : > { %v6960_v23 = vpop.f32.mrf.mxu1 }
0x1dfb   : > { %v6970_v30 = vpack.c.bf16 %v6960_v23, %v6960_v23 }
0x1dfc   : > { %v12561_v29 = vpop.f32.mrf.mxu1 }
0x1dfd   : > { %12568 = vmatmul.mubr.msk.bf16.vlgmr.msra.gmra.mxu0 %vm2287_vm6, %v6970_v30 }
0x1dfe   : > { %12572 = vmatpush3.bf16.msra.mxu0 %v14586_v21  ;;  %v6963_v45 = vpop.f32.mrf.mxu1  ;;  %12577 = vmatprep.mubr.msk.bf16.mxu0 %vm13479_vm0, %v13478_v0 }
0x1dff   : > { %12573 = vmatprep.subr.bf16.mxu0 %v13478_v0 }
0x1e00   : > { %v12562_v46 = vpop.f32.mrf.mxu1 }
0x1e01   : > { %v7345_v46 = vld [vmem:[%s15718_s18 + $0x78] sm:$0xff] }
0x1e02   : > { %12574 = vmatpush3.bf16.msra.mxu0 %v14594_v61  ;;  %v7346_v32 = vpack.c.bf16 %v7345_v46, %v7345_v46 }
0x1e03   : > { %12575 = vmatprep.subr.bf16.mxu0 %v13478_v0 }
0x1e06   : > { %12576 = vmatpush3.bf16.msra.mxu0 %v14604_v6 }
0x1e07   : > { %12599 = vmatprep.subr.bf16.mxu0 %v13478_v0 }
0x1e09   : > { %12578 = vmatmul.mubr.msk.bf16.vlgmr.msra.gmra.mxu0 %vm2100_vm5, %v7028_v50  ;;  %v13286_v50 = vld [vmem:[%s15719_s22 + $0xf0] sm:$0xff]  }
0x1e0a   : > { %12603 = vmatprep.mubr.msk.bf16.mxu0 %vm13479_vm0, %v13478_v0  ;;  %12600 = vmatpush3.bf16.msra.mxu0 %v13281_v14 }
0x1e0b   : > { %12601 = vmatprep.subr.bf16.mxu0 %v13478_v0 }
0x1e0e   : > { %12602 = vmatpush3.bf16.msra.mxu0 %v13282_v17 }
0x1e0f   : > { %12607 = vmatprep.subr.bf16.mxu0 %v13478_v0 }
0x1ebd   : > { %v7020_v56 = vpop.f32.mrf.mxu0 }
0x1ebe   : > { %v7026_v58 = vadd.f32 %v7020_v56, %v6920_v38 }
0x1ebf   : > { %v12569_v7 = vpop.f32.mrf.mxu0 }
0x1ec1   : > { %v7023_v62 = vpop.f32.mrf.mxu0 }
0x1ec3   : > { %v12570_v43 = vpop.f32.mrf.mxu0 }
0x1ec9   : > { %v7066_v63 = vpop.f32.mrf.mxu0 }
0x1eca   : > { %v7076_v49 = vpack.c.bf16 %v7066_v63, %v7066_v63 }
0x1ecb   : > { %v12579_v47 = vpop.f32.mrf.mxu0 }
0x1ecc   : > { %12586 = vmatmul.mubr.msk.bf16.vlgmr.msra.gmra.mxu1 %vm2287_vm6, %v7076_v49  ;;  %v11024_v47 = vld [vmem:[%s15720_s28] ss:$0 sm:$0xff]  ;;  %s15723_s28 = sld [smem:[#allocation17_spill]] }
0x1ecd   : > { %12590 = vmatpush3.bf16.msra.mxu1 %v14586_v21  ;;  %v7069_v1 = vpop.f32.mrf.mxu0  ;;  %12595 = vmatprep.mubr.msk.bf16.mxu1 %vm13479_vm0, %v13478_v0 }
0x1ece   : > { %12591 = vmatprep.subr.bf16.mxu1 %v13478_v0 }
0x1ecf   : > { %v12580_v8 = vpop.f32.mrf.mxu0 }
0x1ed1   : > { %12592 = vmatpush3.bf16.msra.mxu1 %v14594_v61 }
0x1ed2   : > { %12593 = vmatprep.subr.bf16.mxu1 %v13478_v0 }
0x1ed5   : > { %12594 = vmatpush3.bf16.msra.mxu1 %v14604_v6 }
0x1ed6   : > { %12617 = vmatprep.subr.bf16.mxu1 %v13478_v0 }
0x1ed8   : > { %12596 = vmatmul.mubr.msk.bf16.vlgmr.msra.gmra.mxu1 %vm2100_vm5, %v7134_v12 }
0x1ed9   : > { %12621 = vmatprep.mubr.msk.bf16.mxu1 %vm13479_vm0, %v13478_v0  ;;  %12618 = vmatpush3.bf16.msra.mxu1 %v13283_v33 }
0x1eda   : > { %12619 = vmatprep.subr.bf16.mxu1 %v13478_v0 }
0x1edd   : > { %12620 = vmatpush3.bf16.msra.mxu1 %v13284_v25 }
0x1ede   : > { %12625 = vmatprep.subr.bf16.mxu1 %v13478_v0 }
0x1f8c   : > { %v7126_v20 = vpop.f32.mrf.mxu1 }
0x1f8d   : > { %v7132_v36 = vadd.f32 %v7126_v20, %v7026_v58  ;;  %v7514_v20 = vld [vmem:[%s15721_s1 + $0x8] sm:$0xff] }
0x1f8e   : > { %v12587_v59 = vpop.f32.mrf.mxu1 }
0x1f90   : > { %v7129_v42 = vpop.f32.mrf.mxu1 }
0x1f92   : > { %v12588_v26 = vpop.f32.mrf.mxu1 }
0x1f93   : > { %v7515_v26 = vpack.c.bf16 %v7514_v20, %v7514_v20 }
0x1f98   : > { %v7172_v4 = vpop.f32.mrf.mxu1 }
0x1f99   : > { %v7182_v55 = vpack.c.bf16 %v7172_v4, %v7172_v4 }
0x1f9a   : > { %v12597_v28 = vpop.f32.mrf.mxu1 }
0x1f9b   : > { %12604 = vmatmul.mubr.msk.bf16.vlgmr.msra.gmra.mxu0 %vm2287_vm6, %v7182_v55  ;;  %v13287_v55 = vld [vmem:[%s15722_s3 + $0x18] sm:$0xff]   ;;  %v13288_v28 = vld [vmem:[%s15722_s3 + $0x10] sm:$0xff]  }
0x1f9c   : > { %12608 = vmatpush3.bf16.msra.mxu0 %v14586_v21  ;;  %v7175_v60 = vpop.f32.mrf.mxu1  ;;  %12613 = vmatprep.mubr.msk.bf16.mxu0 %vm13479_vm0, %v13478_v0 }
0x1f9d   : > { %12609 = vmatprep.subr.bf16.mxu0 %v13478_v0  ;;  %v13289_v60 = vld [vmem:[%s15722_s3 + $0x8] sm:$0xff]  }
0x1f9e   : > { %v12598_v31 = vpop.f32.mrf.mxu1 }
0x1f9f   : > { %v13290_v31 = vld [vmem:[%s15722_s3] sm:$0xff]  }
0x1fa0   : > { %12610 = vmatpush3.bf16.msra.mxu0 %v14594_v61 }
0x1fa1   : > { %12611 = vmatprep.subr.bf16.mxu0 %v13478_v0 }
0x1fa4   : > { %12612 = vmatpush3.bf16.msra.mxu0 %v14604_v6 }
0x1fa5   : > { %12635 = vmatprep.subr.bf16.mxu0 %v13478_v0 }
0x1fa7   : > { %12614 = vmatmul.mubr.msk.bf16.vlgmr.msra.gmra.mxu0 %vm2100_vm5, %v7240_v5 }
0x1fa8   : > { %12639 = vmatprep.mubr.msk.bf16.mxu0 %vm13479_vm0, %v13478_v0 }
0x205b   : > { %v7232_v34 = vpop.f32.mrf.mxu0 }
0x205c   : > { %v7238_v27 = vadd.f32 %v7232_v34, %v7132_v36  ;;  %v7461_v36 = vld [vmem:[%s15721_s1] sm:$0xff] }
0x205d   : > { %v12605_v38 = vpop.f32.mrf.mxu0  ;;  %v7462_v4 = vpack.c.bf16 %v7461_v36, %v7461_v36 }
0x205f   : > { %v7235_v22 = vpop.f32.mrf.mxu0 }
0x2060   : > { %v7674_v22 = vld [vmem:[%s15721_s1 + $0x10] sm:$0xff]  ;;  %s15724_s1 = sld [smem:[#allocation18_spill]] }
0x2061   : > { %v12606_v39 = vpop.f32.mrf.mxu0 }
0x2067   : > { %v7278_v41 = vpop.f32.mrf.mxu0 }
0x2068   : > { %v7288_v23 = vpack.c.bf16 %v7278_v41, %v7278_v41 }
0x2069   : > { %v12615_v30 = vpop.f32.mrf.mxu0 }
0x206a   : > { %12622 = vmatmul.mubr.msk.bf16.vlgmr.msra.gmra.mxu1 %vm2287_vm6, %v7288_v23  ;;  %v7675_v30 = vpack.c.bf16 %v7674_v22, %v7674_v22 }
0x206b   : > { %12626 = vmatpush3.bf16.msra.mxu1 %v14586_v21  ;;  %v7281_v29 = vpop.f32.mrf.mxu0  ;;  %12631 = vmatprep.mubr.msk.bf16.mxu1 %vm13479_vm0, %v13478_v0  ;;  %v13285_v21 = vld [vmem:[%s15719_s22 + $0xf8] sm:$0xff]  }
0x206c   : > { %12627 = vmatprep.subr.bf16.mxu1 %v13478_v0  ;;  %12636 = vmatpush3.bf16.msra.mxu0 %v13285_v21  ;;  %v13291_v29 = vld [vmem:[%s15722_s3 + $0x28] sm:$0xff]  }
0x206d   : > { %v12616_v45 = vpop.f32.mrf.mxu0  ;;  %12637 = vmatprep.subr.bf16.mxu0 %v13478_v0 }
0x206e   : > { %v13292_v45 = vld [vmem:[%s15722_s3 + $0x20] sm:$0xff]  }
0x206f   : > { %12628 = vmatpush3.bf16.msra.mxu1 %v14594_v61 }
0x2070   : > { %12629 = vmatprep.subr.bf16.mxu1 %v13478_v0  ;;  %12638 = vmatpush3.bf16.msra.mxu0 %v13286_v50 }
0x2071   : > { %12643 = vmatprep.subr.bf16.mxu0 %v13478_v0 }
0x2073   : > { %12630 = vmatpush3.bf16.msra.mxu1 %v14604_v6 }
0x2074   : > { %12649 = vmatprep.subr.bf16.mxu1 %v13478_v0 }
0x2076   : > { %12632 = vmatmul.mubr.msk.bf16.vlgmr.msra.gmra.mxu1 %vm2100_vm5, %v7346_v32 }
0x2077   : > { %12651 = vmatprep.mubr.msk.bf16.mxu1 %vm13479_vm0, %v13478_v0 }
0x212a   : > { %v7338_v61 = vpop.f32.mrf.mxu1 }
0x212b   : > { %v7344_v51 = vadd.f32 %v7338_v61, %v7238_v27 }
0x212c   : > { %v12623_v53 = vpop.f32.mrf.mxu1 }
0x212e   : > { %v7341_v6 = vpop.f32.mrf.mxu1 }
0x2130   : > { %v12624_v56 = vpop.f32.mrf.mxu1 }
0x2136   : > { %v7384_v58 = vpop.f32.mrf.mxu1 }
0x2137   : > { %v7394_v7 = vpack.c.bf16 %v7384_v58, %v7384_v58 }
0x2138   : > { %v12633_v62 = vpop.f32.mrf.mxu1 }
0x2139   : > { %12640 = vmatmul.mubr.msk.bf16.vlgmr.msra.gmra.mxu0 %vm2287_vm6, %v7394_v7 }
0x213a   : > { %v7387_v43 = vpop.f32.mrf.mxu1  ;;  %12645 = vmatprep.mubr.msk.bf16.mxu0 %vm13479_vm0, %v13478_v0 }
0x213c   : > { %v12634_v63 = vpop.f32.mrf.mxu1 }
0x21f9   : > { %v7444_v49 = vpop.f32.mrf.mxu0 }
0x21fa   : > { %v7450_v1 = vadd.f32 %v7444_v49, %v7344_v51 }
0x21fb   : > { %v12641_v8 = vpop.f32.mrf.mxu0 }
0x21fc   : > { %v7458_v10 = vadd.f32 %v11024_v47, %v7450_v1  ;;  %v11037_v47 = vld [vmem:[%s15723_s28] ss:$0 sm:$0xff]  ;;  %s15725_s28 = sld [smem:[#allocation20_spill]] }
0x21fd   : > { %v7447_v12 = vpop.f32.mrf.mxu0 }
0x21fe   : > { %13359 = vtanh.f32 %v7458_v10 }
0x21ff   : > { %v12642_v14 = vpop.f32.mrf.mxu0 }
0x220b   : > { %v14869_v17 = vpop.eup %13359 }
0x220c   : > { %v7460_v59 = vpack.c.bf16 %v14869_v17, %v14869_v17 }
0x220e   : > { %v7467_v42 = vsel %vm1416_vm1, %v7460_v59, 0 }
0x220f   : > { %12644 = vmatpush3.bf16.msra.mxu0 %v7467_v42  ;;  %12650 = vmatpush3.bf16.msra.mxu1 %v7467_v42 }
0x2210   : > { %12655 = vmatprep.subr.bf16.mxu0 %v13478_v0  ;;  %12663 = vmatprep.subr.bf16.mxu1 %v13478_v0 }
0x2212   : > { %12652 = vmatmul.mubr.msk.bf16.vlgmr.msra.gmra.mxu1 %vm3458_vm7, %v7515_v26  ;;  %12646 = vmatmul.mubr.msk.bf16.vlgmr.msra.gmra.mxu0 %vm3458_vm7, %v7462_v4 }
0x2213   : > { %12656 = vmatpush3.bf16.msra.mxu0 %v13287_v55  ;;  %12659 = vmatprep.mubr.msk.bf16.mxu0 %vm13479_vm0, %v13478_v0 }
0x2214   : > { %12657 = vmatprep.subr.bf16.mxu0 %v13478_v0  ;;  %12667 = vmatprep.mubr.msk.bf16.mxu1 %vm13479_vm0, %v13478_v0 }
0x2215   : > { %12664 = vmatpush3.bf16.msra.mxu1 %v13289_v60  ;;  %v13293_v60 = vld [vmem:[%s15724_s1 + $0x8] sm:$0xff]  }
0x2216   : > { %12665 = vmatprep.subr.bf16.mxu1 %v13478_v0 }
0x2217   : > { %12658 = vmatpush3.bf16.msra.mxu0 %v13288_v28 }
0x2218   : > { %12671 = vmatprep.subr.bf16.mxu0 %v13478_v0 }
0x2219   : > { %12666 = vmatpush3.bf16.msra.mxu1 %v13290_v31  ;;  %v13294_v31 = vld [vmem:[%s15724_s1 + $0x18] sm:$0xff]  }
0x221a   : > { %12677 = vmatprep.subr.bf16.mxu1 %v13478_v0 }
0x22d2   : > { %v7553_v52 = vpop.f32.mrf.mxu1  ;;  %v7503_v5 = vpop.f32.mrf.mxu0 }
0x22d3   : > { %v7563_v33 = vpack.c.bf16 %v7553_v52, %v7553_v52  ;;  %v7513_v25 = vpack.c.bf16 %v7503_v5, %v7503_v5  ;;  %v13296_v52 = vld [vmem:[%s15724_s1 + $0x10] sm:$0xff]  }
0x22d4   : > { %v12653_v34 = vpop.f32.mrf.mxu1  ;;  %v12647_v27 = vpop.f32.mrf.mxu0 }
0x22d5   : > { %12660 = vmatmul.mubr.msk.bf16.vlgmr.msra.gmra.mxu0 %vm2287_vm6, %v7563_v33  ;;  %12668 = vmatmul.mubr.msk.bf16.vlgmr.msra.gmra.mxu1 %vm2287_vm6, %v7513_v25 }
0x22d6   : > { %12672 = vmatpush3.bf16.msra.mxu0 %v7467_v42  ;;  %v7556_v38 = vpop.f32.mrf.mxu1  ;;  %12673 = vmatprep.mubr.msk.bf16.mxu0 %vm13479_vm0, %v13478_v0  ;;  %v7506_v39 = vpop.f32.mrf.mxu0 }
0x22d7   : > { %12681 = vmatprep.mubr.msk.bf16.mxu1 %vm13479_vm0, %v13478_v0  ;;  %12685 = vmatprep.subr.bf16.mxu0 %v13478_v0  ;;  %v13419_v38 = vld [vmem:[%s15713_s2] ss:$0 sm:$0xff] }
0x22d8   : > { %v12654_v41 = vpop.f32.mrf.mxu1  ;;  %v12648_v23 = vpop.f32.mrf.mxu0  ;;  %12678 = vmatpush3.bf16.msra.mxu1 %v13291_v29  ;;  %v13420_v39 = vld [vmem:[%s15714_s7] ss:$0 sm:$0xff] }
0x22d9   : > { %12679 = vmatprep.subr.bf16.mxu1 %v13478_v0 }
0x22dc   : > { %12680 = vmatpush3.bf16.msra.mxu1 %v13292_v45 }
0x22dd   : > { %12674 = vmatmul.mubr.msk.bf16.vlgmr.msra.gmra.mxu0 %vm3458_vm7, %v7675_v30  ;;  %12693 = vmatprep.subr.bf16.mxu1 %v13478_v0  ;;  %v7930_v30 = vld [vmem:[%s15725_s28 + $0x28] sm:$0xff] }
0x22de   : > { %12689 = vmatprep.mubr.msk.bf16.mxu0 %vm13479_vm0, %v13478_v0  ;;  %12686 = vmatpush3.bf16.msra.mxu0 %v13293_v60 }
0x22df   : > { %12687 = vmatprep.subr.bf16.mxu0 %v13478_v0 }
0x2395   : > { %v7613_v46 = vpop.f32.mrf.mxu0  ;;  %v7668_v32 = vpop.f32.mrf.mxu1 }
0x2396   : > { %v7669_v21 = vadd.f32 %v7668_v32, %v7613_v46  ;;  %v7931_v46 = vld [vmem:[%s15725_s28 + $0x30] sm:$0xff]  ;;  %v7865_v32 = vld [vmem:[%s15725_s28] sm:$0xff] }
0x2397   : > { %v12661_v50 = vpop.f32.mrf.mxu0  ;;  %v12669_v61 = vpop.f32.mrf.mxu1 }
0x2399   : > { %v7616_v51 = vpop.f32.mrf.mxu0  ;;  %v7671_v53 = vpop.f32.mrf.mxu1 }
0x239b   : > { %v12662_v6 = vpop.f32.mrf.mxu0  ;;  %v12670_v56 = vpop.f32.mrf.mxu1 }
0x239d   : > { %v7713_v58 = vpop.f32.mrf.mxu0 }
0x239e   : > { %v7723_v7 = vpack.c.bf16 %v7713_v58, %v7713_v58  ;;  %v7935_v58 = vpack.c.bf16 %v7931_v46, %v7930_v30 }
0x239f   : > { %v12675_v62 = vpop.f32.mrf.mxu0 }
0x23a0   : > { %12682 = vmatmul.mubr.msk.bf16.vlgmr.msra.gmra.mxu1 %vm2287_vm6, %v7723_v7 }
0x23a1   : > { %v7716_v43 = vpop.f32.mrf.mxu0  ;;  %12697 = vmatprep.mubr.msk.bf16.mxu1 %vm13479_vm0, %v13478_v0  ;;  %12694 = vmatpush3.bf16.msra.mxu1 %v13294_v31 }
0x23a2   : > { %12695 = vmatprep.subr.bf16.mxu1 %v13478_v0 }
0x23a3   : > { %v12676_v63 = vpop.f32.mrf.mxu0 }
0x23a4   : > { %v13297_v63 = vld [vmem:[%s15724_s1 + $0x28] sm:$0xff]  }
0x23a5   : > { %12696 = vmatpush3.bf16.msra.mxu1 %v13296_v52 }
0x23a6   : > { %12715 = vmatprep.subr.bf16.mxu1 %v13478_v0 }
0x2460   : > { %v7773_v49 = vpop.f32.mrf.mxu1 }
0x2461   : > { %v7779_v1 = vadd.f32 %v7773_v49, %v7669_v21  ;;  %v7866_v21 = vld [vmem:[%s15725_s28 + $0x8] sm:$0xff] }
0x2462   : > { %v12683_v8 = vpop.f32.mrf.mxu1  ;;  %v7870_v7 = vpack.c.bf16 %v7866_v21, %v7865_v32 }
0x2463   : > { %v7787_v10 = vadd.f32 %v11037_v47, %v7779_v1  ;;  %v7932_v1 = vld [vmem:[%s15725_s28 + $0x38] sm:$0xff]  ;;  %v7933_v8 = vld [vmem:[%s15725_s28 + $0x40] sm:$0xff] }
0x2464   : > { %v7776_v12 = vpop.f32.mrf.mxu1 }
0x2465   : > { %13361 = vtanh.f32 %v7787_v10  ;;  %v7867_v10 = vld [vmem:[%s15725_s28 + $0x10] sm:$0xff]  ;;  %v7868_v12 = vld [vmem:[%s15725_s28 + $0x18] sm:$0xff] }
0x2466   : > { %v12684_v14 = vpop.f32.mrf.mxu1 }
0x2467   : > { %v13298_v14 = vld [vmem:[%s15724_s1 + $0x20] sm:$0xff]  }
0x2472   : > { %v13362_v20 = vpop.eup %13361 }
0x2473   : > { %v7789_v36 = vadd.f32 %v13362_v20, %v14869_v17  ;;  %v13295_v17 = vld [vmem:[%s15724_s1] sm:$0xff]   ;;  %v7936_v20 = vpack.c.bf16 %v7933_v8, %v7932_v1 }
0x2474   : > { %12688 = vmatpush3.bf16.msra.mxu0 %v13295_v17 }
0x2475   : > { %v7790_v59 = vsel %vm2287_vm6, %v7789_v36, 0.0  ;;  %12701 = vmatprep.subr.bf16.mxu0 %v13478_v0 }
0x2476   : > { %7791 = vadd.xlane.f32.xlu1 %v7790_v59  ;;  %v7934_v59 = vld [vmem:[%s15725_s28 + $0x48] sm:$0xff] }
0x24ff   : > { %v7792_v42 = vpop.xlane.xlu1 %7791 }
0x2500   : > { %v7793_v26 = vmul.f32 0.03125, %v7792_v42  ;;  %v7869_v42 = vld [vmem:[%s15725_s28 + $0x20] sm:$0xff] }
0x2502   : > { %v7794_v4 = vsub.f32 %v7789_v36, %v7793_v26  ;;  %v7871_v36 = vpack.c.bf16 %v7868_v12, %v7867_v10  ;;  %v7937_v26 = vpack.c.bf16 %v7934_v59, %v7934_v59  ;;  %v8133_v59 = vld [vmem:[%s15725_s28 + $0x60] sm:$0xff] }
0x2504   : > { %v7795_v55 = vmul.f32 %v7794_v4, %v7794_v4 }
0x2506   : > { %v7796_v28 = vsel %vm2287_vm6, %v7795_v55, 0.0  ;;  %v13299_v55 = vld [vmem:[%s15724_s1 + $0x38] sm:$0xff]  }
0x2507   : > { %7797 = vadd.xlane.f32.xlu1 %v7796_v28  ;;  %v13300_v28 = vld [vmem:[%s15724_s1 + $0x30] sm:$0xff]  }
0x2590   : > { %v7798_v5 = vpop.xlane.xlu1 %7797 }
0x2591   : > { %v7799_v33 = vmul.f32 0.03125, %v7798_v5 }
0x2593   : > { %v7800_v25 = vadd.f32 1e-05, %v7799_v33 }
0x2595   : > { %13363 = vrsqrt.f32 %v7800_v25 }
0x25a2   : > { %v13364_v34 = vpop.eup %13363 }
0x25a3   : > { %v7802_v27 = vmul.f32 %v13364_v34, %v7794_v4  ;;  %v7872_v4 = vpack.c.bf16 %v7869_v42, %v7869_v42  ;;  %v8134_v42 = vld [vmem:[%s15725_s28 + $0x68] sm:$0xff] }
0x25a5   : > { %v7803_v22 = vmul.f32 %v13419_v38, %v7802_v27 }
0x25a7   : > { %v7804_v41 = vadd.f32 %v13420_v39, %v7803_v22 }
0x25a9   : > { %v14924_v23 = vpack.c.bf16 %v7804_v41, %v7804_v41 }
0x25ab   : > { %12690 = vmatmul.mubr.msk.bf16.vlgmr.msra.gmra.mxu0 %vm2287_vm6, %v14924_v23  ;;  %12698 = vmatmul.mubr.msk.bf16.vlgmr.msra.gmra.mxu1 %vm2287_vm6, %v14924_v23 }
0x25ac   : > { %12703 = vmatprep.mubr.msk.bf16.mxu0 %vm13479_vm0, %v13478_v0  ;;  %12717 = vmatprep.mubr.msk.bf16.mxu1 %vm13479_vm0, %v13478_v0 }
0x266b   : > { %v7859_v29 = vpop.f32.mrf.mxu0  ;;  %v7924_v45 = vpop.f32.mrf.mxu1 }
0x266c   : > { %v7873_v50 = vpack.c.bf16 %v7859_v29, %v7859_v29  ;;  %v7938_v61 = vpack.c.bf16 %v7924_v45, %v7924_v45 }
0x266d   : > { %v12691_v51 = vpop.f32.mrf.mxu0  ;;  %v12699_v53 = vpop.f32.mrf.mxu1 }
0x266e   : > { %v8017_v6 = vsel %vm1416_vm1, %v7873_v50, 0  ;;  %v7949_v56 = vsel %vm1416_vm1, %v7938_v61, 0 }
0x266f   : > { %v7862_v62 = vpop.f32.mrf.mxu0  ;;  %v7927_v43 = vpop.f32.mrf.mxu1  ;;  %12702 = vmatpush3.bf16.msra.mxu0 %v7949_v56  ;;  %12716 = vmatpush3.bf16.msra.mxu1 %v8017_v6 }
0x2670   : > { %12729 = vmatprep.subr.bf16.mxu0 %v13478_v0  ;;  %12737 = vmatprep.subr.bf16.mxu1 %v13478_v0 }
0x2671   : > { %v12692_v49 = vpop.f32.mrf.mxu0  ;;  %v12700_v47 = vpop.f32.mrf.mxu1 }
0x2672   : > { %12704 = vmatmul.mubr.msk.bf16.vlgmr.msra.gmra.mxu0 %vm3458_vm7, %v7935_v58  ;;  %12718 = vmatmul.mubr.msk.bf16.vlgmr.msra.gmra.mxu1 %vm3458_vm7, %v7870_v7  ;;  %v8131_v49 = vld [vmem:[%s15725_s28 + $0x50] sm:$0xff]  ;;  %v8132_v47 = vld [vmem:[%s15725_s28 + $0x58] sm:$0xff] }
0x2673   : > { %12707 = vmatprep.mubr.msk.bf16.mxu0 %vm13479_vm0, %v13478_v0  ;;  %12721 = vmatprep.mubr.msk.bf16.mxu1 %vm13479_vm0, %v13478_v0  ;;  %v8136_v12 = vpack.c.bf16 %v8132_v47, %v8131_v49 }
0x2674   : > { %12730 = vmatpush3.bf16.msra.mxu0 %v13297_v63 }
0x2675   : > { %12731 = vmatprep.subr.bf16.mxu0 %v13478_v0 }
0x2678   : > { %12732 = vmatpush3.bf16.msra.mxu0 %v13298_v14 }
0x2679   : > { %12751 = vmatprep.subr.bf16.mxu0 %v13478_v0 }
0x267a   : > { %12708 = vmatmul.mubr.msk.bf16.gmra.mxu0 %vm3458_vm7, %v7936_v20  ;;  %12722 = vmatmul.mubr.msk.bf16.gmra.mxu1 %vm3458_vm7, %v7871_v36  ;;  %v13301_v20 = vld [vmem:[%s15724_s1 + $0x48] sm:$0xff]  }
0x267b   : > { %12711 = vmatprep.mubr.msk.bf16.mxu0 %vm13479_vm0, %v13478_v0  ;;  %12725 = vmatprep.mubr.msk.bf16.mxu1 %vm13479_vm0, %v13478_v0 }
0x2682   : > { %12712 = vmatmul.mubr.msk.bf16.gmra.mxu0 %vm3458_vm7, %v7937_v26  ;;  %12726 = vmatmul.mubr.msk.bf16.gmra.mxu1 %vm3458_vm7, %v7872_v4  ;;  %v8269_v4 = vld [vmem:[%s15725_s28 + $0x78] sm:$0xff] }
0x2683   : > { %12733 = vmatprep.mubr.msk.bf16.mxu0 %vm13479_vm0, %v13478_v0  ;;  %12739 = vmatprep.mubr.msk.bf16.mxu1 %vm13479_vm0, %v13478_v0 }
0x268a   : > { %12734 = vmatmul.mubr.msk.bf16.vlgmr.msra.gmra.mxu0 %vm2287_vm6, %v14924_v23 }
0x268b   : > { %12752 = vmatpush3.bf16.msra.mxu0 %v13299_v55  ;;  %12755 = vmatprep.mubr.msk.bf16.mxu0 %vm13479_vm0, %v13478_v0  ;;  %v8270_v55 = vld [vmem:[%s15725_s28 + $0x80] sm:$0xff] }
0x268c   : > { %12753 = vmatprep.subr.bf16.mxu0 %v13478_v0 }
0x268f   : > { %12754 = vmatpush3.bf16.msra.mxu0 %v13300_v28  ;;  %v13302_v28 = vld [vmem:[%s15724_s1 + $0x40] sm:$0xff]  }
0x2690   : > { %12759 = vmatprep.subr.bf16.mxu0 %v13478_v0 }
0x2692   : > { %12756 = vmatmul.mubr.msk.bf16.vlgmr.msra.gmra.mxu0 %vm2287_vm6, %v14924_v23 }
0x2693   : > { %12761 = vmatprep.mubr.msk.bf16.mxu0 %vm13479_vm0, %v13478_v0 }
0x2732   : > { %v7985_v60 = vpop.f32.mrf.mxu0  ;;  %v8053_v31 = vpop.f32.mrf.mxu1 }
0x2733   : > { %v14982_v17 = vadd.f32 %v8053_v31, %v7985_v60 }
0x2734   : > { %v12705_v52 = vpop.f32.mrf.mxu0  ;;  %v12719_v5 = vpop.f32.mrf.mxu1 }
0x2735   : > { %v8137_v5 = vpack.c.bf16 %v8134_v42, %v8133_v59 }
0x2736   : > { %v7988_v33 = vpop.f32.mrf.mxu0  ;;  %v8056_v25 = vpop.f32.mrf.mxu1 }
0x2737   : > { %v14984_v34 = vadd.f32 %v8056_v25, %v7988_v33  ;;  %v8274_v33 = vpack.c.bf16 %v8270_v55, %v8269_v4 }
0x2738   : > { %v12706_v27 = vpop.f32.mrf.mxu0  ;;  %v12720_v38 = vpop.f32.mrf.mxu1 }
0x2739   : > { %v13303_v27 = vld [vmem:[%s15724_s1 + $0x58] sm:$0xff]  }
0x273a   : > { %v7993_v22 = vpop.f32.mrf.mxu0  ;;  %v8061_v39 = vpop.f32.mrf.mxu1 }
0x273b   : > { %v14986_v41 = vadd.f32 %v8061_v39, %v7993_v22  ;;  %v8135_v22 = vld [vmem:[%s15725_s28 + $0x70] sm:$0xff]  ;;  %v8271_v39 = vld [vmem:[%s15725_s28 + $0x88] sm:$0xff] }
0x273c   : > { %v12709_v30 = vpop.f32.mrf.mxu0  ;;  %v12723_v29 = vpop.f32.mrf.mxu1 }
0x273d   : > { %v8272_v30 = vld [vmem:[%s15725_s28 + $0x90] sm:$0xff] }
0x273e   : > { %v7996_v45 = vpop.f32.mrf.mxu0  ;;  %v8064_v46 = vpop.f32.mrf.mxu1  ;;  %v13304_v29 = vld [vmem:[%s15724_s1 + $0x50] sm:$0xff]  }
0x273f   : > { %v14988_v32 = vadd.f32 %v8064_v46, %v7996_v45  ;;  %v8138_v45 = vpack.c.bf16 %v8135_v22, %v8135_v22  ;;  %v8275_v46 = vpack.c.bf16 %v8272_v30, %v8271_v39 }
0x2740   : > { %v12710_v21 = vpop.f32.mrf.mxu0  ;;  %v12724_v50 = vpop.f32.mrf.mxu1 }
0x2741   : > { %v8273_v21 = vld [vmem:[%s15725_s28 + $0x98] sm:$0xff] }
0x2742   : > { %v8001_v61 = vpop.f32.mrf.mxu0  ;;  %v8069_v51 = vpop.f32.mrf.mxu1  ;;  %v8276_v50 = vpack.c.bf16 %v8273_v21, %v8273_v21 }
0x2743   : > { %v14990_v53 = vadd.f32 %v8069_v51, %v8001_v61 }
0x2744   : > { %v12713_v6 = vpop.f32.mrf.mxu0  ;;  %v12727_v56 = vpop.f32.mrf.mxu1 }
0x2746   : > { %v8004_v58 = vpop.f32.mrf.mxu0  ;;  %v8072_v7 = vpop.f32.mrf.mxu1 }
0x2748   : > { %v12714_v62 = vpop.f32.mrf.mxu0  ;;  %v12728_v43 = vpop.f32.mrf.mxu1 }
0x274a   : > { %v8125_v63 = vpop.f32.mrf.mxu0 }
0x274b   : > { %v8139_v1 = vpack.c.bf16 %v8125_v63, %v8125_v63 }
0x274c   : > { %v12735_v8 = vpop.f32.mrf.mxu0 }
0x274d   : > { %v8150_v10 = vsel %vm1416_vm1, %v8139_v1, 0 }
0x274e   : > { %v8128_v14 = vpop.f32.mrf.mxu0  ;;  %12738 = vmatpush3.bf16.msra.mxu1 %v8150_v10 }
0x274f   : > { %12773 = vmatprep.subr.bf16.mxu1 %v13478_v0 }
0x2750   : > { %v12736_v36 = vpop.f32.mrf.mxu0 }
0x2751   : > { %12740 = vmatmul.mubr.msk.bf16.vlgmr.msra.gmra.mxu1 %vm3458_vm7, %v8136_v12 }
0x2752   : > { %v8263_v26 = vpop.f32.mrf.mxu0  ;;  %12743 = vmatprep.mubr.msk.bf16.mxu1 %vm13479_vm0, %v13478_v0  ;;  %12774 = vmatpush3.bf16.msra.mxu1 %v13301_v20 }
0x2753   : > { %v8277_v60 = vpack.c.bf16 %v8263_v26, %v8263_v26  ;;  %12775 = vmatprep.subr.bf16.mxu1 %v13478_v0 }
0x2754   : > { %v12757_v31 = vpop.f32.mrf.mxu0 }
0x2755   : > { %v8288_v52 = vsel %vm1416_vm1, %v8277_v60, 0 }
0x2756   : > { %v8266_v25 = vpop.f32.mrf.mxu0  ;;  %12760 = vmatpush3.bf16.msra.mxu0 %v8288_v52  ;;  %12776 = vmatpush3.bf16.msra.mxu1 %v13302_v28 }
0x2757   : > { %12795 = vmatprep.subr.bf16.mxu0 %v13478_v0  ;;  %12781 = vmatprep.subr.bf16.mxu1 %v13478_v0 }
0x2758   : > { %v12758_v38 = vpop.f32.mrf.mxu0 }
0x2759   : > { %12744 = vmatmul.mubr.msk.bf16.gmra.mxu1 %vm3458_vm7, %v8137_v5  ;;  %12762 = vmatmul.mubr.msk.bf16.vlgmr.msra.gmra.mxu0 %vm3458_vm7, %v8274_v33  ;;  %v8407_v5 = vld [vmem:[%s15725_s28 + $0xa0] sm:$0xff]  ;;  %v8408_v33 = vld [vmem:[%s15725_s28 + $0xa8] sm:$0xff] }
0x275a   : > { %12747 = vmatprep.mubr.msk.bf16.mxu1 %vm13479_vm0, %v13478_v0  ;;  %12765 = vmatprep.mubr.msk.bf16.mxu0 %vm13479_vm0, %v13478_v0  ;;  %v8412_v39 = vpack.c.bf16 %v8408_v33, %v8407_v5 }
0x275b   : > { %12796 = vmatpush3.bf16.msra.mxu0 %v13303_v27 }
0x275c   : > { %12797 = vmatprep.subr.bf16.mxu0 %v13478_v0 }
0x275f   : > { %12798 = vmatpush3.bf16.msra.mxu0 %v13304_v29 }
0x2760   : > { %12803 = vmatprep.subr.bf16.mxu0 %v13478_v0 }
0x2761   : > { %12748 = vmatmul.mubr.msk.bf16.gmra.mxu1 %vm3458_vm7, %v8138_v45  ;;  %12766 = vmatmul.mubr.msk.bf16.gmra.mxu0 %vm3458_vm7, %v8275_v46  ;;  %v13305_v45 = vld [vmem:[%s15724_s1 + $0x68] sm:$0xff]  }
0x2762   : > { %12769 = vmatprep.mubr.msk.bf16.mxu0 %vm13479_vm0, %v13478_v0  ;;  %12777 = vmatprep.mubr.msk.bf16.mxu1 %vm13479_vm0, %v13478_v0 }
0x2769   : > { %12770 = vmatmul.mubr.msk.bf16.gmra.mxu0 %vm3458_vm7, %v8276_v50  ;;  %12778 = vmatmul.mubr.msk.bf16.vlgmr.msra.gmra.mxu1 %vm2287_vm6, %v14924_v23  ;;  %v8409_v50 = vld [vmem:[%s15725_s28 + $0xb0] sm:$0xff] }
0x276a   : > { %12799 = vmatprep.mubr.msk.bf16.mxu0 %vm13479_vm0, %v13478_v0  ;;  %12783 = vmatprep.mubr.msk.bf16.mxu1 %vm13479_vm0, %v13478_v0 }
0x2771   : > { %12800 = vmatmul.mubr.msk.bf16.vlgmr.msra.gmra.mxu0 %vm2287_vm6, %v14924_v23 }
0x2772   : > { %12805 = vmatprep.mubr.msk.bf16.mxu0 %vm13479_vm0, %v13478_v0 }
0x2811   : > { %v8186_v61 = vpop.f32.mrf.mxu1 }
0x2812   : > { %v8208_v51 = vadd.f32 %v8186_v61, %v14982_v17  ;;  %v8410_v61 = vld [vmem:[%s15725_s28 + $0xb8] sm:$0xff] }
0x2813   : > { %v12741_v6 = vpop.f32.mrf.mxu1 }
0x2814   : > { %v8545_v6 = vld [vmem:[%s15725_s28 + $0xc8] sm:$0xff] }
0x2815   : > { %v8189_v56 = vpop.f32.mrf.mxu1 }
0x2816   : > { %v8209_v58 = vadd.f32 %v8189_v56, %v14984_v34  ;;  %v8546_v56 = vld [vmem:[%s15725_s28 + $0xd0] sm:$0xff] }
0x2817   : > { %v12742_v7 = vpop.f32.mrf.mxu1 }
0x2819   : > { %v8194_v62 = vpop.f32.mrf.mxu1  ;;  %v8324_v43 = vpop.f32.mrf.mxu0 }
0x281a   : > { %v8210_v63 = vadd.f32 %v8194_v62, %v14986_v41  ;;  %v15043_v49 = vadd.f32 %v8324_v43, %v8208_v51 }
0x281b   : > { %v12745_v47 = vpop.f32.mrf.mxu1  ;;  %v12763_v1 = vpop.f32.mrf.mxu0 }
0x281c   : > { %v8550_v47 = vpack.c.bf16 %v8546_v56, %v8545_v6 }
0x281d   : > { %v8197_v8 = vpop.f32.mrf.mxu1  ;;  %v8327_v10 = vpop.f32.mrf.mxu0 }
0x281e   : > { %v8211_v12 = vadd.f32 %v8197_v8, %v14988_v32  ;;  %v15046_v14 = vadd.f32 %v8327_v10, %v8209_v58  ;;  %v13306_v58 = vld [vmem:[%s15724_s1 + $0x60] sm:$0xff]   ;;  %v13307_v8 = vld [vmem:[%s15724_s1 + $0x78] sm:$0xff]  }
0x281f   : > { %v12746_v17 = vpop.f32.mrf.mxu1  ;;  %v12764_v20 = vpop.f32.mrf.mxu0 }
0x2820   : > { %v8547_v17 = vld [vmem:[%s15725_s28 + $0xd8] sm:$0xff]  ;;  %v8548_v20 = vld [vmem:[%s15725_s28 + $0xe0] sm:$0xff] }
0x2821   : > { %v8202_v34 = vpop.f32.mrf.mxu1  ;;  %v8332_v36 = vpop.f32.mrf.mxu0 }
0x2822   : > { %v8212_v59 = vadd.f32 %v8202_v34, %v14990_v53  ;;  %v15049_v42 = vadd.f32 %v8332_v36, %v8210_v63  ;;  %v8413_v63 = vpack.c.bf16 %v8410_v61, %v8409_v50  ;;  %v13308_v34 = vld [vmem:[%s15724_s1 + $0x70] sm:$0xff]  }
0x2823   : > { %v12749_v41 = vpop.f32.mrf.mxu1  ;;  %v12767_v26 = vpop.f32.mrf.mxu0 }
0x2824   : > { %v8549_v41 = vld [vmem:[%s15725_s28 + $0xe8] sm:$0xff] }
0x2825   : > { %v8205_v4 = vpop.f32.mrf.mxu1  ;;  %v8335_v55 = vpop.f32.mrf.mxu0  ;;  %v8552_v26 = vpack.c.bf16 %v8549_v41, %v8549_v41 }
0x2826   : > { %v15051_v28 = vadd.f32 %v8335_v55, %v8211_v12  ;;  %v8411_v12 = vld [vmem:[%s15725_s28 + $0xc0] sm:$0xff] }
0x2827   : > { %v12750_v32 = vpop.f32.mrf.mxu1  ;;  %v12768_v60 = vpop.f32.mrf.mxu0  ;;  %v8414_v36 = vpack.c.bf16 %v8411_v12, %v8411_v12 }
0x2829   : > { %v8340_v31 = vpop.f32.mrf.mxu0  ;;  %v8401_v52 = vpop.f32.mrf.mxu1 }
0x282a   : > { %v15055_v25 = vadd.f32 %v8340_v31, %v8212_v59  ;;  %v8415_v53 = vpack.c.bf16 %v8401_v52, %v8401_v52  ;;  %v8551_v59 = vpack.c.bf16 %v8548_v20, %v8547_v17 }
0x282b   : > { %v12771_v27 = vpop.f32.mrf.mxu0  ;;  %v12779_v38 = vpop.f32.mrf.mxu1 }
0x282c   : > { %v8426_v22 = vsel %vm1416_vm1, %v8415_v53, 0 }
0x282d   : > { %v8343_v30 = vpop.f32.mrf.mxu0  ;;  %v8404_v29 = vpop.f32.mrf.mxu1  ;;  %12782 = vmatpush3.bf16.msra.mxu1 %v8426_v22 }
0x282e   : > { %12817 = vmatprep.subr.bf16.mxu1 %v13478_v0 }
0x282f   : > { %v12772_v46 = vpop.f32.mrf.mxu0  ;;  %v12780_v21 = vpop.f32.mrf.mxu1 }
0x2830   : > { %12784 = vmatmul.mubr.msk.bf16.vlgmr.msra.gmra.mxu1 %vm3458_vm7, %v8412_v39 }
0x2831   : > { %v8539_v51 = vpop.f32.mrf.mxu0  ;;  %12787 = vmatprep.mubr.msk.bf16.mxu1 %vm13479_vm0, %v13478_v0  ;;  %12818 = vmatpush3.bf16.msra.mxu1 %v13305_v45 }
0x2832   : > { %v8553_v7 = vpack.c.bf16 %v8539_v51, %v8539_v51  ;;  %12819 = vmatprep.subr.bf16.mxu1 %v13478_v0 }
0x2833   : > { %v12801_v62 = vpop.f32.mrf.mxu0 }
0x2834   : > { %v8564_v43 = vsel %vm1416_vm1, %v8553_v7, 0 }
0x2835   : > { %v8542_v1 = vpop.f32.mrf.mxu0  ;;  %12804 = vmatpush3.bf16.msra.mxu0 %v8564_v43  ;;  %12820 = vmatpush3.bf16.msra.mxu1 %v13306_v58 }
0x2836   : > { %12839 = vmatprep.subr.bf16.mxu0 %v13478_v0  ;;  %12825 = vmatprep.subr.bf16.mxu1 %v13478_v0 }
0x2837   : > { %v12802_v10 = vpop.f32.mrf.mxu0 }
0x2838   : > { %12788 = vmatmul.mubr.msk.bf16.gmra.mxu1 %vm3458_vm7, %v8413_v63  ;;  %12806 = vmatmul.mubr.msk.bf16.vlgmr.msra.gmra.mxu0 %vm3458_vm7, %v8550_v47  ;;  %v8683_v63 = vld [vmem:[%s15725_s28 + $0xf0] sm:$0xff]  ;;  %v8684_v47 = vld [vmem:[%s15725_s28 + $0xf8] sm:$0xff] }
0x2839   : > { %12791 = vmatprep.mubr.msk.bf16.mxu1 %vm13479_vm0, %v13478_v0  ;;  %12809 = vmatprep.mubr.msk.bf16.mxu0 %vm13479_vm0, %v13478_v0  ;;  %v8688_v17 = vpack.c.bf16 %v8684_v47, %v8683_v63 }
0x283a   : > { %12840 = vmatpush3.bf16.msra.mxu0 %v13307_v8 }
0x283b   : > { %12841 = vmatprep.subr.bf16.mxu0 %v13478_v0 }
0x283e   : > { %12842 = vmatpush3.bf16.msra.mxu0 %v13308_v34 }
0x283f   : > { %12847 = vmatprep.subr.bf16.mxu0 %v13478_v0 }
0x2840   : > { %12792 = vmatmul.mubr.msk.bf16.gmra.mxu1 %vm3458_vm7, %v8414_v36  ;;  %12810 = vmatmul.mubr.msk.bf16.gmra.mxu0 %vm3458_vm7, %v8551_v59  ;;  %v13309_v36 = vld [vmem:[%s15724_s1 + $0x88] sm:$0xff]  }
0x2841   : > { %12813 = vmatprep.mubr.msk.bf16.mxu0 %vm13479_vm0, %v13478_v0  ;;  %12821 = vmatprep.mubr.msk.bf16.mxu1 %vm13479_vm0, %v13478_v0 }
0x2848   : > { %12814 = vmatmul.mubr.msk.bf16.gmra.mxu0 %vm3458_vm7, %v8552_v26  ;;  %12822 = vmatmul.mubr.msk.bf16.vlgmr.msra.gmra.mxu1 %vm2287_vm6, %v14924_v23  ;;  %v8685_v26 = vld [vmem:[%s15725_s28 + $0x100] sm:$0xff] }
0x2849   : > { %12843 = vmatprep.mubr.msk.bf16.mxu0 %vm13479_vm0, %v13478_v0  ;;  %12827 = vmatprep.mubr.msk.bf16.mxu1 %vm13479_vm0, %v13478_v0 }
0x2850   : > { %12844 = vmatmul.mubr.msk.bf16.vlgmr.msra.gmra.mxu0 %vm2287_vm6, %v14924_v23 }
0x2851   : > { %12849 = vmatprep.mubr.msk.bf16.mxu0 %vm13479_vm0, %v13478_v0 }
0x28f0   : > { %v8462_v4 = vpop.f32.mrf.mxu1 }
0x28f1   : > { %v8484_v55 = vadd.f32 %v8462_v4, %v15043_v49  ;;  %v8686_v4 = vld [vmem:[%s15725_s28 + $0x108] sm:$0xff] }
0x28f2   : > { %v12785_v32 = vpop.f32.mrf.mxu1 }
0x28f3   : > { %v8821_v32 = vld [vmem:[%s15725_s28 + $0x118] sm:$0xff] }
0x28f4   : > { %v8465_v60 = vpop.f32.mrf.mxu1 }
0x28f5   : > { %v8485_v31 = vadd.f32 %v8465_v60, %v15046_v14  ;;  %v8822_v60 = vld [vmem:[%s15725_s28 + $0x120] sm:$0xff] }
0x28f6   : > { %v12786_v52 = vpop.f32.mrf.mxu1 }
0x28f8   : > { %v8470_v5 = vpop.f32.mrf.mxu1  ;;  %v8600_v33 = vpop.f32.mrf.mxu0 }
0x28f9   : > { %v8486_v53 = vadd.f32 %v8470_v5, %v15049_v42  ;;  %v15106_v27 = vadd.f32 %v8600_v33, %v8484_v55 }
0x28fa   : > { %v12789_v38 = vpop.f32.mrf.mxu1  ;;  %v12807_v22 = vpop.f32.mrf.mxu0 }
0x28fb   : > { %v8826_v38 = vpack.c.bf16 %v8822_v60, %v8821_v32 }
0x28fc   : > { %v8473_v39 = vpop.f32.mrf.mxu1  ;;  %v8603_v30 = vpop.f32.mrf.mxu0 }
0x28fd   : > { %v8487_v29 = vadd.f32 %v8473_v39, %v15051_v28  ;;  %v15109_v45 = vadd.f32 %v8603_v30, %v8485_v31  ;;  %v13310_v31 = vld [vmem:[%s15724_s1 + $0x80] sm:$0xff]   ;;  %v13311_v39 = vld [vmem:[%s15724_s1 + $0x98] sm:$0xff]  }
0x28fe   : > { %v12790_v49 = vpop.f32.mrf.mxu1  ;;  %v12808_v46 = vpop.f32.mrf.mxu0 }
0x28ff   : > { %v8823_v49 = vld [vmem:[%s15725_s28 + $0x128] sm:$0xff]  ;;  %v8824_v46 = vld [vmem:[%s15725_s28 + $0x130] sm:$0xff] }
0x2900   : > { %v8478_v14 = vpop.f32.mrf.mxu1  ;;  %v8608_v21 = vpop.f32.mrf.mxu0 }
0x2901   : > { %v8488_v50 = vadd.f32 %v8478_v14, %v15055_v25  ;;  %v15112_v61 = vadd.f32 %v8608_v21, %v8486_v53  ;;  %v8689_v53 = vpack.c.bf16 %v8686_v4, %v8685_v26  ;;  %v13312_v14 = vld [vmem:[%s15724_s1 + $0x90] sm:$0xff]  }
0x2902   : > { %v12793_v42 = vpop.f32.mrf.mxu1  ;;  %v12811_v51 = vpop.f32.mrf.mxu0 }
0x2903   : > { %v8825_v42 = vld [vmem:[%s15725_s28 + $0x138] sm:$0xff] }
0x2904   : > { %v8481_v6 = vpop.f32.mrf.mxu1  ;;  %v8611_v56 = vpop.f32.mrf.mxu0  ;;  %v8828_v51 = vpack.c.bf16 %v8825_v42, %v8825_v42 }
0x2905   : > { %v15114_v58 = vadd.f32 %v8611_v56, %v8487_v29  ;;  %v8687_v29 = vld [vmem:[%s15725_s28 + $0x110] sm:$0xff] }
0x2906   : > { %v12794_v28 = vpop.f32.mrf.mxu1  ;;  %v12812_v7 = vpop.f32.mrf.mxu0  ;;  %v8690_v21 = vpack.c.bf16 %v8687_v29, %v8687_v29 }
0x2908   : > { %v8616_v62 = vpop.f32.mrf.mxu0  ;;  %v8677_v43 = vpop.f32.mrf.mxu1 }
0x2909   : > { %v15118_v1 = vadd.f32 %v8616_v62, %v8488_v50  ;;  %v8691_v25 = vpack.c.bf16 %v8677_v43, %v8677_v43  ;;  %v8827_v50 = vpack.c.bf16 %v8824_v46, %v8823_v49 }
0x290a   : > { %v12815_v8 = vpop.f32.mrf.mxu0  ;;  %v12823_v10 = vpop.f32.mrf.mxu1 }
0x290b   : > { %v8702_v12 = vsel %vm1416_vm1, %v8691_v25, 0 }
0x290c   : > { %v8619_v20 = vpop.f32.mrf.mxu0  ;;  %v8680_v34 = vpop.f32.mrf.mxu1  ;;  %12826 = vmatpush3.bf16.msra.mxu1 %v8702_v12 }
0x290d   : > { %12861 = vmatprep.subr.bf16.mxu1 %v13478_v0 }
0x290e   : > { %v12816_v59 = vpop.f32.mrf.mxu0  ;;  %v12824_v41 = vpop.f32.mrf.mxu1 }
0x290f   : > { %12828 = vmatmul.mubr.msk.bf16.vlgmr.msra.gmra.mxu1 %vm3458_vm7, %v8688_v17 }
0x2910   : > { %v8815_v55 = vpop.f32.mrf.mxu0  ;;  %12831 = vmatprep.mubr.msk.bf16.mxu1 %vm13479_vm0, %v13478_v0  ;;  %12862 = vmatpush3.bf16.msra.mxu1 %v13309_v36 }
0x2911   : > { %v8829_v52 = vpack.c.bf16 %v8815_v55, %v8815_v55  ;;  %12863 = vmatprep.subr.bf16.mxu1 %v13478_v0 }
0x2912   : > { %v12845_v5 = vpop.f32.mrf.mxu0 }
0x2913   : > { %v8840_v33 = vsel %vm1416_vm1, %v8829_v52, 0 }
0x2914   : > { %v8818_v22 = vpop.f32.mrf.mxu0  ;;  %12848 = vmatpush3.bf16.msra.mxu0 %v8840_v33  ;;  %12864 = vmatpush3.bf16.msra.mxu1 %v13310_v31 }
0x2915   : > { %12883 = vmatprep.subr.bf16.mxu0 %v13478_v0  ;;  %12869 = vmatprep.subr.bf16.mxu1 %v13478_v0 }
0x2916   : > { %v12846_v30 = vpop.f32.mrf.mxu0 }
0x2917   : > { %12832 = vmatmul.mubr.msk.bf16.gmra.mxu1 %vm3458_vm7, %v8689_v53  ;;  %12850 = vmatmul.mubr.msk.bf16.vlgmr.msra.gmra.mxu0 %vm3458_vm7, %v8826_v38  ;;  %v8959_v53 = vld [vmem:[%s15725_s28 + $0x140] sm:$0xff]  ;;  %v8960_v38 = vld [vmem:[%s15725_s28 + $0x148] sm:$0xff] }
0x2918   : > { %12835 = vmatprep.mubr.msk.bf16.mxu1 %vm13479_vm0, %v13478_v0  ;;  %12853 = vmatprep.mubr.msk.bf16.mxu0 %vm13479_vm0, %v13478_v0  ;;  %v8964_v49 = vpack.c.bf16 %v8960_v38, %v8959_v53 }
0x2919   : > { %12884 = vmatpush3.bf16.msra.mxu0 %v13311_v39 }
0x291a   : > { %12885 = vmatprep.subr.bf16.mxu0 %v13478_v0 }
0x291d   : > { %12886 = vmatpush3.bf16.msra.mxu0 %v13312_v14 }
0x291e   : > { %12891 = vmatprep.subr.bf16.mxu0 %v13478_v0 }
0x291f   : > { %12836 = vmatmul.mubr.msk.bf16.gmra.mxu1 %vm3458_vm7, %v8690_v21  ;;  %12854 = vmatmul.mubr.msk.bf16.gmra.mxu0 %vm3458_vm7, %v8827_v50  ;;  %v13313_v21 = vld [vmem:[%s15724_s1 + $0xa8] sm:$0xff]  }
0x2920   : > { %12857 = vmatprep.mubr.msk.bf16.mxu0 %vm13479_vm0, %v13478_v0  ;;  %12865 = vmatprep.mubr.msk.bf16.mxu1 %vm13479_vm0, %v13478_v0 }
0x2927   : > { %12858 = vmatmul.mubr.msk.bf16.gmra.mxu0 %vm3458_vm7, %v8828_v51  ;;  %12866 = vmatmul.mubr.msk.bf16.vlgmr.msra.gmra.mxu1 %vm2287_vm6, %v14924_v23  ;;  %v8961_v51 = vld [vmem:[%s15725_s28 + $0x150] sm:$0xff] }
0x2928   : > { %12887 = vmatprep.mubr.msk.bf16.mxu0 %vm13479_vm0, %v13478_v0  ;;  %12871 = vmatprep.mubr.msk.bf16.mxu1 %vm13479_vm0, %v13478_v0 }
0x292f   : > { %12888 = vmatmul.mubr.msk.bf16.vlgmr.msra.gmra.mxu0 %vm2287_vm6, %v14924_v23 }
0x2930   : > { %12893 = vmatprep.mubr.msk.bf16.mxu0 %vm13479_vm0, %v13478_v0 }
0x29cf   : > { %v8738_v6 = vpop.f32.mrf.mxu1 }
0x29d0   : > { %v8760_v56 = vadd.f32 %v8738_v6, %v15106_v27  ;;  %v8962_v6 = vld [vmem:[%s15725_s28 + $0x158] sm:$0xff] }
0x29d1   : > { %v12829_v28 = vpop.f32.mrf.mxu1 }
0x29d2   : > { %v9097_v28 = vld [vmem:[%s15725_s28 + $0x168] sm:$0xff] }
0x29d3   : > { %v8741_v7 = vpop.f32.mrf.mxu1 }
0x29d4   : > { %v8761_v62 = vadd.f32 %v8741_v7, %v15109_v45  ;;  %v9098_v7 = vld [vmem:[%s15725_s28 + $0x170] sm:$0xff] }
0x29d5   : > { %v12830_v43 = vpop.f32.mrf.mxu1 }
0x29d7   : > { %v8746_v63 = vpop.f32.mrf.mxu1  ;;  %v8876_v47 = vpop.f32.mrf.mxu0 }
0x29d8   : > { %v8762_v25 = vadd.f32 %v8746_v63, %v15112_v61  ;;  %v15169_v8 = vadd.f32 %v8876_v47, %v8760_v56 }
0x29d9   : > { %v12833_v10 = vpop.f32.mrf.mxu1  ;;  %v12851_v12 = vpop.f32.mrf.mxu0 }
0x29da   : > { %v9102_v10 = vpack.c.bf16 %v9098_v7, %v9097_v28 }
0x29db   : > { %v8749_v17 = vpop.f32.mrf.mxu1  ;;  %v8879_v20 = vpop.f32.mrf.mxu0 }
0x29dc   : > { %v8763_v34 = vadd.f32 %v8749_v17, %v15114_v58  ;;  %v15172_v36 = vadd.f32 %v8879_v20, %v8761_v62  ;;  %v13314_v62 = vld [vmem:[%s15724_s1 + $0xa0] sm:$0xff]   ;;  %v13315_v17 = vld [vmem:[%s15724_s1 + $0xb8] sm:$0xff]  }
0x29dd   : > { %v12834_v27 = vpop.f32.mrf.mxu1  ;;  %v12852_v59 = vpop.f32.mrf.mxu0 }
0x29de   : > { %v9099_v27 = vld [vmem:[%s15725_s28 + $0x178] sm:$0xff]  ;;  %v9100_v59 = vld [vmem:[%s15725_s28 + $0x180] sm:$0xff] }
0x29df   : > { %v8754_v45 = vpop.f32.mrf.mxu1  ;;  %v8884_v41 = vpop.f32.mrf.mxu0 }
0x29e0   : > { %v8764_v26 = vadd.f32 %v8754_v45, %v15118_v1  ;;  %v15175_v4 = vadd.f32 %v8884_v41, %v8762_v25  ;;  %v8965_v25 = vpack.c.bf16 %v8962_v6, %v8961_v51  ;;  %v13316_v45 = vld [vmem:[%s15724_s1 + $0xb0] sm:$0xff]  }
0x29e1   : > { %v12837_v61 = vpop.f32.mrf.mxu1  ;;  %v12855_v55 = vpop.f32.mrf.mxu0 }
0x29e2   : > { %v9101_v61 = vld [vmem:[%s15725_s28 + $0x188] sm:$0xff] }
0x29e3   : > { %v8757_v32 = vpop.f32.mrf.mxu1  ;;  %v8887_v60 = vpop.f32.mrf.mxu0  ;;  %v9104_v55 = vpack.c.bf16 %v9101_v61, %v9101_v61 }
0x29e4   : > { %v15177_v31 = vadd.f32 %v8887_v60, %v8763_v34  ;;  %v8963_v34 = vld [vmem:[%s15725_s28 + $0x160] sm:$0xff] }
0x29e5   : > { %v12838_v58 = vpop.f32.mrf.mxu1  ;;  %v12856_v52 = vpop.f32.mrf.mxu0  ;;  %v8966_v41 = vpack.c.bf16 %v8963_v34, %v8963_v34 }
0x29e7   : > { %v8892_v5 = vpop.f32.mrf.mxu0  ;;  %v8953_v33 = vpop.f32.mrf.mxu1 }
0x29e8   : > { %v15181_v22 = vadd.f32 %v8892_v5, %v8764_v26  ;;  %v8967_v1 = vpack.c.bf16 %v8953_v33, %v8953_v33  ;;  %v9103_v26 = vpack.c.bf16 %v9100_v59, %v9099_v27 }
0x29e9   : > { %v12859_v39 = vpop.f32.mrf.mxu0  ;;  %v12867_v30 = vpop.f32.mrf.mxu1 }
0x29ea   : > { %v8978_v29 = vsel %vm1416_vm1, %v8967_v1, 0 }
0x29eb   : > { %v8895_v46 = vpop.f32.mrf.mxu0  ;;  %v8956_v14 = vpop.f32.mrf.mxu1  ;;  %12870 = vmatpush3.bf16.msra.mxu1 %v8978_v29 }
0x29ec   : > { %12905 = vmatprep.subr.bf16.mxu1 %v13478_v0 }
0x29ed   : > { %v12860_v50 = vpop.f32.mrf.mxu0  ;;  %v12868_v42 = vpop.f32.mrf.mxu1 }
0x29ee   : > { %12872 = vmatmul.mubr.msk.bf16.vlgmr.msra.gmra.mxu1 %vm3458_vm7, %v8964_v49 }
0x29ef   : > { %v9091_v56 = vpop.f32.mrf.mxu0  ;;  %12875 = vmatprep.mubr.msk.bf16.mxu1 %vm13479_vm0, %v13478_v0  ;;  %12906 = vmatpush3.bf16.msra.mxu1 %v13313_v21 }
0x29f0   : > { %v9105_v43 = vpack.c.bf16 %v9091_v56, %v9091_v56  ;;  %12907 = vmatprep.subr.bf16.mxu1 %v13478_v0 }
0x29f1   : > { %v12889_v63 = vpop.f32.mrf.mxu0 }
0x29f2   : > { %v9116_v47 = vsel %vm1416_vm1, %v9105_v43, 0 }
0x29f3   : > { %v9094_v12 = vpop.f32.mrf.mxu0  ;;  %12892 = vmatpush3.bf16.msra.mxu0 %v9116_v47  ;;  %12908 = vmatpush3.bf16.msra.mxu1 %v13314_v62 }
0x29f4   : > { %12927 = vmatprep.subr.bf16.mxu0 %v13478_v0  ;;  %12913 = vmatprep.subr.bf16.mxu1 %v13478_v0 }
0x29f5   : > { %v12890_v20 = vpop.f32.mrf.mxu0 }
0x29f6   : > { %12876 = vmatmul.mubr.msk.bf16.gmra.mxu1 %vm3458_vm7, %v8965_v25  ;;  %12894 = vmatmul.mubr.msk.bf16.vlgmr.msra.gmra.mxu0 %vm3458_vm7, %v9102_v10  ;;  %v9235_v25 = vld [vmem:[%s15725_s28 + $0x190] sm:$0xff]  ;;  %v9236_v10 = vld [vmem:[%s15725_s28 + $0x198] sm:$0xff] }
0x29f7   : > { %12879 = vmatprep.mubr.msk.bf16.mxu1 %vm13479_vm0, %v13478_v0  ;;  %12897 = vmatprep.mubr.msk.bf16.mxu0 %vm13479_vm0, %v13478_v0  ;;  %v9240_v27 = vpack.c.bf16 %v9236_v10, %v9235_v25 }
0x29f8   : > { %12928 = vmatpush3.bf16.msra.mxu0 %v13315_v17 }
0x29f9   : > { %12929 = vmatprep.subr.bf16.mxu0 %v13478_v0 }
0x29fc   : > { %12930 = vmatpush3.bf16.msra.mxu0 %v13316_v45 }
0x29fd   : > { %12935 = vmatprep.subr.bf16.mxu0 %v13478_v0 }
0x29fe   : > { %12880 = vmatmul.mubr.msk.bf16.gmra.mxu1 %vm3458_vm7, %v8966_v41  ;;  %12898 = vmatmul.mubr.msk.bf16.gmra.mxu0 %vm3458_vm7, %v9103_v26  ;;  %v13317_v41 = vld [vmem:[%s15724_s1 + $0xc8] sm:$0xff]  }
0x29ff   : > { %12901 = vmatprep.mubr.msk.bf16.mxu0 %vm13479_vm0, %v13478_v0  ;;  %12909 = vmatprep.mubr.msk.bf16.mxu1 %vm13479_vm0, %v13478_v0 }
0x2a06   : > { %12902 = vmatmul.mubr.msk.bf16.gmra.mxu0 %vm3458_vm7, %v9104_v55  ;;  %12910 = vmatmul.mubr.msk.bf16.vlgmr.msra.gmra.mxu1 %vm2287_vm6, %v14924_v23  ;;  %v9237_v55 = vld [vmem:[%s15725_s28 + $0x1a0] sm:$0xff] }
0x2a07   : > { %12931 = vmatprep.mubr.msk.bf16.mxu0 %vm13479_vm0, %v13478_v0  ;;  %12915 = vmatprep.mubr.msk.bf16.mxu1 %vm13479_vm0, %v13478_v0 }
0x2a0e   : > { %12932 = vmatmul.mubr.msk.bf16.vlgmr.msra.gmra.mxu0 %vm2287_vm6, %v14924_v23 }
0x2a0f   : > { %12937 = vmatprep.mubr.msk.bf16.mxu0 %vm13479_vm0, %v13478_v0 }
0x2aae   : > { %v9014_v32 = vpop.f32.mrf.mxu1 }
0x2aaf   : > { %v9036_v60 = vadd.f32 %v9014_v32, %v15169_v8  ;;  %v9238_v32 = vld [vmem:[%s15725_s28 + $0x1a8] sm:$0xff] }
0x2ab0   : > { %v12873_v58 = vpop.f32.mrf.mxu1 }
0x2ab1   : > { %v9373_v58 = vld [vmem:[%s15725_s28 + $0x1b8] sm:$0xff] }
0x2ab2   : > { %v9017_v52 = vpop.f32.mrf.mxu1 }
0x2ab3   : > { %v9037_v5 = vadd.f32 %v9017_v52, %v15172_v36  ;;  %v9374_v52 = vld [vmem:[%s15725_s28 + $0x1c0] sm:$0xff] }
0x2ab4   : > { %v12874_v33 = vpop.f32.mrf.mxu1 }
0x2ab6   : > { %v9022_v53 = vpop.f32.mrf.mxu1  ;;  %v9152_v38 = vpop.f32.mrf.mxu0 }
0x2ab7   : > { %v9038_v1 = vadd.f32 %v9022_v53, %v15175_v4  ;;  %v15232_v39 = vadd.f32 %v9152_v38, %v9036_v60 }
0x2ab8   : > { %v12877_v30 = vpop.f32.mrf.mxu1  ;;  %v12895_v29 = vpop.f32.mrf.mxu0 }
0x2ab9   : > { %v9378_v30 = vpack.c.bf16 %v9374_v52, %v9373_v58 }
0x2aba   : > { %v9025_v49 = vpop.f32.mrf.mxu1  ;;  %v9155_v46 = vpop.f32.mrf.mxu0 }
0x2abb   : > { %v9039_v14 = vadd.f32 %v9025_v49, %v15177_v31  ;;  %v15235_v21 = vadd.f32 %v9155_v46, %v9037_v5  ;;  %v13318_v5 = vld [vmem:[%s15724_s1 + $0xc0] sm:$0xff]   ;;  %v13319_v49 = vld [vmem:[%s15724_s1 + $0xd8] sm:$0xff]  }
0x2abc   : > { %v12878_v8 = vpop.f32.mrf.mxu1  ;;  %v12896_v50 = vpop.f32.mrf.mxu0 }
0x2abd   : > { %v9375_v8 = vld [vmem:[%s15725_s28 + $0x1c8] sm:$0xff]  ;;  %v9376_v50 = vld [vmem:[%s15725_s28 + $0x1d0] sm:$0xff] }
0x2abe   : > { %v9030_v36 = vpop.f32.mrf.mxu1  ;;  %v9160_v42 = vpop.f32.mrf.mxu0 }
0x2abf   : > { %v9040_v51 = vadd.f32 %v9030_v36, %v15181_v22  ;;  %v15238_v6 = vadd.f32 %v9160_v42, %v9038_v1  ;;  %v9241_v1 = vpack.c.bf16 %v9238_v32, %v9237_v55  ;;  %v13320_v36 = vld [vmem:[%s15724_s1 + $0xd0] sm:$0xff]  }
0x2ac0   : > { %v12881_v4 = vpop.f32.mrf.mxu1  ;;  %v12899_v56 = vpop.f32.mrf.mxu0 }
0x2ac1   : > { %v9377_v4 = vld [vmem:[%s15725_s28 + $0x1d8] sm:$0xff] }
0x2ac2   : > { %v9033_v28 = vpop.f32.mrf.mxu1  ;;  %v9163_v7 = vpop.f32.mrf.mxu0  ;;  %v9380_v56 = vpack.c.bf16 %v9377_v4, %v9377_v4 }
0x2ac3   : > { %v15240_v62 = vadd.f32 %v9163_v7, %v9039_v14  ;;  %v9239_v14 = vld [vmem:[%s15725_s28 + $0x1b0] sm:$0xff] }
0x2ac4   : > { %v12882_v31 = vpop.f32.mrf.mxu1  ;;  %v12900_v43 = vpop.f32.mrf.mxu0  ;;  %v9242_v42 = vpack.c.bf16 %v9239_v14, %v9239_v14 }
0x2ac6   : > { %v9168_v63 = vpop.f32.mrf.mxu0  ;;  %v9229_v47 = vpop.f32.mrf.mxu1 }
0x2ac7   : > { %v15244_v12 = vadd.f32 %v9168_v63, %v9040_v51  ;;  %v9243_v22 = vpack.c.bf16 %v9229_v47, %v9229_v47  ;;  %v9379_v51 = vpack.c.bf16 %v9376_v50, %v9375_v8 }
0x2ac8   : > { %v12903_v17 = vpop.f32.mrf.mxu0  ;;  %v12911_v20 = vpop.f32.mrf.mxu1 }
0x2ac9   : > { %v9254_v34 = vsel %vm1416_vm1, %v9243_v22, 0 }
0x2aca   : > { %v9171_v59 = vpop.f32.mrf.mxu0  ;;  %v9232_v45 = vpop.f32.mrf.mxu1  ;;  %12914 = vmatpush3.bf16.msra.mxu1 %v9254_v34 }
0x2acb   : > { %12949 = vmatprep.subr.bf16.mxu1 %v13478_v0 }
0x2acc   : > { %v12904_v26 = vpop.f32.mrf.mxu0  ;;  %v12912_v61 = vpop.f32.mrf.mxu1 }
0x2acd   : > { %12916 = vmatmul.mubr.msk.bf16.vlgmr.msra.gmra.mxu1 %vm3458_vm7, %v9240_v27 }
0x2ace   : > { %v9367_v60 = vpop.f32.mrf.mxu0  ;;  %12919 = vmatprep.mubr.msk.bf16.mxu1 %vm13479_vm0, %v13478_v0  ;;  %12950 = vmatpush3.bf16.msra.mxu1 %v13317_v41 }
0x2acf   : > { %v9381_v33 = vpack.c.bf16 %v9367_v60, %v9367_v60  ;;  %12951 = vmatprep.subr.bf16.mxu1 %v13478_v0 }
0x2ad0   : > { %v12933_v53 = vpop.f32.mrf.mxu0 }
0x2ad1   : > { %v9392_v38 = vsel %vm1416_vm1, %v9381_v33, 0 }
0x2ad2   : > { %v9370_v29 = vpop.f32.mrf.mxu0  ;;  %12936 = vmatpush3.bf16.msra.mxu0 %v9392_v38  ;;  %12952 = vmatpush3.bf16.msra.mxu1 %v13318_v5 }
0x2ad3   : > { %12971 = vmatprep.subr.bf16.mxu0 %v13478_v0  ;;  %12957 = vmatprep.subr.bf16.mxu1 %v13478_v0 }
0x2ad4   : > { %v12934_v46 = vpop.f32.mrf.mxu0 }
0x2ad5   : > { %12920 = vmatmul.mubr.msk.bf16.gmra.mxu1 %vm3458_vm7, %v9241_v1  ;;  %12938 = vmatmul.mubr.msk.bf16.vlgmr.msra.gmra.mxu0 %vm3458_vm7, %v9378_v30  ;;  %v9511_v1 = vld [vmem:[%s15725_s28 + $0x1e0] sm:$0xff]  ;;  %v9512_v30 = vld [vmem:[%s15725_s28 + $0x1e8] sm:$0xff] }
0x2ad6   : > { %12923 = vmatprep.mubr.msk.bf16.mxu1 %vm13479_vm0, %v13478_v0  ;;  %12941 = vmatprep.mubr.msk.bf16.mxu0 %vm13479_vm0, %v13478_v0  ;;  %v9516_v8 = vpack.c.bf16 %v9512_v30, %v9511_v1 }
0x2ad7   : > { %12972 = vmatpush3.bf16.msra.mxu0 %v13319_v49 }
0x2ad8   : > { %12973 = vmatprep.subr.bf16.mxu0 %v13478_v0 }
0x2adb   : > { %12974 = vmatpush3.bf16.msra.mxu0 %v13320_v36 }
0x2adc   : > { %12979 = vmatprep.subr.bf16.mxu0 %v13478_v0 }
0x2add   : > { %12924 = vmatmul.mubr.msk.bf16.gmra.mxu1 %vm3458_vm7, %v9242_v42  ;;  %12942 = vmatmul.mubr.msk.bf16.gmra.mxu0 %vm3458_vm7, %v9379_v51  ;;  %v13321_v42 = vld [vmem:[%s15724_s1 + $0xe8] sm:$0xff]  }
0x2ade   : > { %12945 = vmatprep.mubr.msk.bf16.mxu0 %vm13479_vm0, %v13478_v0  ;;  %12953 = vmatprep.mubr.msk.bf16.mxu1 %vm13479_vm0, %v13478_v0 }
0x2ae5   : > { %12946 = vmatmul.mubr.msk.bf16.gmra.mxu0 %vm3458_vm7, %v9380_v56  ;;  %12954 = vmatmul.mubr.msk.bf16.vlgmr.msra.gmra.mxu1 %vm2287_vm6, %v14924_v23  ;;  %v9513_v56 = vld [vmem:[%s15725_s28 + $0x1f0] sm:$0xff] }
0x2ae6   : > { %12975 = vmatprep.mubr.msk.bf16.mxu0 %vm13479_vm0, %v13478_v0  ;;  %12959 = vmatprep.mubr.msk.bf16.mxu1 %vm13479_vm0, %v13478_v0 }
0x2aed   : > { %12976 = vmatmul.mubr.msk.bf16.vlgmr.msra.gmra.mxu0 %vm2287_vm6, %v14924_v23 }
0x2aee   : > { %12981 = vmatprep.mubr.msk.bf16.mxu0 %vm13479_vm0, %v13478_v0 }
0x2b8d   : > { %v9290_v28 = vpop.f32.mrf.mxu1 }
0x2b8e   : > { %v9312_v7 = vadd.f32 %v9290_v28, %v15232_v39  ;;  %v9514_v28 = vld [vmem:[%s15725_s28 + $0x1f8] sm:$0xff] }
0x2b8f   : > { %v12917_v31 = vpop.f32.mrf.mxu1 }
0x2b90   : > { %v9649_v31 = vld [vmem:[%s15725_s28 + $0x208] sm:$0xff] }
0x2b91   : > { %v9293_v43 = vpop.f32.mrf.mxu1 }
0x2b92   : > { %v9313_v63 = vadd.f32 %v9293_v43, %v15235_v21  ;;  %v9650_v43 = vld [vmem:[%s15725_s28 + $0x210] sm:$0xff] }
0x2b93   : > { %v12918_v47 = vpop.f32.mrf.mxu1 }
0x2b95   : > { %v9298_v25 = vpop.f32.mrf.mxu1  ;;  %v9428_v10 = vpop.f32.mrf.mxu0 }
0x2b96   : > { %v9314_v22 = vadd.f32 %v9298_v25, %v15238_v6  ;;  %v15295_v17 = vadd.f32 %v9428_v10, %v9312_v7 }
0x2b97   : > { %v12921_v20 = vpop.f32.mrf.mxu1  ;;  %v12939_v34 = vpop.f32.mrf.mxu0 }
0x2b98   : > { %v9654_v20 = vpack.c.bf16 %v9650_v43, %v9649_v31 }
0x2b99   : > { %v9301_v27 = vpop.f32.mrf.mxu1  ;;  %v9431_v59 = vpop.f32.mrf.mxu0 }
0x2b9a   : > { %v9315_v45 = vadd.f32 %v9301_v27, %v15240_v62  ;;  %v15298_v41 = vadd.f32 %v9431_v59, %v9313_v63  ;;  %v13322_v63 = vld [vmem:[%s15724_s1 + $0xe0] sm:$0xff]   ;;  %v13323_v27 = vld [vmem:[%s15724_s1 + $0xf8] sm:$0xff]  }
0x2b9b   : > { %v12922_v39 = vpop.f32.mrf.mxu1  ;;  %v12940_v26 = vpop.f32.mrf.mxu0 }
0x2b9c   : > { %v9651_v39 = vld [vmem:[%s15725_s28 + $0x218] sm:$0xff]  ;;  %v9652_v26 = vld [vmem:[%s15725_s28 + $0x220] sm:$0xff] }
0x2b9d   : > { %v9306_v21 = vpop.f32.mrf.mxu1  ;;  %v9436_v61 = vpop.f32.mrf.mxu0 }
0x2b9e   : > { %v9316_v55 = vadd.f32 %v9306_v21, %v15244_v12  ;;  %v15301_v32 = vadd.f32 %v9436_v61, %v9314_v22  ;;  %v9517_v22 = vpack.c.bf16 %v9514_v28, %v9513_v56  ;;  %v13324_v21 = vld [vmem:[%s15724_s1 + $0xf0] sm:$0xff]   ;;  %s15726_s1 = sld [smem:[#allocation19_spill]] }
0x2b9f   : > { %v12925_v6 = vpop.f32.mrf.mxu1  ;;  %v12943_v60 = vpop.f32.mrf.mxu0 }
0x2ba0   : > { %v9653_v6 = vld [vmem:[%s15725_s28 + $0x228] sm:$0xff] }
0x2ba1   : > { %v9309_v58 = vpop.f32.mrf.mxu1  ;;  %v9439_v52 = vpop.f32.mrf.mxu0  ;;  %v9656_v60 = vpack.c.bf16 %v9653_v6, %v9653_v6 }
0x2ba2   : > { %v15303_v5 = vadd.f32 %v9439_v52, %v9315_v45  ;;  %v9515_v45 = vld [vmem:[%s15725_s28 + $0x200] sm:$0xff] }
0x2ba3   : > { %v12926_v62 = vpop.f32.mrf.mxu1  ;;  %v12944_v33 = vpop.f32.mrf.mxu0  ;;  %v9518_v61 = vpack.c.bf16 %v9515_v45, %v9515_v45 }
0x2ba5   : > { %v9444_v53 = vpop.f32.mrf.mxu0  ;;  %v9505_v38 = vpop.f32.mrf.mxu1 }
0x2ba6   : > { %v15307_v29 = vadd.f32 %v9444_v53, %v9316_v55  ;;  %v9519_v12 = vpack.c.bf16 %v9505_v38, %v9505_v38  ;;  %v9655_v55 = vpack.c.bf16 %v9652_v26, %v9651_v39 }
0x2ba7   : > { %v12947_v49 = vpop.f32.mrf.mxu0  ;;  %v12955_v46 = vpop.f32.mrf.mxu1 }
0x2ba8   : > { %v9530_v14 = vsel %vm1416_vm1, %v9519_v12, 0 }
0x2ba9   : > { %v9447_v50 = vpop.f32.mrf.mxu0  ;;  %v9508_v36 = vpop.f32.mrf.mxu1  ;;  %12958 = vmatpush3.bf16.msra.mxu1 %v9530_v14 }
0x2baa   : > { %12993 = vmatprep.subr.bf16.mxu1 %v13478_v0 }
0x2bab   : > { %v12948_v51 = vpop.f32.mrf.mxu0  ;;  %v12956_v4 = vpop.f32.mrf.mxu1 }
0x2bac   : > { %12960 = vmatmul.mubr.msk.bf16.vlgmr.msra.gmra.mxu1 %vm3458_vm7, %v9516_v8 }
0x2bad   : > { %v9643_v7 = vpop.f32.mrf.mxu0  ;;  %12963 = vmatprep.mubr.msk.bf16.mxu1 %vm13479_vm0, %v13478_v0  ;;  %12994 = vmatpush3.bf16.msra.mxu1 %v13321_v42 }
0x2bae   : > { %v9657_v47 = vpack.c.bf16 %v9643_v7, %v9643_v7  ;;  %12995 = vmatprep.subr.bf16.mxu1 %v13478_v0 }
0x2baf   : > { %v12977_v25 = vpop.f32.mrf.mxu0 }
0x2bb0   : > { %v9668_v10 = vsel %vm1416_vm1, %v9657_v47, 0 }
0x2bb1   : > { %v9646_v34 = vpop.f32.mrf.mxu0  ;;  %12980 = vmatpush3.bf16.msra.mxu0 %v9668_v10  ;;  %12996 = vmatpush3.bf16.msra.mxu1 %v13322_v63  ;;  %v9787_v10 = vld [vmem:[%s15725_s28 + $0x230] sm:$0xff] }
0x2bb2   : > { %13015 = vmatprep.subr.bf16.mxu0 %v13478_v0  ;;  %13001 = vmatprep.subr.bf16.mxu1 %v13478_v0 }
0x2bb3   : > { %v12978_v59 = vpop.f32.mrf.mxu0 }
0x2bb4   : > { %12964 = vmatmul.mubr.msk.bf16.gmra.mxu1 %vm3458_vm7, %v9517_v22  ;;  %12982 = vmatmul.mubr.msk.bf16.vlgmr.msra.gmra.mxu0 %vm3458_vm7, %v9654_v20  ;;  %v9788_v22 = vld [vmem:[%s15725_s28 + $0x238] sm:$0xff] }
0x2bb5   : > { %12967 = vmatprep.mubr.msk.bf16.mxu1 %vm13479_vm0, %v13478_v0  ;;  %12985 = vmatprep.mubr.msk.bf16.mxu0 %vm13479_vm0, %v13478_v0  ;;  %v9792_v45 = vpack.c.bf16 %v9788_v22, %v9787_v10 }
0x2bb6   : > { %13016 = vmatpush3.bf16.msra.mxu0 %v13323_v27 }
0x2bb7   : > { %13017 = vmatprep.subr.bf16.mxu0 %v13478_v0 }
0x2bba   : > { %13018 = vmatpush3.bf16.msra.mxu0 %v13324_v21 }
0x2bbb   : > { %13023 = vmatprep.subr.bf16.mxu0 %v13478_v0 }
0x2bbc   : > { %12968 = vmatmul.mubr.msk.bf16.gmra.mxu1 %vm3458_vm7, %v9518_v61  ;;  %12986 = vmatmul.mubr.msk.bf16.gmra.mxu0 %vm3458_vm7, %v9655_v55  ;;  %v9789_v55 = vld [vmem:[%s15725_s28 + $0x240] sm:$0xff] }
0x2bbd   : > { %12989 = vmatprep.mubr.msk.bf16.mxu0 %vm13479_vm0, %v13478_v0  ;;  %12997 = vmatprep.mubr.msk.bf16.mxu1 %vm13479_vm0, %v13478_v0 }
0x2bc4   : > { %12990 = vmatmul.mubr.msk.bf16.gmra.mxu0 %vm3458_vm7, %v9656_v60  ;;  %12998 = vmatmul.mubr.msk.bf16.vlgmr.msra.gmra.mxu1 %vm2287_vm6, %v14924_v23  ;;  %v9790_v60 = vld [vmem:[%s15725_s28 + $0x248] sm:$0xff] }
0x2bc5   : > { %13019 = vmatprep.mubr.msk.bf16.mxu0 %vm13479_vm0, %v13478_v0  ;;  %13003 = vmatprep.mubr.msk.bf16.mxu1 %vm13479_vm0, %v13478_v0 }
0x2bcc   : > { %13020 = vmatmul.mubr.msk.bf16.vlgmr.msra.gmra.mxu0 %vm2287_vm6, %v14924_v23 }
0x2bcd   : > { %13025 = vmatprep.mubr.msk.bf16.mxu0 %vm13479_vm0, %v13478_v0 }
0x2c6c   : > { %v9566_v58 = vpop.f32.mrf.mxu1 }
0x2c6d   : > { %v9588_v52 = vadd.f32 %v9566_v58, %v15295_v17  ;;  %v9925_v58 = vld [vmem:[%s15725_s28 + $0x258] sm:$0xff] }
0x2c6e   : > { %v12961_v62 = vpop.f32.mrf.mxu1 }
0x2c70   : > { %v9569_v33 = vpop.f32.mrf.mxu1 }
0x2c71   : > { %v9589_v53 = vadd.f32 %v9569_v33, %v15298_v41 }
0x2c72   : > { %v12962_v38 = vpop.f32.mrf.mxu1 }
0x2c73   : > { %v9793_v38 = vpack.c.bf16 %v9790_v60, %v9789_v55 }
0x2c74   : > { %v9574_v1 = vpop.f32.mrf.mxu1  ;;  %v9704_v30 = vpop.f32.mrf.mxu0 }
0x2c75   : > { %v9590_v12 = vadd.f32 %v9574_v1, %v15301_v32  ;;  %v15358_v49 = vadd.f32 %v9704_v30, %v9588_v52  ;;  %v9926_v52 = vld [vmem:[%s15725_s28 + $0x260] sm:$0xff] }
0x2c76   : > { %v12965_v46 = vpop.f32.mrf.mxu1  ;;  %v12983_v14 = vpop.f32.mrf.mxu0  ;;  %v9930_v1 = vpack.c.bf16 %v9926_v52, %v9925_v58  ;;  %v13421_v58 = vld [vmem:[%s15717_s0] ss:$0 sm:$0xff]  ;;  %s13480_s0 = smov 32  }
0x2c77   : > { %v9791_v46 = vld [vmem:[%s15725_s28 + $0x250] sm:$0xff]  ;;  %v9927_v14 = vld [vmem:[%s15725_s28 + $0x268] sm:$0xff]  ;;  %v5577_v52 = vadd.f32 %v13421_v58, %v14560_v24 }
0x2c78   : > { %v9577_v23 = vpop.f32.mrf.mxu1  ;;  %v9707_v8 = vpop.f32.mrf.mxu0 }
0x2c79   : > { %v9591_v50 = vadd.f32 %v9577_v23, %v15303_v5  ;;  %v15361_v36 = vadd.f32 %v9707_v8, %v9589_v53  ;;  %v9928_v23 = vld [vmem:[%s15725_s28 + $0x270] sm:$0xff]  ;;  %v9794_v8 = vpack.c.bf16 %v9791_v46, %v9791_v46  ;;  %v5579_v46 = vadd.f32 %v13421_v58, %v14566_v35 }
0x2c7a   : > { %v12966_v17 = vpop.f32.mrf.mxu1  ;;  %v12984_v42 = vpop.f32.mrf.mxu0 }
0x2c7b   : > { %v9929_v17 = vld [vmem:[%s15725_s28 + $0x278] sm:$0xff] }
0x2c7c   : > { %v9582_v41 = vpop.f32.mrf.mxu1  ;;  %v9712_v51 = vpop.f32.mrf.mxu0  ;;  %v9932_v42 = vpack.c.bf16 %v9929_v17, %v9929_v17 }
0x2c7d   : > { %v9592_v4 = vadd.f32 %v9582_v41, %v15307_v29  ;;  %v15364_v56 = vadd.f32 %v9712_v51, %v9590_v12 }
0x2c7e   : > { %v12969_v32 = vpop.f32.mrf.mxu1  ;;  %v12987_v28 = vpop.f32.mrf.mxu0 }
0x2c80   : > { %v9585_v7 = vpop.f32.mrf.mxu1  ;;  %v9715_v31 = vpop.f32.mrf.mxu0 }
0x2c81   : > { %v15366_v43 = vadd.f32 %v9715_v31, %v9591_v50  ;;  %v9931_v50 = vpack.c.bf16 %v9928_v23, %v9927_v14 }
0x2c82   : > { %v12970_v63 = vpop.f32.mrf.mxu1  ;;  %v12988_v5 = vpop.f32.mrf.mxu0 }
0x2c83   : > { %v11134_v63 = vld [vmem:[%s15726_s1] ss:$0 sm:$0xff]  ;;  %s15727_s1 = sld [smem:[#allocation23_spill]] }
0x2c84   : > { %v9720_v47 = vpop.f32.mrf.mxu0  ;;  %v9781_v25 = vpop.f32.mrf.mxu1 }
0x2c85   : > { %v15370_v20 = vadd.f32 %v9720_v47, %v9592_v4  ;;  %v9795_v34 = vpack.c.bf16 %v9781_v25, %v9781_v25 }
0x2c86   : > { %v12991_v29 = vpop.f32.mrf.mxu0  ;;  %v12999_v27 = vpop.f32.mrf.mxu1 }
0x2c87   : > { %v9806_v59 = vsel %vm1416_vm1, %v9795_v34, 0 }
0x2c88   : > { %v9723_v39 = vpop.f32.mrf.mxu0  ;;  %v9784_v26 = vpop.f32.mrf.mxu1  ;;  %13002 = vmatpush3.bf16.msra.mxu1 %v9806_v59 }
0x2c89   : > { %13037 = vmatprep.subr.bf16.mxu1 %v13478_v0 }
0x2c8a   : > { %v12992_v21 = vpop.f32.mrf.mxu0  ;;  %v13000_v61 = vpop.f32.mrf.mxu1 }
0x2c8b   : > { %13004 = vmatmul.mubr.msk.bf16.vlgmr.msra.gmra.mxu1 %vm3458_vm7, %v9792_v45 }
0x2c8c   : > { %v9919_v6 = vpop.f32.mrf.mxu0  ;;  %13007 = vmatprep.mubr.msk.bf16.mxu1 %vm13479_vm0, %v13478_v0 }
0x2c8d   : > { %v9933_v62 = vpack.c.bf16 %v9919_v6, %v9919_v6 }
0x2c8e   : > { %v13021_v33 = vpop.f32.mrf.mxu0 }
0x2c8f   : > { %v9944_v53 = vsel %vm1416_vm1, %v9933_v62, 0 }
0x2c90   : > { %v9922_v30 = vpop.f32.mrf.mxu0  ;;  %13024 = vmatpush3.bf16.msra.mxu0 %v9944_v53 }
0x2c91   : > { %13057 = vmatprep.subr.bf16.mxu0 %v13478_v0 }
0x2c92   : > { %v13022_v12 = vpop.f32.mrf.mxu0 }
0x2c93   : > { %13008 = vmatmul.mubr.msk.bf16.gmra.mxu1 %vm3458_vm7, %v9793_v38  ;;  %13026 = vmatmul.mubr.msk.bf16.vlgmr.msra.gmra.mxu0 %vm3458_vm7, %v9930_v1 }
0x2c94   : > { %13011 = vmatprep.mubr.msk.bf16.mxu1 %vm13479_vm0, %v13478_v0  ;;  %13029 = vmatprep.mubr.msk.bf16.mxu0 %vm13479_vm0, %v13478_v0 }
0x2c9b   : > { %13012 = vmatmul.mubr.msk.bf16.gmra.mxu1 %vm3458_vm7, %v9794_v8  ;;  %13030 = vmatmul.mubr.msk.bf16.gmra.mxu0 %vm3458_vm7, %v9931_v50 }
0x2c9c   : > { %13033 = vmatprep.mubr.msk.bf16.mxu0 %vm13479_vm0, %v13478_v0  ;;  %13045 = vmatprep.mubr.msk.bf16.mxu1 %vm13479_vm0, %v13478_v0 }
0x2ca3   : > { %13034 = vmatmul.mubr.msk.bf16.gmra.mxu0 %vm3458_vm7, %v9932_v42  ;;  %v5580_v42 = vadd.f32 %v13421_v58, %v14568_v40 }
0x2ca4   : > { %13061 = vmatprep.mubr.msk.bf16.mxu0 %vm13479_vm0, %v13478_v0 }
0x2d4b   : > { %v9842_v41 = vpop.f32.mrf.mxu1 }
0x2d4c   : > { %v9864_v28 = vadd.f32 %v9842_v41, %v15358_v49 }
0x2d4d   : > { %v13005_v51 = vpop.f32.mrf.mxu1 }
0x2d4f   : > { %v9845_v4 = vpop.f32.mrf.mxu1 }
0x2d50   : > { %v9865_v10 = vadd.f32 %v9845_v4, %v15361_v36 }
0x2d51   : > { %v13006_v32 = vpop.f32.mrf.mxu1 }
0x2d53   : > { %v9850_v7 = vpop.f32.mrf.mxu1  ;;  %v9980_v31 = vpop.f32.mrf.mxu0 }
0x2d54   : > { %v10002_v5 = vadd.f32 %v9980_v31, %v9864_v28  ;;  %v9866_v39 = vadd.f32 %v9850_v7, %v15364_v56  ;;  %v5578_v56 = vadd.f32 %v13421_v58, %v14563_v2 }
0x2d55   : > { %v13009_v47 = vpop.f32.mrf.mxu1  ;;  %v13027_v25 = vpop.f32.mrf.mxu0 }
0x2d56   : > { %v10014_v22 = vadd.f32 %v11134_v63, %v10002_v5 }
0x2d57   : > { %v9853_v34 = vpop.f32.mrf.mxu1  ;;  %v9983_v29 = vpop.f32.mrf.mxu0 }
0x2d58   : > { %13365 = vtanh.f32 %v10014_v22  ;;  %v10003_v27 = vadd.f32 %v9983_v29, %v9865_v10  ;;  %v9867_v60 = vadd.f32 %v9853_v34, %v15366_v43 }
0x2d59   : > { %v13010_v59 = vpop.f32.mrf.mxu1  ;;  %v13028_v45 = vpop.f32.mrf.mxu0 }
0x2d5a   : > { %v10015_v26 = vadd.f32 %v11134_v63, %v10003_v27 }
0x2d5b   : > { %v9858_v49 = vpop.f32.mrf.mxu1  ;;  %v9988_v21 = vpop.f32.mrf.mxu0 }
0x2d5c   : > { %13367 = vtanh.f32 %v10015_v26  ;;  %v10004_v61 = vadd.f32 %v9988_v21, %v9866_v39  ;;  %v9868_v30 = vadd.f32 %v9858_v49, %v15370_v20 }
0x2d5d   : > { %v13031_v55 = vpop.f32.mrf.mxu0  ;;  %v13013_v6 = vpop.f32.mrf.mxu1 }
0x2d5e   : > { %v10016_v36 = vadd.f32 %v11134_v63, %v10004_v61 }
0x2d5f   : > { %v9991_v62 = vpop.f32.mrf.mxu0  ;;  %v9861_v33 = vpop.f32.mrf.mxu1 }
0x2d60   : > { %13369 = vtanh.f32 %v10016_v36  ;;  %v10005_v53 = vadd.f32 %v9991_v62, %v9867_v60 }
0x2d61   : > { %v13032_v38 = vpop.f32.mrf.mxu0  ;;  %v13014_v1 = vpop.f32.mrf.mxu1  ;;  %13371 = vtanh.f32 %v5577_v52 }
0x2d62   : > { %v10017_v12 = vadd.f32 %v11134_v63, %v10005_v53 }
0x2d63   : > { %v9996_v14 = vpop.f32.mrf.mxu0 }
0x2d64   : > { %13373 = vtanh.f32 %v10017_v12  ;;  %v10006_v43 = vadd.f32 %v9996_v14, %v9868_v30 }
0x2d65   : > { %v13366_v23 = vpop.eup %13365  ;;  %v13035_v8 = vpop.f32.mrf.mxu0  ;;  %13375 = vtanh.f32 %v5578_v56 }
0x2d66   : > { %v10018_v24 = vadd.f32 %v11134_v63, %v10006_v43  ;;  %v10024_v50 = vadd.f32 %v13366_v23, %v14570_v44  ;;  %13377 = vtanh.f32 %v5579_v46 }
0x2d67   : > { %v9999_v17 = vpop.f32.mrf.mxu0 }
0x2d68   : > { %13379 = vtanh.f32 %v10018_v24  ;;  %v10029_v2 = vsel %vm2287_vm6, %v10024_v50, 0.0 }
0x2d69   : > { %v13368_v20 = vpop.eup %13367  ;;  %10030 = vadd.xlane.f32.xlu0 %v10029_v2  ;;  %v13036_v41 = vpop.f32.mrf.mxu0  ;;  %13381 = vtanh.f32 %v5580_v42 }
0x2d6a   : > { %v10025_v35 = vadd.f32 %v13368_v20, %v14575_v37  ;;  %13383 = vtanh.f32 %v14573_v48 }
0x2d6c   : > { %v10032_v51 = vsel %vm2287_vm6, %v10025_v35, 0.0 }
0x2d6d   : > { %v13370_v4 = vpop.eup %13369  ;;  %10033 = vadd.xlane.f32.xlu1 %v10032_v51 }
0x2d6e   : > { %v10026_v32 = vadd.f32 %v13370_v4, %v14577_v54  ;;  %v13372_v44 = vpop.eup %13371 }
0x2d6f   : > { %v5587_v37 = vadd.f32 %v13372_v44, %v13892_v9 }
0x2d70   : > { %v10035_v28 = vsel %vm2287_vm6, %v10026_v32, 0.0 }
0x2d71   : > { %v13374_v7 = vpop.eup %13373  ;;  %10036 = vadd.xlane.f32.xlu0 %v10035_v28  ;;  %v5592_v54 = vsel %vm2287_vm6, %v5587_v37, 0.0 }
0x2d72   : > { %v10027_v40 = vadd.f32 %v13374_v7, %v14579_v57  ;;  %v13376_v31 = vpop.eup %13375 }
0x2d73   : > { %v13378_v63 = vpop.eup %13377  ;;  %v5588_v34 = vadd.f32 %v13376_v31, %v13894_v11 }
0x2d74   : > { %v10038_v5 = vsel %vm2287_vm6, %v10027_v40, 0.0  ;;  %v5589_v22 = vadd.f32 %v13378_v63, %v13896_v13 }
0x2d75   : > { %v13380_v47 = vpop.eup %13379  ;;  %10039 = vadd.xlane.f32.xlu1 %v10038_v5  ;;  %v5595_v9 = vsel %vm2287_vm6, %v5588_v34, 0.0  ;;  %v13325_v5 = vld [vmem:[%s15727_s1 + $0x18] sm:$0xff]  }
0x2d76   : > { %v10028_v25 = vadd.f32 %v13380_v47, %v14581_v3  ;;  %v13382_v57 = vpop.eup %13381  ;;  %v5598_v29 = vsel %vm2287_vm6, %v5589_v22, 0.0  ;;  %13038 = vmatpush3.bf16.msra.mxu1 %v13325_v5  ;;  %v13327_v47 = vld [vmem:[%s15727_s1 + $0x8] sm:$0xff]  }
0x2d77   : > { %v5590_v27 = vadd.f32 %v13382_v57, %v13898_v15  ;;  %v13384_v11 = vpop.eup %13383  ;;  %13039 = vmatprep.subr.bf16.mxu1 %v13478_v0 }
0x2d78   : > { %v10041_v10 = vsel %vm5604_vm8, %v10028_v25, 0.0  ;;  %v15440_v61 = vadd.f32 %v13384_v11, %v13900_v18 }
0x2d79   : > { %5593 = vadd.xlane.f32.xlu1 %v5592_v54  ;;  %10042 = vadd.xlane.f32.xlu0 %v10041_v10  ;;  %v5601_v3 = vsel %vm2287_vm6, %v5590_v27, 0.0 }
0x2d7a   : > { %v5605_v36 = vsel %vm5604_vm8, %v15440_v61, 0.0 }
0x2d7d   : > { %5599 = vadd.xlane.f32.xlu1 %v5598_v29  ;;  %5596 = vadd.xlane.f32.xlu0 %v5595_v9 }
0x2d81   : > { %5602 = vadd.xlane.f32.xlu0 %v5601_v3 }
0x2df2   : > { %v10031_v59 = vpop.xlane.xlu0 %10030 }
0x2df3   : > { %v10044_v13 = vmul.f32 0.03125, %v10031_v59 }
0x2df5   : > { %v15432_v45 = vsub.f32 %v10024_v50, %v10044_v13 }
0x2df6   : > { %v10034_v39 = vpop.xlane.xlu1 %10033 }
0x2df7   : > { %v10045_v26 = vmul.f32 0.03125, %v10034_v39  ;;  %v10054_v49 = vmul.f32 %v15432_v45, %v15432_v45 }
0x2df9   : > { %v15436_v21 = vsub.f32 %v10025_v35, %v10045_v26  ;;  %v10059_v15 = vsel %vm2287_vm6, %v10054_v49, 0.0 }
0x2dfa   : > { %v10037_v55 = vpop.xlane.xlu0 %10036  ;;  %10060 = vadd.xlane.f32.xlu1 %v10059_v15 }
0x2dfb   : > { %v10046_v48 = vmul.f32 0.03125, %v10037_v55  ;;  %v10055_v6 = vmul.f32 %v15436_v21, %v15436_v21 }
0x2dfd   : > { %v15444_v60 = vsub.f32 %v10026_v32, %v10046_v48  ;;  %v10062_v58 = vsel %vm2287_vm6, %v10055_v6, 0.0 }
0x2dfe   : > { %5606 = vadd.xlane.f32.xlu1 %v5605_v36  ;;  %v10040_v52 = vpop.xlane.xlu1 %10039  ;;  %10063 = vadd.xlane.f32.xlu0 %v10062_v58  ;;  %v13328_v58 = vld [vmem:[%s15727_s1] sm:$0xff]  }
0x2dff   : > { %v10047_v62 = vmul.f32 0.03125, %v10040_v52  ;;  %v10056_v18 = vmul.f32 %v15444_v60, %v15444_v60 }
0x2e01   : > { %v15451_v33 = vsub.f32 %v10027_v40, %v10047_v62  ;;  %v10065_v53 = vsel %vm2287_vm6, %v10056_v18, 0.0  ;;  %v15499_v18 = vld [vmem:[%s15713_s2] ss:$0 sm:$0xff]  ;;  %s15732_s2 = sld [smem:[#allocation26_spill]] }
0x2e02   : > { %v5594_v38 = vpop.xlane.xlu1 %5593  ;;  %10066 = vadd.xlane.f32.xlu0 %v10065_v53  ;;  %v10043_v1 = vpop.xlane.xlu0 %10042 }
0x2e03   : > { %v5608_v56 = vmul.f32 0.03125, %v5594_v38  ;;  %v10048_v30 = vmul.f32 0.03125, %v10043_v1  ;;  %v10057_v12 = vmul.f32 %v15451_v33, %v15451_v33 }
0x2e05   : > { %v15456_v46 = vsub.f32 %v5587_v37, %v5608_v56  ;;  %v15458_v14 = vsub.f32 %v10028_v25, %v10048_v30  ;;  %v10068_v43 = vsel %vm2287_vm6, %v10057_v12, 0.0  ;;  %v13326_v37 = vld [vmem:[%s15727_s1 + $0x10] sm:$0xff]   ;;  %v15504_v56 = vld [vmem:[%s15714_s7] ss:$0 sm:$0xff]  ;;  %s15730_s1 = sld [smem:[#allocation29_spill]] }
0x2e06   : > { %10069 = vadd.xlane.f32.xlu1 %v10068_v43  ;;  %v5600_v23 = vpop.xlane.xlu1 %5599  ;;  %v5597_v8 = vpop.xlane.xlu0 %5596  ;;  %13040 = vmatpush3.bf16.msra.mxu1 %v13326_v37 }
0x2e07   : > { %v5610_v24 = vmul.f32 0.03125, %v5600_v23  ;;  %v5609_v50 = vmul.f32 0.03125, %v5597_v8  ;;  %v5618_v17 = vmul.f32 %v15456_v46, %v15456_v46  ;;  %v10058_v42 = vmul.f32 %v15458_v14, %v15458_v14  ;;  %13041 = vmatprep.subr.bf16.mxu1 %v13478_v0 }
0x2e09   : > { %v15465_v2 = vsub.f32 %v5589_v22, %v5610_v24  ;;  %v15467_v20 = vsub.f32 %v5588_v34, %v5609_v50  ;;  %v5623_v41 = vsel %vm2287_vm6, %v5618_v17, 0.0  ;;  %v10071_v35 = vsel %vm5604_vm8, %v10058_v42, 0.0 }
0x2e0a   : > { %5624 = vadd.xlane.f32.xlu1 %v5623_v41  ;;  %10072 = vadd.xlane.f32.xlu0 %v10071_v35  ;;  %v5603_v51 = vpop.xlane.xlu0 %5602 }
0x2e0b   : > { %v5611_v4 = vmul.f32 0.03125, %v5603_v51  ;;  %v5620_v32 = vmul.f32 %v15465_v2, %v15465_v2  ;;  %v5619_v44 = vmul.f32 %v15467_v20, %v15467_v20  ;;  %13042 = vmatpush3.bf16.msra.mxu1 %v13327_v47 }
0x2e0c   : > { %13043 = vmatprep.subr.bf16.mxu1 %v13478_v0 }
0x2e0d   : > { %v15475_v28 = vsub.f32 %v5590_v27, %v5611_v4  ;;  %v5629_v7 = vsel %vm2287_vm6, %v5620_v32, 0.0  ;;  %v5626_v40 = vsel %vm2287_vm6, %v5619_v44, 0.0 }
0x2e0e   : > { %5630 = vadd.xlane.f32.xlu1 %v5629_v7  ;;  %5627 = vadd.xlane.f32.xlu0 %v5626_v40 }
0x2e0f   : > { %v5621_v31 = vmul.f32 %v15475_v28, %v15475_v28  ;;  %13044 = vmatpush3.bf16.msra.mxu1 %v13328_v58 }
0x2e10   : > { %13073 = vmatprep.subr.bf16.mxu1 %v13478_v0 }
0x2e11   : > { %v5632_v63 = vsel %vm2287_vm6, %v5621_v31, 0.0 }
0x2e12   : > { %5633 = vadd.xlane.f32.xlu0 %v5632_v63 }
0x2e83   : > { %v10061_v25 = vpop.xlane.xlu1 %10060 }
0x2e84   : > { %v10074_v54 = vmul.f32 0.03125, %v10061_v25 }
0x2e86   : > { %v10079_v10 = vadd.f32 1e-05, %v10074_v54 }
0x2e87   : > { %v5607_v22 = vpop.xlane.xlu1 %5606  ;;  %v10064_v34 = vpop.xlane.xlu0 %10063 }
0x2e88   : > { %13385 = vrsqrt.f32 %v10079_v10  ;;  %v5612_v57 = vmul.f32 0.03125, %v5607_v22  ;;  %v10075_v29 = vmul.f32 0.03125, %v10064_v34 }
0x2e8a   : > { %v15489_v9 = vsub.f32 %v15440_v61, %v5612_v57  ;;  %v10080_v27 = vadd.f32 1e-05, %v10075_v29 }
0x2e8b   : > { %v10067_v3 = vpop.xlane.xlu0 %10066 }
0x2e8c   : > { %13387 = vrsqrt.f32 %v10080_v27  ;;  %v10076_v59 = vmul.f32 0.03125, %v10067_v3  ;;  %v5622_v13 = vmul.f32 %v15489_v9, %v15489_v9 }
0x2e8e   : > { %v10081_v11 = vadd.f32 1e-05, %v10076_v59  ;;  %v5635_v39 = vsel %vm5604_vm8, %v5622_v13, 0.0 }
0x2e8f   : > { %5636 = vadd.xlane.f32.xlu1 %v5635_v39  ;;  %v10070_v26 = vpop.xlane.xlu1 %10069 }
0x2e90   : > { %13389 = vrsqrt.f32 %v10081_v11  ;;  %v10077_v49 = vmul.f32 0.03125, %v10070_v26 }
0x2e92   : > { %v10082_v15 = vadd.f32 1e-05, %v10077_v49 }
0x2e93   : > { %v10073_v55 = vpop.xlane.xlu0 %10072  ;;  %v5625_v4 = vpop.xlane.xlu1 %5624 }
0x2e94   : > { %13391 = vrsqrt.f32 %v10082_v15  ;;  %v10078_v61 = vmul.f32 0.03125, %v10073_v55  ;;  %v5638_v32 = vmul.f32 0.03125, %v5625_v4 }
0x2e95   : > { %v13386_v48 = vpop.eup %13385 }
0x2e96   : > { %v10083_v6 = vadd.f32 1e-05, %v10078_v61  ;;  %v10089_v36 = vmul.f32 %v13386_v48, %v15432_v45  ;;  %v5643_v7 = vadd.f32 1e-05, %v5638_v32 }
0x2e97   : > { %v5631_v40 = vpop.xlane.xlu1 %5630 }
0x2e98   : > { %13393 = vrsqrt.f32 %v10083_v6  ;;  %v10094_v53 = vmul.f32 %v15499_v18, %v10089_v36  ;;  %v5640_v5 = vmul.f32 0.03125, %v5631_v40 }
0x2e99   : > { %v13388_v52 = vpop.eup %13387  ;;  %13395 = vrsqrt.f32 %v5643_v7 }
0x2e9a   : > { %v10090_v62 = vmul.f32 %v13388_v52, %v15436_v21  ;;  %v10099_v30 = vadd.f32 %v15504_v56, %v10094_v53 }
0x2e9c   : > { %v10095_v38 = vmul.f32 %v15499_v18, %v10090_v62 }
0x2e9d   : > { %v13390_v1 = vpop.eup %13389 }
0x2e9e   : > { %v10100_v45 = vadd.f32 %v15504_v56, %v10095_v38  ;;  %v10091_v12 = vmul.f32 %v13390_v1, %v15444_v60 }
0x2ea0   : > { %v13168_v43 = vpack.i.bf16 %v10100_v45, %v10099_v30  ;;  %v10096_v8 = vmul.f32 %v15499_v18, %v10091_v12 }
0x2ea1   : > { %v13392_v23 = vpop.eup %13391 }
0x2ea2   : > { %13169 = vrot.lane.b32.xlu0 %v13168_v43, %s13480_s0  ;;  %v10092_v21 = vmul.f32 %v13392_v23, %v15451_v33  ;;  %v10101_v17 = vadd.f32 %v15504_v56, %v10096_v8  ;;  %v5628_v33 = vpop.xlane.xlu0 %5627 }
0x2ea3   : > { %v5639_v44 = vmul.f32 0.03125, %v5628_v33 }
0x2ea4   : > { %v10097_v24 = vmul.f32 %v15499_v18, %v10092_v21 }
0x2ea5   : > { %v13394_v50 = vpop.eup %13393  ;;  %v5644_v31 = vadd.f32 1e-05, %v5639_v44 }
0x2ea6   : > { %v10102_v42 = vadd.f32 %v15504_v56, %v10097_v24  ;;  %v10093_v41 = vmul.f32 %v13394_v50, %v15458_v14  ;;  %v5634_v63 = vpop.xlane.xlu0 %5633  ;;  %v5645_v14 = vadd.f32 1e-05, %v5640_v5  ;;  %v13396_v25 = vpop.eup %13395 }
0x2ea7   : > { %13397 = vrsqrt.f32 %v5644_v31  ;;  %v5641_v37 = vmul.f32 0.03125, %v5634_v63  ;;  %v5653_v10 = vmul.f32 %v13396_v25, %v15456_v46 }
0x2ea8   : > { %v13173_v35 = vpack.i.bf16 %v10102_v42, %v10101_v17  ;;  %v10098_v60 = vmul.f32 %v15499_v18, %v10093_v41  ;;  %13399 = vrsqrt.f32 %v5645_v14 }
0x2ea9   : > { %v5646_v47 = vadd.f32 1e-05, %v5641_v37  ;;  %v5658_v34 = vmul.f32 %v15499_v18, %v5653_v10 }
0x2eaa   : > { %13174 = vrot.lane.b32.xlu1 %v13173_v35, %s13480_s0  ;;  %v10103_v51 = vadd.f32 %v15504_v56, %v10098_v60 }
0x2eab   : > { %13401 = vrsqrt.f32 %v5646_v47  ;;  %v5663_v3 = vadd.f32 %v15504_v56, %v5658_v34 }
0x2eae   : > { %10117 = vrot.lane.b32.xlu1 %v10103_v51, %s13480_s0  ;;  %s15728_s0 = sld [smem:[#allocation24_spill]] }
0x2eb4   : > { %v13398_v54 = vpop.eup %13397  ;;  %v11135_v24 = vld [vmem:[%s15728_s0] ss:$0 sm:$0xff]  ;;  %s15729_s0 = sld [smem:[#allocation27_spill]] }
0x2eb5   : > { %v5654_v22 = vmul.f32 %v13398_v54, %v15467_v20  ;;  %v13400_v57 = vpop.eup %13399 }
0x2eb6   : > { %v5655_v13 = vmul.f32 %v13400_v57, %v15465_v2 }
0x2eb7   : > { %v5659_v29 = vmul.f32 %v15499_v18, %v5654_v22 }
0x2eb8   : > { %v13402_v27 = vpop.eup %13401  ;;  %v5660_v61 = vmul.f32 %v15499_v18, %v5655_v13 }
0x2eb9   : > { %v5664_v11 = vadd.f32 %v15504_v56, %v5659_v29  ;;  %v5656_v49 = vmul.f32 %v13402_v27, %v15475_v28 }
0x2eba   : > { %v5665_v28 = vadd.f32 %v15504_v56, %v5660_v61 }
0x2ebb   : > { %v5661_v6 = vmul.f32 %v15499_v18, %v5656_v49 }
0x2ebd   : > { %v5666_v62 = vadd.f32 %v15504_v56, %v5661_v6 }
0x2f14   : > { %v13170_v59 = vpop.permute.xlu0 %13169 }
0x2f15   : > { %v13172_v39 = vunpack.i.h.bf16 %v13170_v59  ;;  %v13171_v26 = vunpack.i.l.bf16 %v13170_v59 }
0x2f17   : > { %v10125_v46 = vsel %vm2287_vm6, %v5664_v11, %v13172_v39  ;;  %v10124_v20 = vsel %vm2287_vm6, %v5663_v3, %v13171_v26 }
0x2f18   : > { %v10137_v15 = vpack.c.bf16 %v10125_v46, %v10124_v20  ;;  %v5637_v55 = vpop.xlane.xlu1 %5636 }
0x2f19   : > { %v5642_v48 = vmul.f32 0.03125, %v5637_v55 }
0x2f1a   : > { %13046 = vmatmul.mubr.msk.bf16.vlgmr.msra.gmra.mxu1 %vm10171_vm9, %v10137_v15 }
0x2f1b   : > { %v5647_v2 = vadd.f32 1e-05, %v5642_v48  ;;  %13049 = vmatprep.mubr.msk.bf16.mxu1 %vm13479_vm0, %v13478_v0 }
0x2f1c   : > { %v13175_v36 = vpop.permute.xlu1 %13174 }
0x2f1d   : > { %13403 = vrsqrt.f32 %v5647_v2  ;;  %v13177_v58 = vunpack.i.h.bf16 %v13175_v36  ;;  %v13176_v52 = vunpack.i.l.bf16 %v13175_v36 }
0x2f1f   : > { %v10126_v53 = vsel %vm2287_vm6, %v5665_v28, %v13176_v52  ;;  %v10127_v38 = vsel %vm2287_vm6, %v5666_v62, %v13177_v58  ;;  %v13329_v58 = vld [vmem:[%s15729_s0 + $0x8] sm:$0xff]   ;;  %v13330_v52 = vld [vmem:[%s15729_s0] sm:$0xff]   ;;  %v13331_v62 = vld [vmem:[%s15730_s1 + $0x38] sm:$0xff]   ;;  %s15731_s0 = sld [smem:[#allocation25_spill]] }
0x2f20   : > { %v10138_v1 = vpack.c.bf16 %v10127_v38, %v10126_v53  ;;  %v10118_v23 = vpop.permute.xlu1 %10117  ;;  %13058 = vmatpush3.bf16.msra.mxu0 %v13329_v58  ;;  %13074 = vmatpush3.bf16.msra.mxu1 %v13331_v62  ;;  %v13332_v53 = vld [vmem:[%s15730_s1 + $0x30] sm:$0xff]   ;;  %v13333_v38 = vld [vmem:[%s15730_s1 + $0x28] sm:$0xff]  }
0x2f21   : > { %13059 = vmatprep.subr.bf16.mxu0 %v13478_v0  ;;  %13075 = vmatprep.subr.bf16.mxu1 %v13478_v0 }
0x2f22   : > { %13050 = vmatmul.mubr.msk.bf16.gmra.mxu1 %vm10171_vm9, %v10138_v1  ;;  %v13334_v1 = vld [vmem:[%s15730_s1 + $0x20] sm:$0xff]  }
0x2f23   : > { %13053 = vmatprep.mubr.msk.bf16.mxu1 %vm13479_vm0, %v13478_v0 }
0x2f24   : > { %13060 = vmatpush3.bf16.msra.mxu0 %v13330_v52  ;;  %13076 = vmatpush3.bf16.msra.mxu1 %v13332_v53 }
0x2f25   : > { %13101 = vmatprep.subr.bf16.mxu0 %v13478_v0  ;;  %13077 = vmatprep.subr.bf16.mxu1 %v13478_v0 }
0x2f28   : > { %13078 = vmatpush3.bf16.msra.mxu1 %v13333_v38 }
0x2f29   : > { %13079 = vmatprep.subr.bf16.mxu1 %v13478_v0 }
0x2f2a   : > { %v13404_v30 = vpop.eup %13403 }
0x2f2b   : > { %v5657_v45 = vmul.f32 %v13404_v30, %v15489_v9  ;;  %v13335_v30 = vld [vmem:[%s15730_s1 + $0x18] sm:$0xff]  }
0x2f2c   : > { %13080 = vmatpush3.bf16.msra.mxu1 %v13334_v1 }
0x2f2d   : > { %v5662_v12 = vmul.f32 %v15499_v18, %v5657_v45  ;;  %13081 = vmatprep.subr.bf16.mxu1 %v13478_v0  ;;  %v13336_v45 = vld [vmem:[%s15730_s1 + $0x10] sm:$0xff]  }
0x2f2f   : > { %v5667_v43 = vadd.f32 %v15504_v56, %v5662_v12 }
0x2f30   : > { %13082 = vmatpush3.bf16.msra.mxu1 %v13335_v30 }
0x2f31   : > { %v10128_v21 = vsel %vm2287_vm6, %v5667_v43, %v10118_v23  ;;  %13083 = vmatprep.subr.bf16.mxu1 %v13478_v0 }
0x2f32   : > { %v10139_v8 = vpack.c.bf16 %v10128_v21, %v10128_v21 }
0x2f34   : > { %13054 = vmatmul.mubr.msk.bf16.gmra.mxu1 %vm10171_vm9, %v10139_v8 }
0x2f35   : > { %13089 = vmatprep.mubr.msk.bf16.mxu1 %vm13479_vm0, %v13478_v0  ;;  %13084 = vmatpush3.bf16.msra.mxu1 %v13336_v45 }
0x2f36   : > { %13085 = vmatprep.subr.bf16.mxu1 %v13478_v0 }
0x2fda   : > { %v10215_v50 = vpop.f32.mrf.mxu1 }
0x2fdb   : > { %v10216_v17 = vadd.f32 %v11135_v24, %v10215_v50 }
0x2fdc   : > { %v13047_v42 = vpop.f32.mrf.mxu1 }
0x2fdd   : > { %v10239_v41 = vsel %vm2287_vm6, %v10216_v17, 0.0 }
0x2fde   : > { %10240 = vadd.xlane.f32.xlu1 %v10239_v41  ;;  %v10218_v9 = vpop.f32.mrf.mxu1 }
0x2fdf   : > { %v10219_v18 = vadd.f32 %v11135_v24, %v10218_v9 }
0x2fe0   : > { %v13048_v35 = vpop.f32.mrf.mxu1 }
0x2fe1   : > { %v10242_v56 = vsel %vm2287_vm6, %v10219_v18, 0.0 }
0x2fe2   : > { %10243 = vadd.xlane.f32.xlu0 %v10242_v56  ;;  %v10223_v60 = vpop.f32.mrf.mxu1 }
0x2fe3   : > { %v10224_v51 = vadd.f32 %v11135_v24, %v10223_v60  ;;  %v11143_v60 = vld [vmem:[%s15731_s0] ss:$0 sm:$0xff]  ;;  %s15734_s0 = sld [smem:[#allocation30_spill]] }
0x2fe4   : > { %v13051_v4 = vpop.f32.mrf.mxu1 }
0x2fe5   : > { %v10245_v33 = vsel %vm2287_vm6, %v10224_v51, 0.0 }
0x2fe6   : > { %10246 = vadd.xlane.f32.xlu0 %v10245_v33  ;;  %v10226_v32 = vpop.f32.mrf.mxu1 }
0x2fe7   : > { %v15550_v44 = vadd.f32 %v11135_v24, %v10226_v32  ;;  %v11144_v32 = vld [vmem:[%s15732_s2] ss:$0 sm:$0xff]  ;;  %s15733_s2 = sld [smem:[#allocation28_spill]] }
0x2fe8   : > { %v13052_v7 = vpop.f32.mrf.mxu1 }
0x2fe9   : > { %v10248_v40 = vsel %vm2287_vm6, %v15550_v44, 0.0 }
0x2fea   : > { %10249 = vadd.xlane.f32.xlu0 %v10248_v40 }
0x2ff4   : > { %v10231_v31 = vpop.f32.mrf.mxu1 }
0x2ff5   : > { %v15554_v63 = vadd.f32 %v11135_v24, %v10231_v31 }
0x2ff6   : > { %v13055_v5 = vpop.f32.mrf.mxu1 }
0x2ff7   : > { %v10251_v37 = vsel %vm5604_vm8, %v15554_v63, 0.0 }
0x2ff8   : > { %10252 = vadd.xlane.f32.xlu1 %v10251_v37  ;;  %v10234_v14 = vpop.f32.mrf.mxu1 }
0x2ffa   : > { %v13056_v47 = vpop.f32.mrf.mxu1 }
0x3067   : > { %v10241_v25 = vpop.xlane.xlu1 %10240 }
0x3068   : > { %v10254_v54 = vmul.f32 0.03125, %v10241_v25 }
0x306a   : > { %v15558_v10 = vsub.f32 %v10216_v17, %v10254_v54 }
0x306b   : > { %v10244_v22 = vpop.xlane.xlu0 %10243 }
0x306c   : > { %v10255_v34 = vmul.f32 0.03125, %v10244_v22  ;;  %v10264_v57 = vmul.f32 %v15558_v10, %v15558_v10 }
0x306e   : > { %v15562_v29 = vsub.f32 %v10219_v18, %v10255_v34  ;;  %v10269_v27 = vsel %vm2287_vm6, %v10264_v57, 0.0 }
0x306f   : > { %v10247_v3 = vpop.xlane.xlu0 %10246  ;;  %10270 = vadd.xlane.f32.xlu0 %v10269_v27 }
0x3070   : > { %v10256_v59 = vmul.f32 0.03125, %v10247_v3  ;;  %v10265_v13 = vmul.f32 %v15562_v29, %v15562_v29 }
0x3072   : > { %v15567_v11 = vsub.f32 %v10224_v51, %v10256_v59  ;;  %v10272_v39 = vsel %vm2287_vm6, %v10265_v13, 0.0 }
0x3073   : > { %v10250_v26 = vpop.xlane.xlu0 %10249  ;;  %10273 = vadd.xlane.f32.xlu1 %v10272_v39 }
0x3074   : > { %v10257_v49 = vmul.f32 0.03125, %v10250_v26  ;;  %v10266_v46 = vmul.f32 %v15567_v11, %v15567_v11 }
0x3076   : > { %v15573_v20 = vsub.f32 %v15550_v44, %v10257_v49  ;;  %v10275_v15 = vsel %vm2287_vm6, %v10266_v46, 0.0  ;;  %v13337_v49 = vld [vmem:[%s15730_s1 + $0x8] sm:$0xff]   ;;  %v13338_v46 = vld [vmem:[%s15730_s1] sm:$0xff]   ;;  %s11168_s1 = sshll.u32 %s15738_s16, 4 }
0x3077   : > { %10276 = vadd.xlane.f32.xlu0 %v10275_v15  ;;  %13086 = vmatpush3.bf16.msra.mxu1 %v13337_v49  ;;  %v11145_v15 = vld [vmem:[%s15733_s2] ss:$0 sm:$0xff]  ;;  %s15735_s2 = sld [smem:[#allocation2_spill]] }
0x3078   : > { %v10267_v55 = vmul.f32 %v15573_v20, %v15573_v20  ;;  %13087 = vmatprep.subr.bf16.mxu1 %v13478_v0 }
0x307a   : > { %v10278_v61 = vsel %vm2287_vm6, %v10267_v55, 0.0 }
0x307b   : > { %10279 = vadd.xlane.f32.xlu1 %v10278_v61  ;;  %13088 = vmatpush3.bf16.msra.mxu1 %v13338_v46 }
0x3081   : > { %v10253_v48 = vpop.xlane.xlu1 %10252 }
0x3082   : > { %v10258_v6 = vmul.f32 0.03125, %v10253_v48 }
0x3084   : > { %v15580_v2 = vsub.f32 %v15554_v63, %v10258_v6 }
0x3086   : > { %v10268_v28 = vmul.f32 %v15580_v2, %v15580_v2 }
0x3088   : > { %v10281_v36 = vsel %vm5604_vm8, %v10268_v28, 0.0 }
0x3089   : > { %10282 = vadd.xlane.f32.xlu0 %v10281_v36 }
0x30f8   : > { %v10271_v12 = vpop.xlane.xlu0 %10270 }
0x30f9   : > { %v10284_v43 = vmul.f32 0.03125, %v10271_v12 }
0x30fb   : > { %v10289_v23 = vadd.f32 1e-05, %v10284_v43 }
0x30fc   : > { %v10274_v21 = vpop.xlane.xlu1 %10273 }
0x30fd   : > { %13405 = vrsqrt.f32 %v10289_v23  ;;  %v10285_v8 = vmul.f32 0.03125, %v10274_v21 }
0x30ff   : > { %v10290_v24 = vadd.f32 1e-05, %v10285_v8 }
0x3100   : > { %v10277_v50 = vpop.xlane.xlu0 %10276 }
0x3101   : > { %13407 = vrsqrt.f32 %v10290_v24  ;;  %v10286_v17 = vmul.f32 0.03125, %v10277_v50 }
0x3103   : > { %v10291_v42 = vadd.f32 1e-05, %v10286_v17 }
0x3104   : > { %v10280_v41 = vpop.xlane.xlu1 %10279 }
0x3105   : > { %13409 = vrsqrt.f32 %v10291_v42  ;;  %v10287_v9 = vmul.f32 0.03125, %v10280_v41 }
0x3107   : > { %v10292_v18 = vadd.f32 1e-05, %v10287_v9  ;;  %v11151_v9 = vld [vmem:[%s15734_s0] ss:$0 sm:$0xff]  ;;  %s15736_s0 = sld [smem:[#allocation31_spill]] }
0x3109   : > { %13411 = vrsqrt.f32 %v10292_v18 }
0x310a   : > { %v13406_v35 = vpop.eup %13405 }
0x310b   : > { %v10299_v56 = vmul.f32 %v13406_v35, %v15558_v10 }
0x310d   : > { %v10310_v4 = vmul.f32 %v11143_v60, %v10299_v56 }
0x310e   : > { %v13408_v51 = vpop.eup %13407 }
0x310f   : > { %v10300_v33 = vmul.f32 %v13408_v51, %v15562_v29  ;;  %v10321_v5 = vadd.f32 %v11144_v32, %v10310_v4 }
0x3111   : > { %v10311_v7 = vmul.f32 %v11143_v60, %v10300_v33 }
0x3112   : > { %v13410_v40 = vpop.eup %13409  ;;  %v10283_v31 = vpop.xlane.xlu0 %10282 }
0x3113   : > { %v10322_v37 = vadd.f32 %v11144_v32, %v10311_v7  ;;  %v10301_v14 = vmul.f32 %v13410_v40, %v15567_v11  ;;  %v10288_v47 = vmul.f32 0.03125, %v10283_v31 }
0x3115   : > { %v10330_v25 = vpack.c.bf16 %v10322_v37, %v10321_v5  ;;  %v10293_v54 = vadd.f32 1e-05, %v10288_v47  ;;  %v10312_v10 = vmul.f32 %v11143_v60, %v10301_v14  ;;  %v13481_v37 = vmov 0  }
0x3116   : > { %v13412_v22 = vpop.eup %13411  ;;  %13178 = vset.pattern.permute.xlu1 %v13481_v37  ;;  %13179 = vset.pattern.permute.xlu0 %v13481_v37 }
0x3117   : > { %v10302_v34 = vmul.f32 %v13412_v22, %v15573_v20  ;;  %13413 = vrsqrt.f32 %v10293_v54  ;;  %13062 = vmatmul.mubr.msk.bf16.vlgmr.msra.gmra.mxu0 %vm2287_vm6, %v10330_v25  ;;  %v10323_v29 = vadd.f32 %v11144_v32, %v10312_v10 }
0x3118   : > { %13065 = vmatprep.mubr.msk.bf16.mxu0 %vm13479_vm0, %v13478_v0 }
0x3119   : > { %v10313_v57 = vmul.f32 %v11143_v60, %v10302_v34 }
0x311b   : > { %v10324_v27 = vadd.f32 %v11144_v32, %v10313_v57 }
0x311d   : > { %v10331_v3 = vpack.c.bf16 %v10324_v27, %v10323_v29  ;;  %v1526_v29 = vld [vmem:[%s15735_s2] sm:$0xff]  ;;  %v1527_v27 = vld [vmem:[%s15735_s2 + $0x8] sm:$0xf] }
0x311f   : > { %13066 = vmatmul.mubr.msk.bf16.gmra.mxu0 %vm2287_vm6, %v10331_v3  ;;  %v13339_v3 = vld [vmem:[%s13710_s27 + $0x8] sm:$0xff]  }
0x3120   : > { %13069 = vmatprep.mubr.msk.bf16.mxu0 %vm13479_vm0, %v13478_v0  ;;  %13102 = vmatpush3.bf16.msra.mxu0 %v13339_v3 }
0x3121   : > { %13103 = vmatprep.subr.bf16.mxu0 %v13478_v0 }
0x3124   : > { %v13414_v59 = vpop.eup %13413 }
0x3125   : > { %v10303_v13 = vmul.f32 %v13414_v59, %v15580_v2  ;;  %v13340_v59 = vld [vmem:[%s13710_s27] sm:$0xff]  }
0x3126   : > { %13104 = vmatpush3.bf16.msra.mxu0 %v13340_v59 }
0x3127   : > { %v10314_v11 = vmul.f32 %v11143_v60, %v10303_v13 }
0x3129   : > { %v10325_v39 = vadd.f32 %v11144_v32, %v10314_v11 }
0x312b   : > { %v10332_v26 = vpack.c.bf16 %v10325_v39, %v10325_v39 }
0x312d   : > { %13070 = vmatmul.mubr.msk.bf16.gmra.mxu0 %vm2287_vm6, %v10332_v26 }
0x312e   : > { %13105 = vmatprep.mubr.msk.bf16.mxu0 %vm13479_vm0, %v13478_v0 }
0x31d7   : > { %v10395_v20 = vpop.f32.mrf.mxu0 }
0x31d8   : > { %v10396_v48 = vadd.f32 %v11145_v15, %v10395_v20 }
0x31d9   : > { %v13063_v55 = vpop.f32.mrf.mxu0 }
0x31da   : > { %v11160_v55 = vld [vmem:[%s15736_s0] ss:$0 sm:$0xff]  ;;  %s1378_s0 = scalar_lea.vmem %s13720_s21, %s11168_s1 }
0x31db   : > { %v10398_v61 = vpop.f32.mrf.mxu0 }
0x31dc   : > { %v10399_v6 = vadd.f32 %v11145_v15, %v10398_v61 }
0x31dd   : > { %v13064_v2 = vpop.f32.mrf.mxu0 }
0x31de   : > { %v10433_v28 = vpack.c.bf16 %v10399_v6, %v10396_v48  ;;  %v11161_v6 = vld [vmem:[%s13705_s20] ss:$0 sm:$0xff] }
0x31df   : > { %v10403_v36 = vpop.f32.mrf.mxu0 }
0x31e0   : > { %13090 = vmatmul.mubr.bf16.vlgmr.msra.gmra.mxu1 %v10433_v28  ;;  %v10404_v62 = vadd.f32 %v11145_v15, %v10403_v36 }
0x31e1   : > { %v13067_v58 = vpop.f32.mrf.mxu0  ;;  %13093 = vmatprep.mubr.msk.bf16.mxu1 %vm13479_vm0, %v13478_v0 }
0x31e3   : > { %v10406_v52 = vpop.f32.mrf.mxu0 }
0x31e4   : > { %v10407_v53 = vadd.f32 %v11145_v15, %v10406_v52 }
0x31e5   : > { %v13068_v38 = vpop.f32.mrf.mxu0 }
0x31e6   : > { %v10434_v1 = vpack.c.bf16 %v10407_v53, %v10404_v62  ;;  %v11162_v62 = vld [vmem:[%s13715_s4] ss:$0 sm:$0xff] }
0x31e8   : > { %13094 = vmatmul.mubr.bf16.gmra.mxu1 %v10434_v1 }
0x31e9   : > { %13097 = vmatprep.mubr.msk.bf16.mxu1 %vm13479_vm0, %v13478_v0 }
0x31ed   : > { %v10411_v30 = vpop.f32.mrf.mxu0 }
0x31ee   : > { %v10412_v45 = vadd.f32 %v11145_v15, %v10411_v30 }
0x31ef   : > { %v13071_v12 = vpop.f32.mrf.mxu0 }
0x31f0   : > { %v10435_v43 = vpack.c.bf16 %v10412_v45, %v10412_v45 }
0x31f1   : > { %v10414_v23 = vpop.f32.mrf.mxu0 }
0x31f2   : > { %13098 = vmatmul.mubr.bf16.gmra.mxu1 %v10435_v43 }
0x31f3   : > { %v13072_v21 = vpop.f32.mrf.mxu0 }
0x32a0   : > { %v10525_v8 = vpop.f32.mrf.mxu1 }
0x32a2   : > { %v13091_v24 = vpop.f32.mrf.mxu1 }
0x32a4   : > { %v10527_v50 = vpop.f32.mrf.mxu1 }
0x32a6   : > { %v13092_v17 = vpop.f32.mrf.mxu1 }
0x32a8   : > { %v10531_v42 = vpop.f32.mrf.mxu1 }
0x32aa   : > { %v13095_v41 = vpop.f32.mrf.mxu1 }
0x32ac   : > { %v10533_v18 = vpop.f32.mrf.mxu1 }
0x32ad   : > { %v10534_v35 = vadd.f32 %v11151_v9, %v10533_v18 }
0x32ae   : > { %v13096_v56 = vpop.f32.mrf.mxu1 }
0x32af   : > { %v10544_v60 = vadd.f32 %v10534_v35, %v15550_v44 }
0x32b1   : > { %v10548_v51 = vsel %vm2287_vm6, %v10544_v60, 0.0 }
0x32b2   : > { %10549 = vadd.xlane.f32.xlu1 %v10548_v51  ;;  %v10538_v4 = vpop.f32.mrf.mxu1 }
0x32b3   : > { %v10539_v33 = vadd.f32 %v11151_v9, %v10538_v4 }
0x32b4   : > { %v13099_v32 = vpop.f32.mrf.mxu1 }
0x32b5   : > { %v10545_v7 = vadd.f32 %v10539_v33, %v15554_v63 }
0x32b6   : > { %v10541_v40 = vpop.f32.mrf.mxu1 }
0x32b7   : > { %v10551_v31 = vsel %vm5604_vm8, %v10545_v7, 0.0 }
0x32b8   : > { %10552 = vadd.xlane.f32.xlu0 %v10551_v31  ;;  %v13100_v5 = vpop.f32.mrf.mxu1 }
0x333b   : > { %v10550_v14 = vpop.xlane.xlu1 %10549 }
0x333c   : > { %v10554_v44 = vmul.f32 0.03125, %v10550_v14 }
0x333e   : > { %v10556_v47 = vsub.f32 %v10544_v60, %v10554_v44 }
0x3340   : > { %v10558_v25 = vmul.f32 %v10556_v47, %v10556_v47 }
0x3341   : > { %v10553_v54 = vpop.xlane.xlu0 %10552 }
0x3342   : > { %v10555_v22 = vmul.f32 0.03125, %v10553_v54  ;;  %v10560_v63 = vsel %vm2287_vm6, %v10558_v25, 0.0 }
0x3343   : > { %10561 = vadd.xlane.f32.xlu1 %v10560_v63 }
0x3344   : > { %v10557_v34 = vsub.f32 %v10545_v7, %v10555_v22 }
0x3346   : > { %v10559_v10 = vmul.f32 %v10557_v34, %v10557_v34 }
0x3348   : > { %v10563_v57 = vsel %vm5604_vm8, %v10559_v10, 0.0 }
0x3349   : > { %10564 = vadd.xlane.f32.xlu0 %v10563_v57 }
0x3354   : > { %1530 = vperm.xlu1 %13178, %v1526_v29  }
0x335f   : > { %1535 = vperm.xlu0 %13179, %v1527_v27  }
0x33cc   : > { %v10562_v13 = vpop.xlane.xlu1 %10561 }
0x33cd   : > { %v10566_v11 = vmul.f32 0.03125, %v10562_v13 }
0x33cf   : > { %v10568_v39 = vadd.f32 1e-05, %v10566_v11 }
0x33d0   : > { %v1531_v52 = vpop.permute.xlu1 %1530 }
0x33d1   : > { %13415 = vrsqrt.f32 %v10568_v39  ;;  %v1584_v38 = vadd.f32 %v13814_v16, %v1531_v52 }
0x33d2   : > { %v10565_v26 = vpop.xlane.xlu0 %10564 }
0x33d3   : > { %v10567_v49 = vmul.f32 0.03125, %v10565_v26 }
0x33d5   : > { %v10569_v46 = vadd.f32 1e-05, %v10567_v49 }
0x33d7   : > { %13417 = vrsqrt.f32 %v10569_v46 }
0x33da   : > { %v1536_v30 = vpop.permute.xlu0 %1535 }
0x33db   : > { %v1587_v23 = vadd.f32 %v13816_v19, %v1536_v30 }
0x33de   : > { %v13416_v20 = vpop.eup %13415 }
0x33df   : > { %v10572_v15 = vmul.f32 %v13416_v20, %v10556_v47 }
0x33e1   : > { %v10580_v48 = vmul.f32 %v11160_v55, %v10572_v15 }
0x33e3   : > { %v10588_v28 = vadd.f32 %v11161_v6, %v10580_v48 }
0x33e4   : > { %v13418_v61 = vpop.eup %13417 }
0x33e5   : > { %v10573_v0 = vmul.f32 %v13418_v61, %v10557_v34 }
0x33e7   : > { %v10581_v2 = vmul.f32 %v11160_v55, %v10573_v0 }
0x33e9   : > { %v10589_v36 = vadd.f32 %v11161_v6, %v10581_v2 }
0x33eb   : > { %v10594_v58 = vpack.c.bf16 %v10589_v36, %v10588_v28 }
0x33ed   : > { %13106 = vmatmul.mubr.msk.bf16.vlgmr.msra.gmra.mxu0 %vm2287_vm6, %v10594_v58 }
0x34ad   : > { %v10651_v53 = vpop.f32.mrf.mxu0 }
0x34ae   : > { %v10652_v1 = vadd.f32 %v11162_v62, %v10651_v53 }
0x34af   : > { %v13107_v45 = vpop.f32.mrf.mxu0 }
0x34b0   : > { %v10658_v12 = vadd.f32 %v10652_v1, %v1584_v38 }
0x34b1   : > { %v10654_v43 = vpop.f32.mrf.mxu0 }
0x34b2   : > { %10660 = vst.msk [vmem:[%s1378_s0] sm:$0xff] %vm1769_vm4, %v10658_v12  ;;  %v10655_v21 = vadd.f32 %v11162_v62, %v10654_v43 }
0x34b3   : > { %v13108_v8 = vpop.f32.mrf.mxu0 }
0x34b4   : > { %v10659_v24 = vadd.f32 %v10655_v21, %v1587_v23 }
0x34b6   : > { %10662 = vst.msk [vmem:[%s1378_s0 + $0x8] sm:$0xf] %vm10661_vm10, %v10659_v24 }
0x34b7 PF: > { %s103_s15 = sadd.s32 1, %s13430_s15  }
0x34b8   : > { %p100_p4 = scmp.ge.s32.totalorder %s103_s15, 4  }
0x34ba   :  { %102 = sbr.rel (!%p100_p4) target bundleno = 92 (0x5c), region = 280 }

</bundles_post_ra>
